<compile_context>
chip_gen: v7x
topology: tpu7x:2x2x1
jax: 0.10.0
libtpu: 0.0.40
codegen_flags: <defaults>
</compile_context>

<pallas_src>
import functools

import numpy as np
import jax
import jax.numpy as jnp
from jax import lax
from jax.experimental import pallas as pl
from jax.experimental.pallas import tpu as pltpu


# ---------------------------------------------------------------------------
# Pallas kernels
# ---------------------------------------------------------------------------
def _matmul_affine_kernel(p_ref, w_ref, s_ref, t_ref, o_ref, *, activation):
    """One whole-layer matmul: o = act((patches @ w) * scale + shift).

    p_ref: (Mblk, K) im2col patches      w_ref: (K, F) packed weights
    s_ref, t_ref: (1, F) folded BN scale / shift (incl. conv bias)
    o_ref: (Mblk, F)
    """
    y = jnp.dot(p_ref[...], w_ref[...], preferred_element_type=jnp.float32)
    y = y * s_ref[...] + t_ref[...]
    if activation == "relu":
        y = jnp.maximum(y, 0.0)
    elif activation == "sigmoid":
        y = jax.nn.sigmoid(y)
    o_ref[...] = y.astype(o_ref.dtype)


def matmul_affine(patches, w, scale, shift, activation):
    """patches: (M, K), w: (K, F), scale/shift: (1, F) -> (M, F)."""
    m, k = patches.shape
    f = w.shape[1]
    # Split M across a "parallel" grid axis when (8,128)-alignment allows; this
    # keeps both v7x TensorCores busy and is a no-op cost elsewhere.
    gm = 2 if (m % 16 == 0 and m >= 1024) else 1
    mb = m // gm
    kernel = functools.partial(_matmul_affine_kernel, activation=activation)
    return pl.pallas_call(
        kernel,
        out_shape=jax.ShapeDtypeStruct((m, f), jnp.float32),
        grid=(gm,),
        in_specs=[
            pl.BlockSpec((mb, k), lambda i: (i, 0)),
            pl.BlockSpec((k, f), lambda i: (0, 0)),
            pl.BlockSpec((1, f), lambda i: (0, 0)),
            pl.BlockSpec((1, f), lambda i: (0, 0)),
        ],
        out_specs=pl.BlockSpec((mb, f), lambda i: (i, 0)),
        compiler_params=pltpu.CompilerParams(dimension_semantics=("parallel",)),
    )(patches, w, scale, shift)


def _fc_latent_kernel(enc_ref, wfc_ref, sfc_ref, tfc_ref,
                      wmu_ref, bmu_ref, wlv_ref, blv_ref,
                      wl1_ref, sl1_ref, tl1_ref,
                      wl2_ref, sl2_ref, tl2_ref,
                      mu_ref, lv_ref, lat_ref):
    """Fused fc -> (mu, log_var) -> latent chain; all weights VMEM-resident."""
    fc = jnp.dot(enc_ref[...], wfc_ref[...], preferred_element_type=jnp.float32)
    fc = jnp.maximum(fc * sfc_ref[...] + tfc_ref[...], 0.0)
    mu = jnp.dot(fc, wmu_ref[...], preferred_element_type=jnp.float32) + bmu_ref[...]
    lv = jnp.dot(fc, wlv_ref[...], preferred_element_type=jnp.float32) + blv_ref[...]
    mu_ref[...] = mu
    lv_ref[...] = lv
    # eval-mode reparameterize: z = mu
    l1 = jnp.dot(mu, wl1_ref[...], preferred_element_type=jnp.float32)
    l1 = jnp.maximum(l1 * sl1_ref[...] + tl1_ref[...], 0.0)
    l2 = jnp.dot(l1, wl2_ref[...], preferred_element_type=jnp.float32)
    l2 = jnp.maximum(l2 * sl2_ref[...] + tl2_ref[...], 0.0)
    lat_ref[...] = l2


def fc_latent(enc, q):
    n = enc.shape[0]
    return pl.pallas_call(
        _fc_latent_kernel,
        out_shape=(jax.ShapeDtypeStruct((n, 50), jnp.float32),
                   jax.ShapeDtypeStruct((n, 50), jnp.float32),
                   jax.ShapeDtypeStruct((n, 7 * 7 * 16), jnp.float32)),
    )(enc, q["fc_w"], q["fc_s"], q["fc_t"],
      q["mu_w"], q["mu_b"], q["lv_w"], q["lv_b"],
      q["l1_w"], q["l1_s"], q["l1_t"],
      q["l2_w"], q["l2_s"], q["l2_t"])


def _conv_out_sigmoid_kernel(pt_ref, w_ref, b_ref, o_ref):
    """Final Cout=1 layer computed transposed for a lane-dense (1, M) store."""
    y = jnp.dot(w_ref[...], pt_ref[...], preferred_element_type=jnp.float32)
    o_ref[...] = jax.nn.sigmoid(y + b_ref[...])


def conv_out_sigmoid(patches_t, w_row, bias11):
    _, m = patches_t.shape
    return pl.pallas_call(
        _conv_out_sigmoid_kernel,
        out_shape=jax.ShapeDtypeStruct((1, m), jnp.float32),
    )(patches_t, w_row, bias11)


# ---------------------------------------------------------------------------
# Wrapper-side im2col / polyphase helpers (cheap XLA data movement)
# ---------------------------------------------------------------------------
def _im2col(x, ho, wo, stride):
    """x: (N, H, W, C) -> (N*Ho*Wo, 9*C) patches of a 3x3, pad=1 conv."""
    xp = jnp.pad(x, ((0, 0), (1, 1), (1, 1), (0, 0)))
    n, _, _, c = xp.shape
    taps = []
    for kh in range(3):
        for kw in range(3):
            taps.append(xp[:, kh:kh + stride * (ho - 1) + 1:stride,
                           kw:kw + stride * (wo - 1) + 1:stride, :])
    return jnp.concatenate(taps, axis=-1).reshape(n * ho * wo, 9 * c)


def _im2col_poly(x):
    """Polyphase patches for ConvTranspose2d(k=3, s=2, p=1, op=1):
    x: (N, H, W, C) -> (N*H*W, 4*C), taps (dy, dx) in {0,1}^2."""
    n, h, w, c = x.shape
    xp = jnp.pad(x, ((0, 0), (0, 1), (0, 1), (0, 0)))
    taps = [xp[:, dy:dy + h, dx:dx + w, :] for dy in (0, 1) for dx in (0, 1)]
    return jnp.concatenate(taps, axis=-1).reshape(n * h * w, 4 * c)


def _depth_to_space(r, n, h, w, cout):
    """(N*H*W, 4*Cout) polyphase result -> (N, 2H, 2W, Cout)."""
    r = r.reshape(n, h, w, 2, 2, cout)
    r = jnp.transpose(r, (0, 1, 3, 2, 4, 5))
    return r.reshape(n, 2 * h, 2 * w, cout)


# ---------------------------------------------------------------------------
# One-time parameter packing (weight re-layout, BN folding, flatten perms)
# ---------------------------------------------------------------------------
def _pack_conv(w_oihw):
    # Conv2d (Cout, Cin, 3, 3) -> im2col weight (9*Cin, Cout); row=(kh*3+kw)*Cin+ci
    cout, cin = w_oihw.shape[0], w_oihw.shape[1]
    return jnp.transpose(w_oihw, (2, 3, 1, 0)).reshape(9 * cin, cout)


def _pack_convt_s1(w_iohw):
    # ConvTranspose2d stride-1 (Cin, Cout, 3, 3) -> equivalent (flipped) conv
    # weight in im2col layout (9*Cin, Cout).
    cin, cout = w_iohw.shape[0], w_iohw.shape[1]
    w = jnp.flip(w_iohw, axis=(2, 3))
    return jnp.transpose(w, (2, 3, 0, 1)).reshape(9 * cin, cout)


def _pack_convt_poly(w_iohw):
    # ConvTranspose2d(k=3, s=2, p=1, op=1) -> polyphase weight (4*Cin, 4*Cout):
    # row = tap(dy,dx)*Cin + ci, col = parity(py,px)*Cout + co.
    cin, cout = w_iohw.shape[0], w_iohw.shape[1]
    rows = []
    for dy in (0, 1):
        for dx in (0, 1):
            cols = []
            for py in (0, 1):
                for px in (0, 1):
                    ky = 1 - 2 * dy + py
                    kx = 1 - 2 * dx + px
                    if 0 <= ky <= 2 and 0 <= kx <= 2:
                        cols.append(w_iohw[:, :, ky, kx])
                    else:
                        cols.append(jnp.zeros((cin, cout), w_iohw.dtype))
            rows.append(jnp.concatenate(cols, axis=1))
    return jnp.concatenate(rows, axis=0)


def pack_params(p, eps=1e-5):
    def bn_fold(bn, bias):
        s = p[f"{bn}_gamma"] / jnp.sqrt(p[f"{bn}_rv"] + eps)
        t = p[f"{bn}_beta"] + s * (bias - p[f"{bn}_rm"])
        return s, t

    def row(v):
        return jnp.asarray(v, jnp.float32).reshape(1, -1)

    q = {}
    # encoder convs
    for i, (cv, bn) in enumerate(
            [("econv1", "ebn1"), ("econv2", "ebn2"),
             ("econv3", "ebn3"), ("econv4", "ebn4")], start=1):
        s, t = bn_fold(bn, p[f"{cv}_b"])
        q[f"e{i}_w"] = _pack_conv(p[f"{cv}_w"])
        q[f"e{i}_s"], q[f"e{i}_t"] = row(s), row(t)

    # fc / heads / latent.  PyTorch flattens NCHW (c,h,w); our activations are
    # NHWC-flat -> fold the permutation into the weight rows / columns once.
    perm = np.transpose(np.arange(784, dtype=np.int32).reshape(16, 7, 7),
                        (1, 2, 0)).reshape(-1)
    s, t = bn_fold("fcbn", p["fc_b"])
    q["fc_w"] = jnp.asarray(p["fc_w"]).T[perm]
    q["fc_s"], q["fc_t"] = row(s), row(t)
    q["mu_w"], q["mu_b"] = p["fc_mu_w"].T, row(p["fc_mu_b"])
    q["lv_w"], q["lv_b"] = p["fc_log_var_w"].T, row(p["fc_log_var_b"])
    s, t = bn_fold("lbn1", p["lat1_b"])
    q["l1_w"], q["l1_s"], q["l1_t"] = p["lat1_w"].T, row(s), row(t)
    s, t = bn_fold("lbn2", p["lat2_b"])
    q["l2_w"] = jnp.asarray(p["lat2_w"]).T[:, perm]
    q["l2_s"], q["l2_t"] = row(s[perm]), row(t[perm])

    # decoder
    s, t = bn_fold("dbn1", p["dconv1_b"])
    q["d1_w"] = _pack_convt_poly(p["dconv1_w"])
    q["d1_s"], q["d1_t"] = row(jnp.tile(s, 4)), row(jnp.tile(t, 4))
    s, t = bn_fold("dbn2", p["dconv2_b"])
    q["d2_w"], q["d2_s"], q["d2_t"] = _pack_convt_s1(p["dconv2_w"]), row(s), row(t)
    s, t = bn_fold("dbn3", p["dconv3_b"])
    q["d3_w"] = _pack_convt_poly(p["dconv3_w"])
    q["d3_s"], q["d3_t"] = row(jnp.tile(s, 4)), row(jnp.tile(t, 4))
    q["d4_w"] = _pack_convt_s1(p["dconv4_w"]).T           # (1, 144)
    q["d4_b"] = row(p["dconv4_b"])                        # (1, 1)
    return q


# ---------------------------------------------------------------------------
# Parameters (deterministic synthetic init, PyTorch layouts)
# ---------------------------------------------------------------------------
def init_params(key):
    keys = jax.random.split(key, 100)
    idx = [0]

    def u(shape, bound):
        k = keys[idx[0]]
        idx[0] += 1
        return jax.random.uniform(k, shape, jnp.float32, -bound, bound)

    p = {}

    def add_conv(name, cin, cout):       # nn.Conv2d weight: OIHW
        b = 1.0 / float(np.sqrt(cin * 9))
        p[f"{name}_w"] = u((cout, cin, 3, 3), b)
        p[f"{name}_b"] = u((cout,), b)

    def add_convt(name, cin, cout):      # nn.ConvTranspose2d weight: IOHW
        b = 1.0 / float(np.sqrt(cout * 9))
        p[f"{name}_w"] = u((cin, cout, 3, 3), b)
        p[f"{name}_b"] = u((cout,), b)

    def add_linear(name, fin, fout):     # nn.Linear weight: (out, in)
        b = 1.0 / float(np.sqrt(fin))
        p[f"{name}_w"] = u((fout, fin), b)
        p[f"{name}_b"] = u((fout,), b)

    def add_bn(name, c):
        p[f"{name}_gamma"] = 1.0 + 0.1 * u((c,), 1.0)
        p[f"{name}_beta"] = 0.1 * u((c,), 1.0)
        p[f"{name}_rm"] = 0.1 * u((c,), 1.0)
        p[f"{name}_rv"] = 1.0 + 0.1 * u((c,), 1.0)

    # encoder
    add_conv("econv1", 1, 16);  add_bn("ebn1", 16)
    add_conv("econv2", 16, 32); add_bn("ebn2", 32)
    add_conv("econv3", 32, 64); add_bn("ebn3", 64)
    add_conv("econv4", 64, 16); add_bn("ebn4", 16)
    # fc / heads / latent
    add_linear("fc", 7 * 7 * 16, 50); add_bn("fcbn", 50)
    add_linear("fc_mu", 50, 50)
    add_linear("fc_log_var", 50, 50)
    add_linear("lat1", 50, 50);  add_bn("lbn1", 50)
    add_linear("lat2", 50, 7 * 7 * 16); add_bn("lbn2", 7 * 7 * 16)
    # decoder
    add_convt("dconv1", 16, 64); add_bn("dbn1", 64)
    add_convt("dconv2", 64, 32); add_bn("dbn2", 32)
    add_convt("dconv3", 32, 16); add_bn("dbn3", 16)
    add_convt("dconv4", 16, 1)
    return p


# ---------------------------------------------------------------------------
# Forward pass (Pallas path, packed params)
# ---------------------------------------------------------------------------
def vae_forward(q, x_nchw):
    n = x_nchw.shape[0]
    x = x_nchw.reshape(n, 28, 28, 1)          # NCHW with C=1 -> NHWC (free)

    # ----- encoder -----
    h = matmul_affine(_im2col(x, 28, 28, 1), q["e1_w"], q["e1_s"], q["e1_t"], "relu")
    h = h.reshape(n, 28, 28, 16)
    h = matmul_affine(_im2col(h, 14, 14, 2), q["e2_w"], q["e2_s"], q["e2_t"], "relu")
    h = h.reshape(n, 14, 14, 32)
    h = matmul_affine(_im2col(h, 14, 14, 1), q["e3_w"], q["e3_s"], q["e3_t"], "relu")
    h = h.reshape(n, 14, 14, 64)
    h = matmul_affine(_im2col(h, 7, 7, 2), q["e4_w"], q["e4_s"], q["e4_t"], "relu")

    enc = h.reshape(n, 7 * 7 * 16)            # NHWC-flat; fc weights pre-permuted

    # ----- fused fc -> (mu, log_var) -> latent (one pallas_call) -----
    mu, log_var, lat = fc_latent(enc, q)
    lat = lat.reshape(n, 7, 7, 16)            # columns pre-permuted to NHWC order

    # ----- decoder -----
    d = matmul_affine(_im2col_poly(lat), q["d1_w"], q["d1_s"], q["d1_t"], "relu")
    d = _depth_to_space(d, n, 7, 7, 64)                                      # (n,14,14,64)
    d = matmul_affine(_im2col(d, 14, 14, 1), q["d2_w"], q["d2_s"], q["d2_t"], "relu")
    d = d.reshape(n, 14, 14, 32)
    d = matmul_affine(_im2col_poly(d), q["d3_w"], q["d3_s"], q["d3_t"], "relu")
    d = _depth_to_space(d, n, 14, 14, 16)                                    # (n,28,28,16)
    out = conv_out_sigmoid(_im2col(d, 28, 28, 1).T, q["d4_w"], q["d4_b"])    # (1, n*784)
    out = out.reshape(n, 1, 28, 28)
    return out, mu, log_var


# ---------------------------------------------------------------------------
# Pure-JAX (XLA) reference for validation
# ---------------------------------------------------------------------------
def ref_forward(params, x):
    p = params
    eps = 1e-5

    def bn(v, name):
        shape = (1, -1) + (1,) * (v.ndim - 2)
        g = p[f"{name}_gamma"].reshape(shape)
        b = p[f"{name}_beta"].reshape(shape)
        rm = p[f"{name}_rm"].reshape(shape)
        rv = p[f"{name}_rv"].reshape(shape)
        return (v - rm) / jnp.sqrt(rv + eps) * g + b

    def conv(v, w, b, stride):
        y = lax.conv_general_dilated(v, w, (stride, stride), ((1, 1), (1, 1)),
                                     dimension_numbers=("NCHW", "OIHW", "NCHW"))
        return y + b.reshape(1, -1, 1, 1)

    def convt(v, w_iohw, b, stride, outpad):
        w = jnp.transpose(jnp.flip(w_iohw, (2, 3)), (1, 0, 2, 3))  # -> OIHW
        pad = (3 - 1 - 1, 3 - 1 - 1 + outpad)
        y = lax.conv_general_dilated(v, w, (1, 1), (pad, pad),
                                     lhs_dilation=(stride, stride),
                                     dimension_numbers=("NCHW", "OIHW", "NCHW"))
        return y + b.reshape(1, -1, 1, 1)

    relu = jax.nn.relu
    n = x.shape[0]
    h = relu(bn(conv(x, p["econv1_w"], p["econv1_b"], 1), "ebn1"))
    h = relu(bn(conv(h, p["econv2_w"], p["econv2_b"], 2), "ebn2"))
    h = relu(bn(conv(h, p["econv3_w"], p["econv3_b"], 1), "ebn3"))
    h = relu(bn(conv(h, p["econv4_w"], p["econv4_b"], 2), "ebn4"))
    enc = h.reshape(n, 7 * 7 * 16)
    fc = relu(bn(enc @ p["fc_w"].T + p["fc_b"], "fcbn"))
    mu = fc @ p["fc_mu_w"].T + p["fc_mu_b"]
    log_var = fc @ p["fc_log_var_w"].T + p["fc_log_var_b"]
    z = mu
    l = relu(bn(z @ p["lat1_w"].T + p["lat1_b"], "lbn1"))
    l = relu(bn(l @ p["lat2_w"].T + p["lat2_b"], "lbn2"))
    l = l.reshape(n, 16, 7, 7)
    d = relu(bn(convt(l, p["dconv1_w"], p["dconv1_b"], 2, 1), "dbn1"))
    d = relu(bn(convt(d, p["dconv2_w"], p["dconv2_b"], 1, 0), "dbn2"))
    d = relu(bn(convt(d, p["dconv3_w"], p["dconv3_b"], 2, 1), "dbn3"))
    d = jax.nn.sigmoid(convt(d, p["dconv4_w"], p["dconv4_b"], 1, 0))
    return d.reshape(n, 1, 28, 28), mu, log_var


# ---------------------------------------------------------------------------
if __name__ == "__main__":
    key = jax.random.PRNGKey(0)
    pkey, xkey = jax.random.split(key)
    params = init_params(pkey)
    packed = pack_params(params)              # one-time weight packing (hoisted)
    x = jax.random.normal(xkey, (2, 1, 28, 28), jnp.float32)  # NCHW, like PyTorch

    fwd = jax.jit(vae_forward)
    out, mu, log_var = fwd(packed, x)
    jax.block_until_ready((out, mu, log_var))

    assert out.shape == (2, 1, 28, 28)
    assert mu.shape == (2, 50) and log_var.shape == (2, 50)

    # f32 end-to-end -> tightened tolerances vs a HIGHEST-precision XLA reference.
    with jax.default_matmul_precision("highest"):
        ref_out, ref_mu, ref_lv = jax.jit(ref_forward)(params, x)
    np.testing.assert_allclose(np.asarray(out), np.asarray(ref_out), rtol=5e-3, atol=3e-3)
    np.testing.assert_allclose(np.asarray(mu), np.asarray(ref_mu), rtol=5e-3, atol=3e-3)
    np.testing.assert_allclose(np.asarray(log_var), np.asarray(ref_lv), rtol=5e-3, atol=3e-3)

    print("KERNEL_OK")
</pallas_src>

<mosaic_0001>
module attributes {stable_mosaic.version = 11 : i64} {
  func.func @_matmul_affine_kernel(%arg0: i32, %arg1: memref<784x9xf32, #tpu.memory_space<vmem>>, %arg2: memref<9x16xf32, #tpu.memory_space<vmem>>, %arg3: memref<1x16xf32, #tpu.memory_space<vmem>>, %arg4: memref<1x16xf32, #tpu.memory_space<vmem>>, %arg5: memref<784x16xf32, #tpu.memory_space<vmem>>) attributes {dimension_semantics = [#tpu.dimension_semantics<parallel>], iteration_bounds = array<i64: 2>, scalar_prefetch = 0 : i64, scratch_operands = 0 : i64, tpu.core_type = #tpu.core_type<tc>, window_params = [{transform_indices = @transform_0, window_bounds = array<i64: 784, 9>}, {pipeline_mode = #tpu.pipeline_mode<synchronous>, transform_indices = @transform_1, window_bounds = array<i64: 9, 16>}, {pipeline_mode = #tpu.pipeline_mode<synchronous>, transform_indices = @transform_2, window_bounds = array<i64: 1, 16>}, {pipeline_mode = #tpu.pipeline_mode<synchronous>, transform_indices = @transform_3, window_bounds = array<i64: 1, 16>}, {transform_indices = @transform_4, window_bounds = array<i64: 784, 16>}]} {
    %c0 = arith.constant 0 : index
    %c0_0 = arith.constant 0 : index
    %0 = vector.load %arg1[%c0, %c0_0] : memref<784x9xf32, #tpu.memory_space<vmem>>, vector<784x9xf32>
    %c0_1 = arith.constant 0 : index
    %c0_2 = arith.constant 0 : index
    %1 = vector.load %arg2[%c0_1, %c0_2] : memref<9x16xf32, #tpu.memory_space<vmem>>, vector<9x16xf32>
    %cst = arith.constant dense<0.000000e+00> : vector<784x16xf32>
    %2 = tpu.matmul %0, %1, %cst {dimension_numbers = #tpu.dot_dimension_numbers<[1], [0], [0], [1], [0, 0, 1, 1], [], []>} : vector<784x9xf32>, vector<9x16xf32>, vector<784x16xf32> -> vector<784x16xf32>
    %c0_3 = arith.constant 0 : index
    %c0_4 = arith.constant 0 : index
    %3 = vector.load %arg3[%c0_3, %c0_4] : memref<1x16xf32, #tpu.memory_space<vmem>>, vector<1x16xf32>
    %4 = vector.broadcast %3 : vector<1x16xf32> to vector<784x16xf32>
    %5 = arith.mulf %2, %4 : vector<784x16xf32>
    %c0_5 = arith.constant 0 : index
    %c0_6 = arith.constant 0 : index
    %6 = vector.load %arg4[%c0_5, %c0_6] : memref<1x16xf32, #tpu.memory_space<vmem>>, vector<1x16xf32>
    %7 = vector.broadcast %6 : vector<1x16xf32> to vector<784x16xf32>
    %8 = arith.addf %5, %7 : vector<784x16xf32>
    %cst_7 = arith.constant 0.000000e+00 : f32
    %9 = vector.broadcast %cst_7 : f32 to vector<784x16xf32>
    %10 = arith.maximumf %8, %9 : vector<784x16xf32>
    %c0_8 = arith.constant 0 : index
    %c0_9 = arith.constant 0 : index
    %11 = vector.load %arg5[%c0_8, %c0_9] : memref<784x16xf32, #tpu.memory_space<vmem>>, vector<784x16xf32>
    tpu.vector_store %arg5[%c0_8, %c0_9], %10 {strides = array<i32>} : memref<784x16xf32, #tpu.memory_space<vmem>>, vector<784x16xf32>,
    return
  }
  func.func @transform_0(%arg0: i32) -> (i32, i32) {
    %c0_i32 = arith.constant 0 : i32
    %c0_i32_0 = arith.constant 0 : i32
    return %arg0, %c0_i32 : i32, i32
  }
  func.func @transform_1(%arg0: i32) -> (i32, i32) {
    %c0_i32 = arith.constant 0 : i32
    %c0_i32_0 = arith.constant 0 : i32
    %c0_i32_1 = arith.constant 0 : i32
    return %c0_i32, %c0_i32_0 : i32, i32
  }
  func.func @transform_2(%arg0: i32) -> (i32, i32) {
    %c0_i32 = arith.constant 0 : i32
    %c0_i32_0 = arith.constant 0 : i32
    %c0_i32_1 = arith.constant 0 : i32
    return %c0_i32, %c0_i32_0 : i32, i32
  }
  func.func @transform_3(%arg0: i32) -> (i32, i32) {
    %c0_i32 = arith.constant 0 : i32
    %c0_i32_0 = arith.constant 0 : i32
    %c0_i32_1 = arith.constant 0 : i32
    return %c0_i32, %c0_i32_0 : i32, i32
  }
  func.func @transform_4(%arg0: i32) -> (i32, i32) {
    %c0_i32 = arith.constant 0 : i32
    %c0_i32_0 = arith.constant 0 : i32
    return %arg0, %c0_i32 : i32, i32
  }
}

module attributes {stable_mosaic.version = 11 : i64} {
  func.func @_matmul_affine_kernel(%arg0: i32, %arg1: memref<392x144xf32, #tpu.memory_space<vmem>>, %arg2: memref<144x32xf32, #tpu.memory_space<vmem>>, %arg3: memref<1x32xf32, #tpu.memory_space<vmem>>, %arg4: memref<1x32xf32, #tpu.memory_space<vmem>>, %arg5: memref<392x32xf32, #tpu.memory_space<vmem>>) attributes {dimension_semantics = [#tpu.dimension_semantics<parallel>], iteration_bounds = array<i64: 1>, scalar_prefetch = 0 : i64, scratch_operands = 0 : i64, tpu.core_type = #tpu.core_type<tc>, window_params = [{transform_indices = @transform_0, window_bounds = array<i64: 392, 144>}, {pipeline_mode = #tpu.pipeline_mode<synchronous>, transform_indices = @transform_1, window_bounds = array<i64: 144, 32>}, {pipeline_mode = #tpu.pipeline_mode<synchronous>, transform_indices = @transform_2, window_bounds = array<i64: 1, 32>}, {pipeline_mode = #tpu.pipeline_mode<synchronous>, transform_indices = @transform_3, window_bounds = array<i64: 1, 32>}, {transform_indices = @transform_4, window_bounds = array<i64: 392, 32>}]} {
    %c0 = arith.constant 0 : index
    %c0_0 = arith.constant 0 : index
    %0 = vector.load %arg1[%c0, %c0_0] : memref<392x144xf32, #tpu.memory_space<vmem>>, vector<392x144xf32>
    %c0_1 = arith.constant 0 : index
    %c0_2 = arith.constant 0 : index
    %1 = vector.load %arg2[%c0_1, %c0_2] : memref<144x32xf32, #tpu.memory_space<vmem>>, vector<144x32xf32>
    %cst = arith.constant dense<0.000000e+00> : vector<392x32xf32>
    %2 = tpu.matmul %0, %1, %cst {dimension_numbers = #tpu.dot_dimension_numbers<[1], [0], [0], [1], [0, 0, 1, 1], [], []>} : vector<392x144xf32>, vector<144x32xf32>, vector<392x32xf32> -> vector<392x32xf32>
    %c0_3 = arith.constant 0 : index
    %c0_4 = arith.constant 0 : index
    %3 = vector.load %arg3[%c0_3, %c0_4] : memref<1x32xf32, #tpu.memory_space<vmem>>, vector<1x32xf32>
    %4 = vector.broadcast %3 : vector<1x32xf32> to vector<392x32xf32>
    %5 = arith.mulf %2, %4 : vector<392x32xf32>
    %c0_5 = arith.constant 0 : index
    %c0_6 = arith.constant 0 : index
    %6 = vector.load %arg4[%c0_5, %c0_6] : memref<1x32xf32, #tpu.memory_space<vmem>>, vector<1x32xf32>
    %7 = vector.broadcast %6 : vector<1x32xf32> to vector<392x32xf32>
    %8 = arith.addf %5, %7 : vector<392x32xf32>
    %cst_7 = arith.constant 0.000000e+00 : f32
    %9 = vector.broadcast %cst_7 : f32 to vector<392x32xf32>
    %10 = arith.maximumf %8, %9 : vector<392x32xf32>
    %c0_8 = arith.constant 0 : index
    %c0_9 = arith.constant 0 : index
    %11 = vector.load %arg5[%c0_8, %c0_9] : memref<392x32xf32, #tpu.memory_space<vmem>>, vector<392x32xf32>
    tpu.vector_store %arg5[%c0_8, %c0_9], %10 {strides = array<i32>} : memref<392x32xf32, #tpu.memory_space<vmem>>, vector<392x32xf32>,
    return
  }
  func.func @transform_0(%arg0: i32) -> (i32, i32) {
    %c0_i32 = arith.constant 0 : i32
    %c0_i32_0 = arith.constant 0 : i32
    return %arg0, %c0_i32 : i32, i32
  }
  func.func @transform_1(%arg0: i32) -> (i32, i32) {
    %c0_i32 = arith.constant 0 : i32
    %c0_i32_0 = arith.constant 0 : i32
    %c0_i32_1 = arith.constant 0 : i32
    return %c0_i32, %c0_i32_0 : i32, i32
  }
  func.func @transform_2(%arg0: i32) -> (i32, i32) {
    %c0_i32 = arith.constant 0 : i32
    %c0_i32_0 = arith.constant 0 : i32
    %c0_i32_1 = arith.constant 0 : i32
    return %c0_i32, %c0_i32_0 : i32, i32
  }
  func.func @transform_3(%arg0: i32) -> (i32, i32) {
    %c0_i32 = arith.constant 0 : i32
    %c0_i32_0 = arith.constant 0 : i32
    %c0_i32_1 = arith.constant 0 : i32
    return %c0_i32, %c0_i32_0 : i32, i32
  }
  func.func @transform_4(%arg0: i32) -> (i32, i32) {
    %c0_i32 = arith.constant 0 : i32
    %c0_i32_0 = arith.constant 0 : i32
    return %arg0, %c0_i32 : i32, i32
  }
}

module attributes {stable_mosaic.version = 11 : i64} {
  func.func @_matmul_affine_kernel(%arg0: i32, %arg1: memref<392x288xf32, #tpu.memory_space<vmem>>, %arg2: memref<288x64xf32, #tpu.memory_space<vmem>>, %arg3: memref<1x64xf32, #tpu.memory_space<vmem>>, %arg4: memref<1x64xf32, #tpu.memory_space<vmem>>, %arg5: memref<392x64xf32, #tpu.memory_space<vmem>>) attributes {dimension_semantics = [#tpu.dimension_semantics<parallel>], iteration_bounds = array<i64: 1>, scalar_prefetch = 0 : i64, scratch_operands = 0 : i64, tpu.core_type = #tpu.core_type<tc>, window_params = [{transform_indices = @transform_0, window_bounds = array<i64: 392, 288>}, {pipeline_mode = #tpu.pipeline_mode<synchronous>, transform_indices = @transform_1, window_bounds = array<i64: 288, 64>}, {pipeline_mode = #tpu.pipeline_mode<synchronous>, transform_indices = @transform_2, window_bounds = array<i64: 1, 64>}, {pipeline_mode = #tpu.pipeline_mode<synchronous>, transform_indices = @transform_3, window_bounds = array<i64: 1, 64>}, {transform_indices = @transform_4, window_bounds = array<i64: 392, 64>}]} {
    %c0 = arith.constant 0 : index
    %c0_0 = arith.constant 0 : index
    %0 = vector.load %arg1[%c0, %c0_0] : memref<392x288xf32, #tpu.memory_space<vmem>>, vector<392x288xf32>
    %c0_1 = arith.constant 0 : index
    %c0_2 = arith.constant 0 : index
    %1 = vector.load %arg2[%c0_1, %c0_2] : memref<288x64xf32, #tpu.memory_space<vmem>>, vector<288x64xf32>
    %cst = arith.constant dense<0.000000e+00> : vector<392x64xf32>
    %2 = tpu.matmul %0, %1, %cst {dimension_numbers = #tpu.dot_dimension_numbers<[1], [0], [0], [1], [0, 0, 1, 1], [], []>} : vector<392x288xf32>, vector<288x64xf32>, vector<392x64xf32> -> vector<392x64xf32>
    %c0_3 = arith.constant 0 : index
    %c0_4 = arith.constant 0 : index
    %3 = vector.load %arg3[%c0_3, %c0_4] : memref<1x64xf32, #tpu.memory_space<vmem>>, vector<1x64xf32>
    %4 = vector.broadcast %3 : vector<1x64xf32> to vector<392x64xf32>
    %5 = arith.mulf %2, %4 : vector<392x64xf32>
    %c0_5 = arith.constant 0 : index
    %c0_6 = arith.constant 0 : index
    %6 = vector.load %arg4[%c0_5, %c0_6] : memref<1x64xf32, #tpu.memory_space<vmem>>, vector<1x64xf32>
    %7 = vector.broadcast %6 : vector<1x64xf32> to vector<392x64xf32>
    %8 = arith.addf %5, %7 : vector<392x64xf32>
    %cst_7 = arith.constant 0.000000e+00 : f32
    %9 = vector.broadcast %cst_7 : f32 to vector<392x64xf32>
    %10 = arith.maximumf %8, %9 : vector<392x64xf32>
    %c0_8 = arith.constant 0 : index
    %c0_9 = arith.constant 0 : index
    %11 = vector.load %arg5[%c0_8, %c0_9] : memref<392x64xf32, #tpu.memory_space<vmem>>, vector<392x64xf32>
    tpu.vector_store %arg5[%c0_8, %c0_9], %10 {strides = array<i32>} : memref<392x64xf32, #tpu.memory_space<vmem>>, vector<392x64xf32>,
    return
  }
  func.func @transform_0(%arg0: i32) -> (i32, i32) {
    %c0_i32 = arith.constant 0 : i32
    %c0_i32_0 = arith.constant 0 : i32
    return %arg0, %c0_i32 : i32, i32
  }
  func.func @transform_1(%arg0: i32) -> (i32, i32) {
    %c0_i32 = arith.constant 0 : i32
    %c0_i32_0 = arith.constant 0 : i32
    %c0_i32_1 = arith.constant 0 : i32
    return %c0_i32, %c0_i32_0 : i32, i32
  }
  func.func @transform_2(%arg0: i32) -> (i32, i32) {
    %c0_i32 = arith.constant 0 : i32
    %c0_i32_0 = arith.constant 0 : i32
    %c0_i32_1 = arith.constant 0 : i32
    return %c0_i32, %c0_i32_0 : i32, i32
  }
  func.func @transform_3(%arg0: i32) -> (i32, i32) {
    %c0_i32 = arith.constant 0 : i32
    %c0_i32_0 = arith.constant 0 : i32
    %c0_i32_1 = arith.constant 0 : i32
    return %c0_i32, %c0_i32_0 : i32, i32
  }
  func.func @transform_4(%arg0: i32) -> (i32, i32) {
    %c0_i32 = arith.constant 0 : i32
    %c0_i32_0 = arith.constant 0 : i32
    return %arg0, %c0_i32 : i32, i32
  }
}

module attributes {stable_mosaic.version = 11 : i64} {
  func.func @_matmul_affine_kernel(%arg0: i32, %arg1: memref<98x576xf32, #tpu.memory_space<vmem>>, %arg2: memref<576x16xf32, #tpu.memory_space<vmem>>, %arg3: memref<1x16xf32, #tpu.memory_space<vmem>>, %arg4: memref<1x16xf32, #tpu.memory_space<vmem>>, %arg5: memref<98x16xf32, #tpu.memory_space<vmem>>) attributes {dimension_semantics = [#tpu.dimension_semantics<parallel>], iteration_bounds = array<i64: 1>, scalar_prefetch = 0 : i64, scratch_operands = 0 : i64, tpu.core_type = #tpu.core_type<tc>, window_params = [{transform_indices = @transform_0, window_bounds = array<i64: 98, 576>}, {pipeline_mode = #tpu.pipeline_mode<synchronous>, transform_indices = @transform_1, window_bounds = array<i64: 576, 16>}, {pipeline_mode = #tpu.pipeline_mode<synchronous>, transform_indices = @transform_2, window_bounds = array<i64: 1, 16>}, {pipeline_mode = #tpu.pipeline_mode<synchronous>, transform_indices = @transform_3, window_bounds = array<i64: 1, 16>}, {transform_indices = @transform_4, window_bounds = array<i64: 98, 16>}]} {
    %c0 = arith.constant 0 : index
    %c0_0 = arith.constant 0 : index
    %0 = vector.load %arg1[%c0, %c0_0] : memref<98x576xf32, #tpu.memory_space<vmem>>, vector<98x576xf32>
    %c0_1 = arith.constant 0 : index
    %c0_2 = arith.constant 0 : index
    %1 = vector.load %arg2[%c0_1, %c0_2] : memref<576x16xf32, #tpu.memory_space<vmem>>, vector<576x16xf32>
    %cst = arith.constant dense<0.000000e+00> : vector<98x16xf32>
    %2 = tpu.matmul %0, %1, %cst {dimension_numbers = #tpu.dot_dimension_numbers<[1], [0], [0], [1], [0, 0, 1, 1], [], []>} : vector<98x576xf32>, vector<576x16xf32>, vector<98x16xf32> -> vector<98x16xf32>
    %c0_3 = arith.constant 0 : index
    %c0_4 = arith.constant 0 : index
    %3 = vector.load %arg3[%c0_3, %c0_4] : memref<1x16xf32, #tpu.memory_space<vmem>>, vector<1x16xf32>
    %4 = vector.broadcast %3 : vector<1x16xf32> to vector<98x16xf32>
    %5 = arith.mulf %2, %4 : vector<98x16xf32>
    %c0_5 = arith.constant 0 : index
    %c0_6 = arith.constant 0 : index
    %6 = vector.load %arg4[%c0_5, %c0_6] : memref<1x16xf32, #tpu.memory_space<vmem>>, vector<1x16xf32>
    %7 = vector.broadcast %6 : vector<1x16xf32> to vector<98x16xf32>
    %8 = arith.addf %5, %7 : vector<98x16xf32>
    %cst_7 = arith.constant 0.000000e+00 : f32
    %9 = vector.broadcast %cst_7 : f32 to vector<98x16xf32>
    %10 = arith.maximumf %8, %9 : vector<98x16xf32>
    %c0_8 = arith.constant 0 : index
    %c0_9 = arith.constant 0 : index
    %11 = vector.load %arg5[%c0_8, %c0_9] : memref<98x16xf32, #tpu.memory_space<vmem>>, vector<98x16xf32>
    tpu.vector_store %arg5[%c0_8, %c0_9], %10 {strides = array<i32>} : memref<98x16xf32, #tpu.memory_space<vmem>>, vector<98x16xf32>,
    return
  }
  func.func @transform_0(%arg0: i32) -> (i32, i32) {
    %c0_i32 = arith.constant 0 : i32
    %c0_i32_0 = arith.constant 0 : i32
    return %arg0, %c0_i32 : i32, i32
  }
  func.func @transform_1(%arg0: i32) -> (i32, i32) {
    %c0_i32 = arith.constant 0 : i32
    %c0_i32_0 = arith.constant 0 : i32
    %c0_i32_1 = arith.constant 0 : i32
    return %c0_i32, %c0_i32_0 : i32, i32
  }
  func.func @transform_2(%arg0: i32) -> (i32, i32) {
    %c0_i32 = arith.constant 0 : i32
    %c0_i32_0 = arith.constant 0 : i32
    %c0_i32_1 = arith.constant 0 : i32
    return %c0_i32, %c0_i32_0 : i32, i32
  }
  func.func @transform_3(%arg0: i32) -> (i32, i32) {
    %c0_i32 = arith.constant 0 : i32
    %c0_i32_0 = arith.constant 0 : i32
    %c0_i32_1 = arith.constant 0 : i32
    return %c0_i32, %c0_i32_0 : i32, i32
  }
  func.func @transform_4(%arg0: i32) -> (i32, i32) {
    %c0_i32 = arith.constant 0 : i32
    %c0_i32_0 = arith.constant 0 : i32
    return %arg0, %c0_i32 : i32, i32
  }
}

module attributes {stable_mosaic.version = 11 : i64} {
  func.func @_fc_latent_kernel(%arg0: memref<2x784xf32, #tpu.memory_space<vmem>>, %arg1: memref<784x50xf32, #tpu.memory_space<vmem>>, %arg2: memref<1x50xf32, #tpu.memory_space<vmem>>, %arg3: memref<1x50xf32, #tpu.memory_space<vmem>>, %arg4: memref<50x50xf32, #tpu.memory_space<vmem>>, %arg5: memref<1x50xf32, #tpu.memory_space<vmem>>, %arg6: memref<50x50xf32, #tpu.memory_space<vmem>>, %arg7: memref<1x50xf32, #tpu.memory_space<vmem>>, %arg8: memref<50x50xf32, #tpu.memory_space<vmem>>, %arg9: memref<1x50xf32, #tpu.memory_space<vmem>>, %arg10: memref<1x50xf32, #tpu.memory_space<vmem>>, %arg11: memref<50x784xf32, #tpu.memory_space<vmem>>, %arg12: memref<1x784xf32, #tpu.memory_space<vmem>>, %arg13: memref<1x784xf32, #tpu.memory_space<vmem>>, %arg14: memref<2x50xf32, #tpu.memory_space<vmem>>, %arg15: memref<2x50xf32, #tpu.memory_space<vmem>>, %arg16: memref<2x784xf32, #tpu.memory_space<vmem>>) attributes {dimension_semantics = [], scalar_prefetch = 0 : i64, scratch_operands = 0 : i64, tpu.core_type = #tpu.core_type<tc>} {
    %c0 = arith.constant 0 : index
    %c0_0 = arith.constant 0 : index
    %0 = vector.load %arg0[%c0, %c0_0] : memref<2x784xf32, #tpu.memory_space<vmem>>, vector<2x784xf32>
    %c0_1 = arith.constant 0 : index
    %c0_2 = arith.constant 0 : index
    %1 = vector.load %arg1[%c0_1, %c0_2] : memref<784x50xf32, #tpu.memory_space<vmem>>, vector<784x50xf32>
    %cst = arith.constant dense<0.000000e+00> : vector<2x50xf32>
    %2 = tpu.matmul %0, %1, %cst {dimension_numbers = #tpu.dot_dimension_numbers<[1], [0], [0], [1], [0, 0, 1, 1], [], []>} : vector<2x784xf32>, vector<784x50xf32>, vector<2x50xf32> -> vector<2x50xf32>
    %c0_3 = arith.constant 0 : index
    %c0_4 = arith.constant 0 : index
    %3 = vector.load %arg2[%c0_3, %c0_4] : memref<1x50xf32, #tpu.memory_space<vmem>>, vector<1x50xf32>
    %4 = vector.broadcast %3 : vector<1x50xf32> to vector<2x50xf32>
    %5 = arith.mulf %2, %4 : vector<2x50xf32>
    %c0_5 = arith.constant 0 : index
    %c0_6 = arith.constant 0 : index
    %6 = vector.load %arg3[%c0_5, %c0_6] : memref<1x50xf32, #tpu.memory_space<vmem>>, vector<1x50xf32>
    %7 = vector.broadcast %6 : vector<1x50xf32> to vector<2x50xf32>
    %8 = arith.addf %5, %7 : vector<2x50xf32>
    %cst_7 = arith.constant 0.000000e+00 : f32
    %9 = vector.broadcast %cst_7 : f32 to vector<2x50xf32>
    %10 = arith.maximumf %8, %9 : vector<2x50xf32>
    %c0_8 = arith.constant 0 : index
    %c0_9 = arith.constant 0 : index
    %11 = vector.load %arg4[%c0_8, %c0_9] : memref<50x50xf32, #tpu.memory_space<vmem>>, vector<50x50xf32>
    %cst_10 = arith.constant dense<0.000000e+00> : vector<2x50xf32>
    %12 = tpu.matmul %10, %11, %cst_10 {dimension_numbers = #tpu.dot_dimension_numbers<[1], [0], [0], [1], [0, 0, 1, 1], [], []>} : vector<2x50xf32>, vector<50x50xf32>, vector<2x50xf32> -> vector<2x50xf32>
    %c0_11 = arith.constant 0 : index
    %c0_12 = arith.constant 0 : index
    %13 = vector.load %arg5[%c0_11, %c0_12] : memref<1x50xf32, #tpu.memory_space<vmem>>, vector<1x50xf32>
    %14 = vector.broadcast %13 : vector<1x50xf32> to vector<2x50xf32>
    %15 = arith.addf %12, %14 : vector<2x50xf32>
    %c0_13 = arith.constant 0 : index
    %c0_14 = arith.constant 0 : index
    %16 = vector.load %arg6[%c0_13, %c0_14] : memref<50x50xf32, #tpu.memory_space<vmem>>, vector<50x50xf32>
    %cst_15 = arith.constant dense<0.000000e+00> : vector<2x50xf32>
    %17 = tpu.matmul %10, %16, %cst_15 {dimension_numbers = #tpu.dot_dimension_numbers<[1], [0], [0], [1], [0, 0, 1, 1], [], []>} : vector<2x50xf32>, vector<50x50xf32>, vector<2x50xf32> -> vector<2x50xf32>
    %c0_16 = arith.constant 0 : index
    %c0_17 = arith.constant 0 : index
    %18 = vector.load %arg7[%c0_16, %c0_17] : memref<1x50xf32, #tpu.memory_space<vmem>>, vector<1x50xf32>
    %19 = vector.broadcast %18 : vector<1x50xf32> to vector<2x50xf32>
    %20 = arith.addf %17, %19 : vector<2x50xf32>
    %c0_18 = arith.constant 0 : index
    %c0_19 = arith.constant 0 : index
    %21 = vector.load %arg14[%c0_18, %c0_19] : memref<2x50xf32, #tpu.memory_space<vmem>>, vector<2x50xf32>
    tpu.vector_store %arg14[%c0_18, %c0_19], %15 {strides = array<i32>} : memref<2x50xf32, #tpu.memory_space<vmem>>, vector<2x50xf32>,
    %c0_20 = arith.constant 0 : index
    %c0_21 = arith.constant 0 : index
    %22 = vector.load %arg15[%c0_20, %c0_21] : memref<2x50xf32, #tpu.memory_space<vmem>>, vector<2x50xf32>
    tpu.vector_store %arg15[%c0_20, %c0_21], %20 {strides = array<i32>} : memref<2x50xf32, #tpu.memory_space<vmem>>, vector<2x50xf32>,
    %c0_22 = arith.constant 0 : index
    %c0_23 = arith.constant 0 : index
    %23 = vector.load %arg8[%c0_22, %c0_23] : memref<50x50xf32, #tpu.memory_space<vmem>>, vector<50x50xf32>
    %cst_24 = arith.constant dense<0.000000e+00> : vector<2x50xf32>
    %24 = tpu.matmul %15, %23, %cst_24 {dimension_numbers = #tpu.dot_dimension_numbers<[1], [0], [0], [1], [0, 0, 1, 1], [], []>} : vector<2x50xf32>, vector<50x50xf32>, vector<2x50xf32> -> vector<2x50xf32>
    %c0_25 = arith.constant 0 : index
    %c0_26 = arith.constant 0 : index
    %25 = vector.load %arg9[%c0_25, %c0_26] : memref<1x50xf32, #tpu.memory_space<vmem>>, vector<1x50xf32>
    %26 = vector.broadcast %25 : vector<1x50xf32> to vector<2x50xf32>
    %27 = arith.mulf %24, %26 : vector<2x50xf32>
    %c0_27 = arith.constant 0 : index
    %c0_28 = arith.constant 0 : index
    %28 = vector.load %arg10[%c0_27, %c0_28] : memref<1x50xf32, #tpu.memory_space<vmem>>, vector<1x50xf32>
    %29 = vector.broadcast %28 : vector<1x50xf32> to vector<2x50xf32>
    %30 = arith.addf %27, %29 : vector<2x50xf32>
    %cst_29 = arith.constant 0.000000e+00 : f32
    %31 = vector.broadcast %cst_29 : f32 to vector<2x50xf32>
    %32 = arith.maximumf %30, %31 : vector<2x50xf32>
    %c0_30 = arith.constant 0 : index
    %c0_31 = arith.constant 0 : index
    %33 = vector.load %arg11[%c0_30, %c0_31] : memref<50x784xf32, #tpu.memory_space<vmem>>, vector<50x784xf32>
    %cst_32 = arith.constant dense<0.000000e+00> : vector<2x784xf32>
    %34 = tpu.matmul %32, %33, %cst_32 {dimension_numbers = #tpu.dot_dimension_numbers<[1], [0], [0], [1], [0, 0, 1, 1], [], []>} : vector<2x50xf32>, vector<50x784xf32>, vector<2x784xf32> -> vector<2x784xf32>
    %c0_33 = arith.constant 0 : index
    %c0_34 = arith.constant 0 : index
    %35 = vector.load %arg12[%c0_33, %c0_34] : memref<1x784xf32, #tpu.memory_space<vmem>>, vector<1x784xf32>
    %36 = vector.broadcast %35 : vector<1x784xf32> to vector<2x784xf32>
    %37 = arith.mulf %34, %36 : vector<2x784xf32>
    %c0_35 = arith.constant 0 : index
    %c0_36 = arith.constant 0 : index
    %38 = vector.load %arg13[%c0_35, %c0_36] : memref<1x784xf32, #tpu.memory_space<vmem>>, vector<1x784xf32>
    %39 = vector.broadcast %38 : vector<1x784xf32> to vector<2x784xf32>
    %40 = arith.addf %37, %39 : vector<2x784xf32>
    %cst_37 = arith.constant 0.000000e+00 : f32
    %41 = vector.broadcast %cst_37 : f32 to vector<2x784xf32>
    %42 = arith.maximumf %40, %41 : vector<2x784xf32>
    %c0_38 = arith.constant 0 : index
    %c0_39 = arith.constant 0 : index
    %43 = vector.load %arg16[%c0_38, %c0_39] : memref<2x784xf32, #tpu.memory_space<vmem>>, vector<2x784xf32>
    tpu.vector_store %arg16[%c0_38, %c0_39], %42 {strides = array<i32>} : memref<2x784xf32, #tpu.memory_space<vmem>>, vector<2x784xf32>,
    return
  }
}

module attributes {stable_mosaic.version = 11 : i64} {
  func.func @_matmul_affine_kernel(%arg0: i32, %arg1: memref<98x64xf32, #tpu.memory_space<vmem>>, %arg2: memref<64x256xf32, #tpu.memory_space<vmem>>, %arg3: memref<1x256xf32, #tpu.memory_space<vmem>>, %arg4: memref<1x256xf32, #tpu.memory_space<vmem>>, %arg5: memref<98x256xf32, #tpu.memory_space<vmem>>) attributes {dimension_semantics = [#tpu.dimension_semantics<parallel>], iteration_bounds = array<i64: 1>, scalar_prefetch = 0 : i64, scratch_operands = 0 : i64, tpu.core_type = #tpu.core_type<tc>, window_params = [{transform_indices = @transform_0, window_bounds = array<i64: 98, 64>}, {pipeline_mode = #tpu.pipeline_mode<synchronous>, transform_indices = @transform_1, window_bounds = array<i64: 64, 256>}, {pipeline_mode = #tpu.pipeline_mode<synchronous>, transform_indices = @transform_2, window_bounds = array<i64: 1, 256>}, {pipeline_mode = #tpu.pipeline_mode<synchronous>, transform_indices = @transform_3, window_bounds = array<i64: 1, 256>}, {transform_indices = @transform_4, window_bounds = array<i64: 98, 256>}]} {
    %c0 = arith.constant 0 : index
    %c0_0 = arith.constant 0 : index
    %0 = vector.load %arg1[%c0, %c0_0] : memref<98x64xf32, #tpu.memory_space<vmem>>, vector<98x64xf32>
    %c0_1 = arith.constant 0 : index
    %c0_2 = arith.constant 0 : index
    %1 = vector.load %arg2[%c0_1, %c0_2] : memref<64x256xf32, #tpu.memory_space<vmem>>, vector<64x256xf32>
    %cst = arith.constant dense<0.000000e+00> : vector<98x256xf32>
    %2 = tpu.matmul %0, %1, %cst {dimension_numbers = #tpu.dot_dimension_numbers<[1], [0], [0], [1], [0, 0, 1, 1], [], []>} : vector<98x64xf32>, vector<64x256xf32>, vector<98x256xf32> -> vector<98x256xf32>
    %c0_3 = arith.constant 0 : index
    %c0_4 = arith.constant 0 : index
    %3 = vector.load %arg3[%c0_3, %c0_4] : memref<1x256xf32, #tpu.memory_space<vmem>>, vector<1x256xf32>
    %4 = vector.broadcast %3 : vector<1x256xf32> to vector<98x256xf32>
    %5 = arith.mulf %2, %4 : vector<98x256xf32>
    %c0_5 = arith.constant 0 : index
    %c0_6 = arith.constant 0 : index
    %6 = vector.load %arg4[%c0_5, %c0_6] : memref<1x256xf32, #tpu.memory_space<vmem>>, vector<1x256xf32>
    %7 = vector.broadcast %6 : vector<1x256xf32> to vector<98x256xf32>
    %8 = arith.addf %5, %7 : vector<98x256xf32>
    %cst_7 = arith.constant 0.000000e+00 : f32
    %9 = vector.broadcast %cst_7 : f32 to vector<98x256xf32>
    %10 = arith.maximumf %8, %9 : vector<98x256xf32>
    %c0_8 = arith.constant 0 : index
    %c0_9 = arith.constant 0 : index
    %11 = vector.load %arg5[%c0_8, %c0_9] : memref<98x256xf32, #tpu.memory_space<vmem>>, vector<98x256xf32>
    tpu.vector_store %arg5[%c0_8, %c0_9], %10 {strides = array<i32>} : memref<98x256xf32, #tpu.memory_space<vmem>>, vector<98x256xf32>,
    return
  }
  func.func @transform_0(%arg0: i32) -> (i32, i32) {
    %c0_i32 = arith.constant 0 : i32
    %c0_i32_0 = arith.constant 0 : i32
    return %arg0, %c0_i32 : i32, i32
  }
  func.func @transform_1(%arg0: i32) -> (i32, i32) {
    %c0_i32 = arith.constant 0 : i32
    %c0_i32_0 = arith.constant 0 : i32
    %c0_i32_1 = arith.constant 0 : i32
    return %c0_i32, %c0_i32_0 : i32, i32
  }
  func.func @transform_2(%arg0: i32) -> (i32, i32) {
    %c0_i32 = arith.constant 0 : i32
    %c0_i32_0 = arith.constant 0 : i32
    %c0_i32_1 = arith.constant 0 : i32
    return %c0_i32, %c0_i32_0 : i32, i32
  }
  func.func @transform_3(%arg0: i32) -> (i32, i32) {
    %c0_i32 = arith.constant 0 : i32
    %c0_i32_0 = arith.constant 0 : i32
    %c0_i32_1 = arith.constant 0 : i32
    return %c0_i32, %c0_i32_0 : i32, i32
  }
  func.func @transform_4(%arg0: i32) -> (i32, i32) {
    %c0_i32 = arith.constant 0 : i32
    %c0_i32_0 = arith.constant 0 : i32
    return %arg0, %c0_i32 : i32, i32
  }
}

module attributes {stable_mosaic.version = 11 : i64} {
  func.func @_matmul_affine_kernel(%arg0: i32, %arg1: memref<392x576xf32, #tpu.memory_space<vmem>>, %arg2: memref<576x32xf32, #tpu.memory_space<vmem>>, %arg3: memref<1x32xf32, #tpu.memory_space<vmem>>, %arg4: memref<1x32xf32, #tpu.memory_space<vmem>>, %arg5: memref<392x32xf32, #tpu.memory_space<vmem>>) attributes {dimension_semantics = [#tpu.dimension_semantics<parallel>], iteration_bounds = array<i64: 1>, scalar_prefetch = 0 : i64, scratch_operands = 0 : i64, tpu.core_type = #tpu.core_type<tc>, window_params = [{transform_indices = @transform_0, window_bounds = array<i64: 392, 576>}, {pipeline_mode = #tpu.pipeline_mode<synchronous>, transform_indices = @transform_1, window_bounds = array<i64: 576, 32>}, {pipeline_mode = #tpu.pipeline_mode<synchronous>, transform_indices = @transform_2, window_bounds = array<i64: 1, 32>}, {pipeline_mode = #tpu.pipeline_mode<synchronous>, transform_indices = @transform_3, window_bounds = array<i64: 1, 32>}, {transform_indices = @transform_4, window_bounds = array<i64: 392, 32>}]} {
    %c0 = arith.constant 0 : index
    %c0_0 = arith.constant 0 : index
    %0 = vector.load %arg1[%c0, %c0_0] : memref<392x576xf32, #tpu.memory_space<vmem>>, vector<392x576xf32>
    %c0_1 = arith.constant 0 : index
    %c0_2 = arith.constant 0 : index
    %1 = vector.load %arg2[%c0_1, %c0_2] : memref<576x32xf32, #tpu.memory_space<vmem>>, vector<576x32xf32>
    %cst = arith.constant dense<0.000000e+00> : vector<392x32xf32>
    %2 = tpu.matmul %0, %1, %cst {dimension_numbers = #tpu.dot_dimension_numbers<[1], [0], [0], [1], [0, 0, 1, 1], [], []>} : vector<392x576xf32>, vector<576x32xf32>, vector<392x32xf32> -> vector<392x32xf32>
    %c0_3 = arith.constant 0 : index
    %c0_4 = arith.constant 0 : index
    %3 = vector.load %arg3[%c0_3, %c0_4] : memref<1x32xf32, #tpu.memory_space<vmem>>, vector<1x32xf32>
    %4 = vector.broadcast %3 : vector<1x32xf32> to vector<392x32xf32>
    %5 = arith.mulf %2, %4 : vector<392x32xf32>
    %c0_5 = arith.constant 0 : index
    %c0_6 = arith.constant 0 : index
    %6 = vector.load %arg4[%c0_5, %c0_6] : memref<1x32xf32, #tpu.memory_space<vmem>>, vector<1x32xf32>
    %7 = vector.broadcast %6 : vector<1x32xf32> to vector<392x32xf32>
    %8 = arith.addf %5, %7 : vector<392x32xf32>
    %cst_7 = arith.constant 0.000000e+00 : f32
    %9 = vector.broadcast %cst_7 : f32 to vector<392x32xf32>
    %10 = arith.maximumf %8, %9 : vector<392x32xf32>
    %c0_8 = arith.constant 0 : index
    %c0_9 = arith.constant 0 : index
    %11 = vector.load %arg5[%c0_8, %c0_9] : memref<392x32xf32, #tpu.memory_space<vmem>>, vector<392x32xf32>
    tpu.vector_store %arg5[%c0_8, %c0_9], %10 {strides = array<i32>} : memref<392x32xf32, #tpu.memory_space<vmem>>, vector<392x32xf32>,
    return
  }
  func.func @transform_0(%arg0: i32) -> (i32, i32) {
    %c0_i32 = arith.constant 0 : i32
    %c0_i32_0 = arith.constant 0 : i32
    return %arg0, %c0_i32 : i32, i32
  }
  func.func @transform_1(%arg0: i32) -> (i32, i32) {
    %c0_i32 = arith.constant 0 : i32
    %c0_i32_0 = arith.constant 0 : i32
    %c0_i32_1 = arith.constant 0 : i32
    return %c0_i32, %c0_i32_0 : i32, i32
  }
  func.func @transform_2(%arg0: i32) -> (i32, i32) {
    %c0_i32 = arith.constant 0 : i32
    %c0_i32_0 = arith.constant 0 : i32
    %c0_i32_1 = arith.constant 0 : i32
    return %c0_i32, %c0_i32_0 : i32, i32
  }
  func.func @transform_3(%arg0: i32) -> (i32, i32) {
    %c0_i32 = arith.constant 0 : i32
    %c0_i32_0 = arith.constant 0 : i32
    %c0_i32_1 = arith.constant 0 : i32
    return %c0_i32, %c0_i32_0 : i32, i32
  }
  func.func @transform_4(%arg0: i32) -> (i32, i32) {
    %c0_i32 = arith.constant 0 : i32
    %c0_i32_0 = arith.constant 0 : i32
    return %arg0, %c0_i32 : i32, i32
  }
}

module attributes {stable_mosaic.version = 11 : i64} {
  func.func @_matmul_affine_kernel(%arg0: i32, %arg1: memref<392x128xf32, #tpu.memory_space<vmem>>, %arg2: memref<128x64xf32, #tpu.memory_space<vmem>>, %arg3: memref<1x64xf32, #tpu.memory_space<vmem>>, %arg4: memref<1x64xf32, #tpu.memory_space<vmem>>, %arg5: memref<392x64xf32, #tpu.memory_space<vmem>>) attributes {dimension_semantics = [#tpu.dimension_semantics<parallel>], iteration_bounds = array<i64: 1>, scalar_prefetch = 0 : i64, scratch_operands = 0 : i64, tpu.core_type = #tpu.core_type<tc>, window_params = [{transform_indices = @transform_0, window_bounds = array<i64: 392, 128>}, {pipeline_mode = #tpu.pipeline_mode<synchronous>, transform_indices = @transform_1, window_bounds = array<i64: 128, 64>}, {pipeline_mode = #tpu.pipeline_mode<synchronous>, transform_indices = @transform_2, window_bounds = array<i64: 1, 64>}, {pipeline_mode = #tpu.pipeline_mode<synchronous>, transform_indices = @transform_3, window_bounds = array<i64: 1, 64>}, {transform_indices = @transform_4, window_bounds = array<i64: 392, 64>}]} {
    %c0 = arith.constant 0 : index
    %c0_0 = arith.constant 0 : index
    %0 = vector.load %arg1[%c0, %c0_0] : memref<392x128xf32, #tpu.memory_space<vmem>>, vector<392x128xf32>
    %c0_1 = arith.constant 0 : index
    %c0_2 = arith.constant 0 : index
    %1 = vector.load %arg2[%c0_1, %c0_2] : memref<128x64xf32, #tpu.memory_space<vmem>>, vector<128x64xf32>
    %cst = arith.constant dense<0.000000e+00> : vector<392x64xf32>
    %2 = tpu.matmul %0, %1, %cst {dimension_numbers = #tpu.dot_dimension_numbers<[1], [0], [0], [1], [0, 0, 1, 1], [], []>} : vector<392x128xf32>, vector<128x64xf32>, vector<392x64xf32> -> vector<392x64xf32>
    %c0_3 = arith.constant 0 : index
    %c0_4 = arith.constant 0 : index
    %3 = vector.load %arg3[%c0_3, %c0_4] : memref<1x64xf32, #tpu.memory_space<vmem>>, vector<1x64xf32>
    %4 = vector.broadcast %3 : vector<1x64xf32> to vector<392x64xf32>
    %5 = arith.mulf %2, %4 : vector<392x64xf32>
    %c0_5 = arith.constant 0 : index
    %c0_6 = arith.constant 0 : index
    %6 = vector.load %arg4[%c0_5, %c0_6] : memref<1x64xf32, #tpu.memory_space<vmem>>, vector<1x64xf32>
    %7 = vector.broadcast %6 : vector<1x64xf32> to vector<392x64xf32>
    %8 = arith.addf %5, %7 : vector<392x64xf32>
    %cst_7 = arith.constant 0.000000e+00 : f32
    %9 = vector.broadcast %cst_7 : f32 to vector<392x64xf32>
    %10 = arith.maximumf %8, %9 : vector<392x64xf32>
    %c0_8 = arith.constant 0 : index
    %c0_9 = arith.constant 0 : index
    %11 = vector.load %arg5[%c0_8, %c0_9] : memref<392x64xf32, #tpu.memory_space<vmem>>, vector<392x64xf32>
    tpu.vector_store %arg5[%c0_8, %c0_9], %10 {strides = array<i32>} : memref<392x64xf32, #tpu.memory_space<vmem>>, vector<392x64xf32>,
    return
  }
  func.func @transform_0(%arg0: i32) -> (i32, i32) {
    %c0_i32 = arith.constant 0 : i32
    %c0_i32_0 = arith.constant 0 : i32
    return %arg0, %c0_i32 : i32, i32
  }
  func.func @transform_1(%arg0: i32) -> (i32, i32) {
    %c0_i32 = arith.constant 0 : i32
    %c0_i32_0 = arith.constant 0 : i32
    %c0_i32_1 = arith.constant 0 : i32
    return %c0_i32, %c0_i32_0 : i32, i32
  }
  func.func @transform_2(%arg0: i32) -> (i32, i32) {
    %c0_i32 = arith.constant 0 : i32
    %c0_i32_0 = arith.constant 0 : i32
    %c0_i32_1 = arith.constant 0 : i32
    return %c0_i32, %c0_i32_0 : i32, i32
  }
  func.func @transform_3(%arg0: i32) -> (i32, i32) {
    %c0_i32 = arith.constant 0 : i32
    %c0_i32_0 = arith.constant 0 : i32
    %c0_i32_1 = arith.constant 0 : i32
    return %c0_i32, %c0_i32_0 : i32, i32
  }
  func.func @transform_4(%arg0: i32) -> (i32, i32) {
    %c0_i32 = arith.constant 0 : i32
    %c0_i32_0 = arith.constant 0 : i32
    return %arg0, %c0_i32 : i32, i32
  }
}

module attributes {stable_mosaic.version = 11 : i64} {
  func.func @_conv_out_sigmoid_kernel(%arg0: memref<144x1568xf32, #tpu.memory_space<vmem>>, %arg1: memref<1x144xf32, #tpu.memory_space<vmem>>, %arg2: memref<1x1xf32, #tpu.memory_space<vmem>>, %arg3: memref<1x1568xf32, #tpu.memory_space<vmem>>) attributes {dimension_semantics = [], scalar_prefetch = 0 : i64, scratch_operands = 0 : i64, tpu.core_type = #tpu.core_type<tc>} {
    %c0 = arith.constant 0 : index
    %c0_0 = arith.constant 0 : index
    %0 = vector.load %arg1[%c0, %c0_0] : memref<1x144xf32, #tpu.memory_space<vmem>>, vector<1x144xf32>
    %c0_1 = arith.constant 0 : index
    %c0_2 = arith.constant 0 : index
    %1 = vector.load %arg0[%c0_1, %c0_2] : memref<144x1568xf32, #tpu.memory_space<vmem>>, vector<144x1568xf32>
    %cst = arith.constant dense<0.000000e+00> : vector<1x1568xf32>
    %2 = tpu.matmul %0, %1, %cst {dimension_numbers = #tpu.dot_dimension_numbers<[1], [0], [0], [1], [0, 0, 1, 1], [], []>} : vector<1x144xf32>, vector<144x1568xf32>, vector<1x1568xf32> -> vector<1x1568xf32>
    %c0_3 = arith.constant 0 : index
    %c0_4 = arith.constant 0 : index
    %3 = vector.load %arg2[%c0_3, %c0_4] : memref<1x1xf32, #tpu.memory_space<vmem>>, vector<1x1xf32>
    %4 = vector.broadcast %3 : vector<1x1xf32> to vector<1x1568xf32>
    %5 = arith.addf %2, %4 : vector<1x1568xf32>
    %6 = arith.negf %5 : vector<1x1568xf32>
    %7 = math.exp %6 : vector<1x1568xf32>
    %cst_5 = arith.constant 1.000000e+00 : f32
    %8 = vector.broadcast %cst_5 : f32 to vector<1x1568xf32>
    %9 = arith.addf %8, %7 : vector<1x1568xf32>
    %10 = arith.divf %8, %9 : vector<1x1568xf32>
    %c0_6 = arith.constant 0 : index
    %c0_7 = arith.constant 0 : index
    %11 = vector.load %arg3[%c0_6, %c0_7] : memref<1x1568xf32, #tpu.memory_space<vmem>>, vector<1x1568xf32>
    tpu.vector_store %arg3[%c0_6, %c0_7], %10 {strides = array<i32>} : memref<1x1568xf32, #tpu.memory_space<vmem>>, vector<1x1568xf32>,
    return
  }
}

</mosaic_0001>

<bundles_post_ra>
// kernel: vae_forward.9
= control target key start
LH: loop header
LB: loop body
LE: loop exit
PB: predicated region body
PF: predicated region fallthrough
CT: control target
= control target key end

     0   :  { %9 = vsyncpa [#allocation3], 0  ;;  %s2962_s0 = inlined_call_operand.vmem [shape: f32[1568,9], index: 0, kind: input, shape index: {}]   ;;  %s2963_s1 = inlined_call_operand.hbm [shape: f32[9,16], index: 1, kind: input, shape index: {}]   ;;  %s2964_s2 = inlined_call_operand.hbm [shape: f32[1,16], index: 2, kind: input, shape index: {}]   ;;  %s2965_s3 = inlined_call_operand.hbm [shape: f32[1,16], index: 3, kind: input, shape index: {}]   ;;  %s2966_s4 = inlined_call_operand.vmem [shape: f32[1568,16], index: 4, kind: output, shape index: {}]  }
   0x1   :  { %10 = vsyncpa [#allocation5], 0  ;;  %s2237_s15 = smov 0  }
   0x2 LB: > { %s2206_s16 = smov [#allocation4]   ;;  %s1689_s18 = sadd.s32 4294967295, %s2204_s15   ;;  %s2204_s15 = sphi %s2237_s15, %s16_s15  }
   0x3   : > { %s162_s17 = sshll.u32 %s2206_s16, 4  ;;  %p1691_p0 = scmp.ge.s32.totalorder %s2204_s15, 1  ;;  %s163_s17 = int_to_ptr.vmem [resolvable:$true] %s162_s17 }
   0x4   : > { %p136_p1 = scmp.lt.s32.totalorder %s2204_s15, 3  ;;  %p2247_p2 = scmp.eq.s32.totalorder %s1689_s18, 0 }
   0x5   : > { %s2207_s21 = smov [#allocation2]   ;;  %s2208_s24 = smov [#allocation6]  }
   0x6   : > { %s2970_s19 = scalar_select %p2247_p2, 1, 0 }
   0x7   : > { %p2251_p3 = pnand %p1691_p0, %p136_p1  ;;  %s148_s22 = sshll.u32 %s2207_s21, 4  ;;  %s2263_s22 = int_to_ptr.vmem [resolvable:$true] %s148_s22 }
   0x8   : > { %s173_s25 = sshll.u32 %s2208_s24, 4  ;;  %s2106_s28 = scalar_lea.hbm %s2964_s2, 16  ;;  %s2265_s25 = int_to_ptr.vmem [resolvable:$true] %s173_s25 }
   0x9   : > { %s2971_s20 = scalar_select %p2251_p3, 1, 0 }
   0xa   : > { %p2076_p4 = pneg %p2251_p3  ;;  %p2107_p6 = scmp.ne.s32.totalorder %s2964_s2, %s2106_s28 }
   0xb   : > { %p2113_p10 = scmp.lt.u32.totalorder %s2106_s28, %s2964_s2 }
   0xc   : > { %p2259_p5 = pnand %p2247_p2, %p2076_p4 }
   0xe   : > { %p2275_p7 = pneg %p2259_p5 }
  0x10   : > { %p2109_p8 = pnand %p2275_p7, %p2107_p6 }
  0x12   : > { %p2110_p9 = pneg %p2109_p8 }
  0x14   : > { %p2115_p11 = pnand %p2113_p10, %p2110_p9 }
  0x16   : > { %2118 = shalt.err (!%p2115_p11)
}
  0x17   : > { %s2119_s8 = scalar_lea.vmem %s163_s17, 16  ;;  %s2126_s9 = scalar_lea.vmem %s163_s17, 32 }
  0x18   : > { %p2120_p12 = scmp.ne.s32.totalorder %s163_s17, %s2119_s8  ;;  %p2127_p1 = scmp.lt.s32.totalorder %s163_s17, %s163_s17 }
  0x19   : > { %p2128_p4 = scmp.lt.s32.totalorder %s2126_s9, %s2119_s8 }
  0x1a   : > { %p2122_p13 = pnand %p2120_p12, %p2275_p7 }
  0x1b   : > { %p2129_p2 = por %p2128_p4, %p2127_p1 }
  0x1c   : > { %p2123_p0 = pneg %p2122_p13 }
  0x1e   : > { %p2130_p3 = pnand %p2129_p2, %p2123_p0 }
  0x20   : > { %2133 = shalt.err (!%p2130_p3)
}
  0x21   : > { %2082 = dma.hbm_to_vmem [thread:$0]  (!%p2259_p5), %s2964_s2, 16, %s163_s17, [#allocation5]  }
  0x22   : > { %s2134_s14 = scalar_lea.hbm %s2963_s1, 256 }
  0x23   : > { %p2135_p6 = scmp.ne.s32.totalorder %s2963_s1, %s2134_s14  ;;  %p2141_p2 = scmp.lt.u32.totalorder %s2134_s14, %s2963_s1 }
  0x25   : > { %p2137_p8 = pnand %p2135_p6, %p2275_p7 }
  0x27   : > { %p2138_p9 = pneg %p2137_p8 }
  0x29   : > { %p2143_p3 = pnand %p2141_p2, %p2138_p9 }
  0x2b   : > { %2146 = shalt.err (!%p2143_p3)
}
  0x2c   : > { %s2147_s17 = scalar_lea.vmem %s2263_s22, 256  ;;  %p2155_p13 = scmp.lt.s32.totalorder %s2263_s22, %s2263_s22 }
  0x2d   : > { %p2148_p10 = scmp.ne.s32.totalorder %s2263_s22, %s2147_s17  ;;  %p2156_p0 = scmp.lt.s32.totalorder %s2147_s17, %s2147_s17 }
  0x2f   : > { %p2150_p11 = pnand %p2148_p10, %p2275_p7  ;;  %p2157_p1 = por %p2156_p0, %p2155_p13 }
  0x31   : > { %p2151_p12 = pneg %p2150_p11 }
  0x33   : > { %p2158_p4 = pnand %p2157_p1, %p2151_p12 }
  0x35   : > { %2161 = shalt.err (!%p2158_p4)
}
  0x36   : > { %s2209_s27 = smov 128   ;;  %s2210_s28 = smov 8  }
  0x37   : > { %2079 = dma.hbm_to_vmem [thread:$0]  (!%p2259_p5), %s2963_s1, 256, %s2263_s22, [#allocation3], %s2209_s27, %s2209_s27, %s2210_s28  }
  0x38   : > { %s2162_s8 = scalar_lea.hbm %s2965_s3, 16 }
  0x39   : > { %p2163_p6 = scmp.ne.s32.totalorder %s2965_s3, %s2162_s8  ;;  %p2169_p2 = scmp.lt.u32.totalorder %s2162_s8, %s2965_s3 }
  0x3b   : > { %p2165_p8 = pnand %p2163_p6, %p2275_p7 }
  0x3d   : > { %p2166_p9 = pneg %p2165_p8 }
  0x3f   : > { %p2171_p3 = pnand %p2169_p2, %p2166_p9 }
  0x41   : > { %2174 = shalt.err (!%p2171_p3)
}
  0x42   : > { %s2175_s22 = scalar_lea.vmem %s2265_s25, 16  ;;  %s2182_s13 = scalar_lea.vmem %s2265_s25, 32 }
  0x43   : > { %p2176_p10 = scmp.ne.s32.totalorder %s2265_s25, %s2175_s22  ;;  %p2183_p13 = scmp.lt.s32.totalorder %s2265_s25, %s2265_s25 }
  0x44   : > { %p2184_p0 = scmp.lt.s32.totalorder %s2182_s13, %s2175_s22 }
  0x45   : > { %p2178_p11 = pnand %p2176_p10, %p2275_p7 }
  0x46   : > { %p2185_p1 = por %p2184_p0, %p2183_p13 }
  0x47   : > { %p2179_p12 = pneg %p2178_p11 }
  0x49   : > { %p2186_p4 = pnand %p2185_p1, %p2179_p12 }
  0x4b   : > { %2189 = shalt.err (!%p2186_p4)
}
  0x4c   : > { %2085 = dma.hbm_to_vmem [thread:$0]  (!%p2259_p5), %s2965_s3, 16, %s2265_s25, [#allocation5]  }
  0x4d   : > { %p2974_p6 = scmp.ne.s32.totalorder %s2971_s20, 0 }
  0x4e   : > { %p2975_p7 = scmp.ne.s32.totalorder (!%p2974_p6), %s2970_s19, 0 }
  0x4f   : > { %195 = sbr.rel (%p2974_p6) target bundleno = 414 (0x19e), region = 36 }
  0x56   : > { %2195 = dma.done.wait (%p2975_p7), [#allocation3], 256  }
  0x57   : > { %2197 = vsyncadd (%p2975_p7), [#allocation3], 4294967040 }
  0x58   : > { %2199 = dma.done.wait (%p2975_p7), [#allocation5], 32  }
  0x59   : > { %2201 = vsyncadd (%p2975_p7), [#allocation5], 4294967264  ;;  %s229_s23 = smul.u32 98, %s1689_s18  ;;  %vm636_vm0 = vcmask 1040384   ;;  %vm341_vm1 = vcmask 72704   ;;  %v339_v0 = vld [vmem:[#allocation2] sm:$0xff] }
  0x5a   : > { %v340_v1 = vld [vmem:[#allocation2 + $0x8] sm:$0x1]  ;;  %vm2211_vm2 = vmmov 1   ;;  %vm1503_vm4 = vcmask 130048  }
  0x5b   : > { %p230_p8 = scmp.lt.s32.totalorder %s229_s23, 195  ;;  %vm2057_vm3 = vmpackc.low %vm636_vm0, %vm2211_vm2  ;;  %v2056_v2 = vpack.c.bf16 %v340_v1, %v339_v0 }
  0x5d   : > { %s2977_s23 = smov (!%p230_p8, %s229_s23), 195  ;;  %2058 = vmatprep.subr.msk.bf16.mxu0 %vm2057_vm3, %v2056_v2  ;;  %2062 = vmatprep.subr.msk.bf16.mxu1 %vm2057_vm3, %v2056_v2 }
  0x5e   : > { %s1700_s20 = sshll.u32 %s2977_s23, 3  ;;  %2061 = vmatpush3.bf16.msk.msra.mxu0 %vm2057_vm3, %v2056_v2  ;;  %2063 = vmatpush3.bf16.msk.msra.mxu1 %vm2057_vm3, %v2056_v2 }
  0x5f   : > { %s2358_s19 = scalar_lea.vmem %s2962_s0, %s1700_s20  ;;  %s2571_s24 = scalar_lea.vmem %s2966_s4, %s1700_s20 }
  0x60   : > { %v241_v3 = vld [vmem:[%s2358_s19] sm:$0xff]  ;;  %v291_v4 = vld [vmem:[%s2358_s19 + $0x190] sm:$0xff]  ;;  %v242_v5 = vld [vmem:[%s2358_s19 + $0x8] sm:$0xff] }
  0x61   : > { %1909 = vmatprep.mubr.msk.f32.mxu0 %vm341_vm1, %v241_v3  ;;  %1984 = vmatprep.mubr.msk.f32.mxu1 %vm341_vm1, %v291_v4  ;;  %v292_v6 = vld [vmem:[%s2358_s19 + $0x198] sm:$0xff]  ;;  %v243_v7 = vld [vmem:[%s2358_s19 + $0x10] sm:$0xff]  ;;  %v293_v8 = vld [vmem:[%s2358_s19 + $0x1a0] sm:$0xff] }
  0x62   : > { %1910 = vmatmul.mubr.msk.f32.vlgmr.msra.gmra.mrb[0].mxu0 %vm341_vm1, %v242_v5  ;;  %1985 = vmatmul.mubr.msk.f32.vlgmr.msra.gmra.mrb[0].mxu1 %vm341_vm1, %v292_v6  ;;  %v244_v9 = vld [vmem:[%s2358_s19 + $0x18] sm:$0xff]  ;;  %v294_v10 = vld [vmem:[%s2358_s19 + $0x1a8] sm:$0xff]  ;;  %v245_v11 = vld [vmem:[%s2358_s19 + $0x20] sm:$0xff] }
  0x63   : > { %1912 = vmatprep.mubr.msk.f32.mxu0 %vm341_vm1, %v243_v7  ;;  %1987 = vmatprep.mubr.msk.f32.mxu1 %vm341_vm1, %v293_v8  ;;  %v295_v12 = vld [vmem:[%s2358_s19 + $0x1b0] sm:$0xff]  ;;  %v246_v13 = vld [vmem:[%s2358_s19 + $0x28] sm:$0xff]  ;;  %v296_v14 = vld [vmem:[%s2358_s19 + $0x1b8] sm:$0xff] }
  0x64   : > { %v247_v15 = vld [vmem:[%s2358_s19 + $0x30] sm:$0xff]  ;;  %v297_v16 = vld [vmem:[%s2358_s19 + $0x1c0] sm:$0xff]  ;;  %v248_v17 = vld [vmem:[%s2358_s19 + $0x38] sm:$0xff] }
  0x65   : > { %v298_v18 = vld [vmem:[%s2358_s19 + $0x1c8] sm:$0xff]  ;;  %v249_v19 = vld [vmem:[%s2358_s19 + $0x40] sm:$0xff]  ;;  %v299_v20 = vld [vmem:[%s2358_s19 + $0x1d0] sm:$0xff] }
  0x66   : > { %1913 = vmatmul.mubr.msk.f32.gmra.mrb[2].mxu0 %vm341_vm1, %v244_v9  ;;  %1988 = vmatmul.mubr.msk.f32.gmra.mrb[2].mxu1 %vm341_vm1, %v294_v10  ;;  %v250_v21 = vld [vmem:[%s2358_s19 + $0x48] sm:$0xff]  ;;  %v300_v22 = vld [vmem:[%s2358_s19 + $0x1d8] sm:$0xff]  ;;  %v251_v23 = vld [vmem:[%s2358_s19 + $0x50] sm:$0xff] }
  0x67   : > { %1915 = vmatprep.mubr.msk.f32.mxu0 %vm341_vm1, %v245_v11  ;;  %1990 = vmatprep.mubr.msk.f32.mxu1 %vm341_vm1, %v295_v12  ;;  %v301_v24 = vld [vmem:[%s2358_s19 + $0x1e0] sm:$0xff]  ;;  %v252_v25 = vld [vmem:[%s2358_s19 + $0x58] sm:$0xff]  ;;  %v302_v26 = vld [vmem:[%s2358_s19 + $0x1e8] sm:$0xff] }
  0x68   : > { %v253_v27 = vld [vmem:[%s2358_s19 + $0x60] sm:$0xff]  ;;  %v303_v28 = vld [vmem:[%s2358_s19 + $0x1f0] sm:$0xff]  ;;  %v254_v29 = vld [vmem:[%s2358_s19 + $0x68] sm:$0xff] }
  0x69   : > { %v304_v30 = vld [vmem:[%s2358_s19 + $0x1f8] sm:$0xff]  ;;  %v255_v31 = vld [vmem:[%s2358_s19 + $0x70] sm:$0xff]  ;;  %v305_v32 = vld [vmem:[%s2358_s19 + $0x200] sm:$0xff] }
  0x6a   : > { %1916 = vmatmul.mubr.msk.f32.gmra.mrb[4].mxu0 %vm341_vm1, %v246_v13  ;;  %1991 = vmatmul.mubr.msk.f32.gmra.mrb[4].mxu1 %vm341_vm1, %v296_v14  ;;  %v256_v33 = vld [vmem:[%s2358_s19 + $0x78] sm:$0xff]  ;;  %v306_v34 = vld [vmem:[%s2358_s19 + $0x208] sm:$0xff]  ;;  %v257_v35 = vld [vmem:[%s2358_s19 + $0x80] sm:$0xff] }
  0x6b   : > { %1918 = vmatprep.mubr.msk.f32.mxu0 %vm341_vm1, %v247_v15  ;;  %1993 = vmatprep.mubr.msk.f32.mxu1 %vm341_vm1, %v297_v16  ;;  %v307_v36 = vld [vmem:[%s2358_s19 + $0x210] sm:$0xff]  ;;  %v258_v37 = vld [vmem:[%s2358_s19 + $0x88] sm:$0xff]  ;;  %v308_v38 = vld [vmem:[%s2358_s19 + $0x218] sm:$0xff] }
  0x6c   : > { %v259_v39 = vld [vmem:[%s2358_s19 + $0x90] sm:$0xff]  ;;  %v309_v40 = vld [vmem:[%s2358_s19 + $0x220] sm:$0xff]  ;;  %v260_v41 = vld [vmem:[%s2358_s19 + $0x98] sm:$0xff] }
  0x6d   : > { %v310_v42 = vld [vmem:[%s2358_s19 + $0x228] sm:$0xff]  ;;  %v261_v43 = vld [vmem:[%s2358_s19 + $0xa0] sm:$0xff]  ;;  %v311_v44 = vld [vmem:[%s2358_s19 + $0x230] sm:$0xff] }
  0x6e   : > { %1919 = vmatmul.mubr.msk.f32.gmra.mrb[6].mxu0 %vm341_vm1, %v248_v17  ;;  %1994 = vmatmul.mubr.msk.f32.gmra.mrb[6].mxu1 %vm341_vm1, %v298_v18  ;;  %v262_v45 = vld [vmem:[%s2358_s19 + $0xa8] sm:$0xff]  ;;  %v312_v46 = vld [vmem:[%s2358_s19 + $0x238] sm:$0xff]  ;;  %v263_v47 = vld [vmem:[%s2358_s19 + $0xb0] sm:$0xff] }
  0x6f   : > { %1921 = vmatprep.mubr.msk.f32.mxu0 %vm341_vm1, %v249_v19  ;;  %1996 = vmatprep.mubr.msk.f32.mxu1 %vm341_vm1, %v299_v20  ;;  %v313_v48 = vld [vmem:[%s2358_s19 + $0x240] sm:$0xff]  ;;  %v264_v49 = vld [vmem:[%s2358_s19 + $0xb8] sm:$0xff]  ;;  %v314_v50 = vld [vmem:[%s2358_s19 + $0x248] sm:$0xff] }
  0x70   : > { %v265_v51 = vld [vmem:[%s2358_s19 + $0xc0] sm:$0xff]  ;;  %v315_v52 = vld [vmem:[%s2358_s19 + $0x250] sm:$0xff]  ;;  %v266_v53 = vld [vmem:[%s2358_s19 + $0xc8] sm:$0xff] }
  0x71   : > { %v316_v54 = vld [vmem:[%s2358_s19 + $0x258] sm:$0xff]  ;;  %v267_v55 = vld [vmem:[%s2358_s19 + $0xd0] sm:$0xff]  ;;  %v317_v56 = vld [vmem:[%s2358_s19 + $0x260] sm:$0xff] }
  0x72   : > { %1922 = vmatmul.mubr.msk.f32.gmra.mrb[8].mxu0 %vm341_vm1, %v250_v21  ;;  %1997 = vmatmul.mubr.msk.f32.gmra.mrb[8].mxu1 %vm341_vm1, %v300_v22  ;;  %v268_v57 = vld [vmem:[%s2358_s19 + $0xd8] sm:$0xff]  ;;  %v318_v58 = vld [vmem:[%s2358_s19 + $0x268] sm:$0xff]  ;;  %v269_v59 = vld [vmem:[%s2358_s19 + $0xe0] sm:$0xff] }
  0x73   : > { %1924 = vmatprep.mubr.msk.f32.mxu0 %vm341_vm1, %v251_v23  ;;  %1999 = vmatprep.mubr.msk.f32.mxu1 %vm341_vm1, %v301_v24  ;;  %v319_v60 = vld [vmem:[%s2358_s19 + $0x270] sm:$0xff]  ;;  %v270_v61 = vld [vmem:[%s2358_s19 + $0xe8] sm:$0xff]  ;;  %v320_v62 = vld [vmem:[%s2358_s19 + $0x278] sm:$0xff] }
  0x74   : > { %v271_v63 = vld [vmem:[%s2358_s19 + $0xf0] sm:$0xff]  ;;  %v321_v0 = vld [vmem:[%s2358_s19 + $0x280] sm:$0xff]  ;;  %v272_v1 = vld [vmem:[%s2358_s19 + $0xf8] sm:$0xff] }
  0x75   : > { %v322_v2 = vld [vmem:[%s2358_s19 + $0x288] sm:$0xff]  ;;  %v273_v3 = vld [vmem:[%s2358_s19 + $0x100] sm:$0xff]  ;;  %v323_v4 = vld [vmem:[%s2358_s19 + $0x290] sm:$0xff] }
  0x76   : > { %1925 = vmatmul.mubr.msk.f32.gmra.mrb[10].mxu0 %vm341_vm1, %v252_v25  ;;  %2000 = vmatmul.mubr.msk.f32.gmra.mrb[10].mxu1 %vm341_vm1, %v302_v26  ;;  %v274_v5 = vld [vmem:[%s2358_s19 + $0x108] sm:$0xff]  ;;  %v324_v6 = vld [vmem:[%s2358_s19 + $0x298] sm:$0xff]  ;;  %v275_v7 = vld [vmem:[%s2358_s19 + $0x110] sm:$0xff] }
  0x77   : > { %1927 = vmatprep.mubr.msk.f32.mxu0 %vm341_vm1, %v253_v27  ;;  %2002 = vmatprep.mubr.msk.f32.mxu1 %vm341_vm1, %v303_v28  ;;  %v325_v8 = vld [vmem:[%s2358_s19 + $0x2a0] sm:$0xff]  ;;  %v276_v9 = vld [vmem:[%s2358_s19 + $0x118] sm:$0xff]  ;;  %v326_v10 = vld [vmem:[%s2358_s19 + $0x2a8] sm:$0xff] }
  0x78   : > { %v277_v11 = vld [vmem:[%s2358_s19 + $0x120] sm:$0xff]  ;;  %v327_v12 = vld [vmem:[%s2358_s19 + $0x2b0] sm:$0xff]  ;;  %v278_v13 = vld [vmem:[%s2358_s19 + $0x128] sm:$0xff] }
  0x79   : > { %v328_v14 = vld [vmem:[%s2358_s19 + $0x2b8] sm:$0xff]  ;;  %v279_v15 = vld [vmem:[%s2358_s19 + $0x130] sm:$0xff]  ;;  %v329_v16 = vld [vmem:[%s2358_s19 + $0x2c0] sm:$0xff] }
  0x7a   : > { %1928 = vmatmul.mubr.msk.f32.gmra.mrb[12].mxu0 %vm341_vm1, %v254_v29  ;;  %2003 = vmatmul.mubr.msk.f32.gmra.mrb[12].mxu1 %vm341_vm1, %v304_v30  ;;  %v280_v17 = vld [vmem:[%s2358_s19 + $0x138] sm:$0xff]  ;;  %v330_v18 = vld [vmem:[%s2358_s19 + $0x2c8] sm:$0xff]  ;;  %v281_v19 = vld [vmem:[%s2358_s19 + $0x140] sm:$0xff] }
  0x7b   : > { %1930 = vmatprep.mubr.msk.f32.mxu0 %vm341_vm1, %v255_v31  ;;  %2005 = vmatprep.mubr.msk.f32.mxu1 %vm341_vm1, %v305_v32  ;;  %v331_v20 = vld [vmem:[%s2358_s19 + $0x2d0] sm:$0xff]  ;;  %v282_v21 = vld [vmem:[%s2358_s19 + $0x148] sm:$0xff]  ;;  %v332_v22 = vld [vmem:[%s2358_s19 + $0x2d8] sm:$0xff] }
  0x7c   : > { %v283_v23 = vld [vmem:[%s2358_s19 + $0x150] sm:$0xff]  ;;  %v333_v24 = vld [vmem:[%s2358_s19 + $0x2e0] sm:$0xff]  ;;  %v284_v25 = vld [vmem:[%s2358_s19 + $0x158] sm:$0xff] }
  0x7d   : > { %v334_v26 = vld [vmem:[%s2358_s19 + $0x2e8] sm:$0xff]  ;;  %v285_v27 = vld [vmem:[%s2358_s19 + $0x160] sm:$0xff]  ;;  %v335_v28 = vld [vmem:[%s2358_s19 + $0x2f0] sm:$0xff] }
  0x7e   : > { %1931 = vmatmul.mubr.msk.f32.gmra.mrb[14].mxu0 %vm341_vm1, %v256_v33  ;;  %2006 = vmatmul.mubr.msk.f32.gmra.mrb[14].mxu1 %vm341_vm1, %v306_v34  ;;  %v286_v29 = vld [vmem:[%s2358_s19 + $0x168] sm:$0xff]  ;;  %v336_v30 = vld [vmem:[%s2358_s19 + $0x2f8] sm:$0xff]  ;;  %v287_v31 = vld [vmem:[%s2358_s19 + $0x170] sm:$0xff] }
  0x7f   : > { %1933 = vmatprep.mubr.msk.f32.mxu0 %vm341_vm1, %v257_v35  ;;  %2008 = vmatprep.mubr.msk.f32.mxu1 %vm341_vm1, %v307_v36  ;;  %v337_v32 = vld [vmem:[%s2358_s19 + $0x300] sm:$0xff]  ;;  %v288_v33 = vld [vmem:[%s2358_s19 + $0x178] sm:$0xff]  ;;  %v338_v34 = vld [vmem:[%s2358_s19 + $0x308] sm:$0xff] }
  0x80   : > { %v289_v35 = vld [vmem:[%s2358_s19 + $0x180] sm:$0xff]  ;;  %v290_v36 = vld [vmem:[%s2358_s19 + $0x188] sm:$0xff] }
  0x82   : > { %1934 = vmatmul.mubr.msk.f32.gmra.mrb[16].mxu0 %vm341_vm1, %v258_v37  ;;  %2009 = vmatmul.mubr.msk.f32.gmra.mrb[16].mxu1 %vm341_vm1, %v308_v38  ;;  %v2556_v37 = vld [vmem:[#allocation4] ss:$0 sm:$0xff] }
  0x83   : > { %1936 = vmatprep.mubr.msk.f32.mxu0 %vm341_vm1, %v259_v39  ;;  %2011 = vmatprep.mubr.msk.f32.mxu1 %vm341_vm1, %v309_v40  ;;  %v2558_v39 = vld [vmem:[#allocation6] ss:$0 sm:$0xff] }
  0x86   : > { %1937 = vmatmul.mubr.msk.f32.gmra.mrb[18].mxu0 %vm341_vm1, %v260_v41  ;;  %2012 = vmatmul.mubr.msk.f32.gmra.mrb[18].mxu1 %vm341_vm1, %v310_v42 }
  0x87   : > { %1939 = vmatprep.mubr.msk.f32.mxu0 %vm341_vm1, %v261_v43  ;;  %2014 = vmatprep.mubr.msk.f32.mxu1 %vm341_vm1, %v311_v44 }
  0x8a   : > { %1940 = vmatmul.mubr.msk.f32.gmra.mrb[20].mxu0 %vm341_vm1, %v262_v45  ;;  %2015 = vmatmul.mubr.msk.f32.gmra.mrb[20].mxu1 %vm341_vm1, %v312_v46 }
  0x8b   : > { %1942 = vmatprep.mubr.msk.f32.mxu0 %vm341_vm1, %v263_v47  ;;  %2017 = vmatprep.mubr.msk.f32.mxu1 %vm341_vm1, %v313_v48 }
  0x8e   : > { %1943 = vmatmul.mubr.msk.f32.gmra.mrb[22].mxu0 %vm341_vm1, %v264_v49  ;;  %2018 = vmatmul.mubr.msk.f32.gmra.mrb[22].mxu1 %vm341_vm1, %v314_v50 }
  0x8f   : > { %1945 = vmatprep.mubr.msk.f32.mxu0 %vm341_vm1, %v265_v51  ;;  %2020 = vmatprep.mubr.msk.f32.mxu1 %vm341_vm1, %v315_v52 }
  0x92   : > { %1946 = vmatmul.mubr.msk.f32.gmra.mrb[24].mxu0 %vm341_vm1, %v266_v53  ;;  %2021 = vmatmul.mubr.msk.f32.gmra.mrb[24].mxu1 %vm341_vm1, %v316_v54 }
  0x93   : > { %1948 = vmatprep.mubr.msk.f32.mxu0 %vm341_vm1, %v267_v55  ;;  %2023 = vmatprep.mubr.msk.f32.mxu1 %vm341_vm1, %v317_v56 }
  0x96   : > { %1949 = vmatmul.mubr.msk.f32.gmra.mrb[26].mxu0 %vm341_vm1, %v268_v57  ;;  %2024 = vmatmul.mubr.msk.f32.gmra.mrb[26].mxu1 %vm341_vm1, %v318_v58 }
  0x97   : > { %1951 = vmatprep.mubr.msk.f32.mxu0 %vm341_vm1, %v269_v59  ;;  %2026 = vmatprep.mubr.msk.f32.mxu1 %vm341_vm1, %v319_v60 }
  0x9a   : > { %1952 = vmatmul.mubr.msk.f32.gmra.mrb[28].mxu0 %vm341_vm1, %v270_v61  ;;  %2027 = vmatmul.mubr.msk.f32.gmra.mrb[28].mxu1 %vm341_vm1, %v320_v62 }
  0x9b   : > { %1954 = vmatprep.mubr.msk.f32.mxu0 %vm341_vm1, %v271_v63  ;;  %2029 = vmatprep.mubr.msk.f32.mxu1 %vm341_vm1, %v321_v0 }
  0x9e   : > { %1955 = vmatmul.mubr.msk.f32.gmra.mrb[30].mxu0 %vm341_vm1, %v272_v1  ;;  %2030 = vmatmul.mubr.msk.f32.gmra.mrb[30].mxu1 %vm341_vm1, %v322_v2 }
  0x9f   : > { %1957 = vmatprep.mubr.msk.f32.mxu0 %vm341_vm1, %v273_v3  ;;  %2032 = vmatprep.mubr.msk.f32.mxu1 %vm341_vm1, %v323_v4 }
  0xa2   : > { %1958 = vmatmul.mubr.msk.f32.gmra.mrb[32].mxu0 %vm341_vm1, %v274_v5  ;;  %2033 = vmatmul.mubr.msk.f32.gmra.mrb[32].mxu1 %vm341_vm1, %v324_v6 }
  0xa3   : > { %1960 = vmatprep.mubr.msk.f32.mxu0 %vm341_vm1, %v275_v7  ;;  %2035 = vmatprep.mubr.msk.f32.mxu1 %vm341_vm1, %v325_v8 }
  0xa6   : > { %1961 = vmatmul.mubr.msk.f32.gmra.mrb[34].mxu0 %vm341_vm1, %v276_v9  ;;  %2036 = vmatmul.mubr.msk.f32.gmra.mrb[34].mxu1 %vm341_vm1, %v326_v10 }
  0xa7   : > { %1963 = vmatprep.mubr.msk.f32.mxu0 %vm341_vm1, %v277_v11  ;;  %2038 = vmatprep.mubr.msk.f32.mxu1 %vm341_vm1, %v327_v12 }
  0xaa   : > { %1964 = vmatmul.mubr.msk.f32.gmra.mrb[36].mxu0 %vm341_vm1, %v278_v13  ;;  %2039 = vmatmul.mubr.msk.f32.gmra.mrb[36].mxu1 %vm341_vm1, %v328_v14 }
  0xab   : > { %1966 = vmatprep.mubr.msk.f32.mxu0 %vm341_vm1, %v279_v15  ;;  %2041 = vmatprep.mubr.msk.f32.mxu1 %vm341_vm1, %v329_v16 }
  0xae   : > { %1967 = vmatmul.mubr.msk.f32.gmra.mrb[38].mxu0 %vm341_vm1, %v280_v17  ;;  %2042 = vmatmul.mubr.msk.f32.gmra.mrb[38].mxu1 %vm341_vm1, %v330_v18 }
  0xaf   : > { %1969 = vmatprep.mubr.msk.f32.mxu0 %vm341_vm1, %v281_v19  ;;  %2044 = vmatprep.mubr.msk.f32.mxu1 %vm341_vm1, %v331_v20 }
  0xb2   : > { %1970 = vmatmul.mubr.msk.f32.gmra.mrb[40].mxu0 %vm341_vm1, %v282_v21  ;;  %2045 = vmatmul.mubr.msk.f32.gmra.mrb[40].mxu1 %vm341_vm1, %v332_v22 }
  0xb3   : > { %1972 = vmatprep.mubr.msk.f32.mxu0 %vm341_vm1, %v283_v23  ;;  %2047 = vmatprep.mubr.msk.f32.mxu1 %vm341_vm1, %v333_v24 }
  0xb6   : > { %1973 = vmatmul.mubr.msk.f32.gmra.mrb[42].mxu0 %vm341_vm1, %v284_v25  ;;  %2048 = vmatmul.mubr.msk.f32.gmra.mrb[42].mxu1 %vm341_vm1, %v334_v26 }
  0xb7   : > { %1975 = vmatprep.mubr.msk.f32.mxu0 %vm341_vm1, %v285_v27  ;;  %2050 = vmatprep.mubr.msk.f32.mxu1 %vm341_vm1, %v335_v28 }
  0xba   : > { %1976 = vmatmul.mubr.msk.f32.gmra.mrb[44].mxu0 %vm341_vm1, %v286_v29  ;;  %2051 = vmatmul.mubr.msk.f32.gmra.mrb[44].mxu1 %vm341_vm1, %v336_v30 }
  0xbb   : > { %1978 = vmatprep.mubr.msk.f32.mxu0 %vm341_vm1, %v287_v31  ;;  %2053 = vmatprep.mubr.msk.f32.mxu1 %vm341_vm1, %v337_v32 }
  0xbe   : > { %1979 = vmatmul.mubr.msk.f32.gmra.mrb[46].mxu0 %vm341_vm1, %v288_v33  ;;  %2054 = vmatmul.mubr.msk.f32.gmra.mrb[46].mxu1 %vm341_vm1, %v338_v34 }
  0xbf   : > { %1981 = vmatprep.mubr.msk.f32.mxu0 %vm341_vm1, %v289_v35 }
  0xc2   : > { %1982 = vmatmul.mubr.msk.f32.gmra.mrb[48].mxu0 %vm341_vm1, %v290_v36 }
 0x135   : > { %v1911_v38 = vpop.f32.mrb[0].mxu0  ;;  %v1986_v40 = vpop.f32.mrb[0].mxu1 }
 0x136   : > { %v1203_v41 = vmul.f32 %v1911_v38, %v2556_v37  ;;  %v706_v42 = vpop.f32.mrb[1].mxu0  ;;  %v1253_v43 = vmul.f32 %v1986_v40, %v2556_v37  ;;  %v956_v44 = vpop.f32.mrb[1].mxu1 }
 0x137   : > { %v1202_v45 = vmul.f32 %v2556_v37, %v706_v42  ;;  %v1252_v46 = vmul.f32 %v2556_v37, %v956_v44 }
 0x138   : > { %v1308_v47 = vadd.f32 %v2558_v39, %v1203_v41  ;;  %v1358_v48 = vadd.f32 %v2558_v39, %v1253_v43 }
 0x139   : > { %v1307_v49 = vadd.f32 %v2558_v39, %v1202_v45  ;;  %v1914_v50 = vpop.f32.mrb[2].mxu0  ;;  %v1357_v51 = vadd.f32 %v2558_v39, %v1252_v46  ;;  %v1989_v52 = vpop.f32.mrb[2].mxu1 }
 0x13a   : > { %v1406_v53 = vmax.f32 %v1308_v47, 0.0  ;;  %v1456_v54 = vmax.f32 %v1358_v48, 0.0  ;;  %v1205_v55 = vmul.f32 %v1914_v50, %v2556_v37  ;;  %v716_v56 = vpop.f32.mrb[3].mxu0  ;;  %v1255_v57 = vmul.f32 %v1989_v52, %v2556_v37  ;;  %v966_v58 = vpop.f32.mrb[3].mxu1 }
 0x13b   : > { %v1405_v59 = vmax.f32 %v1307_v49, 0.0  ;;  %v1455_v60 = vmax.f32 %v1357_v51, 0.0  ;;  %v1204_v61 = vmul.f32 %v2556_v37, %v716_v56  ;;  %v1254_v62 = vmul.f32 %v2556_v37, %v966_v58 }
 0x13c   : > { %1505 = vst.msk [vmem:[%s2571_s24 + $0x8] sm:$0xff] %vm1503_vm4, %v1406_v53  ;;  %1555 = vst.msk [vmem:[%s2571_s24 + $0x198] sm:$0xff] %vm1503_vm4, %v1456_v54  ;;  %v1310_v63 = vadd.f32 %v2558_v39, %v1205_v55  ;;  %v1360_v0 = vadd.f32 %v2558_v39, %v1255_v57 }
 0x13d   : > { %1504 = vst.msk [vmem:[%s2571_s24] sm:$0xff] %vm1503_vm4, %v1405_v59  ;;  %1554 = vst.msk [vmem:[%s2571_s24 + $0x190] sm:$0xff] %vm1503_vm4, %v1455_v60  ;;  %v1309_v1 = vadd.f32 %v2558_v39, %v1204_v61  ;;  %v1917_v2 = vpop.f32.mrb[4].mxu0  ;;  %v1359_v3 = vadd.f32 %v2558_v39, %v1254_v62  ;;  %v1992_v4 = vpop.f32.mrb[4].mxu1 }
 0x13e   : > { %v1408_v5 = vmax.f32 %v1310_v63, 0.0  ;;  %v1458_v6 = vmax.f32 %v1360_v0, 0.0  ;;  %v1207_v7 = vmul.f32 %v1917_v2, %v2556_v37  ;;  %v726_v8 = vpop.f32.mrb[5].mxu0  ;;  %v1257_v9 = vmul.f32 %v1992_v4, %v2556_v37  ;;  %v976_v10 = vpop.f32.mrb[5].mxu1 }
 0x13f   : > { %v1407_v11 = vmax.f32 %v1309_v1, 0.0  ;;  %v1457_v12 = vmax.f32 %v1359_v3, 0.0  ;;  %v1206_v13 = vmul.f32 %v2556_v37, %v726_v8  ;;  %v1256_v14 = vmul.f32 %v2556_v37, %v976_v10 }
 0x140   : > { %1507 = vst.msk [vmem:[%s2571_s24 + $0x18] sm:$0xff] %vm1503_vm4, %v1408_v5  ;;  %1557 = vst.msk [vmem:[%s2571_s24 + $0x1a8] sm:$0xff] %vm1503_vm4, %v1458_v6  ;;  %v1312_v15 = vadd.f32 %v2558_v39, %v1207_v7  ;;  %v1362_v16 = vadd.f32 %v2558_v39, %v1257_v9 }
 0x141   : > { %1506 = vst.msk [vmem:[%s2571_s24 + $0x10] sm:$0xff] %vm1503_vm4, %v1407_v11  ;;  %1556 = vst.msk [vmem:[%s2571_s24 + $0x1a0] sm:$0xff] %vm1503_vm4, %v1457_v12  ;;  %v1311_v17 = vadd.f32 %v2558_v39, %v1206_v13  ;;  %v1920_v18 = vpop.f32.mrb[6].mxu0  ;;  %v1361_v19 = vadd.f32 %v2558_v39, %v1256_v14  ;;  %v1995_v20 = vpop.f32.mrb[6].mxu1 }
 0x142   : > { %v1410_v21 = vmax.f32 %v1312_v15, 0.0  ;;  %v1460_v22 = vmax.f32 %v1362_v16, 0.0  ;;  %v1209_v23 = vmul.f32 %v1920_v18, %v2556_v37  ;;  %v736_v24 = vpop.f32.mrb[7].mxu0  ;;  %v1259_v25 = vmul.f32 %v1995_v20, %v2556_v37  ;;  %v986_v26 = vpop.f32.mrb[7].mxu1 }
 0x143   : > { %v1409_v27 = vmax.f32 %v1311_v17, 0.0  ;;  %v1459_v28 = vmax.f32 %v1361_v19, 0.0  ;;  %v1208_v29 = vmul.f32 %v2556_v37, %v736_v24  ;;  %v1258_v30 = vmul.f32 %v2556_v37, %v986_v26 }
 0x144   : > { %1509 = vst.msk [vmem:[%s2571_s24 + $0x28] sm:$0xff] %vm1503_vm4, %v1410_v21  ;;  %1559 = vst.msk [vmem:[%s2571_s24 + $0x1b8] sm:$0xff] %vm1503_vm4, %v1460_v22  ;;  %v1314_v31 = vadd.f32 %v2558_v39, %v1209_v23  ;;  %v1364_v32 = vadd.f32 %v2558_v39, %v1259_v25 }
 0x145   : > { %1508 = vst.msk [vmem:[%s2571_s24 + $0x20] sm:$0xff] %vm1503_vm4, %v1409_v27  ;;  %1558 = vst.msk [vmem:[%s2571_s24 + $0x1b0] sm:$0xff] %vm1503_vm4, %v1459_v28  ;;  %v1313_v33 = vadd.f32 %v2558_v39, %v1208_v29  ;;  %v1923_v34 = vpop.f32.mrb[8].mxu0  ;;  %v1363_v35 = vadd.f32 %v2558_v39, %v1258_v30  ;;  %v1998_v36 = vpop.f32.mrb[8].mxu1 }
 0x146   : > { %v1412_v38 = vmax.f32 %v1314_v31, 0.0  ;;  %v1462_v40 = vmax.f32 %v1364_v32, 0.0  ;;  %v1211_v41 = vmul.f32 %v1923_v34, %v2556_v37  ;;  %v746_v42 = vpop.f32.mrb[9].mxu0  ;;  %v1261_v43 = vmul.f32 %v1998_v36, %v2556_v37  ;;  %v996_v44 = vpop.f32.mrb[9].mxu1 }
 0x147   : > { %v1411_v45 = vmax.f32 %v1313_v33, 0.0  ;;  %v1461_v46 = vmax.f32 %v1363_v35, 0.0  ;;  %v1210_v47 = vmul.f32 %v2556_v37, %v746_v42  ;;  %v1260_v48 = vmul.f32 %v2556_v37, %v996_v44 }
 0x148   : > { %1511 = vst.msk [vmem:[%s2571_s24 + $0x38] sm:$0xff] %vm1503_vm4, %v1412_v38  ;;  %1561 = vst.msk [vmem:[%s2571_s24 + $0x1c8] sm:$0xff] %vm1503_vm4, %v1462_v40  ;;  %v1316_v49 = vadd.f32 %v2558_v39, %v1211_v41  ;;  %v1366_v50 = vadd.f32 %v2558_v39, %v1261_v43 }
 0x149   : > { %1510 = vst.msk [vmem:[%s2571_s24 + $0x30] sm:$0xff] %vm1503_vm4, %v1411_v45  ;;  %1560 = vst.msk [vmem:[%s2571_s24 + $0x1c0] sm:$0xff] %vm1503_vm4, %v1461_v46  ;;  %v1315_v51 = vadd.f32 %v2558_v39, %v1210_v47  ;;  %v1926_v52 = vpop.f32.mrb[10].mxu0  ;;  %v1365_v53 = vadd.f32 %v2558_v39, %v1260_v48  ;;  %v2001_v54 = vpop.f32.mrb[10].mxu1 }
 0x14a   : > { %v1414_v55 = vmax.f32 %v1316_v49, 0.0  ;;  %v1464_v56 = vmax.f32 %v1366_v50, 0.0  ;;  %v1213_v57 = vmul.f32 %v1926_v52, %v2556_v37  ;;  %v756_v58 = vpop.f32.mrb[11].mxu0  ;;  %v1263_v59 = vmul.f32 %v2001_v54, %v2556_v37  ;;  %v1006_v60 = vpop.f32.mrb[11].mxu1 }
 0x14b   : > { %v1413_v61 = vmax.f32 %v1315_v51, 0.0  ;;  %v1463_v62 = vmax.f32 %v1365_v53, 0.0  ;;  %v1212_v63 = vmul.f32 %v2556_v37, %v756_v58  ;;  %v1262_v0 = vmul.f32 %v2556_v37, %v1006_v60 }
 0x14c   : > { %1513 = vst.msk [vmem:[%s2571_s24 + $0x48] sm:$0xff] %vm1503_vm4, %v1414_v55  ;;  %1563 = vst.msk [vmem:[%s2571_s24 + $0x1d8] sm:$0xff] %vm1503_vm4, %v1464_v56  ;;  %v1318_v1 = vadd.f32 %v2558_v39, %v1213_v57  ;;  %v1368_v2 = vadd.f32 %v2558_v39, %v1263_v59 }
 0x14d   : > { %1512 = vst.msk [vmem:[%s2571_s24 + $0x40] sm:$0xff] %vm1503_vm4, %v1413_v61  ;;  %1562 = vst.msk [vmem:[%s2571_s24 + $0x1d0] sm:$0xff] %vm1503_vm4, %v1463_v62  ;;  %v1317_v3 = vadd.f32 %v2558_v39, %v1212_v63  ;;  %v1929_v4 = vpop.f32.mrb[12].mxu0  ;;  %v1367_v5 = vadd.f32 %v2558_v39, %v1262_v0  ;;  %v2004_v6 = vpop.f32.mrb[12].mxu1 }
 0x14e   : > { %v1416_v7 = vmax.f32 %v1318_v1, 0.0  ;;  %v1466_v8 = vmax.f32 %v1368_v2, 0.0  ;;  %v1215_v9 = vmul.f32 %v1929_v4, %v2556_v37  ;;  %v766_v10 = vpop.f32.mrb[13].mxu0  ;;  %v1265_v11 = vmul.f32 %v2004_v6, %v2556_v37  ;;  %v1016_v12 = vpop.f32.mrb[13].mxu1 }
 0x14f   : > { %v1415_v13 = vmax.f32 %v1317_v3, 0.0  ;;  %v1465_v14 = vmax.f32 %v1367_v5, 0.0  ;;  %v1214_v15 = vmul.f32 %v2556_v37, %v766_v10  ;;  %v1264_v16 = vmul.f32 %v2556_v37, %v1016_v12 }
 0x150   : > { %1515 = vst.msk [vmem:[%s2571_s24 + $0x58] sm:$0xff] %vm1503_vm4, %v1416_v7  ;;  %1565 = vst.msk [vmem:[%s2571_s24 + $0x1e8] sm:$0xff] %vm1503_vm4, %v1466_v8  ;;  %v1320_v17 = vadd.f32 %v2558_v39, %v1215_v9  ;;  %v1370_v18 = vadd.f32 %v2558_v39, %v1265_v11 }
 0x151   : > { %1514 = vst.msk [vmem:[%s2571_s24 + $0x50] sm:$0xff] %vm1503_vm4, %v1415_v13  ;;  %1564 = vst.msk [vmem:[%s2571_s24 + $0x1e0] sm:$0xff] %vm1503_vm4, %v1465_v14  ;;  %v1319_v19 = vadd.f32 %v2558_v39, %v1214_v15  ;;  %v1932_v20 = vpop.f32.mrb[14].mxu0  ;;  %v1369_v21 = vadd.f32 %v2558_v39, %v1264_v16  ;;  %v2007_v22 = vpop.f32.mrb[14].mxu1 }
 0x152   : > { %v1418_v23 = vmax.f32 %v1320_v17, 0.0  ;;  %v1468_v24 = vmax.f32 %v1370_v18, 0.0  ;;  %v1217_v25 = vmul.f32 %v1932_v20, %v2556_v37  ;;  %v776_v26 = vpop.f32.mrb[15].mxu0  ;;  %v1267_v27 = vmul.f32 %v2007_v22, %v2556_v37  ;;  %v1026_v28 = vpop.f32.mrb[15].mxu1 }
 0x153   : > { %v1417_v29 = vmax.f32 %v1319_v19, 0.0  ;;  %v1467_v30 = vmax.f32 %v1369_v21, 0.0  ;;  %v1216_v31 = vmul.f32 %v2556_v37, %v776_v26  ;;  %v1266_v32 = vmul.f32 %v2556_v37, %v1026_v28 }
 0x154   : > { %1517 = vst.msk [vmem:[%s2571_s24 + $0x68] sm:$0xff] %vm1503_vm4, %v1418_v23  ;;  %1567 = vst.msk [vmem:[%s2571_s24 + $0x1f8] sm:$0xff] %vm1503_vm4, %v1468_v24  ;;  %v1322_v33 = vadd.f32 %v2558_v39, %v1217_v25  ;;  %v1372_v34 = vadd.f32 %v2558_v39, %v1267_v27 }
 0x155   : > { %1516 = vst.msk [vmem:[%s2571_s24 + $0x60] sm:$0xff] %vm1503_vm4, %v1417_v29  ;;  %1566 = vst.msk [vmem:[%s2571_s24 + $0x1f0] sm:$0xff] %vm1503_vm4, %v1467_v30  ;;  %v1321_v35 = vadd.f32 %v2558_v39, %v1216_v31  ;;  %v1935_v36 = vpop.f32.mrb[16].mxu0  ;;  %v1371_v38 = vadd.f32 %v2558_v39, %v1266_v32  ;;  %v2010_v40 = vpop.f32.mrb[16].mxu1 }
 0x156   : > { %v1420_v41 = vmax.f32 %v1322_v33, 0.0  ;;  %v1470_v42 = vmax.f32 %v1372_v34, 0.0  ;;  %v1219_v43 = vmul.f32 %v1935_v36, %v2556_v37  ;;  %v786_v44 = vpop.f32.mrb[17].mxu0  ;;  %v1269_v45 = vmul.f32 %v2010_v40, %v2556_v37  ;;  %v1036_v46 = vpop.f32.mrb[17].mxu1 }
 0x157   : > { %v1419_v47 = vmax.f32 %v1321_v35, 0.0  ;;  %v1469_v48 = vmax.f32 %v1371_v38, 0.0  ;;  %v1218_v49 = vmul.f32 %v2556_v37, %v786_v44  ;;  %v1268_v50 = vmul.f32 %v2556_v37, %v1036_v46 }
 0x158   : > { %1519 = vst.msk [vmem:[%s2571_s24 + $0x78] sm:$0xff] %vm1503_vm4, %v1420_v41  ;;  %1569 = vst.msk [vmem:[%s2571_s24 + $0x208] sm:$0xff] %vm1503_vm4, %v1470_v42  ;;  %v1324_v51 = vadd.f32 %v2558_v39, %v1219_v43  ;;  %v1374_v52 = vadd.f32 %v2558_v39, %v1269_v45 }
 0x159   : > { %1518 = vst.msk [vmem:[%s2571_s24 + $0x70] sm:$0xff] %vm1503_vm4, %v1419_v47  ;;  %1568 = vst.msk [vmem:[%s2571_s24 + $0x200] sm:$0xff] %vm1503_vm4, %v1469_v48  ;;  %v1323_v53 = vadd.f32 %v2558_v39, %v1218_v49  ;;  %v1938_v54 = vpop.f32.mrb[18].mxu0  ;;  %v1373_v55 = vadd.f32 %v2558_v39, %v1268_v50  ;;  %v2013_v56 = vpop.f32.mrb[18].mxu1 }
 0x15a   : > { %v1422_v57 = vmax.f32 %v1324_v51, 0.0  ;;  %v1472_v58 = vmax.f32 %v1374_v52, 0.0  ;;  %v1221_v59 = vmul.f32 %v1938_v54, %v2556_v37  ;;  %v796_v60 = vpop.f32.mrb[19].mxu0  ;;  %v1271_v61 = vmul.f32 %v2013_v56, %v2556_v37  ;;  %v1046_v62 = vpop.f32.mrb[19].mxu1 }
 0x15b   : > { %v1421_v63 = vmax.f32 %v1323_v53, 0.0  ;;  %v1471_v0 = vmax.f32 %v1373_v55, 0.0  ;;  %v1220_v1 = vmul.f32 %v2556_v37, %v796_v60  ;;  %v1270_v2 = vmul.f32 %v2556_v37, %v1046_v62 }
 0x15c   : > { %1521 = vst.msk [vmem:[%s2571_s24 + $0x88] sm:$0xff] %vm1503_vm4, %v1422_v57  ;;  %1571 = vst.msk [vmem:[%s2571_s24 + $0x218] sm:$0xff] %vm1503_vm4, %v1472_v58  ;;  %v1326_v3 = vadd.f32 %v2558_v39, %v1221_v59  ;;  %v1376_v4 = vadd.f32 %v2558_v39, %v1271_v61 }
 0x15d   : > { %1520 = vst.msk [vmem:[%s2571_s24 + $0x80] sm:$0xff] %vm1503_vm4, %v1421_v63  ;;  %1570 = vst.msk [vmem:[%s2571_s24 + $0x210] sm:$0xff] %vm1503_vm4, %v1471_v0  ;;  %v1325_v5 = vadd.f32 %v2558_v39, %v1220_v1  ;;  %v1941_v6 = vpop.f32.mrb[20].mxu0  ;;  %v1375_v7 = vadd.f32 %v2558_v39, %v1270_v2  ;;  %v2016_v8 = vpop.f32.mrb[20].mxu1 }
 0x15e   : > { %v1424_v9 = vmax.f32 %v1326_v3, 0.0  ;;  %v1474_v10 = vmax.f32 %v1376_v4, 0.0  ;;  %v1223_v11 = vmul.f32 %v1941_v6, %v2556_v37  ;;  %v806_v12 = vpop.f32.mrb[21].mxu0  ;;  %v1273_v13 = vmul.f32 %v2016_v8, %v2556_v37  ;;  %v1056_v14 = vpop.f32.mrb[21].mxu1 }
 0x15f   : > { %v1423_v15 = vmax.f32 %v1325_v5, 0.0  ;;  %v1473_v16 = vmax.f32 %v1375_v7, 0.0  ;;  %v1222_v17 = vmul.f32 %v2556_v37, %v806_v12  ;;  %v1272_v18 = vmul.f32 %v2556_v37, %v1056_v14 }
 0x160   : > { %1523 = vst.msk [vmem:[%s2571_s24 + $0x98] sm:$0xff] %vm1503_vm4, %v1424_v9  ;;  %1573 = vst.msk [vmem:[%s2571_s24 + $0x228] sm:$0xff] %vm1503_vm4, %v1474_v10  ;;  %v1328_v19 = vadd.f32 %v2558_v39, %v1223_v11  ;;  %v1378_v20 = vadd.f32 %v2558_v39, %v1273_v13 }
 0x161   : > { %1522 = vst.msk [vmem:[%s2571_s24 + $0x90] sm:$0xff] %vm1503_vm4, %v1423_v15  ;;  %1572 = vst.msk [vmem:[%s2571_s24 + $0x220] sm:$0xff] %vm1503_vm4, %v1473_v16  ;;  %v1327_v21 = vadd.f32 %v2558_v39, %v1222_v17  ;;  %v1944_v22 = vpop.f32.mrb[22].mxu0  ;;  %v1377_v23 = vadd.f32 %v2558_v39, %v1272_v18  ;;  %v2019_v24 = vpop.f32.mrb[22].mxu1 }
 0x162   : > { %v1426_v25 = vmax.f32 %v1328_v19, 0.0  ;;  %v1476_v26 = vmax.f32 %v1378_v20, 0.0  ;;  %v1225_v27 = vmul.f32 %v1944_v22, %v2556_v37  ;;  %v816_v28 = vpop.f32.mrb[23].mxu0  ;;  %v1275_v29 = vmul.f32 %v2019_v24, %v2556_v37  ;;  %v1066_v30 = vpop.f32.mrb[23].mxu1 }
 0x163   : > { %v1425_v31 = vmax.f32 %v1327_v21, 0.0  ;;  %v1475_v32 = vmax.f32 %v1377_v23, 0.0  ;;  %v1224_v33 = vmul.f32 %v2556_v37, %v816_v28  ;;  %v1274_v34 = vmul.f32 %v2556_v37, %v1066_v30 }
 0x164   : > { %1525 = vst.msk [vmem:[%s2571_s24 + $0xa8] sm:$0xff] %vm1503_vm4, %v1426_v25  ;;  %1575 = vst.msk [vmem:[%s2571_s24 + $0x238] sm:$0xff] %vm1503_vm4, %v1476_v26  ;;  %v1330_v35 = vadd.f32 %v2558_v39, %v1225_v27  ;;  %v1380_v36 = vadd.f32 %v2558_v39, %v1275_v29 }
 0x165   : > { %1524 = vst.msk [vmem:[%s2571_s24 + $0xa0] sm:$0xff] %vm1503_vm4, %v1425_v31  ;;  %1574 = vst.msk [vmem:[%s2571_s24 + $0x230] sm:$0xff] %vm1503_vm4, %v1475_v32  ;;  %v1329_v38 = vadd.f32 %v2558_v39, %v1224_v33  ;;  %v1947_v40 = vpop.f32.mrb[24].mxu0  ;;  %v1379_v41 = vadd.f32 %v2558_v39, %v1274_v34  ;;  %v2022_v42 = vpop.f32.mrb[24].mxu1 }
 0x166   : > { %v1428_v43 = vmax.f32 %v1330_v35, 0.0  ;;  %v1478_v44 = vmax.f32 %v1380_v36, 0.0  ;;  %v1227_v45 = vmul.f32 %v1947_v40, %v2556_v37  ;;  %v826_v46 = vpop.f32.mrb[25].mxu0  ;;  %v1277_v47 = vmul.f32 %v2022_v42, %v2556_v37  ;;  %v1076_v48 = vpop.f32.mrb[25].mxu1 }
 0x167   : > { %v1427_v49 = vmax.f32 %v1329_v38, 0.0  ;;  %v1477_v50 = vmax.f32 %v1379_v41, 0.0  ;;  %v1226_v51 = vmul.f32 %v2556_v37, %v826_v46  ;;  %v1276_v52 = vmul.f32 %v2556_v37, %v1076_v48 }
 0x168   : > { %1527 = vst.msk [vmem:[%s2571_s24 + $0xb8] sm:$0xff] %vm1503_vm4, %v1428_v43  ;;  %1577 = vst.msk [vmem:[%s2571_s24 + $0x248] sm:$0xff] %vm1503_vm4, %v1478_v44  ;;  %v1332_v53 = vadd.f32 %v2558_v39, %v1227_v45  ;;  %v1382_v54 = vadd.f32 %v2558_v39, %v1277_v47 }
 0x169   : > { %1526 = vst.msk [vmem:[%s2571_s24 + $0xb0] sm:$0xff] %vm1503_vm4, %v1427_v49  ;;  %1576 = vst.msk [vmem:[%s2571_s24 + $0x240] sm:$0xff] %vm1503_vm4, %v1477_v50  ;;  %v1331_v55 = vadd.f32 %v2558_v39, %v1226_v51  ;;  %v1950_v56 = vpop.f32.mrb[26].mxu0  ;;  %v1381_v57 = vadd.f32 %v2558_v39, %v1276_v52  ;;  %v2025_v58 = vpop.f32.mrb[26].mxu1 }
 0x16a   : > { %v1430_v59 = vmax.f32 %v1332_v53, 0.0  ;;  %v1480_v60 = vmax.f32 %v1382_v54, 0.0  ;;  %v1229_v61 = vmul.f32 %v1950_v56, %v2556_v37  ;;  %v836_v62 = vpop.f32.mrb[27].mxu0  ;;  %v1279_v63 = vmul.f32 %v2025_v58, %v2556_v37  ;;  %v1086_v0 = vpop.f32.mrb[27].mxu1 }
 0x16b   : > { %v1429_v1 = vmax.f32 %v1331_v55, 0.0  ;;  %v1479_v2 = vmax.f32 %v1381_v57, 0.0  ;;  %v1228_v3 = vmul.f32 %v2556_v37, %v836_v62  ;;  %v1278_v4 = vmul.f32 %v2556_v37, %v1086_v0 }
 0x16c   : > { %1529 = vst.msk [vmem:[%s2571_s24 + $0xc8] sm:$0xff] %vm1503_vm4, %v1430_v59  ;;  %1579 = vst.msk [vmem:[%s2571_s24 + $0x258] sm:$0xff] %vm1503_vm4, %v1480_v60  ;;  %v1334_v5 = vadd.f32 %v2558_v39, %v1229_v61  ;;  %v1384_v6 = vadd.f32 %v2558_v39, %v1279_v63 }
 0x16d   : > { %1528 = vst.msk [vmem:[%s2571_s24 + $0xc0] sm:$0xff] %vm1503_vm4, %v1429_v1  ;;  %1578 = vst.msk [vmem:[%s2571_s24 + $0x250] sm:$0xff] %vm1503_vm4, %v1479_v2  ;;  %v1333_v7 = vadd.f32 %v2558_v39, %v1228_v3  ;;  %v1953_v8 = vpop.f32.mrb[28].mxu0  ;;  %v1383_v9 = vadd.f32 %v2558_v39, %v1278_v4  ;;  %v2028_v10 = vpop.f32.mrb[28].mxu1 }
 0x16e   : > { %v1432_v11 = vmax.f32 %v1334_v5, 0.0  ;;  %v1482_v12 = vmax.f32 %v1384_v6, 0.0  ;;  %v1231_v13 = vmul.f32 %v1953_v8, %v2556_v37  ;;  %v846_v14 = vpop.f32.mrb[29].mxu0  ;;  %v1281_v15 = vmul.f32 %v2028_v10, %v2556_v37  ;;  %v1096_v16 = vpop.f32.mrb[29].mxu1 }
 0x16f   : > { %v1431_v17 = vmax.f32 %v1333_v7, 0.0  ;;  %v1481_v18 = vmax.f32 %v1383_v9, 0.0  ;;  %v1230_v19 = vmul.f32 %v2556_v37, %v846_v14  ;;  %v1280_v20 = vmul.f32 %v2556_v37, %v1096_v16 }
 0x170   : > { %1531 = vst.msk [vmem:[%s2571_s24 + $0xd8] sm:$0xff] %vm1503_vm4, %v1432_v11  ;;  %1581 = vst.msk [vmem:[%s2571_s24 + $0x268] sm:$0xff] %vm1503_vm4, %v1482_v12  ;;  %v1336_v21 = vadd.f32 %v2558_v39, %v1231_v13  ;;  %v1386_v22 = vadd.f32 %v2558_v39, %v1281_v15 }
 0x171   : > { %1530 = vst.msk [vmem:[%s2571_s24 + $0xd0] sm:$0xff] %vm1503_vm4, %v1431_v17  ;;  %1580 = vst.msk [vmem:[%s2571_s24 + $0x260] sm:$0xff] %vm1503_vm4, %v1481_v18  ;;  %v1335_v23 = vadd.f32 %v2558_v39, %v1230_v19  ;;  %v1956_v24 = vpop.f32.mrb[30].mxu0  ;;  %v1385_v25 = vadd.f32 %v2558_v39, %v1280_v20  ;;  %v2031_v26 = vpop.f32.mrb[30].mxu1 }
 0x172   : > { %v1434_v27 = vmax.f32 %v1336_v21, 0.0  ;;  %v1484_v28 = vmax.f32 %v1386_v22, 0.0  ;;  %v1233_v29 = vmul.f32 %v1956_v24, %v2556_v37  ;;  %v856_v30 = vpop.f32.mrb[31].mxu0  ;;  %v1283_v31 = vmul.f32 %v2031_v26, %v2556_v37  ;;  %v1106_v32 = vpop.f32.mrb[31].mxu1 }
 0x173   : > { %v1433_v33 = vmax.f32 %v1335_v23, 0.0  ;;  %v1483_v34 = vmax.f32 %v1385_v25, 0.0  ;;  %v1232_v35 = vmul.f32 %v2556_v37, %v856_v30  ;;  %v1282_v36 = vmul.f32 %v2556_v37, %v1106_v32 }
 0x174   : > { %1533 = vst.msk [vmem:[%s2571_s24 + $0xe8] sm:$0xff] %vm1503_vm4, %v1434_v27  ;;  %1583 = vst.msk [vmem:[%s2571_s24 + $0x278] sm:$0xff] %vm1503_vm4, %v1484_v28  ;;  %v1338_v38 = vadd.f32 %v2558_v39, %v1233_v29  ;;  %v1388_v40 = vadd.f32 %v2558_v39, %v1283_v31 }
 0x175   : > { %1532 = vst.msk [vmem:[%s2571_s24 + $0xe0] sm:$0xff] %vm1503_vm4, %v1433_v33  ;;  %1582 = vst.msk [vmem:[%s2571_s24 + $0x270] sm:$0xff] %vm1503_vm4, %v1483_v34  ;;  %v1337_v41 = vadd.f32 %v2558_v39, %v1232_v35  ;;  %v1959_v42 = vpop.f32.mrb[32].mxu0  ;;  %v1387_v43 = vadd.f32 %v2558_v39, %v1282_v36  ;;  %v2034_v44 = vpop.f32.mrb[32].mxu1 }
 0x176   : > { %v1436_v45 = vmax.f32 %v1338_v38, 0.0  ;;  %v1486_v46 = vmax.f32 %v1388_v40, 0.0  ;;  %v1235_v47 = vmul.f32 %v1959_v42, %v2556_v37  ;;  %v866_v48 = vpop.f32.mrb[33].mxu0  ;;  %v1285_v49 = vmul.f32 %v2034_v44, %v2556_v37  ;;  %v1116_v50 = vpop.f32.mrb[33].mxu1 }
 0x177   : > { %v1435_v51 = vmax.f32 %v1337_v41, 0.0  ;;  %v1485_v52 = vmax.f32 %v1387_v43, 0.0  ;;  %v1234_v53 = vmul.f32 %v2556_v37, %v866_v48  ;;  %v1284_v54 = vmul.f32 %v2556_v37, %v1116_v50 }
 0x178   : > { %1535 = vst.msk [vmem:[%s2571_s24 + $0xf8] sm:$0xff] %vm1503_vm4, %v1436_v45  ;;  %1585 = vst.msk [vmem:[%s2571_s24 + $0x288] sm:$0xff] %vm1503_vm4, %v1486_v46  ;;  %v1340_v55 = vadd.f32 %v2558_v39, %v1235_v47  ;;  %v1390_v56 = vadd.f32 %v2558_v39, %v1285_v49 }
 0x179   : > { %1534 = vst.msk [vmem:[%s2571_s24 + $0xf0] sm:$0xff] %vm1503_vm4, %v1435_v51  ;;  %1584 = vst.msk [vmem:[%s2571_s24 + $0x280] sm:$0xff] %vm1503_vm4, %v1485_v52  ;;  %v1339_v57 = vadd.f32 %v2558_v39, %v1234_v53  ;;  %v1962_v58 = vpop.f32.mrb[34].mxu0  ;;  %v1389_v59 = vadd.f32 %v2558_v39, %v1284_v54  ;;  %v2037_v60 = vpop.f32.mrb[34].mxu1 }
 0x17a   : > { %v1438_v61 = vmax.f32 %v1340_v55, 0.0  ;;  %v1488_v62 = vmax.f32 %v1390_v56, 0.0  ;;  %v1237_v63 = vmul.f32 %v1962_v58, %v2556_v37  ;;  %v876_v0 = vpop.f32.mrb[35].mxu0  ;;  %v1287_v1 = vmul.f32 %v2037_v60, %v2556_v37  ;;  %v1126_v2 = vpop.f32.mrb[35].mxu1 }
 0x17b   : > { %v1437_v3 = vmax.f32 %v1339_v57, 0.0  ;;  %v1487_v4 = vmax.f32 %v1389_v59, 0.0  ;;  %v1236_v5 = vmul.f32 %v2556_v37, %v876_v0  ;;  %v1286_v6 = vmul.f32 %v2556_v37, %v1126_v2 }
 0x17c   : > { %1537 = vst.msk [vmem:[%s2571_s24 + $0x108] sm:$0xff] %vm1503_vm4, %v1438_v61  ;;  %1587 = vst.msk [vmem:[%s2571_s24 + $0x298] sm:$0xff] %vm1503_vm4, %v1488_v62  ;;  %v1342_v7 = vadd.f32 %v2558_v39, %v1237_v63  ;;  %v1392_v8 = vadd.f32 %v2558_v39, %v1287_v1 }
 0x17d   : > { %1536 = vst.msk [vmem:[%s2571_s24 + $0x100] sm:$0xff] %vm1503_vm4, %v1437_v3  ;;  %1586 = vst.msk [vmem:[%s2571_s24 + $0x290] sm:$0xff] %vm1503_vm4, %v1487_v4  ;;  %v1341_v9 = vadd.f32 %v2558_v39, %v1236_v5  ;;  %v1965_v10 = vpop.f32.mrb[36].mxu0  ;;  %v1391_v11 = vadd.f32 %v2558_v39, %v1286_v6  ;;  %v2040_v12 = vpop.f32.mrb[36].mxu1 }
 0x17e   : > { %v1440_v13 = vmax.f32 %v1342_v7, 0.0  ;;  %v1490_v14 = vmax.f32 %v1392_v8, 0.0  ;;  %v1239_v15 = vmul.f32 %v1965_v10, %v2556_v37  ;;  %v886_v16 = vpop.f32.mrb[37].mxu0  ;;  %v1289_v17 = vmul.f32 %v2040_v12, %v2556_v37  ;;  %v1136_v18 = vpop.f32.mrb[37].mxu1 }
 0x17f   : > { %v1439_v19 = vmax.f32 %v1341_v9, 0.0  ;;  %v1489_v20 = vmax.f32 %v1391_v11, 0.0  ;;  %v1238_v21 = vmul.f32 %v2556_v37, %v886_v16  ;;  %v1288_v22 = vmul.f32 %v2556_v37, %v1136_v18 }
 0x180   : > { %1539 = vst.msk [vmem:[%s2571_s24 + $0x118] sm:$0xff] %vm1503_vm4, %v1440_v13  ;;  %1589 = vst.msk [vmem:[%s2571_s24 + $0x2a8] sm:$0xff] %vm1503_vm4, %v1490_v14  ;;  %v1344_v23 = vadd.f32 %v2558_v39, %v1239_v15  ;;  %v1394_v24 = vadd.f32 %v2558_v39, %v1289_v17 }
 0x181   : > { %1538 = vst.msk [vmem:[%s2571_s24 + $0x110] sm:$0xff] %vm1503_vm4, %v1439_v19  ;;  %1588 = vst.msk [vmem:[%s2571_s24 + $0x2a0] sm:$0xff] %vm1503_vm4, %v1489_v20  ;;  %v1343_v25 = vadd.f32 %v2558_v39, %v1238_v21  ;;  %v1968_v26 = vpop.f32.mrb[38].mxu0  ;;  %v1393_v27 = vadd.f32 %v2558_v39, %v1288_v22  ;;  %v2043_v28 = vpop.f32.mrb[38].mxu1 }
 0x182   : > { %v1442_v29 = vmax.f32 %v1344_v23, 0.0  ;;  %v1492_v30 = vmax.f32 %v1394_v24, 0.0  ;;  %v1241_v31 = vmul.f32 %v1968_v26, %v2556_v37  ;;  %v896_v32 = vpop.f32.mrb[39].mxu0  ;;  %v1291_v33 = vmul.f32 %v2043_v28, %v2556_v37  ;;  %v1146_v34 = vpop.f32.mrb[39].mxu1 }
 0x183   : > { %v1441_v35 = vmax.f32 %v1343_v25, 0.0  ;;  %v1491_v36 = vmax.f32 %v1393_v27, 0.0  ;;  %v1240_v38 = vmul.f32 %v2556_v37, %v896_v32  ;;  %v1290_v40 = vmul.f32 %v2556_v37, %v1146_v34 }
 0x184   : > { %1541 = vst.msk [vmem:[%s2571_s24 + $0x128] sm:$0xff] %vm1503_vm4, %v1442_v29  ;;  %1591 = vst.msk [vmem:[%s2571_s24 + $0x2b8] sm:$0xff] %vm1503_vm4, %v1492_v30  ;;  %v1346_v41 = vadd.f32 %v2558_v39, %v1241_v31  ;;  %v1396_v42 = vadd.f32 %v2558_v39, %v1291_v33 }
 0x185   : > { %1540 = vst.msk [vmem:[%s2571_s24 + $0x120] sm:$0xff] %vm1503_vm4, %v1441_v35  ;;  %1590 = vst.msk [vmem:[%s2571_s24 + $0x2b0] sm:$0xff] %vm1503_vm4, %v1491_v36  ;;  %v1345_v43 = vadd.f32 %v2558_v39, %v1240_v38  ;;  %v1971_v44 = vpop.f32.mrb[40].mxu0  ;;  %v1395_v45 = vadd.f32 %v2558_v39, %v1290_v40  ;;  %v2046_v46 = vpop.f32.mrb[40].mxu1 }
 0x186   : > { %v1444_v47 = vmax.f32 %v1346_v41, 0.0  ;;  %v1494_v48 = vmax.f32 %v1396_v42, 0.0  ;;  %v1243_v49 = vmul.f32 %v1971_v44, %v2556_v37  ;;  %v906_v50 = vpop.f32.mrb[41].mxu0  ;;  %v1293_v51 = vmul.f32 %v2046_v46, %v2556_v37  ;;  %v1156_v52 = vpop.f32.mrb[41].mxu1 }
 0x187   : > { %v1443_v53 = vmax.f32 %v1345_v43, 0.0  ;;  %v1493_v54 = vmax.f32 %v1395_v45, 0.0  ;;  %v1242_v55 = vmul.f32 %v2556_v37, %v906_v50  ;;  %v1292_v56 = vmul.f32 %v2556_v37, %v1156_v52 }
 0x188   : > { %1543 = vst.msk [vmem:[%s2571_s24 + $0x138] sm:$0xff] %vm1503_vm4, %v1444_v47  ;;  %1593 = vst.msk [vmem:[%s2571_s24 + $0x2c8] sm:$0xff] %vm1503_vm4, %v1494_v48  ;;  %v1348_v57 = vadd.f32 %v2558_v39, %v1243_v49  ;;  %v1398_v58 = vadd.f32 %v2558_v39, %v1293_v51 }
 0x189   : > { %1542 = vst.msk [vmem:[%s2571_s24 + $0x130] sm:$0xff] %vm1503_vm4, %v1443_v53  ;;  %1592 = vst.msk [vmem:[%s2571_s24 + $0x2c0] sm:$0xff] %vm1503_vm4, %v1493_v54  ;;  %v1347_v59 = vadd.f32 %v2558_v39, %v1242_v55  ;;  %v1974_v60 = vpop.f32.mrb[42].mxu0  ;;  %v1397_v61 = vadd.f32 %v2558_v39, %v1292_v56  ;;  %v2049_v62 = vpop.f32.mrb[42].mxu1 }
 0x18a   : > { %v1446_v63 = vmax.f32 %v1348_v57, 0.0  ;;  %v1496_v0 = vmax.f32 %v1398_v58, 0.0  ;;  %v1245_v1 = vmul.f32 %v1974_v60, %v2556_v37  ;;  %v916_v2 = vpop.f32.mrb[43].mxu0  ;;  %v1295_v3 = vmul.f32 %v2049_v62, %v2556_v37  ;;  %v1166_v4 = vpop.f32.mrb[43].mxu1 }
 0x18b   : > { %v1445_v5 = vmax.f32 %v1347_v59, 0.0  ;;  %v1495_v6 = vmax.f32 %v1397_v61, 0.0  ;;  %v1244_v7 = vmul.f32 %v2556_v37, %v916_v2  ;;  %v1294_v8 = vmul.f32 %v2556_v37, %v1166_v4 }
 0x18c   : > { %1545 = vst.msk [vmem:[%s2571_s24 + $0x148] sm:$0xff] %vm1503_vm4, %v1446_v63  ;;  %1595 = vst.msk [vmem:[%s2571_s24 + $0x2d8] sm:$0xff] %vm1503_vm4, %v1496_v0  ;;  %v1350_v9 = vadd.f32 %v2558_v39, %v1245_v1  ;;  %v1400_v10 = vadd.f32 %v2558_v39, %v1295_v3 }
 0x18d   : > { %1544 = vst.msk [vmem:[%s2571_s24 + $0x140] sm:$0xff] %vm1503_vm4, %v1445_v5  ;;  %1594 = vst.msk [vmem:[%s2571_s24 + $0x2d0] sm:$0xff] %vm1503_vm4, %v1495_v6  ;;  %v1349_v11 = vadd.f32 %v2558_v39, %v1244_v7  ;;  %v1977_v12 = vpop.f32.mrb[44].mxu0  ;;  %v1399_v13 = vadd.f32 %v2558_v39, %v1294_v8  ;;  %v2052_v14 = vpop.f32.mrb[44].mxu1 }
 0x18e   : > { %v1448_v15 = vmax.f32 %v1350_v9, 0.0  ;;  %v1498_v16 = vmax.f32 %v1400_v10, 0.0  ;;  %v1247_v17 = vmul.f32 %v1977_v12, %v2556_v37  ;;  %v926_v18 = vpop.f32.mrb[45].mxu0  ;;  %v1297_v19 = vmul.f32 %v2052_v14, %v2556_v37  ;;  %v1176_v20 = vpop.f32.mrb[45].mxu1 }
 0x18f   : > { %v1447_v21 = vmax.f32 %v1349_v11, 0.0  ;;  %v1497_v22 = vmax.f32 %v1399_v13, 0.0  ;;  %v1246_v23 = vmul.f32 %v2556_v37, %v926_v18  ;;  %v1296_v24 = vmul.f32 %v2556_v37, %v1176_v20 }
 0x190   : > { %1547 = vst.msk [vmem:[%s2571_s24 + $0x158] sm:$0xff] %vm1503_vm4, %v1448_v15  ;;  %1597 = vst.msk [vmem:[%s2571_s24 + $0x2e8] sm:$0xff] %vm1503_vm4, %v1498_v16  ;;  %v1352_v25 = vadd.f32 %v2558_v39, %v1247_v17  ;;  %v1402_v26 = vadd.f32 %v2558_v39, %v1297_v19 }
 0x191   : > { %1546 = vst.msk [vmem:[%s2571_s24 + $0x150] sm:$0xff] %vm1503_vm4, %v1447_v21  ;;  %1596 = vst.msk [vmem:[%s2571_s24 + $0x2e0] sm:$0xff] %vm1503_vm4, %v1497_v22  ;;  %v1351_v27 = vadd.f32 %v2558_v39, %v1246_v23  ;;  %v1980_v28 = vpop.f32.mrb[46].mxu0  ;;  %v1401_v29 = vadd.f32 %v2558_v39, %v1296_v24  ;;  %v2055_v30 = vpop.f32.mrb[46].mxu1 }
 0x192   : > { %v1450_v31 = vmax.f32 %v1352_v25, 0.0  ;;  %v1500_v32 = vmax.f32 %v1402_v26, 0.0  ;;  %v1249_v33 = vmul.f32 %v1980_v28, %v2556_v37  ;;  %v936_v34 = vpop.f32.mrb[47].mxu0  ;;  %v1299_v35 = vmul.f32 %v2055_v30, %v2556_v37  ;;  %v1186_v36 = vpop.f32.mrb[47].mxu1 }
 0x193   : > { %v1449_v38 = vmax.f32 %v1351_v27, 0.0  ;;  %v1499_v40 = vmax.f32 %v1401_v29, 0.0  ;;  %v1248_v41 = vmul.f32 %v2556_v37, %v936_v34  ;;  %v1298_v42 = vmul.f32 %v2556_v37, %v1186_v36 }
 0x194   : > { %1549 = vst.msk [vmem:[%s2571_s24 + $0x168] sm:$0xff] %vm1503_vm4, %v1450_v31  ;;  %1599 = vst.msk [vmem:[%s2571_s24 + $0x2f8] sm:$0xff] %vm1503_vm4, %v1500_v32  ;;  %v1354_v43 = vadd.f32 %v2558_v39, %v1249_v33  ;;  %v1404_v44 = vadd.f32 %v2558_v39, %v1299_v35 }
 0x195   : > { %1548 = vst.msk [vmem:[%s2571_s24 + $0x160] sm:$0xff] %vm1503_vm4, %v1449_v38  ;;  %1598 = vst.msk [vmem:[%s2571_s24 + $0x2f0] sm:$0xff] %vm1503_vm4, %v1499_v40  ;;  %v1353_v45 = vadd.f32 %v2558_v39, %v1248_v41  ;;  %v1983_v46 = vpop.f32.mrb[48].mxu0  ;;  %v1403_v47 = vadd.f32 %v2558_v39, %v1298_v42 }
 0x196   : > { %v1452_v48 = vmax.f32 %v1354_v43, 0.0  ;;  %v1502_v49 = vmax.f32 %v1404_v44, 0.0  ;;  %v1251_v50 = vmul.f32 %v1983_v46, %v2556_v37  ;;  %v946_v51 = vpop.f32.mrb[49].mxu0 }
 0x197   : > { %v1451_v52 = vmax.f32 %v1353_v45, 0.0  ;;  %v1501_v53 = vmax.f32 %v1403_v47, 0.0  ;;  %v1250_v54 = vmul.f32 %v2556_v37, %v946_v51 }
 0x198   : > { %1551 = vst.msk [vmem:[%s2571_s24 + $0x178] sm:$0xff] %vm1503_vm4, %v1452_v48  ;;  %1601 = vst.msk [vmem:[%s2571_s24 + $0x308] sm:$0xff] %vm1503_vm4, %v1502_v49  ;;  %v1356_v55 = vadd.f32 %v2558_v39, %v1251_v50 }
 0x199   : > { %1550 = vst.msk [vmem:[%s2571_s24 + $0x170] sm:$0xff] %vm1503_vm4, %v1451_v52  ;;  %1600 = vst.msk [vmem:[%s2571_s24 + $0x300] sm:$0xff] %vm1503_vm4, %v1501_v53  ;;  %v1355_v56 = vadd.f32 %v2558_v39, %v1250_v54 }
 0x19a   : > { %v1454_v57 = vmax.f32 %v1356_v55, 0.0 }
 0x19b   : > { %v1453_v58 = vmax.f32 %v1355_v56, 0.0 }
 0x19c   : > { %1553 = vst.msk [vmem:[%s2571_s24 + $0x188] sm:$0xff] %vm1503_vm4, %v1454_v57 }
 0x19d   : > { %1552 = vst.msk [vmem:[%s2571_s24 + $0x180] sm:$0xff] %vm1503_vm4, %v1453_v58 }
 0x19e PF: > { %s16_s15 = sadd.s32 1, %s2204_s15  }
 0x19f   : > { %p13_p5 = scmp.ge.s32.totalorder %s16_s15, 4  }
 0x1a1   :  { %15 = sbr.rel (!%p13_p5) target bundleno = 2 (0x2), region = 79 }
 0x1a8   :  { %1624 = vsyncpa [#allocation3], 1 }
 0x1a9   :  { %1626 = vsyncpa [#allocation3 + $0x1], 1 }
 0x1aa   :  { %1627 = vsyncpa [#allocation5], 1 }

// kernel: vae_forward.10
= control target key start
LH: loop header
LB: loop body
LE: loop exit
PB: predicated region body
PF: predicated region fallthrough
CT: control target
= control target key end

     0   :  { %v903_v0 = vmov 0.0|0.0   ;;  %vm133_vm0 = vcmask 130048   ;;  %vm752_vm1 = vcmask 261120   ;;  %s1648_s1 = inlined_call_operand.vmem [shape: f32[144,32], index: 1, kind: input, shape index: {}]   ;;  %s1649_s0 = inlined_call_operand.vmem [shape: f32[392,144], index: 0, kind: input, shape index: {}]   ;;  %s1650_s2 = inlined_call_operand.vmem [shape: f32[1,32], index: 2, kind: input, shape index: {}]   ;;  %s1651_s3 = inlined_call_operand.vmem [shape: f32[1,32], index: 3, kind: input, shape index: {}]   ;;  %s1652_s4 = inlined_call_operand.vmem [shape: f32[392,32], index: 4, kind: output, shape index: {}]  }
   0x1   :  { %857 = vmatprep.subr.bf16.mxu0 %v903_v0  ;;  %v115_v1 = vld [vmem:[%s1648_s1] sm:$0xff]  ;;  %v116_v2 = vld [vmem:[%s1648_s1 + $0x8] sm:$0xff]  ;;  %884 = vmatprep.subr.bf16.mxu1 %v903_v0  ;;  %v117_v3 = vld [vmem:[%s1648_s1 + $0x10] sm:$0xff] }
   0x2   :  { %v858_v4 = vpack.c.bf16 %v116_v2, %v115_v1  ;;  %v118_v5 = vld [vmem:[%s1648_s1 + $0x18] sm:$0xff]  ;;  %v119_v7 = vld [vmem:[%s1648_s1 + $0x20] sm:$0xff]  ;;  %v120_v8 = vld [vmem:[%s1648_s1 + $0x28] sm:$0xff] }
   0x3   :  { %v861_v6 = vpack.c.bf16 %v118_v5, %v117_v3  ;;  %v18_v9 = vld [vmem:[%s1649_s0 + $0x8] sm:$0xff]  ;;  %v68_v10 = vld [vmem:[%s1649_s0 + $0x198] sm:$0xff]  ;;  %v864_v11 = vpack.c.bf16 %v120_v8, %v119_v7  ;;  %v121_v12 = vld [vmem:[%s1648_s1 + $0x30] sm:$0xff] }
   0x4   :  { %859 = vmatpush1.bf16.msra.mxu0 %v858_v4  ;;  %893 = vmatpush1.bf16.msra.mxu1 %v858_v4  ;;  %v122_v13 = vld [vmem:[%s1648_s1 + $0x38] sm:$0xff]  ;;  %v123_v15 = vld [vmem:[%s1648_s1 + $0x40] sm:$0xff]  ;;  %v124_v16 = vld [vmem:[%s1648_s1 + $0x48] sm:$0xff] }
   0x5   :  { %860 = vmatprep.subr.bf16.mxu0 %v903_v0  ;;  %885 = vmatprep.subr.bf16.mxu1 %v903_v0  ;;  %v867_v14 = vpack.c.bf16 %v122_v13, %v121_v12  ;;  %v870_v17 = vpack.c.bf16 %v124_v16, %v123_v15  ;;  %v125_v18 = vld [vmem:[%s1648_s1 + $0x50] sm:$0xff]  ;;  %v126_v19 = vld [vmem:[%s1648_s1 + $0x58] sm:$0xff]  ;;  %v127_v21 = vld [vmem:[%s1648_s1 + $0x60] sm:$0xff] }
   0x6   :  { %806 = vmatprep.mubr.msk.f32.mxu0 %vm133_vm0, %v18_v9  ;;  %831 = vmatprep.mubr.msk.f32.mxu1 %vm133_vm0, %v68_v10  ;;  %v873_v20 = vpack.c.bf16 %v126_v19, %v125_v18  ;;  %v128_v22 = vld [vmem:[%s1648_s1 + $0x68] sm:$0xff]  ;;  %v129_v24 = vld [vmem:[%s1648_s1 + $0x70] sm:$0xff]  ;;  %v130_v25 = vld [vmem:[%s1648_s1 + $0x78] sm:$0xff] }
   0x7   :  { %v876_v23 = vpack.c.bf16 %v128_v22, %v127_v21  ;;  %v879_v26 = vpack.c.bf16 %v130_v25, %v129_v24  ;;  %v131_v27 = vld [vmem:[%s1648_s1 + $0x80] sm:$0xff]  ;;  %v132_v28 = vld [vmem:[%s1648_s1 + $0x88] sm:$0xff]  ;;  %v67_v31 = vld [vmem:[%s1649_s0 + $0x190] sm:$0xff] }
   0x8   :  { %862 = vmatpush1.bf16.msra.mxu0 %v861_v6  ;;  %894 = vmatpush1.bf16.msra.mxu1 %v861_v6  ;;  %v882_v29 = vpack.c.bf16 %v132_v28, %v131_v27  ;;  %v17_v30 = vld [vmem:[%s1649_s0] sm:$0xff]  ;;  %v20_v32 = vld [vmem:[%s1649_s0 + $0x18] sm:$0xff]  ;;  %v70_v33 = vld [vmem:[%s1649_s0 + $0x1a8] sm:$0xff] }
   0x9   :  { %863 = vmatprep.subr.bf16.mxu0 %v903_v0  ;;  %886 = vmatprep.subr.bf16.mxu1 %v903_v0  ;;  %v19_v34 = vld [vmem:[%s1649_s0 + $0x10] sm:$0xff]  ;;  %v69_v35 = vld [vmem:[%s1649_s0 + $0x1a0] sm:$0xff]  ;;  %v22_v36 = vld [vmem:[%s1649_s0 + $0x28] sm:$0xff] }
   0xa   :  { %v72_v37 = vld [vmem:[%s1649_s0 + $0x1b8] sm:$0xff]  ;;  %v21_v38 = vld [vmem:[%s1649_s0 + $0x20] sm:$0xff]  ;;  %v71_v39 = vld [vmem:[%s1649_s0 + $0x1b0] sm:$0xff] }
   0xb   :  { %v24_v40 = vld [vmem:[%s1649_s0 + $0x38] sm:$0xff]  ;;  %v74_v41 = vld [vmem:[%s1649_s0 + $0x1c8] sm:$0xff]  ;;  %v23_v42 = vld [vmem:[%s1649_s0 + $0x30] sm:$0xff] }
   0xc   :  { %865 = vmatpush1.bf16.msra.mxu0 %v864_v11  ;;  %895 = vmatpush1.bf16.msra.mxu1 %v864_v11  ;;  %v73_v43 = vld [vmem:[%s1649_s0 + $0x1c0] sm:$0xff]  ;;  %v26_v44 = vld [vmem:[%s1649_s0 + $0x48] sm:$0xff]  ;;  %v76_v45 = vld [vmem:[%s1649_s0 + $0x1d8] sm:$0xff] }
   0xd   :  { %866 = vmatprep.subr.bf16.mxu0 %v903_v0  ;;  %887 = vmatprep.subr.bf16.mxu1 %v903_v0  ;;  %v25_v46 = vld [vmem:[%s1649_s0 + $0x40] sm:$0xff]  ;;  %v75_v47 = vld [vmem:[%s1649_s0 + $0x1d0] sm:$0xff]  ;;  %v28_v48 = vld [vmem:[%s1649_s0 + $0x58] sm:$0xff] }
   0xe   :  { %v78_v49 = vld [vmem:[%s1649_s0 + $0x1e8] sm:$0xff]  ;;  %v27_v50 = vld [vmem:[%s1649_s0 + $0x50] sm:$0xff]  ;;  %v77_v51 = vld [vmem:[%s1649_s0 + $0x1e0] sm:$0xff] }
   0xf   :  { %v30_v52 = vld [vmem:[%s1649_s0 + $0x68] sm:$0xff]  ;;  %v80_v53 = vld [vmem:[%s1649_s0 + $0x1f8] sm:$0xff]  ;;  %v29_v54 = vld [vmem:[%s1649_s0 + $0x60] sm:$0xff] }
  0x10   :  { %868 = vmatpush1.bf16.msra.mxu0 %v867_v14  ;;  %896 = vmatpush1.bf16.msra.mxu1 %v867_v14  ;;  %v79_v55 = vld [vmem:[%s1649_s0 + $0x1f0] sm:$0xff]  ;;  %v32_v56 = vld [vmem:[%s1649_s0 + $0x78] sm:$0xff]  ;;  %v82_v57 = vld [vmem:[%s1649_s0 + $0x208] sm:$0xff] }
  0x11   :  { %869 = vmatprep.subr.bf16.mxu0 %v903_v0  ;;  %888 = vmatprep.subr.bf16.mxu1 %v903_v0  ;;  %v31_v58 = vld [vmem:[%s1649_s0 + $0x70] sm:$0xff]  ;;  %v81_v59 = vld [vmem:[%s1649_s0 + $0x200] sm:$0xff]  ;;  %v34_v60 = vld [vmem:[%s1649_s0 + $0x88] sm:$0xff] }
  0x12   :  { %v84_v61 = vld [vmem:[%s1649_s0 + $0x218] sm:$0xff]  ;;  %v33_v62 = vld [vmem:[%s1649_s0 + $0x80] sm:$0xff]  ;;  %v83_v63 = vld [vmem:[%s1649_s0 + $0x210] sm:$0xff] }
  0x13   :  { %v86_v1 = vld [vmem:[%s1649_s0 + $0x228] sm:$0xff]  ;;  %v35_v2 = vld [vmem:[%s1649_s0 + $0x90] sm:$0xff]  ;;  %v85_v3 = vld [vmem:[%s1649_s0 + $0x220] sm:$0xff] }
  0x14   :  { %871 = vmatpush1.bf16.msra.mxu0 %v870_v17  ;;  %897 = vmatpush1.bf16.msra.mxu1 %v870_v17  ;;  %v38_v4 = vld [vmem:[%s1649_s0 + $0xa8] sm:$0xff]  ;;  %v88_v5 = vld [vmem:[%s1649_s0 + $0x238] sm:$0xff]  ;;  %v37_v6 = vld [vmem:[%s1649_s0 + $0xa0] sm:$0xff] }
  0x15   :  { %872 = vmatprep.subr.bf16.mxu0 %v903_v0  ;;  %889 = vmatprep.subr.bf16.mxu1 %v903_v0  ;;  %v87_v7 = vld [vmem:[%s1649_s0 + $0x230] sm:$0xff]  ;;  %v40_v8 = vld [vmem:[%s1649_s0 + $0xb8] sm:$0xff]  ;;  %v90_v9 = vld [vmem:[%s1649_s0 + $0x248] sm:$0xff] }
  0x16   :  { %v39_v10 = vld [vmem:[%s1649_s0 + $0xb0] sm:$0xff]  ;;  %v89_v11 = vld [vmem:[%s1649_s0 + $0x240] sm:$0xff]  ;;  %v42_v12 = vld [vmem:[%s1649_s0 + $0xc8] sm:$0xff] }
  0x17   :  { %v92_v13 = vld [vmem:[%s1649_s0 + $0x258] sm:$0xff]  ;;  %v41_v14 = vld [vmem:[%s1649_s0 + $0xc0] sm:$0xff]  ;;  %v91_v15 = vld [vmem:[%s1649_s0 + $0x250] sm:$0xff] }
  0x18   :  { %874 = vmatpush1.bf16.msra.mxu0 %v873_v20  ;;  %898 = vmatpush1.bf16.msra.mxu1 %v873_v20  ;;  %v44_v16 = vld [vmem:[%s1649_s0 + $0xd8] sm:$0xff]  ;;  %v94_v17 = vld [vmem:[%s1649_s0 + $0x268] sm:$0xff]  ;;  %v43_v18 = vld [vmem:[%s1649_s0 + $0xd0] sm:$0xff] }
  0x19   :  { %875 = vmatprep.subr.bf16.mxu0 %v903_v0  ;;  %890 = vmatprep.subr.bf16.mxu1 %v903_v0  ;;  %v93_v19 = vld [vmem:[%s1649_s0 + $0x260] sm:$0xff]  ;;  %v46_v20 = vld [vmem:[%s1649_s0 + $0xe8] sm:$0xff]  ;;  %v96_v21 = vld [vmem:[%s1649_s0 + $0x278] sm:$0xff] }
  0x1a   :  { %v45_v22 = vld [vmem:[%s1649_s0 + $0xe0] sm:$0xff]  ;;  %v48_v24 = vld [vmem:[%s1649_s0 + $0xf8] sm:$0xff]  ;;  %v98_v25 = vld [vmem:[%s1649_s0 + $0x288] sm:$0xff] }
  0x1b   :  { %v97_v27 = vld [vmem:[%s1649_s0 + $0x280] sm:$0xff]  ;;  %v50_v28 = vld [vmem:[%s1649_s0 + $0x108] sm:$0xff] }
  0x1c   :  { %877 = vmatpush1.bf16.msra.mxu0 %v876_v23  ;;  %899 = vmatpush1.bf16.msra.mxu1 %v876_v23  ;;  %v95_v23 = vld [vmem:[%s1649_s0 + $0x270] sm:$0xff] }
  0x1d   :  { %878 = vmatprep.subr.bf16.mxu0 %v903_v0  ;;  %891 = vmatprep.subr.bf16.mxu1 %v903_v0 }
  0x20   :  { %880 = vmatpush1.bf16.msra.mxu0 %v879_v26  ;;  %900 = vmatpush1.bf16.msra.mxu1 %v879_v26  ;;  %v47_v26 = vld [vmem:[%s1649_s0 + $0xf0] sm:$0xff] }
  0x21   :  { %881 = vmatprep.subr.bf16.mxu0 %v903_v0  ;;  %892 = vmatprep.subr.bf16.mxu1 %v903_v0  ;;  %v36_v0 = vld [vmem:[%s1649_s0 + $0x98] sm:$0xff] }
  0x24   :  { %883 = vmatpush1.bf16.msra.mxu0 %v882_v29  ;;  %901 = vmatpush1.bf16.msra.mxu1 %v882_v29  ;;  %v100_v29 = vld [vmem:[%s1649_s0 + $0x298] sm:$0xff] }
  0x27   :  { %346 = vmatmul.mubr.f32.vlgmr.msra.gmra.mrb[0].mxu0 %v17_v30  ;;  %471 = vmatmul.mubr.f32.vlgmr.msra.gmra.mrb[0].mxu1 %v67_v31  ;;  %v49_v30 = vld [vmem:[%s1649_s0 + $0x100] sm:$0xff]  ;;  %v99_v31 = vld [vmem:[%s1649_s0 + $0x290] sm:$0xff] }
  0x28   :  { %807 = vmatprep.mubr.msk.f32.mxu0 %vm133_vm0, %v20_v32  ;;  %832 = vmatprep.mubr.msk.f32.mxu1 %vm133_vm0, %v70_v33  ;;  %v52_v32 = vld [vmem:[%s1649_s0 + $0x118] sm:$0xff]  ;;  %v102_v33 = vld [vmem:[%s1649_s0 + $0x2a8] sm:$0xff] }
  0x2b   :  { %351 = vmatmul.mubr.f32.gmra.mrb[2].mxu0 %v19_v34  ;;  %476 = vmatmul.mubr.f32.gmra.mrb[2].mxu1 %v69_v35  ;;  %v51_v34 = vld [vmem:[%s1649_s0 + $0x110] sm:$0xff]  ;;  %v101_v35 = vld [vmem:[%s1649_s0 + $0x2a0] sm:$0xff] }
  0x2c   :  { %808 = vmatprep.mubr.msk.f32.mxu0 %vm133_vm0, %v22_v36  ;;  %833 = vmatprep.mubr.msk.f32.mxu1 %vm133_vm0, %v72_v37  ;;  %v54_v36 = vld [vmem:[%s1649_s0 + $0x128] sm:$0xff]  ;;  %v104_v37 = vld [vmem:[%s1649_s0 + $0x2b8] sm:$0xff] }
  0x2f   :  { %356 = vmatmul.mubr.f32.gmra.mrb[4].mxu0 %v21_v38  ;;  %481 = vmatmul.mubr.f32.gmra.mrb[4].mxu1 %v71_v39  ;;  %v53_v38 = vld [vmem:[%s1649_s0 + $0x120] sm:$0xff]  ;;  %v103_v39 = vld [vmem:[%s1649_s0 + $0x2b0] sm:$0xff] }
  0x30   :  { %809 = vmatprep.mubr.msk.f32.mxu0 %vm133_vm0, %v24_v40  ;;  %834 = vmatprep.mubr.msk.f32.mxu1 %vm133_vm0, %v74_v41  ;;  %v56_v40 = vld [vmem:[%s1649_s0 + $0x138] sm:$0xff]  ;;  %v106_v41 = vld [vmem:[%s1649_s0 + $0x2c8] sm:$0xff] }
  0x33   :  { %361 = vmatmul.mubr.f32.gmra.mrb[6].mxu0 %v23_v42  ;;  %486 = vmatmul.mubr.f32.gmra.mrb[6].mxu1 %v73_v43  ;;  %v55_v42 = vld [vmem:[%s1649_s0 + $0x130] sm:$0xff]  ;;  %v105_v43 = vld [vmem:[%s1649_s0 + $0x2c0] sm:$0xff] }
  0x34   :  { %810 = vmatprep.mubr.msk.f32.mxu0 %vm133_vm0, %v26_v44  ;;  %835 = vmatprep.mubr.msk.f32.mxu1 %vm133_vm0, %v76_v45  ;;  %v58_v44 = vld [vmem:[%s1649_s0 + $0x148] sm:$0xff]  ;;  %v108_v45 = vld [vmem:[%s1649_s0 + $0x2d8] sm:$0xff] }
  0x37   :  { %366 = vmatmul.mubr.f32.gmra.mrb[8].mxu0 %v25_v46  ;;  %491 = vmatmul.mubr.f32.gmra.mrb[8].mxu1 %v75_v47  ;;  %v57_v46 = vld [vmem:[%s1649_s0 + $0x140] sm:$0xff]  ;;  %v107_v47 = vld [vmem:[%s1649_s0 + $0x2d0] sm:$0xff] }
  0x38   :  { %811 = vmatprep.mubr.msk.f32.mxu0 %vm133_vm0, %v28_v48  ;;  %836 = vmatprep.mubr.msk.f32.mxu1 %vm133_vm0, %v78_v49  ;;  %v60_v48 = vld [vmem:[%s1649_s0 + $0x158] sm:$0xff]  ;;  %v110_v49 = vld [vmem:[%s1649_s0 + $0x2e8] sm:$0xff] }
  0x3b   :  { %371 = vmatmul.mubr.f32.gmra.mrb[10].mxu0 %v27_v50  ;;  %496 = vmatmul.mubr.f32.gmra.mrb[10].mxu1 %v77_v51  ;;  %v59_v50 = vld [vmem:[%s1649_s0 + $0x150] sm:$0xff]  ;;  %v109_v51 = vld [vmem:[%s1649_s0 + $0x2e0] sm:$0xff] }
  0x3c   :  { %812 = vmatprep.mubr.msk.f32.mxu0 %vm133_vm0, %v30_v52  ;;  %837 = vmatprep.mubr.msk.f32.mxu1 %vm133_vm0, %v80_v53  ;;  %v62_v52 = vld [vmem:[%s1649_s0 + $0x168] sm:$0xff]  ;;  %v112_v53 = vld [vmem:[%s1649_s0 + $0x2f8] sm:$0xff] }
  0x3f   :  { %376 = vmatmul.mubr.f32.gmra.mrb[12].mxu0 %v29_v54  ;;  %501 = vmatmul.mubr.f32.gmra.mrb[12].mxu1 %v79_v55  ;;  %v61_v54 = vld [vmem:[%s1649_s0 + $0x160] sm:$0xff]  ;;  %v111_v55 = vld [vmem:[%s1649_s0 + $0x2f0] sm:$0xff] }
  0x40   :  { %813 = vmatprep.mubr.msk.f32.mxu0 %vm133_vm0, %v32_v56  ;;  %838 = vmatprep.mubr.msk.f32.mxu1 %vm133_vm0, %v82_v57  ;;  %v64_v56 = vld [vmem:[%s1649_s0 + $0x178] sm:$0xff]  ;;  %v114_v57 = vld [vmem:[%s1649_s0 + $0x308] sm:$0xff] }
  0x43   :  { %381 = vmatmul.mubr.f32.gmra.mrb[14].mxu0 %v31_v58  ;;  %506 = vmatmul.mubr.f32.gmra.mrb[14].mxu1 %v81_v59  ;;  %v63_v58 = vld [vmem:[%s1649_s0 + $0x170] sm:$0xff]  ;;  %v113_v59 = vld [vmem:[%s1649_s0 + $0x300] sm:$0xff] }
  0x44   :  { %814 = vmatprep.mubr.msk.f32.mxu0 %vm133_vm0, %v34_v60  ;;  %839 = vmatprep.mubr.msk.f32.mxu1 %vm133_vm0, %v84_v61  ;;  %v66_v60 = vld [vmem:[%s1649_s0 + $0x188] sm:$0xff]  ;;  %v65_v61 = vld [vmem:[%s1649_s0 + $0x180] sm:$0xff] }
  0x47   :  { %386 = vmatmul.mubr.f32.gmra.mrb[16].mxu0 %v33_v62  ;;  %511 = vmatmul.mubr.f32.gmra.mrb[16].mxu1 %v83_v63  ;;  %v1347_v62 = vld [vmem:[%s1650_s2] ss:$0 sm:$0xff] }
  0x48   :  { %815 = vmatprep.mubr.msk.f32.mxu0 %vm133_vm0, %v36_v0  ;;  %840 = vmatprep.mubr.msk.f32.mxu1 %vm133_vm0, %v86_v1  ;;  %v1352_v0 = vld [vmem:[%s1651_s3] ss:$0 sm:$0xff] }
  0x4b   :  { %391 = vmatmul.mubr.f32.gmra.mrb[18].mxu0 %v35_v2  ;;  %516 = vmatmul.mubr.f32.gmra.mrb[18].mxu1 %v85_v3 }
  0x4c   :  { %816 = vmatprep.mubr.msk.f32.mxu0 %vm133_vm0, %v38_v4  ;;  %841 = vmatprep.mubr.msk.f32.mxu1 %vm133_vm0, %v88_v5 }
  0x4f   :  { %396 = vmatmul.mubr.f32.gmra.mrb[20].mxu0 %v37_v6  ;;  %521 = vmatmul.mubr.f32.gmra.mrb[20].mxu1 %v87_v7 }
  0x50   :  { %817 = vmatprep.mubr.msk.f32.mxu0 %vm133_vm0, %v40_v8  ;;  %842 = vmatprep.mubr.msk.f32.mxu1 %vm133_vm0, %v90_v9 }
  0x53   :  { %401 = vmatmul.mubr.f32.gmra.mrb[22].mxu0 %v39_v10  ;;  %526 = vmatmul.mubr.f32.gmra.mrb[22].mxu1 %v89_v11 }
  0x54   :  { %818 = vmatprep.mubr.msk.f32.mxu0 %vm133_vm0, %v42_v12  ;;  %843 = vmatprep.mubr.msk.f32.mxu1 %vm133_vm0, %v92_v13 }
  0x57   :  { %406 = vmatmul.mubr.f32.gmra.mrb[24].mxu0 %v41_v14  ;;  %531 = vmatmul.mubr.f32.gmra.mrb[24].mxu1 %v91_v15 }
  0x58   :  { %819 = vmatprep.mubr.msk.f32.mxu0 %vm133_vm0, %v44_v16  ;;  %844 = vmatprep.mubr.msk.f32.mxu1 %vm133_vm0, %v94_v17 }
  0x5b   :  { %411 = vmatmul.mubr.f32.gmra.mrb[26].mxu0 %v43_v18  ;;  %536 = vmatmul.mubr.f32.gmra.mrb[26].mxu1 %v93_v19 }
  0x5c   :  { %820 = vmatprep.mubr.msk.f32.mxu0 %vm133_vm0, %v46_v20  ;;  %845 = vmatprep.mubr.msk.f32.mxu1 %vm133_vm0, %v96_v21 }
  0x5f   :  { %416 = vmatmul.mubr.f32.gmra.mrb[28].mxu0 %v45_v22  ;;  %541 = vmatmul.mubr.f32.gmra.mrb[28].mxu1 %v95_v23 }
  0x60   :  { %821 = vmatprep.mubr.msk.f32.mxu0 %vm133_vm0, %v48_v24  ;;  %846 = vmatprep.mubr.msk.f32.mxu1 %vm133_vm0, %v98_v25 }
  0x63   :  { %421 = vmatmul.mubr.f32.gmra.mrb[30].mxu0 %v47_v26  ;;  %546 = vmatmul.mubr.f32.gmra.mrb[30].mxu1 %v97_v27 }
  0x64   :  { %822 = vmatprep.mubr.msk.f32.mxu0 %vm133_vm0, %v50_v28  ;;  %847 = vmatprep.mubr.msk.f32.mxu1 %vm133_vm0, %v100_v29 }
  0x67   :  { %426 = vmatmul.mubr.f32.gmra.mrb[32].mxu0 %v49_v30  ;;  %551 = vmatmul.mubr.f32.gmra.mrb[32].mxu1 %v99_v31 }
  0x68   :  { %823 = vmatprep.mubr.msk.f32.mxu0 %vm133_vm0, %v52_v32  ;;  %848 = vmatprep.mubr.msk.f32.mxu1 %vm133_vm0, %v102_v33 }
  0x6b   :  { %431 = vmatmul.mubr.f32.gmra.mrb[34].mxu0 %v51_v34  ;;  %556 = vmatmul.mubr.f32.gmra.mrb[34].mxu1 %v101_v35 }
  0x6c   :  { %824 = vmatprep.mubr.msk.f32.mxu0 %vm133_vm0, %v54_v36  ;;  %849 = vmatprep.mubr.msk.f32.mxu1 %vm133_vm0, %v104_v37 }
  0x6f   :  { %436 = vmatmul.mubr.f32.gmra.mrb[36].mxu0 %v53_v38  ;;  %561 = vmatmul.mubr.f32.gmra.mrb[36].mxu1 %v103_v39 }
  0x70   :  { %825 = vmatprep.mubr.msk.f32.mxu0 %vm133_vm0, %v56_v40  ;;  %850 = vmatprep.mubr.msk.f32.mxu1 %vm133_vm0, %v106_v41 }
  0x73   :  { %441 = vmatmul.mubr.f32.gmra.mrb[38].mxu0 %v55_v42  ;;  %566 = vmatmul.mubr.f32.gmra.mrb[38].mxu1 %v105_v43 }
  0x74   :  { %826 = vmatprep.mubr.msk.f32.mxu0 %vm133_vm0, %v58_v44  ;;  %851 = vmatprep.mubr.msk.f32.mxu1 %vm133_vm0, %v108_v45 }
  0x77   :  { %446 = vmatmul.mubr.f32.gmra.mrb[40].mxu0 %v57_v46  ;;  %571 = vmatmul.mubr.f32.gmra.mrb[40].mxu1 %v107_v47 }
  0x78   :  { %827 = vmatprep.mubr.msk.f32.mxu0 %vm133_vm0, %v60_v48  ;;  %852 = vmatprep.mubr.msk.f32.mxu1 %vm133_vm0, %v110_v49 }
  0x7b   :  { %451 = vmatmul.mubr.f32.gmra.mrb[42].mxu0 %v59_v50  ;;  %576 = vmatmul.mubr.f32.gmra.mrb[42].mxu1 %v109_v51 }
  0x7c   :  { %828 = vmatprep.mubr.msk.f32.mxu0 %vm133_vm0, %v62_v52  ;;  %853 = vmatprep.mubr.msk.f32.mxu1 %vm133_vm0, %v112_v53 }
  0x7f   :  { %456 = vmatmul.mubr.f32.gmra.mrb[44].mxu0 %v61_v54  ;;  %581 = vmatmul.mubr.f32.gmra.mrb[44].mxu1 %v111_v55 }
  0x80   :  { %829 = vmatprep.mubr.msk.f32.mxu0 %vm133_vm0, %v64_v56  ;;  %854 = vmatprep.mubr.msk.f32.mxu1 %vm133_vm0, %v114_v57 }
  0x83   :  { %461 = vmatmul.mubr.f32.gmra.mrb[46].mxu0 %v63_v58  ;;  %586 = vmatmul.mubr.f32.gmra.mrb[46].mxu1 %v113_v59 }
  0x84   :  { %830 = vmatprep.mubr.msk.f32.mxu0 %vm133_vm0, %v66_v60 }
  0x87   :  { %466 = vmatmul.mubr.f32.gmra.mrb[48].mxu0 %v65_v61 }
  0xfa   :  { %v347_v63 = vpop.f32.mrb[0].mxu0  ;;  %v472_v1 = vpop.f32.mrb[0].mxu1 }
  0xfb   :  { %v598_v2 = vmul.f32 %v1347_v62, %v347_v63  ;;  %v349_v3 = vpop.f32.mrb[1].mxu0  ;;  %v623_v4 = vmul.f32 %v1347_v62, %v472_v1  ;;  %v474_v5 = vpop.f32.mrb[1].mxu1 }
  0xfd   :  { %v654_v6 = vadd.f32 %v1352_v0, %v598_v2  ;;  %v679_v7 = vadd.f32 %v1352_v0, %v623_v4 }
  0xfe   :  { %v352_v8 = vpop.f32.mrb[2].mxu0  ;;  %v477_v9 = vpop.f32.mrb[2].mxu1 }
  0xff   :  { %v703_v10 = vmax.f32 %v654_v6, 0.0  ;;  %v728_v11 = vmax.f32 %v679_v7, 0.0  ;;  %v599_v12 = vmul.f32 %v1347_v62, %v352_v8  ;;  %v354_v13 = vpop.f32.mrb[3].mxu0  ;;  %v624_v14 = vmul.f32 %v1347_v62, %v477_v9  ;;  %v479_v15 = vpop.f32.mrb[3].mxu1 }
 0x101   :  { %753 = vst.msk [vmem:[%s1652_s4] sm:$0xff] %vm752_vm1, %v703_v10  ;;  %778 = vst.msk [vmem:[%s1652_s4 + $0xc8] sm:$0xff] %vm752_vm1, %v728_v11  ;;  %v655_v16 = vadd.f32 %v1352_v0, %v599_v12  ;;  %v680_v17 = vadd.f32 %v1352_v0, %v624_v14 }
 0x102   :  { %v357_v18 = vpop.f32.mrb[4].mxu0  ;;  %v482_v19 = vpop.f32.mrb[4].mxu1 }
 0x103   :  { %v704_v20 = vmax.f32 %v655_v16, 0.0  ;;  %v729_v21 = vmax.f32 %v680_v17, 0.0  ;;  %v600_v22 = vmul.f32 %v1347_v62, %v357_v18  ;;  %v359_v23 = vpop.f32.mrb[5].mxu0  ;;  %v625_v24 = vmul.f32 %v1347_v62, %v482_v19  ;;  %v484_v25 = vpop.f32.mrb[5].mxu1 }
 0x105   :  { %754 = vst.msk [vmem:[%s1652_s4 + $0x8] sm:$0xff] %vm752_vm1, %v704_v20  ;;  %779 = vst.msk [vmem:[%s1652_s4 + $0xd0] sm:$0xff] %vm752_vm1, %v729_v21  ;;  %v656_v26 = vadd.f32 %v1352_v0, %v600_v22  ;;  %v681_v27 = vadd.f32 %v1352_v0, %v625_v24 }
 0x106   :  { %v362_v28 = vpop.f32.mrb[6].mxu0  ;;  %v487_v29 = vpop.f32.mrb[6].mxu1 }
 0x107   :  { %v705_v30 = vmax.f32 %v656_v26, 0.0  ;;  %v730_v31 = vmax.f32 %v681_v27, 0.0  ;;  %v601_v32 = vmul.f32 %v1347_v62, %v362_v28  ;;  %v364_v33 = vpop.f32.mrb[7].mxu0  ;;  %v626_v34 = vmul.f32 %v1347_v62, %v487_v29  ;;  %v489_v35 = vpop.f32.mrb[7].mxu1 }
 0x109   :  { %755 = vst.msk [vmem:[%s1652_s4 + $0x10] sm:$0xff] %vm752_vm1, %v705_v30  ;;  %780 = vst.msk [vmem:[%s1652_s4 + $0xd8] sm:$0xff] %vm752_vm1, %v730_v31  ;;  %v657_v36 = vadd.f32 %v1352_v0, %v601_v32  ;;  %v682_v37 = vadd.f32 %v1352_v0, %v626_v34 }
 0x10a   :  { %v367_v38 = vpop.f32.mrb[8].mxu0  ;;  %v492_v39 = vpop.f32.mrb[8].mxu1 }
 0x10b   :  { %v706_v40 = vmax.f32 %v657_v36, 0.0  ;;  %v731_v41 = vmax.f32 %v682_v37, 0.0  ;;  %v602_v42 = vmul.f32 %v1347_v62, %v367_v38  ;;  %v369_v43 = vpop.f32.mrb[9].mxu0  ;;  %v627_v44 = vmul.f32 %v1347_v62, %v492_v39  ;;  %v494_v45 = vpop.f32.mrb[9].mxu1 }
 0x10d   :  { %756 = vst.msk [vmem:[%s1652_s4 + $0x18] sm:$0xff] %vm752_vm1, %v706_v40  ;;  %781 = vst.msk [vmem:[%s1652_s4 + $0xe0] sm:$0xff] %vm752_vm1, %v731_v41  ;;  %v658_v46 = vadd.f32 %v1352_v0, %v602_v42  ;;  %v683_v47 = vadd.f32 %v1352_v0, %v627_v44 }
 0x10e   :  { %v372_v48 = vpop.f32.mrb[10].mxu0  ;;  %v497_v49 = vpop.f32.mrb[10].mxu1 }
 0x10f   :  { %v707_v50 = vmax.f32 %v658_v46, 0.0  ;;  %v732_v51 = vmax.f32 %v683_v47, 0.0  ;;  %v603_v52 = vmul.f32 %v1347_v62, %v372_v48  ;;  %v374_v53 = vpop.f32.mrb[11].mxu0  ;;  %v628_v54 = vmul.f32 %v1347_v62, %v497_v49  ;;  %v499_v55 = vpop.f32.mrb[11].mxu1 }
 0x111   :  { %757 = vst.msk [vmem:[%s1652_s4 + $0x20] sm:$0xff] %vm752_vm1, %v707_v50  ;;  %782 = vst.msk [vmem:[%s1652_s4 + $0xe8] sm:$0xff] %vm752_vm1, %v732_v51  ;;  %v659_v56 = vadd.f32 %v1352_v0, %v603_v52  ;;  %v684_v57 = vadd.f32 %v1352_v0, %v628_v54 }
 0x112   :  { %v377_v58 = vpop.f32.mrb[12].mxu0  ;;  %v502_v59 = vpop.f32.mrb[12].mxu1 }
 0x113   :  { %v708_v60 = vmax.f32 %v659_v56, 0.0  ;;  %v733_v61 = vmax.f32 %v684_v57, 0.0  ;;  %v604_v63 = vmul.f32 %v1347_v62, %v377_v58  ;;  %v379_v1 = vpop.f32.mrb[13].mxu0  ;;  %v629_v2 = vmul.f32 %v1347_v62, %v502_v59  ;;  %v504_v3 = vpop.f32.mrb[13].mxu1 }
 0x115   :  { %758 = vst.msk [vmem:[%s1652_s4 + $0x28] sm:$0xff] %vm752_vm1, %v708_v60  ;;  %783 = vst.msk [vmem:[%s1652_s4 + $0xf0] sm:$0xff] %vm752_vm1, %v733_v61  ;;  %v660_v4 = vadd.f32 %v1352_v0, %v604_v63  ;;  %v685_v5 = vadd.f32 %v1352_v0, %v629_v2 }
 0x116   :  { %v382_v6 = vpop.f32.mrb[14].mxu0  ;;  %v507_v7 = vpop.f32.mrb[14].mxu1 }
 0x117   :  { %v709_v8 = vmax.f32 %v660_v4, 0.0  ;;  %v734_v9 = vmax.f32 %v685_v5, 0.0  ;;  %v605_v10 = vmul.f32 %v1347_v62, %v382_v6  ;;  %v384_v11 = vpop.f32.mrb[15].mxu0  ;;  %v630_v12 = vmul.f32 %v1347_v62, %v507_v7  ;;  %v509_v13 = vpop.f32.mrb[15].mxu1 }
 0x119   :  { %759 = vst.msk [vmem:[%s1652_s4 + $0x30] sm:$0xff] %vm752_vm1, %v709_v8  ;;  %784 = vst.msk [vmem:[%s1652_s4 + $0xf8] sm:$0xff] %vm752_vm1, %v734_v9  ;;  %v661_v14 = vadd.f32 %v1352_v0, %v605_v10  ;;  %v686_v15 = vadd.f32 %v1352_v0, %v630_v12 }
 0x11a   :  { %v387_v16 = vpop.f32.mrb[16].mxu0  ;;  %v512_v17 = vpop.f32.mrb[16].mxu1 }
 0x11b   :  { %v710_v18 = vmax.f32 %v661_v14, 0.0  ;;  %v735_v19 = vmax.f32 %v686_v15, 0.0  ;;  %v606_v20 = vmul.f32 %v1347_v62, %v387_v16  ;;  %v389_v21 = vpop.f32.mrb[17].mxu0  ;;  %v631_v22 = vmul.f32 %v1347_v62, %v512_v17  ;;  %v514_v23 = vpop.f32.mrb[17].mxu1 }
 0x11d   :  { %760 = vst.msk [vmem:[%s1652_s4 + $0x38] sm:$0xff] %vm752_vm1, %v710_v18  ;;  %785 = vst.msk [vmem:[%s1652_s4 + $0x100] sm:$0xff] %vm752_vm1, %v735_v19  ;;  %v662_v24 = vadd.f32 %v1352_v0, %v606_v20  ;;  %v687_v25 = vadd.f32 %v1352_v0, %v631_v22 }
 0x11e   :  { %v392_v26 = vpop.f32.mrb[18].mxu0  ;;  %v517_v27 = vpop.f32.mrb[18].mxu1 }
 0x11f   :  { %v711_v28 = vmax.f32 %v662_v24, 0.0  ;;  %v736_v29 = vmax.f32 %v687_v25, 0.0  ;;  %v607_v30 = vmul.f32 %v1347_v62, %v392_v26  ;;  %v394_v31 = vpop.f32.mrb[19].mxu0  ;;  %v632_v32 = vmul.f32 %v1347_v62, %v517_v27  ;;  %v519_v33 = vpop.f32.mrb[19].mxu1 }
 0x121   :  { %761 = vst.msk [vmem:[%s1652_s4 + $0x40] sm:$0xff] %vm752_vm1, %v711_v28  ;;  %786 = vst.msk [vmem:[%s1652_s4 + $0x108] sm:$0xff] %vm752_vm1, %v736_v29  ;;  %v663_v34 = vadd.f32 %v1352_v0, %v607_v30  ;;  %v688_v35 = vadd.f32 %v1352_v0, %v632_v32 }
 0x122   :  { %v397_v36 = vpop.f32.mrb[20].mxu0  ;;  %v522_v37 = vpop.f32.mrb[20].mxu1 }
 0x123   :  { %v712_v38 = vmax.f32 %v663_v34, 0.0  ;;  %v737_v39 = vmax.f32 %v688_v35, 0.0  ;;  %v608_v40 = vmul.f32 %v1347_v62, %v397_v36  ;;  %v399_v41 = vpop.f32.mrb[21].mxu0  ;;  %v633_v42 = vmul.f32 %v1347_v62, %v522_v37  ;;  %v524_v43 = vpop.f32.mrb[21].mxu1 }
 0x125   :  { %762 = vst.msk [vmem:[%s1652_s4 + $0x48] sm:$0xff] %vm752_vm1, %v712_v38  ;;  %787 = vst.msk [vmem:[%s1652_s4 + $0x110] sm:$0xff] %vm752_vm1, %v737_v39  ;;  %v664_v44 = vadd.f32 %v1352_v0, %v608_v40  ;;  %v689_v45 = vadd.f32 %v1352_v0, %v633_v42 }
 0x126   :  { %v402_v46 = vpop.f32.mrb[22].mxu0  ;;  %v527_v47 = vpop.f32.mrb[22].mxu1 }
 0x127   :  { %v713_v48 = vmax.f32 %v664_v44, 0.0  ;;  %v738_v49 = vmax.f32 %v689_v45, 0.0  ;;  %v609_v50 = vmul.f32 %v1347_v62, %v402_v46  ;;  %v404_v51 = vpop.f32.mrb[23].mxu0  ;;  %v634_v52 = vmul.f32 %v1347_v62, %v527_v47  ;;  %v529_v53 = vpop.f32.mrb[23].mxu1 }
 0x129   :  { %763 = vst.msk [vmem:[%s1652_s4 + $0x50] sm:$0xff] %vm752_vm1, %v713_v48  ;;  %788 = vst.msk [vmem:[%s1652_s4 + $0x118] sm:$0xff] %vm752_vm1, %v738_v49  ;;  %v665_v54 = vadd.f32 %v1352_v0, %v609_v50  ;;  %v690_v55 = vadd.f32 %v1352_v0, %v634_v52 }
 0x12a   :  { %v407_v56 = vpop.f32.mrb[24].mxu0  ;;  %v532_v57 = vpop.f32.mrb[24].mxu1 }
 0x12b   :  { %v714_v58 = vmax.f32 %v665_v54, 0.0  ;;  %v739_v59 = vmax.f32 %v690_v55, 0.0  ;;  %v610_v60 = vmul.f32 %v1347_v62, %v407_v56  ;;  %v409_v61 = vpop.f32.mrb[25].mxu0  ;;  %v635_v63 = vmul.f32 %v1347_v62, %v532_v57  ;;  %v534_v1 = vpop.f32.mrb[25].mxu1 }
 0x12d   :  { %764 = vst.msk [vmem:[%s1652_s4 + $0x58] sm:$0xff] %vm752_vm1, %v714_v58  ;;  %789 = vst.msk [vmem:[%s1652_s4 + $0x120] sm:$0xff] %vm752_vm1, %v739_v59  ;;  %v666_v2 = vadd.f32 %v1352_v0, %v610_v60  ;;  %v691_v3 = vadd.f32 %v1352_v0, %v635_v63 }
 0x12e   :  { %v412_v4 = vpop.f32.mrb[26].mxu0  ;;  %v537_v5 = vpop.f32.mrb[26].mxu1 }
 0x12f   :  { %v715_v6 = vmax.f32 %v666_v2, 0.0  ;;  %v740_v7 = vmax.f32 %v691_v3, 0.0  ;;  %v611_v8 = vmul.f32 %v1347_v62, %v412_v4  ;;  %v414_v9 = vpop.f32.mrb[27].mxu0  ;;  %v636_v10 = vmul.f32 %v1347_v62, %v537_v5  ;;  %v539_v11 = vpop.f32.mrb[27].mxu1 }
 0x131   :  { %765 = vst.msk [vmem:[%s1652_s4 + $0x60] sm:$0xff] %vm752_vm1, %v715_v6  ;;  %790 = vst.msk [vmem:[%s1652_s4 + $0x128] sm:$0xff] %vm752_vm1, %v740_v7  ;;  %v667_v12 = vadd.f32 %v1352_v0, %v611_v8  ;;  %v692_v13 = vadd.f32 %v1352_v0, %v636_v10 }
 0x132   :  { %v417_v14 = vpop.f32.mrb[28].mxu0  ;;  %v542_v15 = vpop.f32.mrb[28].mxu1 }
 0x133   :  { %v716_v16 = vmax.f32 %v667_v12, 0.0  ;;  %v741_v17 = vmax.f32 %v692_v13, 0.0  ;;  %v612_v18 = vmul.f32 %v1347_v62, %v417_v14  ;;  %v419_v19 = vpop.f32.mrb[29].mxu0  ;;  %v637_v20 = vmul.f32 %v1347_v62, %v542_v15  ;;  %v544_v21 = vpop.f32.mrb[29].mxu1 }
 0x135   :  { %766 = vst.msk [vmem:[%s1652_s4 + $0x68] sm:$0xff] %vm752_vm1, %v716_v16  ;;  %791 = vst.msk [vmem:[%s1652_s4 + $0x130] sm:$0xff] %vm752_vm1, %v741_v17  ;;  %v668_v22 = vadd.f32 %v1352_v0, %v612_v18  ;;  %v693_v23 = vadd.f32 %v1352_v0, %v637_v20 }
 0x136   :  { %v422_v24 = vpop.f32.mrb[30].mxu0  ;;  %v547_v25 = vpop.f32.mrb[30].mxu1 }
 0x137   :  { %v717_v26 = vmax.f32 %v668_v22, 0.0  ;;  %v742_v27 = vmax.f32 %v693_v23, 0.0  ;;  %v613_v28 = vmul.f32 %v1347_v62, %v422_v24  ;;  %v424_v29 = vpop.f32.mrb[31].mxu0  ;;  %v638_v30 = vmul.f32 %v1347_v62, %v547_v25  ;;  %v549_v31 = vpop.f32.mrb[31].mxu1 }
 0x139   :  { %767 = vst.msk [vmem:[%s1652_s4 + $0x70] sm:$0xff] %vm752_vm1, %v717_v26  ;;  %792 = vst.msk [vmem:[%s1652_s4 + $0x138] sm:$0xff] %vm752_vm1, %v742_v27  ;;  %v669_v32 = vadd.f32 %v1352_v0, %v613_v28  ;;  %v694_v33 = vadd.f32 %v1352_v0, %v638_v30 }
 0x13a   :  { %v427_v34 = vpop.f32.mrb[32].mxu0  ;;  %v552_v35 = vpop.f32.mrb[32].mxu1 }
 0x13b   :  { %v718_v36 = vmax.f32 %v669_v32, 0.0  ;;  %v743_v37 = vmax.f32 %v694_v33, 0.0  ;;  %v614_v38 = vmul.f32 %v1347_v62, %v427_v34  ;;  %v429_v39 = vpop.f32.mrb[33].mxu0  ;;  %v639_v40 = vmul.f32 %v1347_v62, %v552_v35  ;;  %v554_v41 = vpop.f32.mrb[33].mxu1 }
 0x13d   :  { %768 = vst.msk [vmem:[%s1652_s4 + $0x78] sm:$0xff] %vm752_vm1, %v718_v36  ;;  %793 = vst.msk [vmem:[%s1652_s4 + $0x140] sm:$0xff] %vm752_vm1, %v743_v37  ;;  %v670_v42 = vadd.f32 %v1352_v0, %v614_v38  ;;  %v695_v43 = vadd.f32 %v1352_v0, %v639_v40 }
 0x13e   :  { %v432_v44 = vpop.f32.mrb[34].mxu0  ;;  %v557_v45 = vpop.f32.mrb[34].mxu1 }
 0x13f   :  { %v719_v46 = vmax.f32 %v670_v42, 0.0  ;;  %v744_v47 = vmax.f32 %v695_v43, 0.0  ;;  %v615_v48 = vmul.f32 %v1347_v62, %v432_v44  ;;  %v434_v49 = vpop.f32.mrb[35].mxu0  ;;  %v640_v50 = vmul.f32 %v1347_v62, %v557_v45  ;;  %v559_v51 = vpop.f32.mrb[35].mxu1 }
 0x141   :  { %769 = vst.msk [vmem:[%s1652_s4 + $0x80] sm:$0xff] %vm752_vm1, %v719_v46  ;;  %794 = vst.msk [vmem:[%s1652_s4 + $0x148] sm:$0xff] %vm752_vm1, %v744_v47  ;;  %v671_v52 = vadd.f32 %v1352_v0, %v615_v48  ;;  %v696_v53 = vadd.f32 %v1352_v0, %v640_v50 }
 0x142   :  { %v437_v54 = vpop.f32.mrb[36].mxu0  ;;  %v562_v55 = vpop.f32.mrb[36].mxu1 }
 0x143   :  { %v720_v56 = vmax.f32 %v671_v52, 0.0  ;;  %v745_v57 = vmax.f32 %v696_v53, 0.0  ;;  %v616_v58 = vmul.f32 %v1347_v62, %v437_v54  ;;  %v439_v59 = vpop.f32.mrb[37].mxu0  ;;  %v641_v60 = vmul.f32 %v1347_v62, %v562_v55  ;;  %v564_v61 = vpop.f32.mrb[37].mxu1 }
 0x145   :  { %770 = vst.msk [vmem:[%s1652_s4 + $0x88] sm:$0xff] %vm752_vm1, %v720_v56  ;;  %795 = vst.msk [vmem:[%s1652_s4 + $0x150] sm:$0xff] %vm752_vm1, %v745_v57  ;;  %v672_v63 = vadd.f32 %v1352_v0, %v616_v58  ;;  %v697_v1 = vadd.f32 %v1352_v0, %v641_v60 }
 0x146   :  { %v442_v2 = vpop.f32.mrb[38].mxu0  ;;  %v567_v3 = vpop.f32.mrb[38].mxu1 }
 0x147   :  { %v721_v4 = vmax.f32 %v672_v63, 0.0  ;;  %v746_v5 = vmax.f32 %v697_v1, 0.0  ;;  %v617_v6 = vmul.f32 %v1347_v62, %v442_v2  ;;  %v444_v7 = vpop.f32.mrb[39].mxu0  ;;  %v642_v8 = vmul.f32 %v1347_v62, %v567_v3  ;;  %v569_v9 = vpop.f32.mrb[39].mxu1 }
 0x149   :  { %771 = vst.msk [vmem:[%s1652_s4 + $0x90] sm:$0xff] %vm752_vm1, %v721_v4  ;;  %796 = vst.msk [vmem:[%s1652_s4 + $0x158] sm:$0xff] %vm752_vm1, %v746_v5  ;;  %v673_v10 = vadd.f32 %v1352_v0, %v617_v6  ;;  %v698_v11 = vadd.f32 %v1352_v0, %v642_v8 }
 0x14a   :  { %v447_v12 = vpop.f32.mrb[40].mxu0  ;;  %v572_v13 = vpop.f32.mrb[40].mxu1 }
 0x14b   :  { %v722_v14 = vmax.f32 %v673_v10, 0.0  ;;  %v747_v15 = vmax.f32 %v698_v11, 0.0  ;;  %v618_v16 = vmul.f32 %v1347_v62, %v447_v12  ;;  %v449_v17 = vpop.f32.mrb[41].mxu0  ;;  %v643_v18 = vmul.f32 %v1347_v62, %v572_v13  ;;  %v574_v19 = vpop.f32.mrb[41].mxu1 }
 0x14d   :  { %772 = vst.msk [vmem:[%s1652_s4 + $0x98] sm:$0xff] %vm752_vm1, %v722_v14  ;;  %797 = vst.msk [vmem:[%s1652_s4 + $0x160] sm:$0xff] %vm752_vm1, %v747_v15  ;;  %v674_v20 = vadd.f32 %v1352_v0, %v618_v16  ;;  %v699_v21 = vadd.f32 %v1352_v0, %v643_v18 }
 0x14e   :  { %v452_v22 = vpop.f32.mrb[42].mxu0  ;;  %v577_v23 = vpop.f32.mrb[42].mxu1 }
 0x14f   :  { %v723_v24 = vmax.f32 %v674_v20, 0.0  ;;  %v748_v25 = vmax.f32 %v699_v21, 0.0  ;;  %v619_v26 = vmul.f32 %v1347_v62, %v452_v22  ;;  %v454_v27 = vpop.f32.mrb[43].mxu0  ;;  %v644_v28 = vmul.f32 %v1347_v62, %v577_v23  ;;  %v579_v29 = vpop.f32.mrb[43].mxu1 }
 0x151   :  { %773 = vst.msk [vmem:[%s1652_s4 + $0xa0] sm:$0xff] %vm752_vm1, %v723_v24  ;;  %798 = vst.msk [vmem:[%s1652_s4 + $0x168] sm:$0xff] %vm752_vm1, %v748_v25  ;;  %v675_v30 = vadd.f32 %v1352_v0, %v619_v26  ;;  %v700_v31 = vadd.f32 %v1352_v0, %v644_v28 }
 0x152   :  { %v457_v32 = vpop.f32.mrb[44].mxu0  ;;  %v582_v33 = vpop.f32.mrb[44].mxu1 }
 0x153   :  { %v724_v34 = vmax.f32 %v675_v30, 0.0  ;;  %v749_v35 = vmax.f32 %v700_v31, 0.0  ;;  %v620_v36 = vmul.f32 %v1347_v62, %v457_v32  ;;  %v459_v37 = vpop.f32.mrb[45].mxu0  ;;  %v645_v38 = vmul.f32 %v1347_v62, %v582_v33  ;;  %v584_v39 = vpop.f32.mrb[45].mxu1 }
 0x155   :  { %774 = vst.msk [vmem:[%s1652_s4 + $0xa8] sm:$0xff] %vm752_vm1, %v724_v34  ;;  %799 = vst.msk [vmem:[%s1652_s4 + $0x170] sm:$0xff] %vm752_vm1, %v749_v35  ;;  %v676_v40 = vadd.f32 %v1352_v0, %v620_v36  ;;  %v701_v41 = vadd.f32 %v1352_v0, %v645_v38 }
 0x156   :  { %v462_v42 = vpop.f32.mrb[46].mxu0  ;;  %v587_v43 = vpop.f32.mrb[46].mxu1 }
 0x157   :  { %v725_v44 = vmax.f32 %v676_v40, 0.0  ;;  %v750_v45 = vmax.f32 %v701_v41, 0.0  ;;  %v621_v46 = vmul.f32 %v1347_v62, %v462_v42  ;;  %v464_v47 = vpop.f32.mrb[47].mxu0  ;;  %v646_v48 = vmul.f32 %v1347_v62, %v587_v43  ;;  %v589_v49 = vpop.f32.mrb[47].mxu1 }
 0x159   :  { %775 = vst.msk [vmem:[%s1652_s4 + $0xb0] sm:$0xff] %vm752_vm1, %v725_v44  ;;  %800 = vst.msk [vmem:[%s1652_s4 + $0x178] sm:$0xff] %vm752_vm1, %v750_v45  ;;  %v677_v50 = vadd.f32 %v1352_v0, %v621_v46  ;;  %v702_v51 = vadd.f32 %v1352_v0, %v646_v48 }
 0x15a   :  { %v467_v52 = vpop.f32.mrb[48].mxu0 }
 0x15b   :  { %v726_v53 = vmax.f32 %v677_v50, 0.0  ;;  %v751_v54 = vmax.f32 %v702_v51, 0.0  ;;  %v622_v55 = vmul.f32 %v1347_v62, %v467_v52  ;;  %v469_v56 = vpop.f32.mrb[49].mxu0 }
 0x15d   :  { %776 = vst.msk [vmem:[%s1652_s4 + $0xb8] sm:$0xff] %vm752_vm1, %v726_v53  ;;  %801 = vst.msk [vmem:[%s1652_s4 + $0x180] sm:$0xff] %vm752_vm1, %v751_v54  ;;  %v678_v57 = vadd.f32 %v1352_v0, %v622_v55 }
 0x15f   :  { %v727_v58 = vmax.f32 %v678_v57, 0.0 }
 0x161   :  { %777 = vst.msk [vmem:[%s1652_s4 + $0xc0] sm:$0xff] %vm752_vm1, %v727_v58 }

// kernel: vae_forward.11
= control target key start
LH: loop header
LB: loop body
LE: loop exit
PB: predicated region body
PF: predicated region fallthrough
CT: control target
= control target key end

     0   :  { %v1548_v0 = vmov 0.0|0.0   ;;  %vm1549_vm0 = vmmov 0   ;;  %v1550_v6 = vmov 0.0   ;;  %vm200_vm1 = vcmask 261120   ;;  %s2732_s1 = inlined_call_operand.vmem [shape: f32[288,64], index: 1, kind: input, shape index: {}]   ;;  %s2733_s0 = inlined_call_operand.vmem [shape: f32[392,288], index: 0, kind: input, shape index: {}]   ;;  %s2734_s2 = inlined_call_operand.vmem [shape: f32[1,64], index: 2, kind: input, shape index: {}]   ;;  %s2735_s3 = inlined_call_operand.vmem [shape: f32[1,64], index: 3, kind: input, shape index: {}]   ;;  %s2736_s4 = inlined_call_operand.vmem [shape: f32[392,64], index: 4, kind: output, shape index: {}]  }
   0x1   :  { %1442 = vmatprep.subr.bf16.mxu1 %v1548_v0  ;;  %v164_v1 = vld [vmem:[%s2732_s1] sm:$0xff]  ;;  %v165_v2 = vld [vmem:[%s2732_s1 + $0x8] sm:$0xff]  ;;  %v166_v3 = vld [vmem:[%s2732_s1 + $0x10] sm:$0xff]  ;;  %1490 = vmatprep.subr.bf16.mxu0 %v1548_v0  ;;  %vm1129_vm2 = vcmask 523264  }
   0x2   :  { %v1443_v4 = vpack.c.bf16 %v165_v2, %v164_v1  ;;  %v167_v5 = vld [vmem:[%s2732_s1 + $0x18] sm:$0xff]  ;;  %1295 = vmatprep.mubr.msk.f32.mxu0 %vm1549_vm0, %v1550_v6  ;;  %v168_v8 = vld [vmem:[%s2732_s1 + $0x20] sm:$0xff]  ;;  %v169_v9 = vld [vmem:[%s2732_s1 + $0x28] sm:$0xff] }
   0x3   :  { %v1446_v7 = vpack.c.bf16 %v167_v5, %v166_v3  ;;  %v1449_v10 = vpack.c.bf16 %v169_v9, %v168_v8  ;;  %v170_v11 = vld [vmem:[%s2732_s1 + $0x30] sm:$0xff]  ;;  %v171_v12 = vld [vmem:[%s2732_s1 + $0x38] sm:$0xff]  ;;  %v196_v13 = vld [vmem:[%s2732_s1 + $0x100] sm:$0xff] }
   0x4   :  { %1444 = vmatpush1.bf16.msra.mxu1 %v1443_v4  ;;  %v197_v14 = vld [vmem:[%s2732_s1 + $0x108] sm:$0xff]  ;;  %v198_v16 = vld [vmem:[%s2732_s1 + $0x110] sm:$0xff]  ;;  %v1452_v17 = vpack.c.bf16 %v171_v12, %v170_v11  ;;  %v199_v18 = vld [vmem:[%s2732_s1 + $0x118] sm:$0xff] }
   0x5   :  { %1445 = vmatprep.subr.bf16.mxu1 %v1548_v0  ;;  %v1491_v15 = vpack.c.bf16 %v197_v14, %v196_v13  ;;  %v172_v19 = vld [vmem:[%s2732_s1 + $0x40] sm:$0xff]  ;;  %v173_v20 = vld [vmem:[%s2732_s1 + $0x48] sm:$0xff]  ;;  %v1494_v21 = vpack.c.bf16 %v199_v18, %v198_v16  ;;  %v174_v24 = vld [vmem:[%s2732_s1 + $0x50] sm:$0xff] }
   0x6   :  { %v18_v22 = vld [vmem:[%s2733_s0 + $0x8] sm:$0xff]  ;;  %v1455_v23 = vpack.c.bf16 %v173_v20, %v172_v19  ;;  %v175_v25 = vld [vmem:[%s2732_s1 + $0x58] sm:$0xff]  ;;  %v19_v26 = vld [vmem:[%s2733_s0 + $0x10] sm:$0xff] }
   0x7   :  { %1492 = vmatpush3.bf16.msra.mxu0 %v1491_v15  ;;  %412 = vmatprep.mubr.f32.mxu1 %v18_v22  ;;  %v1458_v27 = vpack.c.bf16 %v175_v25, %v174_v24  ;;  %v176_v28 = vld [vmem:[%s2732_s1 + $0x60] sm:$0xff]  ;;  %v177_v29 = vld [vmem:[%s2732_s1 + $0x68] sm:$0xff]  ;;  %v178_v32 = vld [vmem:[%s2732_s1 + $0x70] sm:$0xff] }
   0x8   :  { %1447 = vmatpush1.bf16.msra.mxu1 %v1446_v7  ;;  %1493 = vmatprep.subr.bf16.mxu0 %v1548_v0  ;;  %v22_v30 = vld [vmem:[%s2733_s0 + $0x28] sm:$0xff]  ;;  %v1461_v31 = vpack.c.bf16 %v177_v29, %v176_v28  ;;  %v179_v33 = vld [vmem:[%s2732_s1 + $0x78] sm:$0xff]  ;;  %v25_v34 = vld [vmem:[%s2733_s0 + $0x40] sm:$0xff] }
   0x9   :  { %1448 = vmatprep.subr.bf16.mxu1 %v1548_v0  ;;  %v1464_v35 = vpack.c.bf16 %v179_v33, %v178_v32  ;;  %v180_v36 = vld [vmem:[%s2732_s1 + $0x80] sm:$0xff]  ;;  %v181_v37 = vld [vmem:[%s2732_s1 + $0x88] sm:$0xff]  ;;  %v28_v38 = vld [vmem:[%s2733_s0 + $0x58] sm:$0xff] }
   0xa   :  { %v1467_v39 = vpack.c.bf16 %v181_v37, %v180_v36  ;;  %v182_v40 = vld [vmem:[%s2732_s1 + $0x90] sm:$0xff]  ;;  %v183_v41 = vld [vmem:[%s2732_s1 + $0x98] sm:$0xff]  ;;  %v184_v44 = vld [vmem:[%s2732_s1 + $0xa0] sm:$0xff] }
   0xb   :  { %1495 = vmatpush3.bf16.msra.mxu0 %v1494_v21  ;;  %v31_v42 = vld [vmem:[%s2733_s0 + $0x70] sm:$0xff]  ;;  %v1470_v43 = vpack.c.bf16 %v183_v41, %v182_v40  ;;  %v185_v45 = vld [vmem:[%s2732_s1 + $0xa8] sm:$0xff]  ;;  %v187_v49 = vld [vmem:[%s2732_s1 + $0xb8] sm:$0xff] }
   0xc   :  { %1450 = vmatpush1.bf16.msra.mxu1 %v1449_v10  ;;  %v34_v46 = vld [vmem:[%s2733_s0 + $0x88] sm:$0xff]  ;;  %v1473_v47 = vpack.c.bf16 %v185_v45, %v184_v44  ;;  %v186_v48 = vld [vmem:[%s2732_s1 + $0xb0] sm:$0xff]  ;;  %v37_v50 = vld [vmem:[%s2733_s0 + $0xa0] sm:$0xff] }
   0xd   :  { %1451 = vmatprep.subr.bf16.mxu1 %v1548_v0  ;;  %v1476_v51 = vpack.c.bf16 %v187_v49, %v186_v48  ;;  %v188_v52 = vld [vmem:[%s2732_s1 + $0xc0] sm:$0xff]  ;;  %v189_v53 = vld [vmem:[%s2732_s1 + $0xc8] sm:$0xff]  ;;  %v40_v54 = vld [vmem:[%s2733_s0 + $0xb8] sm:$0xff] }
   0xe   :  { %1296 = vmatmul.mubr.msk.f32.vlgmr.msra.gmra.mrb[0].mxu0 %vm200_vm1, %v19_v26  ;;  %v1479_v55 = vpack.c.bf16 %v189_v53, %v188_v52  ;;  %v190_v56 = vld [vmem:[%s2732_s1 + $0xd0] sm:$0xff]  ;;  %v191_v57 = vld [vmem:[%s2732_s1 + $0xd8] sm:$0xff]  ;;  %v192_v60 = vld [vmem:[%s2732_s1 + $0xe0] sm:$0xff] }
   0xf   :  { %1298 = vmatprep.mubr.msk.f32.mxu0 %vm1549_vm0, %v1550_v6  ;;  %v43_v58 = vld [vmem:[%s2733_s0 + $0xd0] sm:$0xff]  ;;  %v1482_v59 = vpack.c.bf16 %v191_v57, %v190_v56  ;;  %v193_v61 = vld [vmem:[%s2732_s1 + $0xe8] sm:$0xff]  ;;  %v195_v2 = vld [vmem:[%s2732_s1 + $0xf8] sm:$0xff] }
  0x10   :  { %1453 = vmatpush1.bf16.msra.mxu1 %v1452_v17  ;;  %v46_v62 = vld [vmem:[%s2733_s0 + $0xe8] sm:$0xff]  ;;  %v1485_v63 = vpack.c.bf16 %v193_v61, %v192_v60  ;;  %v194_v1 = vld [vmem:[%s2732_s1 + $0xf0] sm:$0xff]  ;;  %v49_v3 = vld [vmem:[%s2733_s0 + $0x100] sm:$0xff] }
  0x11   :  { %1454 = vmatprep.subr.bf16.mxu1 %v1548_v0  ;;  %v1488_v4 = vpack.c.bf16 %v195_v2, %v194_v1  ;;  %v52_v5 = vld [vmem:[%s2733_s0 + $0x118] sm:$0xff]  ;;  %v17_v7 = vld [vmem:[%s2733_s0] sm:$0xff]  ;;  %v58_v11 = vld [vmem:[%s2733_s0 + $0x148] sm:$0xff] }
  0x12   :  { %1299 = vmatmul.mubr.msk.f32.gmra.mrb[2].mxu0 %vm200_vm1, %v22_v30  ;;  %v21_v8 = vld [vmem:[%s2733_s0 + $0x20] sm:$0xff]  ;;  %v20_v9 = vld [vmem:[%s2733_s0 + $0x18] sm:$0xff]  ;;  %v23_v12 = vld [vmem:[%s2733_s0 + $0x30] sm:$0xff] }
  0x13   :  { %1301 = vmatprep.mubr.msk.f32.mxu0 %vm1549_vm0, %v1550_v6  ;;  %v24_v10 = vld [vmem:[%s2733_s0 + $0x38] sm:$0xff]  ;;  %v27_v13 = vld [vmem:[%s2733_s0 + $0x50] sm:$0xff]  ;;  %v61_v14 = vld [vmem:[%s2733_s0 + $0x160] sm:$0xff] }
  0x14   :  { %1456 = vmatpush1.bf16.msra.mxu1 %v1455_v23  ;;  %v26_v15 = vld [vmem:[%s2733_s0 + $0x48] sm:$0xff]  ;;  %v64_v17 = vld [vmem:[%s2733_s0 + $0x178] sm:$0xff]  ;;  %v29_v18 = vld [vmem:[%s2733_s0 + $0x60] sm:$0xff] }
  0x15   :  { %1457 = vmatprep.subr.bf16.mxu1 %v1548_v0  ;;  %v30_v16 = vld [vmem:[%s2733_s0 + $0x68] sm:$0xff]  ;;  %v33_v19 = vld [vmem:[%s2733_s0 + $0x80] sm:$0xff]  ;;  %v67_v20 = vld [vmem:[%s2733_s0 + $0x190] sm:$0xff] }
  0x16   :  { %1302 = vmatmul.mubr.msk.f32.gmra.mrb[4].mxu0 %vm200_vm1, %v25_v34  ;;  %v32_v21 = vld [vmem:[%s2733_s0 + $0x78] sm:$0xff]  ;;  %v70_v23 = vld [vmem:[%s2733_s0 + $0x1a8] sm:$0xff]  ;;  %v35_v24 = vld [vmem:[%s2733_s0 + $0x90] sm:$0xff] }
  0x17   :  { %1304 = vmatprep.mubr.msk.f32.mxu0 %vm1549_vm0, %v1550_v6  ;;  %v36_v22 = vld [vmem:[%s2733_s0 + $0x98] sm:$0xff]  ;;  %v39_v25 = vld [vmem:[%s2733_s0 + $0xb0] sm:$0xff]  ;;  %v73_v26 = vld [vmem:[%s2733_s0 + $0x1c0] sm:$0xff] }
  0x18   :  { %1459 = vmatpush1.bf16.msra.mxu1 %v1458_v27  ;;  %v38_v27 = vld [vmem:[%s2733_s0 + $0xa8] sm:$0xff]  ;;  %v76_v29 = vld [vmem:[%s2733_s0 + $0x1d8] sm:$0xff]  ;;  %v41_v30 = vld [vmem:[%s2733_s0 + $0xc0] sm:$0xff] }
  0x19   :  { %1460 = vmatprep.subr.bf16.mxu1 %v1548_v0  ;;  %v42_v28 = vld [vmem:[%s2733_s0 + $0xc8] sm:$0xff]  ;;  %v79_v32 = vld [vmem:[%s2733_s0 + $0x1f0] sm:$0xff]  ;;  %v44_v33 = vld [vmem:[%s2733_s0 + $0xd8] sm:$0xff] }
  0x1a   :  { %1305 = vmatmul.mubr.msk.f32.gmra.mrb[6].mxu0 %vm200_vm1, %v28_v38  ;;  %v48_v34 = vld [vmem:[%s2733_s0 + $0xf8] sm:$0xff]  ;;  %v47_v36 = vld [vmem:[%s2733_s0 + $0xf0] sm:$0xff]  ;;  %v85_v38 = vld [vmem:[%s2733_s0 + $0x220] sm:$0xff] }
  0x1b   :  { %1307 = vmatprep.mubr.msk.f32.mxu0 %vm1549_vm0, %v1550_v6  ;;  %v51_v37 = vld [vmem:[%s2733_s0 + $0x110] sm:$0xff]  ;;  %v54_v40 = vld [vmem:[%s2733_s0 + $0x128] sm:$0xff]  ;;  %v88_v41 = vld [vmem:[%s2733_s0 + $0x238] sm:$0xff] }
  0x1c   :  { %1462 = vmatpush1.bf16.msra.mxu1 %v1461_v31  ;;  %v45_v31 = vld [vmem:[%s2733_s0 + $0xe0] sm:$0xff]  ;;  %v91_v44 = vld [vmem:[%s2733_s0 + $0x250] sm:$0xff]  ;;  %v56_v45 = vld [vmem:[%s2733_s0 + $0x138] sm:$0xff] }
  0x1d   :  { %1463 = vmatprep.subr.bf16.mxu1 %v1548_v0  ;;  %v59_v48 = vld [vmem:[%s2733_s0 + $0x150] sm:$0xff]  ;;  %v66_v52 = vld [vmem:[%s2733_s0 + $0x188] sm:$0xff]  ;;  %v100_v53 = vld [vmem:[%s2733_s0 + $0x298] sm:$0xff] }
  0x1e   :  { %1308 = vmatmul.mubr.msk.f32.gmra.mrb[8].mxu0 %vm200_vm1, %v31_v42  ;;  %v53_v42 = vld [vmem:[%s2733_s0 + $0x120] sm:$0xff]  ;;  %v63_v49 = vld [vmem:[%s2733_s0 + $0x170] sm:$0xff]  ;;  %v68_v57 = vld [vmem:[%s2733_s0 + $0x198] sm:$0xff] }
  0x1f   :  { %1310 = vmatprep.mubr.msk.f32.mxu0 %vm1549_vm0, %v1550_v6  ;;  %v103_v56 = vld [vmem:[%s2733_s0 + $0x2b0] sm:$0xff]  ;;  %v78_v1 = vld [vmem:[%s2733_s0 + $0x1e8] sm:$0xff]  ;;  %v112_v2 = vld [vmem:[%s2733_s0 + $0x2f8] sm:$0xff] }
  0x20   :  { %1465 = vmatpush1.bf16.msra.mxu1 %v1464_v35  ;;  %v82_v35 = vld [vmem:[%s2733_s0 + $0x208] sm:$0xff]  ;;  %v71_v60 = vld [vmem:[%s2733_s0 + $0x1b0] sm:$0xff] }
  0x21   :  { %1466 = vmatprep.subr.bf16.mxu1 %v1548_v0  ;;  %v75_v61 = vld [vmem:[%s2733_s0 + $0x1d0] sm:$0xff] }
  0x22   :  { %1311 = vmatmul.mubr.msk.f32.gmra.mrb[10].mxu0 %vm200_vm1, %v34_v46  ;;  %v60_v46 = vld [vmem:[%s2733_s0 + $0x158] sm:$0xff] }
  0x23   :  { %1313 = vmatprep.mubr.msk.f32.mxu0 %vm1549_vm0, %v1550_v6 }
  0x24   :  { %1468 = vmatpush1.bf16.msra.mxu1 %v1467_v39  ;;  %v50_v39 = vld [vmem:[%s2733_s0 + $0x108] sm:$0xff] }
  0x25   :  { %1469 = vmatprep.subr.bf16.mxu1 %v1548_v0 }
  0x26   :  { %1314 = vmatmul.mubr.msk.f32.gmra.mrb[12].mxu0 %vm200_vm1, %v37_v50  ;;  %v97_v50 = vld [vmem:[%s2733_s0 + $0x280] sm:$0xff] }
  0x27   :  { %1316 = vmatprep.mubr.msk.f32.mxu0 %vm1549_vm0, %v1550_v6 }
  0x28   :  { %1471 = vmatpush1.bf16.msra.mxu1 %v1470_v43  ;;  %v57_v43 = vld [vmem:[%s2733_s0 + $0x140] sm:$0xff] }
  0x29   :  { %1472 = vmatprep.subr.bf16.mxu1 %v1548_v0 }
  0x2a   :  { %1317 = vmatmul.mubr.msk.f32.gmra.mrb[14].mxu0 %vm200_vm1, %v40_v54  ;;  %v65_v54 = vld [vmem:[%s2733_s0 + $0x180] sm:$0xff] }
  0x2b   :  { %1319 = vmatprep.mubr.msk.f32.mxu0 %vm1549_vm0, %v1550_v6 }
  0x2c   :  { %1474 = vmatpush1.bf16.msra.mxu1 %v1473_v47  ;;  %v94_v47 = vld [vmem:[%s2733_s0 + $0x268] sm:$0xff] }
  0x2d   :  { %1475 = vmatprep.subr.bf16.mxu1 %v1548_v0 }
  0x2e   :  { %1320 = vmatmul.mubr.msk.f32.gmra.mrb[16].mxu0 %vm200_vm1, %v43_v58  ;;  %v72_v58 = vld [vmem:[%s2733_s0 + $0x1b8] sm:$0xff] }
  0x2f   :  { %1322 = vmatprep.mubr.msk.f32.mxu0 %vm1549_vm0, %v1550_v6 }
  0x30   :  { %1477 = vmatpush1.bf16.msra.mxu1 %v1476_v51  ;;  %v62_v51 = vld [vmem:[%s2733_s0 + $0x168] sm:$0xff] }
  0x31   :  { %1478 = vmatprep.subr.bf16.mxu1 %v1548_v0 }
  0x32   :  { %1323 = vmatmul.mubr.msk.f32.gmra.mrb[18].mxu0 %vm200_vm1, %v46_v62  ;;  %v109_v62 = vld [vmem:[%s2733_s0 + $0x2e0] sm:$0xff] }
  0x33   :  { %1325 = vmatprep.mubr.msk.f32.mxu0 %vm1549_vm0, %v1550_v6 }
  0x34   :  { %1480 = vmatpush1.bf16.msra.mxu1 %v1479_v55  ;;  %v69_v55 = vld [vmem:[%s2733_s0 + $0x1a0] sm:$0xff] }
  0x35   :  { %1481 = vmatprep.subr.bf16.mxu1 %v1548_v0 }
  0x36   :  { %1326 = vmatmul.mubr.msk.f32.gmra.mrb[20].mxu0 %vm200_vm1, %v49_v3  ;;  %v77_v3 = vld [vmem:[%s2733_s0 + $0x1e0] sm:$0xff] }
  0x37   :  { %1328 = vmatprep.mubr.msk.f32.mxu0 %vm1549_vm0, %v1550_v6 }
  0x38   :  { %1483 = vmatpush1.bf16.msra.mxu1 %v1482_v59  ;;  %v106_v59 = vld [vmem:[%s2733_s0 + $0x2c8] sm:$0xff] }
  0x39   :  { %1484 = vmatprep.subr.bf16.mxu1 %v1548_v0 }
  0x3a   :  { %1329 = vmatmul.mubr.msk.f32.gmra.mrb[22].mxu0 %vm200_vm1, %v52_v5  ;;  %v115_v5 = vld [vmem:[%s2733_s0 + $0x310] sm:$0xff] }
  0x3b   :  { %1331 = vmatprep.mubr.msk.f32.mxu0 %vm1549_vm0, %v1550_v6 }
  0x3c   :  { %1486 = vmatpush1.bf16.msra.mxu1 %v1485_v63  ;;  %v74_v63 = vld [vmem:[%s2733_s0 + $0x1c8] sm:$0xff] }
  0x3d   :  { %1487 = vmatprep.subr.bf16.mxu1 %v1548_v0  ;;  %v55_v0 = vld [vmem:[%s2733_s0 + $0x130] sm:$0xff] }
  0x3e   :  { %1332 = vmatmul.mubr.msk.f32.gmra.mrb[24].mxu0 %vm200_vm1, %v55_v0  ;;  %v118_v0 = vld [vmem:[%s2733_s0 + $0x328] sm:$0xff] }
  0x3f   :  { %1334 = vmatprep.mubr.msk.f32.mxu0 %vm1549_vm0, %v1550_v6 }
  0x40   :  { %1489 = vmatpush1.bf16.msra.mxu1 %v1488_v4  ;;  %v81_v4 = vld [vmem:[%s2733_s0 + $0x200] sm:$0xff] }
  0x42   :  { %1335 = vmatmul.mubr.msk.f32.gmra.mrb[26].mxu0 %vm200_vm1, %v58_v11  ;;  %v121_v11 = vld [vmem:[%s2733_s0 + $0x340] sm:$0xff] }
  0x43   :  { %413 = vmatmul.mubr.f32.vlgmr.msra.gmra.mrb[0].mxu1 %v17_v7  ;;  %1337 = vmatprep.mubr.msk.f32.mxu0 %vm1549_vm0, %v1550_v6  ;;  %v80_v7 = vld [vmem:[%s2733_s0 + $0x1f8] sm:$0xff] }
  0x44   :  { %417 = vmatprep.mubr.f32.mxu1 %v21_v8  ;;  %v84_v8 = vld [vmem:[%s2733_s0 + $0x218] sm:$0xff] }
  0x46   :  { %1338 = vmatmul.mubr.msk.f32.gmra.mrb[28].mxu0 %vm200_vm1, %v61_v14  ;;  %v124_v14 = vld [vmem:[%s2733_s0 + $0x358] sm:$0xff] }
  0x47   :  { %418 = vmatmul.mubr.f32.gmra.mrb[2].mxu1 %v20_v9  ;;  %1340 = vmatprep.mubr.msk.f32.mxu0 %vm1549_vm0, %v1550_v6  ;;  %v83_v9 = vld [vmem:[%s2733_s0 + $0x210] sm:$0xff] }
  0x48   :  { %422 = vmatprep.mubr.f32.mxu1 %v24_v10  ;;  %v87_v10 = vld [vmem:[%s2733_s0 + $0x230] sm:$0xff] }
  0x4a   :  { %1341 = vmatmul.mubr.msk.f32.gmra.mrb[30].mxu0 %vm200_vm1, %v64_v17  ;;  %v127_v17 = vld [vmem:[%s2733_s0 + $0x370] sm:$0xff] }
  0x4b   :  { %423 = vmatmul.mubr.f32.gmra.mrb[4].mxu1 %v23_v12  ;;  %1343 = vmatprep.mubr.msk.f32.mxu0 %vm1549_vm0, %v1550_v6  ;;  %v86_v12 = vld [vmem:[%s2733_s0 + $0x228] sm:$0xff] }
  0x4c   :  { %427 = vmatprep.mubr.f32.mxu1 %v27_v13  ;;  %v90_v13 = vld [vmem:[%s2733_s0 + $0x248] sm:$0xff] }
  0x4e   :  { %1344 = vmatmul.mubr.msk.f32.gmra.mrb[32].mxu0 %vm200_vm1, %v67_v20  ;;  %v130_v20 = vld [vmem:[%s2733_s0 + $0x388] sm:$0xff] }
  0x4f   :  { %428 = vmatmul.mubr.f32.gmra.mrb[6].mxu1 %v26_v15  ;;  %1346 = vmatprep.mubr.msk.f32.mxu0 %vm1549_vm0, %v1550_v6  ;;  %v89_v15 = vld [vmem:[%s2733_s0 + $0x240] sm:$0xff] }
  0x50   :  { %432 = vmatprep.mubr.f32.mxu1 %v30_v16  ;;  %v93_v16 = vld [vmem:[%s2733_s0 + $0x260] sm:$0xff] }
  0x52   :  { %1347 = vmatmul.mubr.msk.f32.gmra.mrb[34].mxu0 %vm200_vm1, %v70_v23  ;;  %v133_v23 = vld [vmem:[%s2733_s0 + $0x3a0] sm:$0xff] }
  0x53   :  { %433 = vmatmul.mubr.f32.gmra.mrb[8].mxu1 %v29_v18  ;;  %1349 = vmatprep.mubr.msk.f32.mxu0 %vm1549_vm0, %v1550_v6  ;;  %v92_v18 = vld [vmem:[%s2733_s0 + $0x258] sm:$0xff] }
  0x54   :  { %437 = vmatprep.mubr.f32.mxu1 %v33_v19  ;;  %v96_v19 = vld [vmem:[%s2733_s0 + $0x278] sm:$0xff] }
  0x56   :  { %1350 = vmatmul.mubr.msk.f32.gmra.mrb[36].mxu0 %vm200_vm1, %v73_v26  ;;  %v136_v26 = vld [vmem:[%s2733_s0 + $0x3b8] sm:$0xff] }
  0x57   :  { %438 = vmatmul.mubr.f32.gmra.mrb[10].mxu1 %v32_v21  ;;  %1352 = vmatprep.mubr.msk.f32.mxu0 %vm1549_vm0, %v1550_v6  ;;  %v95_v21 = vld [vmem:[%s2733_s0 + $0x270] sm:$0xff] }
  0x58   :  { %442 = vmatprep.mubr.f32.mxu1 %v36_v22  ;;  %v99_v22 = vld [vmem:[%s2733_s0 + $0x290] sm:$0xff] }
  0x5a   :  { %1353 = vmatmul.mubr.msk.f32.gmra.mrb[38].mxu0 %vm200_vm1, %v76_v29  ;;  %v139_v29 = vld [vmem:[%s2733_s0 + $0x3d0] sm:$0xff] }
  0x5b   :  { %443 = vmatmul.mubr.f32.gmra.mrb[12].mxu1 %v35_v24  ;;  %1355 = vmatprep.mubr.msk.f32.mxu0 %vm1549_vm0, %v1550_v6  ;;  %v98_v24 = vld [vmem:[%s2733_s0 + $0x288] sm:$0xff] }
  0x5c   :  { %447 = vmatprep.mubr.f32.mxu1 %v39_v25  ;;  %v102_v25 = vld [vmem:[%s2733_s0 + $0x2a8] sm:$0xff] }
  0x5e   :  { %1356 = vmatmul.mubr.msk.f32.gmra.mrb[40].mxu0 %vm200_vm1, %v79_v32  ;;  %v142_v32 = vld [vmem:[%s2733_s0 + $0x3e8] sm:$0xff] }
  0x5f   :  { %448 = vmatmul.mubr.f32.gmra.mrb[14].mxu1 %v38_v27  ;;  %1358 = vmatprep.mubr.msk.f32.mxu0 %vm1549_vm0, %v1550_v6  ;;  %v101_v27 = vld [vmem:[%s2733_s0 + $0x2a0] sm:$0xff] }
  0x60   :  { %452 = vmatprep.mubr.f32.mxu1 %v42_v28  ;;  %v105_v28 = vld [vmem:[%s2733_s0 + $0x2c0] sm:$0xff] }
  0x62   :  { %1359 = vmatmul.mubr.msk.f32.gmra.mrb[42].mxu0 %vm200_vm1, %v82_v35  ;;  %v145_v35 = vld [vmem:[%s2733_s0 + $0x400] sm:$0xff] }
  0x63   :  { %453 = vmatmul.mubr.f32.gmra.mrb[16].mxu1 %v41_v30  ;;  %1361 = vmatprep.mubr.msk.f32.mxu0 %vm1549_vm0, %v1550_v6  ;;  %v104_v30 = vld [vmem:[%s2733_s0 + $0x2b8] sm:$0xff] }
  0x64   :  { %457 = vmatprep.mubr.f32.mxu1 %v45_v31  ;;  %v108_v31 = vld [vmem:[%s2733_s0 + $0x2d8] sm:$0xff] }
  0x66   :  { %1362 = vmatmul.mubr.msk.f32.gmra.mrb[44].mxu0 %vm200_vm1, %v85_v38  ;;  %v148_v38 = vld [vmem:[%s2733_s0 + $0x418] sm:$0xff] }
  0x67   :  { %458 = vmatmul.mubr.f32.gmra.mrb[18].mxu1 %v44_v33  ;;  %1364 = vmatprep.mubr.msk.f32.mxu0 %vm1549_vm0, %v1550_v6  ;;  %v107_v33 = vld [vmem:[%s2733_s0 + $0x2d0] sm:$0xff] }
  0x68   :  { %462 = vmatprep.mubr.f32.mxu1 %v48_v34  ;;  %v111_v34 = vld [vmem:[%s2733_s0 + $0x2f0] sm:$0xff] }
  0x6a   :  { %1365 = vmatmul.mubr.msk.f32.gmra.mrb[46].mxu0 %vm200_vm1, %v88_v41  ;;  %v151_v41 = vld [vmem:[%s2733_s0 + $0x430] sm:$0xff] }
  0x6b   :  { %463 = vmatmul.mubr.f32.gmra.mrb[20].mxu1 %v47_v36  ;;  %1367 = vmatprep.mubr.msk.f32.mxu0 %vm1549_vm0, %v1550_v6  ;;  %v110_v36 = vld [vmem:[%s2733_s0 + $0x2e8] sm:$0xff] }
  0x6c   :  { %467 = vmatprep.mubr.f32.mxu1 %v51_v37  ;;  %v114_v37 = vld [vmem:[%s2733_s0 + $0x308] sm:$0xff] }
  0x6e   :  { %1368 = vmatmul.mubr.msk.f32.gmra.mrb[48].mxu0 %vm200_vm1, %v91_v44  ;;  %v154_v44 = vld [vmem:[%s2733_s0 + $0x448] sm:$0xff] }
  0x6f   :  { %468 = vmatmul.mubr.f32.gmra.mrb[22].mxu1 %v50_v39  ;;  %1370 = vmatprep.mubr.msk.f32.mxu0 %vm1549_vm0, %v1550_v6  ;;  %v113_v39 = vld [vmem:[%s2733_s0 + $0x300] sm:$0xff] }
  0x70   :  { %472 = vmatprep.mubr.f32.mxu1 %v54_v40  ;;  %v117_v40 = vld [vmem:[%s2733_s0 + $0x320] sm:$0xff] }
  0x72   :  { %1371 = vmatmul.mubr.msk.f32.gmra.mrb[50].mxu0 %vm200_vm1, %v94_v47  ;;  %v157_v47 = vld [vmem:[%s2733_s0 + $0x460] sm:$0xff] }
  0x73   :  { %473 = vmatmul.mubr.f32.gmra.mrb[24].mxu1 %v53_v42  ;;  %1373 = vmatprep.mubr.msk.f32.mxu0 %vm1549_vm0, %v1550_v6  ;;  %v116_v42 = vld [vmem:[%s2733_s0 + $0x318] sm:$0xff] }
  0x74   :  { %477 = vmatprep.mubr.f32.mxu1 %v57_v43  ;;  %v120_v43 = vld [vmem:[%s2733_s0 + $0x338] sm:$0xff] }
  0x76   :  { %1374 = vmatmul.mubr.msk.f32.gmra.mrb[52].mxu0 %vm200_vm1, %v97_v50  ;;  %v160_v50 = vld [vmem:[%s2733_s0 + $0x478] sm:$0xff] }
  0x77   :  { %478 = vmatmul.mubr.f32.gmra.mrb[26].mxu1 %v56_v45  ;;  %1376 = vmatprep.mubr.msk.f32.mxu0 %vm1549_vm0, %v1550_v6  ;;  %v119_v45 = vld [vmem:[%s2733_s0 + $0x330] sm:$0xff] }
  0x78   :  { %482 = vmatprep.mubr.f32.mxu1 %v60_v46  ;;  %v123_v46 = vld [vmem:[%s2733_s0 + $0x350] sm:$0xff] }
  0x7a   :  { %1377 = vmatmul.mubr.msk.f32.gmra.mrb[54].mxu0 %vm200_vm1, %v100_v53  ;;  %v163_v53 = vld [vmem:[%s2733_s0 + $0x490] sm:$0xff] }
  0x7b   :  { %483 = vmatmul.mubr.f32.gmra.mrb[28].mxu1 %v59_v48  ;;  %1379 = vmatprep.mubr.msk.f32.mxu0 %vm1549_vm0, %v1550_v6  ;;  %v122_v48 = vld [vmem:[%s2733_s0 + $0x348] sm:$0xff] }
  0x7c   :  { %487 = vmatprep.mubr.f32.mxu1 %v63_v49  ;;  %v126_v49 = vld [vmem:[%s2733_s0 + $0x368] sm:$0xff] }
  0x7e   :  { %1380 = vmatmul.mubr.msk.f32.gmra.mrb[56].mxu0 %vm200_vm1, %v103_v56  ;;  %v135_v56 = vld [vmem:[%s2733_s0 + $0x3b0] sm:$0xff] }
  0x7f   :  { %488 = vmatmul.mubr.f32.gmra.mrb[30].mxu1 %v62_v51  ;;  %1382 = vmatprep.mubr.msk.f32.mxu0 %vm1549_vm0, %v1550_v6  ;;  %v125_v51 = vld [vmem:[%s2733_s0 + $0x360] sm:$0xff] }
  0x80   :  { %492 = vmatprep.mubr.f32.mxu1 %v66_v52  ;;  %v129_v52 = vld [vmem:[%s2733_s0 + $0x380] sm:$0xff] }
  0x82   :  { %1383 = vmatmul.mubr.msk.f32.gmra.mrb[58].mxu0 %vm200_vm1, %v106_v59  ;;  %v137_v59 = vld [vmem:[%s2733_s0 + $0x3c0] sm:$0xff] }
  0x83   :  { %493 = vmatmul.mubr.f32.gmra.mrb[32].mxu1 %v65_v54  ;;  %1385 = vmatprep.mubr.msk.f32.mxu0 %vm1549_vm0, %v1550_v6  ;;  %v128_v54 = vld [vmem:[%s2733_s0 + $0x378] sm:$0xff] }
  0x84   :  { %497 = vmatprep.mubr.f32.mxu1 %v69_v55  ;;  %v132_v55 = vld [vmem:[%s2733_s0 + $0x398] sm:$0xff] }
  0x86   :  { %1386 = vmatmul.mubr.msk.f32.gmra.mrb[60].mxu0 %vm200_vm1, %v109_v62  ;;  %v144_v62 = vld [vmem:[%s2733_s0 + $0x3f8] sm:$0xff] }
  0x87   :  { %498 = vmatmul.mubr.f32.gmra.mrb[34].mxu1 %v68_v57  ;;  %1388 = vmatprep.mubr.msk.f32.mxu0 %vm1549_vm0, %v1550_v6  ;;  %v134_v57 = vld [vmem:[%s2733_s0 + $0x3a8] sm:$0xff] }
  0x88   :  { %502 = vmatprep.mubr.f32.mxu1 %v72_v58  ;;  %v138_v58 = vld [vmem:[%s2733_s0 + $0x3c8] sm:$0xff] }
  0x8a   :  { %1389 = vmatmul.mubr.msk.f32.gmra.mrb[62].mxu0 %vm200_vm1, %v112_v2 }
  0x8b   :  { %503 = vmatmul.mubr.f32.gmra.mrb[36].mxu1 %v71_v60  ;;  %1391 = vmatprep.mubr.msk.f32.mxu0 %vm1549_vm0, %v1550_v6  ;;  %v141_v60 = vld [vmem:[%s2733_s0 + $0x3e0] sm:$0xff] }
  0x8c   :  { %507 = vmatprep.mubr.f32.mxu1 %v75_v61  ;;  %v140_v61 = vld [vmem:[%s2733_s0 + $0x3d8] sm:$0xff] }
  0x8e   :  { %1392 = vmatmul.mubr.msk.f32.gmra.mrb[64].mxu0 %vm200_vm1, %v115_v5  ;;  %v146_v5 = vld [vmem:[%s2733_s0 + $0x408] sm:$0xff] }
  0x8f   :  { %508 = vmatmul.mubr.f32.gmra.mrb[38].mxu1 %v74_v63  ;;  %1394 = vmatprep.mubr.msk.f32.mxu0 %vm1549_vm0, %v1550_v6 }
  0x90   :  { %512 = vmatprep.mubr.f32.mxu1 %v78_v1  ;;  %v143_v1 = vld [vmem:[%s2733_s0 + $0x3f0] sm:$0xff] }
  0x92   :  { %1395 = vmatmul.mubr.msk.f32.gmra.mrb[66].mxu0 %vm200_vm1, %v118_v0 }
  0x93   :  { %513 = vmatmul.mubr.f32.gmra.mrb[40].mxu1 %v77_v3  ;;  %1397 = vmatprep.mubr.msk.f32.mxu0 %vm1549_vm0, %v1550_v6  ;;  %v147_v3 = vld [vmem:[%s2733_s0 + $0x410] sm:$0xff] }
  0x94   :  { %517 = vmatprep.mubr.f32.mxu1 %v81_v4 }
  0x96   :  { %1398 = vmatmul.mubr.msk.f32.gmra.mrb[68].mxu0 %vm200_vm1, %v121_v11  ;;  %v153_v11 = vld [vmem:[%s2733_s0 + $0x440] sm:$0xff] }
  0x97   :  { %518 = vmatmul.mubr.f32.gmra.mrb[42].mxu1 %v80_v7  ;;  %1400 = vmatprep.mubr.msk.f32.mxu0 %vm1549_vm0, %v1550_v6 }
  0x98   :  { %522 = vmatprep.mubr.f32.mxu1 %v84_v8  ;;  %v150_v8 = vld [vmem:[%s2733_s0 + $0x428] sm:$0xff] }
  0x9a   :  { %1401 = vmatmul.mubr.msk.f32.gmra.mrb[70].mxu0 %vm200_vm1, %v124_v14 }
  0x9b   :  { %523 = vmatmul.mubr.f32.gmra.mrb[44].mxu1 %v83_v9  ;;  %1403 = vmatprep.mubr.msk.f32.mxu0 %vm1549_vm0, %v1550_v6  ;;  %v149_v9 = vld [vmem:[%s2733_s0 + $0x420] sm:$0xff] }
  0x9c   :  { %527 = vmatprep.mubr.f32.mxu1 %v87_v10 }
  0x9e   :  { %1404 = vmatmul.mubr.msk.f32.gmra.mrb[72].mxu0 %vm200_vm1, %v127_v17  ;;  %v155_v17 = vld [vmem:[%s2733_s0 + $0x450] sm:$0xff] }
  0x9f   :  { %528 = vmatmul.mubr.f32.gmra.mrb[46].mxu1 %v86_v12  ;;  %1406 = vmatprep.mubr.msk.f32.mxu0 %vm1549_vm0, %v1550_v6 }
  0xa0   :  { %532 = vmatprep.mubr.f32.mxu1 %v90_v13  ;;  %v152_v13 = vld [vmem:[%s2733_s0 + $0x438] sm:$0xff] }
  0xa2   :  { %1407 = vmatmul.mubr.msk.f32.gmra.mrb[74].mxu0 %vm200_vm1, %v130_v20 }
  0xa3   :  { %533 = vmatmul.mubr.f32.gmra.mrb[48].mxu1 %v89_v15  ;;  %1409 = vmatprep.mubr.msk.f32.mxu0 %vm1549_vm0, %v1550_v6  ;;  %v156_v15 = vld [vmem:[%s2733_s0 + $0x458] sm:$0xff] }
  0xa4   :  { %537 = vmatprep.mubr.f32.mxu1 %v93_v16 }
  0xa6   :  { %1410 = vmatmul.mubr.msk.f32.gmra.mrb[76].mxu0 %vm200_vm1, %v133_v23  ;;  %v162_v23 = vld [vmem:[%s2733_s0 + $0x488] sm:$0xff] }
  0xa7   :  { %538 = vmatmul.mubr.f32.gmra.mrb[50].mxu1 %v92_v18  ;;  %1412 = vmatprep.mubr.msk.f32.mxu0 %vm1549_vm0, %v1550_v6 }
  0xa8   :  { %542 = vmatprep.mubr.f32.mxu1 %v96_v19  ;;  %v159_v19 = vld [vmem:[%s2733_s0 + $0x470] sm:$0xff] }
  0xaa   :  { %1413 = vmatmul.mubr.msk.f32.gmra.mrb[78].mxu0 %vm200_vm1, %v136_v26 }
  0xab   :  { %543 = vmatmul.mubr.f32.gmra.mrb[52].mxu1 %v95_v21  ;;  %1415 = vmatprep.mubr.msk.f32.mxu0 %vm1549_vm0, %v1550_v6  ;;  %v158_v21 = vld [vmem:[%s2733_s0 + $0x468] sm:$0xff] }
  0xac   :  { %547 = vmatprep.mubr.f32.mxu1 %v99_v22 }
  0xae   :  { %1416 = vmatmul.mubr.msk.f32.gmra.mrb[80].mxu0 %vm200_vm1, %v139_v29 }
  0xaf   :  { %548 = vmatmul.mubr.f32.gmra.mrb[54].mxu1 %v98_v24  ;;  %1418 = vmatprep.mubr.msk.f32.mxu0 %vm1549_vm0, %v1550_v6 }
  0xb0   :  { %552 = vmatprep.mubr.f32.mxu1 %v102_v25  ;;  %v161_v25 = vld [vmem:[%s2733_s0 + $0x480] sm:$0xff] }
  0xb2   :  { %1419 = vmatmul.mubr.msk.f32.gmra.mrb[82].mxu0 %vm200_vm1, %v142_v32 }
  0xb3   :  { %553 = vmatmul.mubr.f32.gmra.mrb[56].mxu1 %v101_v27  ;;  %1421 = vmatprep.mubr.msk.f32.mxu0 %vm1549_vm0, %v1550_v6 }
  0xb4   :  { %557 = vmatprep.mubr.f32.mxu1 %v105_v28 }
  0xb6   :  { %1422 = vmatmul.mubr.msk.f32.gmra.mrb[84].mxu0 %vm200_vm1, %v145_v35 }
  0xb7   :  { %558 = vmatmul.mubr.f32.gmra.mrb[58].mxu1 %v104_v30  ;;  %1424 = vmatprep.mubr.msk.f32.mxu0 %vm1549_vm0, %v1550_v6 }
  0xb8   :  { %562 = vmatprep.mubr.f32.mxu1 %v108_v31 }
  0xba   :  { %1425 = vmatmul.mubr.msk.f32.gmra.mrb[86].mxu0 %vm200_vm1, %v148_v38  ;;  %v2311_v38 = vld [vmem:[%s2734_s2] ss:$0 sm:$0xff] }
  0xbb   :  { %563 = vmatmul.mubr.f32.gmra.mrb[60].mxu1 %v107_v33  ;;  %1427 = vmatprep.mubr.msk.f32.mxu0 %vm1549_vm0, %v1550_v6 }
  0xbc   :  { %567 = vmatprep.mubr.f32.mxu1 %v111_v34 }
  0xbe   :  { %1428 = vmatmul.mubr.msk.f32.gmra.mrb[88].mxu0 %vm200_vm1, %v151_v41 }
  0xbf   :  { %568 = vmatmul.mubr.f32.gmra.mrb[62].mxu1 %v110_v36  ;;  %1430 = vmatprep.mubr.msk.f32.mxu0 %vm1549_vm0, %v1550_v6 }
  0xc0   :  { %572 = vmatprep.mubr.f32.mxu1 %v114_v37 }
  0xc2   :  { %1431 = vmatmul.mubr.msk.f32.gmra.mrb[90].mxu0 %vm200_vm1, %v154_v44 }
  0xc3   :  { %573 = vmatmul.mubr.f32.gmra.mrb[64].mxu1 %v113_v39  ;;  %1433 = vmatprep.mubr.msk.f32.mxu0 %vm1549_vm0, %v1550_v6 }
  0xc4   :  { %577 = vmatprep.mubr.f32.mxu1 %v117_v40 }
  0xc6   :  { %1434 = vmatmul.mubr.msk.f32.gmra.mrb[92].mxu0 %vm200_vm1, %v157_v47 }
  0xc7   :  { %578 = vmatmul.mubr.f32.gmra.mrb[66].mxu1 %v116_v42  ;;  %1436 = vmatprep.mubr.msk.f32.mxu0 %vm1549_vm0, %v1550_v6  ;;  %v2318_v42 = vld [vmem:[%s2735_s3] ss:$0 sm:$0xff] }
  0xc8   :  { %582 = vmatprep.mubr.f32.mxu1 %v120_v43 }
  0xca   :  { %1437 = vmatmul.mubr.msk.f32.gmra.mrb[94].mxu0 %vm200_vm1, %v160_v50 }
  0xcb   :  { %583 = vmatmul.mubr.f32.gmra.mrb[68].mxu1 %v119_v45  ;;  %1439 = vmatprep.mubr.msk.f32.mxu0 %vm1549_vm0, %v1550_v6  ;;  %v131_v6 = vld [vmem:[%s2733_s0 + $0x390] sm:$0xff] }
  0xcc   :  { %587 = vmatprep.mubr.f32.mxu1 %v123_v46 }
  0xce   :  { %1440 = vmatmul.mubr.msk.f32.gmra.mrb[96].mxu0 %vm200_vm1, %v163_v53 }
  0xcf   :  { %588 = vmatmul.mubr.f32.gmra.mrb[70].mxu1 %v122_v48 }
  0xd0   :  { %592 = vmatprep.mubr.f32.mxu1 %v126_v49 }
  0xd3   :  { %593 = vmatmul.mubr.f32.gmra.mrb[72].mxu1 %v125_v51 }
  0xd4   :  { %597 = vmatprep.mubr.f32.mxu1 %v129_v52 }
  0xd7   :  { %598 = vmatmul.mubr.f32.gmra.mrb[74].mxu1 %v128_v54 }
  0xd8   :  { %602 = vmatprep.mubr.f32.mxu1 %v132_v55 }
  0xdb   :  { %603 = vmatmul.mubr.f32.gmra.mrb[76].mxu1 %v131_v6 }
  0xdc   :  { %607 = vmatprep.mubr.f32.mxu1 %v135_v56 }
  0xdf   :  { %608 = vmatmul.mubr.f32.gmra.mrb[78].mxu1 %v134_v57 }
  0xe0   :  { %612 = vmatprep.mubr.f32.mxu1 %v138_v58 }
  0xe1   :  { %v724_v63 = vpop.f32.mrb[0].mxu0 }
  0xe2   :  { %v1297_v2 = vpop.f32.mrb[1].mxu0 }
  0xe3   :  { %613 = vmatmul.mubr.f32.gmra.mrb[80].mxu1 %v137_v59 }
  0xe4   :  { %617 = vmatprep.mubr.f32.mxu1 %v141_v60 }
  0xe5   :  { %v729_v4 = vpop.f32.mrb[2].mxu0 }
  0xe6   :  { %v1300_v7 = vpop.f32.mrb[3].mxu0 }
  0xe7   :  { %618 = vmatmul.mubr.f32.gmra.mrb[82].mxu1 %v140_v61 }
  0xe8   :  { %622 = vmatprep.mubr.f32.mxu1 %v144_v62 }
  0xe9   :  { %v734_v0 = vpop.f32.mrb[4].mxu0 }
  0xea   :  { %v1303_v10 = vpop.f32.mrb[5].mxu0 }
  0xeb   :  { %623 = vmatmul.mubr.f32.gmra.mrb[84].mxu1 %v143_v1 }
  0xec   :  { %627 = vmatprep.mubr.f32.mxu1 %v147_v3 }
  0xed   :  { %v2269_v12 = vpop.f32.mrb[6].mxu0 }
  0xee   :  { %v1306_v14 = vpop.f32.mrb[7].mxu0 }
  0xef   :  { %628 = vmatmul.mubr.f32.gmra.mrb[86].mxu1 %v146_v5 }
  0xf0   :  { %632 = vmatprep.mubr.f32.mxu1 %v150_v8 }
  0xf1   :  { %v2277_v16 = vpop.f32.mrb[8].mxu0 }
  0xf2   :  { %v1309_v18 = vpop.f32.mrb[9].mxu0 }
  0xf3   :  { %633 = vmatmul.mubr.f32.gmra.mrb[88].mxu1 %v149_v9 }
  0xf4   :  { %637 = vmatprep.mubr.f32.mxu1 %v153_v11 }
  0xf5   :  { %v2285_v20 = vpop.f32.mrb[10].mxu0 }
  0xf6   :  { %v1312_v22 = vpop.f32.mrb[11].mxu0 }
  0xf7   :  { %638 = vmatmul.mubr.f32.gmra.mrb[90].mxu1 %v152_v13 }
  0xf8   :  { %642 = vmatprep.mubr.f32.mxu1 %v156_v15 }
  0xf9   :  { %v2293_v24 = vpop.f32.mrb[12].mxu0 }
  0xfa   :  { %v1315_v26 = vpop.f32.mrb[13].mxu0 }
  0xfb   :  { %643 = vmatmul.mubr.f32.gmra.mrb[92].mxu1 %v155_v17 }
  0xfc   :  { %647 = vmatprep.mubr.f32.mxu1 %v159_v19 }
  0xfd   :  { %v2298_v27 = vpop.f32.mrb[14].mxu0 }
  0xfe   :  { %v1318_v28 = vpop.f32.mrb[15].mxu0 }
  0xff   :  { %648 = vmatmul.mubr.f32.gmra.mrb[94].mxu1 %v158_v21 }
 0x100   :  { %652 = vmatprep.mubr.f32.mxu1 %v162_v23 }
 0x101   :  { %v2300_v29 = vpop.f32.mrb[16].mxu0 }
 0x102   :  { %v1321_v30 = vpop.f32.mrb[17].mxu0 }
 0x103   :  { %653 = vmatmul.mubr.f32.gmra.mrb[96].mxu1 %v161_v25 }
 0x105   :  { %v2302_v31 = vpop.f32.mrb[18].mxu0 }
 0x106   :  { %v1324_v32 = vpop.f32.mrb[19].mxu0 }
 0x109   :  { %v2304_v33 = vpop.f32.mrb[20].mxu0 }
 0x10a   :  { %v1327_v34 = vpop.f32.mrb[21].mxu0 }
 0x10d   :  { %v2306_v35 = vpop.f32.mrb[22].mxu0 }
 0x10e   :  { %v1330_v36 = vpop.f32.mrb[23].mxu0 }
 0x111   :  { %v2313_v41 = vpop.f32.mrb[24].mxu0 }
 0x112   :  { %v1333_v43 = vpop.f32.mrb[25].mxu0 }
 0x115   :  { %v2322_v49 = vpop.f32.mrb[26].mxu0 }
 0x116   :  { %v414_v37 = vpop.f32.mrb[0].mxu1  ;;  %v1336_v50 = vpop.f32.mrb[27].mxu0 }
 0x117   :  { %v725_v39 = vadd.f32 %v724_v63, %v414_v37  ;;  %v416_v40 = vpop.f32.mrb[1].mxu1 }
 0x119   :  { %v975_v44 = vmul.f32 %v2311_v38, %v725_v39  ;;  %v2330_v56 = vpop.f32.mrb[28].mxu0 }
 0x11a   :  { %v419_v45 = vpop.f32.mrb[2].mxu1  ;;  %v1339_v57 = vpop.f32.mrb[29].mxu0 }
 0x11b   :  { %v1031_v46 = vadd.f32 %v2318_v42, %v975_v44  ;;  %v730_v47 = vadd.f32 %v729_v4, %v419_v45  ;;  %v421_v48 = vpop.f32.mrb[3].mxu1 }
 0x11d   :  { %v1080_v51 = vmax.f32 %v1031_v46, 0.0  ;;  %v976_v52 = vmul.f32 %v2311_v38, %v730_v47  ;;  %v2339_v1 = vpop.f32.mrb[30].mxu0 }
 0x11e   :  { %v424_v53 = vpop.f32.mrb[4].mxu1  ;;  %v1342_v2 = vpop.f32.mrb[31].mxu0 }
 0x11f   :  { %1130 = vst.msk [vmem:[%s2736_s4] sm:$0xff] %vm1129_vm2, %v1080_v51  ;;  %v1032_v54 = vadd.f32 %v2318_v42, %v976_v52  ;;  %v735_v55 = vadd.f32 %v734_v0, %v424_v53  ;;  %v426_v6 = vpop.f32.mrb[5].mxu1 }
 0x121   :  { %v1081_v58 = vmax.f32 %v1032_v54, 0.0  ;;  %v977_v59 = vmul.f32 %v2311_v38, %v735_v55  ;;  %v2348_v9 = vpop.f32.mrb[32].mxu0 }
 0x122   :  { %v429_v60 = vpop.f32.mrb[6].mxu1  ;;  %v1345_v10 = vpop.f32.mrb[33].mxu0 }
 0x123   :  { %1131 = vst.msk [vmem:[%s2736_s4 + $0x8] sm:$0xff] %vm1129_vm2, %v1081_v58  ;;  %v1033_v61 = vadd.f32 %v2318_v42, %v977_v59  ;;  %v740_v62 = vadd.f32 %v2269_v12, %v429_v60  ;;  %v431_v63 = vpop.f32.mrb[7].mxu1 }
 0x125   :  { %v1082_v3 = vmax.f32 %v1033_v61, 0.0  ;;  %v978_v4 = vmul.f32 %v2311_v38, %v740_v62  ;;  %v2357_v18 = vpop.f32.mrb[34].mxu0 }
 0x126   :  { %v434_v5 = vpop.f32.mrb[8].mxu1 }
 0x127   :  { %1132 = vst.msk [vmem:[%s2736_s4 + $0x10] sm:$0xff] %vm1129_vm2, %v1082_v3  ;;  %v1034_v7 = vadd.f32 %v2318_v42, %v978_v4  ;;  %v745_v8 = vadd.f32 %v2277_v16, %v434_v5  ;;  %v436_v0 = vpop.f32.mrb[9].mxu1  ;;  %v1348_v16 = vpop.f32.mrb[35].mxu0 }
 0x129   :  { %v1083_v11 = vmax.f32 %v1034_v7, 0.0  ;;  %v979_v12 = vmul.f32 %v2311_v38, %v745_v8  ;;  %v2366_v28 = vpop.f32.mrb[36].mxu0 }
 0x12a   :  { %v439_v13 = vpop.f32.mrb[10].mxu1 }
 0x12b   :  { %1133 = vst.msk [vmem:[%s2736_s4 + $0x18] sm:$0xff] %vm1129_vm2, %v1083_v11  ;;  %v1035_v14 = vadd.f32 %v2318_v42, %v979_v12  ;;  %v750_v15 = vadd.f32 %v2285_v20, %v439_v13  ;;  %v441_v17 = vpop.f32.mrb[11].mxu1  ;;  %v1351_v20 = vpop.f32.mrb[37].mxu0 }
 0x12d   :  { %v1084_v19 = vmax.f32 %v1035_v14, 0.0  ;;  %v980_v21 = vmul.f32 %v2311_v38, %v750_v15  ;;  %v2375_v40 = vpop.f32.mrb[38].mxu0 }
 0x12e   :  { %v444_v22 = vpop.f32.mrb[12].mxu1 }
 0x12f   :  { %1134 = vst.msk [vmem:[%s2736_s4 + $0x20] sm:$0xff] %vm1129_vm2, %v1084_v19  ;;  %v1036_v23 = vadd.f32 %v2318_v42, %v980_v21  ;;  %v755_v25 = vadd.f32 %v2293_v24, %v444_v22  ;;  %v446_v26 = vpop.f32.mrb[13].mxu1  ;;  %v1354_v24 = vpop.f32.mrb[39].mxu0 }
 0x131   :  { %v1085_v30 = vmax.f32 %v1036_v23, 0.0  ;;  %v981_v32 = vmul.f32 %v2311_v38, %v755_v25  ;;  %v2384_v50 = vpop.f32.mrb[40].mxu0 }
 0x132   :  { %v449_v34 = vpop.f32.mrb[14].mxu1 }
 0x133   :  { %1135 = vst.msk [vmem:[%s2736_s4 + $0x28] sm:$0xff] %vm1129_vm2, %v1085_v30  ;;  %v1037_v36 = vadd.f32 %v2318_v42, %v981_v32  ;;  %v760_v37 = vadd.f32 %v2298_v27, %v449_v34  ;;  %v451_v39 = vpop.f32.mrb[15].mxu1  ;;  %v1357_v27 = vpop.f32.mrb[41].mxu0 }
 0x135   :  { %v1086_v43 = vmax.f32 %v1037_v36, 0.0  ;;  %v982_v44 = vmul.f32 %v2311_v38, %v760_v37  ;;  %v2393_v57 = vpop.f32.mrb[42].mxu0 }
 0x136   :  { %v454_v45 = vpop.f32.mrb[16].mxu1 }
 0x137   :  { %1136 = vst.msk [vmem:[%s2736_s4 + $0x30] sm:$0xff] %vm1129_vm2, %v1086_v43  ;;  %v1038_v46 = vadd.f32 %v2318_v42, %v982_v44  ;;  %v765_v47 = vadd.f32 %v2300_v29, %v454_v45  ;;  %v456_v48 = vpop.f32.mrb[17].mxu1  ;;  %v1360_v29 = vpop.f32.mrb[43].mxu0 }
 0x139   :  { %v1087_v51 = vmax.f32 %v1038_v46, 0.0  ;;  %v983_v52 = vmul.f32 %v2311_v38, %v765_v47  ;;  %v2402_v2 = vpop.f32.mrb[44].mxu0 }
 0x13a   :  { %v459_v53 = vpop.f32.mrb[18].mxu1 }
 0x13b   :  { %1137 = vst.msk [vmem:[%s2736_s4 + $0x38] sm:$0xff] %vm1129_vm2, %v1087_v51  ;;  %v1039_v54 = vadd.f32 %v2318_v42, %v983_v52  ;;  %v770_v55 = vadd.f32 %v2302_v31, %v459_v53  ;;  %v461_v6 = vpop.f32.mrb[19].mxu1  ;;  %v1363_v31 = vpop.f32.mrb[45].mxu0 }
 0x13d   :  { %v1088_v58 = vmax.f32 %v1039_v54, 0.0  ;;  %v984_v59 = vmul.f32 %v2311_v38, %v770_v55  ;;  %v2411_v10 = vpop.f32.mrb[46].mxu0 }
 0x13e   :  { %v464_v60 = vpop.f32.mrb[20].mxu1 }
 0x13f   :  { %1138 = vst.msk [vmem:[%s2736_s4 + $0x40] sm:$0xff] %vm1129_vm2, %v1088_v58  ;;  %v1040_v61 = vadd.f32 %v2318_v42, %v984_v59  ;;  %v775_v62 = vadd.f32 %v2304_v33, %v464_v60  ;;  %v466_v63 = vpop.f32.mrb[21].mxu1  ;;  %v1366_v33 = vpop.f32.mrb[47].mxu0 }
 0x141   :  { %v1089_v3 = vmax.f32 %v1040_v61, 0.0  ;;  %v985_v4 = vmul.f32 %v2311_v38, %v775_v62  ;;  %v2420_v16 = vpop.f32.mrb[48].mxu0 }
 0x142   :  { %v469_v5 = vpop.f32.mrb[22].mxu1 }
 0x143   :  { %1139 = vst.msk [vmem:[%s2736_s4 + $0x48] sm:$0xff] %vm1129_vm2, %v1089_v3  ;;  %v1041_v7 = vadd.f32 %v2318_v42, %v985_v4  ;;  %v780_v8 = vadd.f32 %v2306_v35, %v469_v5  ;;  %v471_v0 = vpop.f32.mrb[23].mxu1  ;;  %v1369_v35 = vpop.f32.mrb[49].mxu0 }
 0x145   :  { %v1090_v11 = vmax.f32 %v1041_v7, 0.0  ;;  %v986_v12 = vmul.f32 %v2311_v38, %v780_v8  ;;  %v2429_v20 = vpop.f32.mrb[50].mxu0 }
 0x146   :  { %v474_v13 = vpop.f32.mrb[24].mxu1 }
 0x147   :  { %1140 = vst.msk [vmem:[%s2736_s4 + $0x50] sm:$0xff] %vm1129_vm2, %v1090_v11  ;;  %v1042_v14 = vadd.f32 %v2318_v42, %v986_v12  ;;  %v785_v15 = vadd.f32 %v2313_v41, %v474_v13  ;;  %v476_v17 = vpop.f32.mrb[25].mxu1  ;;  %v1372_v41 = vpop.f32.mrb[51].mxu0 }
 0x149   :  { %v1091_v19 = vmax.f32 %v1042_v14, 0.0  ;;  %v987_v21 = vmul.f32 %v2311_v38, %v785_v15  ;;  %v2438_v24 = vpop.f32.mrb[52].mxu0 }
 0x14a   :  { %v479_v22 = vpop.f32.mrb[26].mxu1 }
 0x14b   :  { %1141 = vst.msk [vmem:[%s2736_s4 + $0x58] sm:$0xff] %vm1129_vm2, %v1091_v19  ;;  %v1043_v23 = vadd.f32 %v2318_v42, %v987_v21  ;;  %v790_v25 = vadd.f32 %v2322_v49, %v479_v22  ;;  %v481_v26 = vpop.f32.mrb[27].mxu1  ;;  %v1375_v49 = vpop.f32.mrb[53].mxu0 }
 0x14d   :  { %v1092_v30 = vmax.f32 %v1043_v23, 0.0  ;;  %v988_v32 = vmul.f32 %v2311_v38, %v790_v25  ;;  %v2447_v27 = vpop.f32.mrb[54].mxu0 }
 0x14e   :  { %v484_v34 = vpop.f32.mrb[28].mxu1 }
 0x14f   :  { %1142 = vst.msk [vmem:[%s2736_s4 + $0x60] sm:$0xff] %vm1129_vm2, %v1092_v30  ;;  %v1044_v36 = vadd.f32 %v2318_v42, %v988_v32  ;;  %v795_v37 = vadd.f32 %v2330_v56, %v484_v34  ;;  %v486_v39 = vpop.f32.mrb[29].mxu1  ;;  %v1378_v56 = vpop.f32.mrb[55].mxu0 }
 0x151   :  { %v1093_v43 = vmax.f32 %v1044_v36, 0.0  ;;  %v989_v44 = vmul.f32 %v2311_v38, %v795_v37  ;;  %v2456_v29 = vpop.f32.mrb[56].mxu0 }
 0x152   :  { %v489_v45 = vpop.f32.mrb[30].mxu1 }
 0x153   :  { %1143 = vst.msk [vmem:[%s2736_s4 + $0x68] sm:$0xff] %vm1129_vm2, %v1093_v43  ;;  %v1045_v46 = vadd.f32 %v2318_v42, %v989_v44  ;;  %v800_v47 = vadd.f32 %v2339_v1, %v489_v45  ;;  %v491_v48 = vpop.f32.mrb[31].mxu1  ;;  %v1381_v1 = vpop.f32.mrb[57].mxu0 }
 0x155   :  { %v1094_v51 = vmax.f32 %v1045_v46, 0.0  ;;  %v990_v52 = vmul.f32 %v2311_v38, %v800_v47  ;;  %v2465_v31 = vpop.f32.mrb[58].mxu0 }
 0x156   :  { %v494_v53 = vpop.f32.mrb[32].mxu1 }
 0x157   :  { %1144 = vst.msk [vmem:[%s2736_s4 + $0x70] sm:$0xff] %vm1129_vm2, %v1094_v51  ;;  %v1046_v54 = vadd.f32 %v2318_v42, %v990_v52  ;;  %v805_v55 = vadd.f32 %v2348_v9, %v494_v53  ;;  %v496_v6 = vpop.f32.mrb[33].mxu1  ;;  %v1384_v9 = vpop.f32.mrb[59].mxu0 }
 0x159   :  { %v1095_v58 = vmax.f32 %v1046_v54, 0.0  ;;  %v991_v59 = vmul.f32 %v2311_v38, %v805_v55  ;;  %v2474_v33 = vpop.f32.mrb[60].mxu0 }
 0x15a   :  { %v499_v60 = vpop.f32.mrb[34].mxu1 }
 0x15b   :  { %1145 = vst.msk [vmem:[%s2736_s4 + $0x78] sm:$0xff] %vm1129_vm2, %v1095_v58  ;;  %v1047_v61 = vadd.f32 %v2318_v42, %v991_v59  ;;  %v810_v62 = vadd.f32 %v2357_v18, %v499_v60  ;;  %v501_v63 = vpop.f32.mrb[35].mxu1  ;;  %v1387_v18 = vpop.f32.mrb[61].mxu0 }
 0x15d   :  { %v1096_v3 = vmax.f32 %v1047_v61, 0.0  ;;  %v992_v4 = vmul.f32 %v2311_v38, %v810_v62  ;;  %v2483_v35 = vpop.f32.mrb[62].mxu0 }
 0x15e   :  { %v504_v5 = vpop.f32.mrb[36].mxu1 }
 0x15f   :  { %1146 = vst.msk [vmem:[%s2736_s4 + $0x80] sm:$0xff] %vm1129_vm2, %v1096_v3  ;;  %v1048_v7 = vadd.f32 %v2318_v42, %v992_v4  ;;  %v815_v8 = vadd.f32 %v2366_v28, %v504_v5  ;;  %v506_v0 = vpop.f32.mrb[37].mxu1  ;;  %v1390_v28 = vpop.f32.mrb[63].mxu0 }
 0x161   :  { %v1097_v11 = vmax.f32 %v1048_v7, 0.0  ;;  %v993_v12 = vmul.f32 %v2311_v38, %v815_v8  ;;  %v2492_v41 = vpop.f32.mrb[64].mxu0 }
 0x162   :  { %v509_v13 = vpop.f32.mrb[38].mxu1 }
 0x163   :  { %1147 = vst.msk [vmem:[%s2736_s4 + $0x88] sm:$0xff] %vm1129_vm2, %v1097_v11  ;;  %v1049_v14 = vadd.f32 %v2318_v42, %v993_v12  ;;  %v820_v15 = vadd.f32 %v2375_v40, %v509_v13  ;;  %v511_v17 = vpop.f32.mrb[39].mxu1  ;;  %v1393_v40 = vpop.f32.mrb[65].mxu0 }
 0x165   :  { %v1098_v19 = vmax.f32 %v1049_v14, 0.0  ;;  %v994_v21 = vmul.f32 %v2311_v38, %v820_v15  ;;  %v2501_v49 = vpop.f32.mrb[66].mxu0 }
 0x166   :  { %v514_v22 = vpop.f32.mrb[40].mxu1 }
 0x167   :  { %1148 = vst.msk [vmem:[%s2736_s4 + $0x90] sm:$0xff] %vm1129_vm2, %v1098_v19  ;;  %v1050_v23 = vadd.f32 %v2318_v42, %v994_v21  ;;  %v825_v25 = vadd.f32 %v2384_v50, %v514_v22  ;;  %v516_v26 = vpop.f32.mrb[41].mxu1  ;;  %v1396_v50 = vpop.f32.mrb[67].mxu0 }
 0x169   :  { %v1099_v30 = vmax.f32 %v1050_v23, 0.0  ;;  %v995_v32 = vmul.f32 %v2311_v38, %v825_v25  ;;  %v2510_v56 = vpop.f32.mrb[68].mxu0 }
 0x16a   :  { %v519_v34 = vpop.f32.mrb[42].mxu1 }
 0x16b   :  { %1149 = vst.msk [vmem:[%s2736_s4 + $0x98] sm:$0xff] %vm1129_vm2, %v1099_v30  ;;  %v1051_v36 = vadd.f32 %v2318_v42, %v995_v32  ;;  %v830_v37 = vadd.f32 %v2393_v57, %v519_v34  ;;  %v521_v39 = vpop.f32.mrb[43].mxu1  ;;  %v1399_v57 = vpop.f32.mrb[69].mxu0 }
 0x16d   :  { %v1100_v43 = vmax.f32 %v1051_v36, 0.0  ;;  %v996_v44 = vmul.f32 %v2311_v38, %v830_v37  ;;  %v2519_v1 = vpop.f32.mrb[70].mxu0 }
 0x16e   :  { %v524_v45 = vpop.f32.mrb[44].mxu1 }
 0x16f   :  { %1150 = vst.msk [vmem:[%s2736_s4 + $0xa0] sm:$0xff] %vm1129_vm2, %v1100_v43  ;;  %v1052_v46 = vadd.f32 %v2318_v42, %v996_v44  ;;  %v835_v47 = vadd.f32 %v2402_v2, %v524_v45  ;;  %v526_v48 = vpop.f32.mrb[45].mxu1  ;;  %v1402_v2 = vpop.f32.mrb[71].mxu0 }
 0x171   :  { %v1101_v51 = vmax.f32 %v1052_v46, 0.0  ;;  %v997_v52 = vmul.f32 %v2311_v38, %v835_v47  ;;  %v2528_v9 = vpop.f32.mrb[72].mxu0 }
 0x172   :  { %v529_v53 = vpop.f32.mrb[46].mxu1 }
 0x173   :  { %1151 = vst.msk [vmem:[%s2736_s4 + $0xa8] sm:$0xff] %vm1129_vm2, %v1101_v51  ;;  %v1053_v54 = vadd.f32 %v2318_v42, %v997_v52  ;;  %v840_v55 = vadd.f32 %v2411_v10, %v529_v53  ;;  %v531_v6 = vpop.f32.mrb[47].mxu1  ;;  %v1405_v10 = vpop.f32.mrb[73].mxu0 }
 0x175   :  { %v1102_v58 = vmax.f32 %v1053_v54, 0.0  ;;  %v998_v59 = vmul.f32 %v2311_v38, %v840_v55  ;;  %v2537_v18 = vpop.f32.mrb[74].mxu0 }
 0x176   :  { %v534_v60 = vpop.f32.mrb[48].mxu1 }
 0x177   :  { %1152 = vst.msk [vmem:[%s2736_s4 + $0xb0] sm:$0xff] %vm1129_vm2, %v1102_v58  ;;  %v1054_v61 = vadd.f32 %v2318_v42, %v998_v59  ;;  %v845_v62 = vadd.f32 %v2420_v16, %v534_v60  ;;  %v536_v63 = vpop.f32.mrb[49].mxu1  ;;  %v1408_v16 = vpop.f32.mrb[75].mxu0 }
 0x179   :  { %v1103_v3 = vmax.f32 %v1054_v61, 0.0  ;;  %v999_v4 = vmul.f32 %v2311_v38, %v845_v62  ;;  %v2546_v28 = vpop.f32.mrb[76].mxu0 }
 0x17a   :  { %v539_v5 = vpop.f32.mrb[50].mxu1 }
 0x17b   :  { %1153 = vst.msk [vmem:[%s2736_s4 + $0xb8] sm:$0xff] %vm1129_vm2, %v1103_v3  ;;  %v1055_v7 = vadd.f32 %v2318_v42, %v999_v4  ;;  %v850_v8 = vadd.f32 %v2429_v20, %v539_v5  ;;  %v541_v0 = vpop.f32.mrb[51].mxu1  ;;  %v1411_v20 = vpop.f32.mrb[77].mxu0 }
 0x17d   :  { %v1104_v11 = vmax.f32 %v1055_v7, 0.0  ;;  %v1000_v12 = vmul.f32 %v2311_v38, %v850_v8  ;;  %v2555_v40 = vpop.f32.mrb[78].mxu0 }
 0x17e   :  { %v544_v13 = vpop.f32.mrb[52].mxu1 }
 0x17f   :  { %1154 = vst.msk [vmem:[%s2736_s4 + $0xc0] sm:$0xff] %vm1129_vm2, %v1104_v11  ;;  %v1056_v14 = vadd.f32 %v2318_v42, %v1000_v12  ;;  %v855_v15 = vadd.f32 %v2438_v24, %v544_v13  ;;  %v546_v17 = vpop.f32.mrb[53].mxu1  ;;  %v1414_v24 = vpop.f32.mrb[79].mxu0 }
 0x181   :  { %v1105_v19 = vmax.f32 %v1056_v14, 0.0  ;;  %v1001_v21 = vmul.f32 %v2311_v38, %v855_v15  ;;  %v2564_v50 = vpop.f32.mrb[80].mxu0 }
 0x182   :  { %v549_v22 = vpop.f32.mrb[54].mxu1 }
 0x183   :  { %1155 = vst.msk [vmem:[%s2736_s4 + $0xc8] sm:$0xff] %vm1129_vm2, %v1105_v19  ;;  %v1057_v23 = vadd.f32 %v2318_v42, %v1001_v21  ;;  %v860_v25 = vadd.f32 %v2447_v27, %v549_v22  ;;  %v551_v26 = vpop.f32.mrb[55].mxu1  ;;  %v1417_v27 = vpop.f32.mrb[81].mxu0 }
 0x185   :  { %v1106_v30 = vmax.f32 %v1057_v23, 0.0  ;;  %v1002_v32 = vmul.f32 %v2311_v38, %v860_v25  ;;  %v2573_v57 = vpop.f32.mrb[82].mxu0 }
 0x186   :  { %v554_v34 = vpop.f32.mrb[56].mxu1 }
 0x187   :  { %1156 = vst.msk [vmem:[%s2736_s4 + $0xd0] sm:$0xff] %vm1129_vm2, %v1106_v30  ;;  %v1058_v36 = vadd.f32 %v2318_v42, %v1002_v32  ;;  %v865_v37 = vadd.f32 %v2456_v29, %v554_v34  ;;  %v556_v39 = vpop.f32.mrb[57].mxu1  ;;  %v1420_v29 = vpop.f32.mrb[83].mxu0 }
 0x189   :  { %v1107_v43 = vmax.f32 %v1058_v36, 0.0  ;;  %v1003_v44 = vmul.f32 %v2311_v38, %v865_v37  ;;  %v2582_v2 = vpop.f32.mrb[84].mxu0 }
 0x18a   :  { %v559_v45 = vpop.f32.mrb[58].mxu1 }
 0x18b   :  { %1157 = vst.msk [vmem:[%s2736_s4 + $0xd8] sm:$0xff] %vm1129_vm2, %v1107_v43  ;;  %v1059_v46 = vadd.f32 %v2318_v42, %v1003_v44  ;;  %v870_v47 = vadd.f32 %v2465_v31, %v559_v45  ;;  %v561_v48 = vpop.f32.mrb[59].mxu1  ;;  %v1423_v31 = vpop.f32.mrb[85].mxu0 }
 0x18d   :  { %v1108_v51 = vmax.f32 %v1059_v46, 0.0  ;;  %v1004_v52 = vmul.f32 %v2311_v38, %v870_v47  ;;  %v2591_v10 = vpop.f32.mrb[86].mxu0 }
 0x18e   :  { %v564_v53 = vpop.f32.mrb[60].mxu1 }
 0x18f   :  { %1158 = vst.msk [vmem:[%s2736_s4 + $0xe0] sm:$0xff] %vm1129_vm2, %v1108_v51  ;;  %v1060_v54 = vadd.f32 %v2318_v42, %v1004_v52  ;;  %v875_v55 = vadd.f32 %v2474_v33, %v564_v53  ;;  %v566_v6 = vpop.f32.mrb[61].mxu1  ;;  %v1426_v33 = vpop.f32.mrb[87].mxu0 }
 0x191   :  { %v1109_v58 = vmax.f32 %v1060_v54, 0.0  ;;  %v1005_v59 = vmul.f32 %v2311_v38, %v875_v55  ;;  %v2600_v16 = vpop.f32.mrb[88].mxu0 }
 0x192   :  { %v569_v60 = vpop.f32.mrb[62].mxu1 }
 0x193   :  { %1159 = vst.msk [vmem:[%s2736_s4 + $0xe8] sm:$0xff] %vm1129_vm2, %v1109_v58  ;;  %v1061_v61 = vadd.f32 %v2318_v42, %v1005_v59  ;;  %v880_v62 = vadd.f32 %v2483_v35, %v569_v60  ;;  %v571_v63 = vpop.f32.mrb[63].mxu1  ;;  %v1429_v35 = vpop.f32.mrb[89].mxu0 }
 0x195   :  { %v1110_v3 = vmax.f32 %v1061_v61, 0.0  ;;  %v1006_v4 = vmul.f32 %v2311_v38, %v880_v62  ;;  %v2609_v20 = vpop.f32.mrb[90].mxu0 }
 0x196   :  { %v574_v5 = vpop.f32.mrb[64].mxu1 }
 0x197   :  { %1160 = vst.msk [vmem:[%s2736_s4 + $0xf0] sm:$0xff] %vm1129_vm2, %v1110_v3  ;;  %v1062_v7 = vadd.f32 %v2318_v42, %v1006_v4  ;;  %v885_v8 = vadd.f32 %v2492_v41, %v574_v5  ;;  %v576_v0 = vpop.f32.mrb[65].mxu1  ;;  %v1432_v41 = vpop.f32.mrb[91].mxu0 }
 0x199   :  { %v1111_v11 = vmax.f32 %v1062_v7, 0.0  ;;  %v1007_v12 = vmul.f32 %v2311_v38, %v885_v8  ;;  %v2618_v24 = vpop.f32.mrb[92].mxu0 }
 0x19a   :  { %v579_v13 = vpop.f32.mrb[66].mxu1 }
 0x19b   :  { %1161 = vst.msk [vmem:[%s2736_s4 + $0xf8] sm:$0xff] %vm1129_vm2, %v1111_v11  ;;  %v1063_v14 = vadd.f32 %v2318_v42, %v1007_v12  ;;  %v890_v15 = vadd.f32 %v2501_v49, %v579_v13  ;;  %v581_v17 = vpop.f32.mrb[67].mxu1  ;;  %v1435_v49 = vpop.f32.mrb[93].mxu0 }
 0x19d   :  { %v1112_v19 = vmax.f32 %v1063_v14, 0.0  ;;  %v1008_v21 = vmul.f32 %v2311_v38, %v890_v15  ;;  %v2627_v27 = vpop.f32.mrb[94].mxu0 }
 0x19e   :  { %v584_v22 = vpop.f32.mrb[68].mxu1 }
 0x19f   :  { %1162 = vst.msk [vmem:[%s2736_s4 + $0x100] sm:$0xff] %vm1129_vm2, %v1112_v19  ;;  %v1064_v23 = vadd.f32 %v2318_v42, %v1008_v21  ;;  %v895_v25 = vadd.f32 %v2510_v56, %v584_v22  ;;  %v586_v26 = vpop.f32.mrb[69].mxu1  ;;  %v1438_v56 = vpop.f32.mrb[95].mxu0 }
 0x1a1   :  { %v1113_v30 = vmax.f32 %v1064_v23, 0.0  ;;  %v1009_v32 = vmul.f32 %v2311_v38, %v895_v25  ;;  %v2636_v29 = vpop.f32.mrb[96].mxu0 }
 0x1a2   :  { %v589_v34 = vpop.f32.mrb[70].mxu1 }
 0x1a3   :  { %1163 = vst.msk [vmem:[%s2736_s4 + $0x108] sm:$0xff] %vm1129_vm2, %v1113_v30  ;;  %v1065_v36 = vadd.f32 %v2318_v42, %v1009_v32  ;;  %v900_v37 = vadd.f32 %v2519_v1, %v589_v34  ;;  %v591_v39 = vpop.f32.mrb[71].mxu1  ;;  %v1441_v1 = vpop.f32.mrb[97].mxu0 }
 0x1a5   :  { %v1114_v43 = vmax.f32 %v1065_v36, 0.0  ;;  %v1010_v44 = vmul.f32 %v2311_v38, %v900_v37 }
 0x1a6   :  { %v594_v45 = vpop.f32.mrb[72].mxu1 }
 0x1a7   :  { %1164 = vst.msk [vmem:[%s2736_s4 + $0x110] sm:$0xff] %vm1129_vm2, %v1114_v43  ;;  %v1066_v46 = vadd.f32 %v2318_v42, %v1010_v44  ;;  %v905_v47 = vadd.f32 %v2528_v9, %v594_v45  ;;  %v596_v48 = vpop.f32.mrb[73].mxu1 }
 0x1a9   :  { %v1115_v51 = vmax.f32 %v1066_v46, 0.0  ;;  %v1011_v52 = vmul.f32 %v2311_v38, %v905_v47 }
 0x1aa   :  { %v599_v53 = vpop.f32.mrb[74].mxu1 }
 0x1ab   :  { %1165 = vst.msk [vmem:[%s2736_s4 + $0x118] sm:$0xff] %vm1129_vm2, %v1115_v51  ;;  %v1067_v54 = vadd.f32 %v2318_v42, %v1011_v52  ;;  %v910_v55 = vadd.f32 %v2537_v18, %v599_v53  ;;  %v601_v6 = vpop.f32.mrb[75].mxu1 }
 0x1ad   :  { %v1116_v31 = vmax.f32 %v1067_v54, 0.0  ;;  %v1012_v9 = vmul.f32 %v2311_v38, %v910_v55 }
 0x1ae   :  { %v604_v58 = vpop.f32.mrb[76].mxu1 }
 0x1af   :  { %1166 = vst.msk [vmem:[%s2736_s4 + $0x120] sm:$0xff] %vm1129_vm2, %v1116_v31  ;;  %v1068_v59 = vadd.f32 %v2318_v42, %v1012_v9  ;;  %v915_v60 = vadd.f32 %v2546_v28, %v604_v58  ;;  %v606_v61 = vpop.f32.mrb[77].mxu1 }
 0x1b1   :  { %v1117_v62 = vmax.f32 %v1068_v59, 0.0  ;;  %v1013_v63 = vmul.f32 %v2311_v38, %v915_v60 }
 0x1b2   :  { %v609_v33 = vpop.f32.mrb[78].mxu1 }
 0x1b3   :  { %1167 = vst.msk [vmem:[%s2736_s4 + $0x128] sm:$0xff] %vm1129_vm2, %v1117_v62  ;;  %v1069_v18 = vadd.f32 %v2318_v42, %v1013_v63  ;;  %v920_v3 = vadd.f32 %v2555_v40, %v609_v33  ;;  %v611_v4 = vpop.f32.mrb[79].mxu1 }
 0x1b5   :  { %v1118_v5 = vmax.f32 %v1069_v18, 0.0  ;;  %v1014_v7 = vmul.f32 %v2311_v38, %v920_v3 }
 0x1b6   :  { %v614_v8 = vpop.f32.mrb[80].mxu1 }
 0x1b7   :  { %1168 = vst.msk [vmem:[%s2736_s4 + $0x130] sm:$0xff] %vm1129_vm2, %v1118_v5  ;;  %v1070_v28 = vadd.f32 %v2318_v42, %v1014_v7  ;;  %v925_v0 = vadd.f32 %v2564_v50, %v614_v8  ;;  %v616_v35 = vpop.f32.mrb[81].mxu1 }
 0x1b9   :  { %v1119_v11 = vmax.f32 %v1070_v28, 0.0  ;;  %v1015_v12 = vmul.f32 %v2311_v38, %v925_v0 }
 0x1ba   :  { %v619_v13 = vpop.f32.mrb[82].mxu1 }
 0x1bb   :  { %1169 = vst.msk [vmem:[%s2736_s4 + $0x138] sm:$0xff] %vm1129_vm2, %v1119_v11  ;;  %v1071_v40 = vadd.f32 %v2318_v42, %v1015_v12  ;;  %v930_v14 = vadd.f32 %v2573_v57, %v619_v13  ;;  %v621_v15 = vpop.f32.mrb[83].mxu1 }
 0x1bd   :  { %v1120_v17 = vmax.f32 %v1071_v40, 0.0  ;;  %v1016_v41 = vmul.f32 %v2311_v38, %v930_v14 }
 0x1be   :  { %v624_v19 = vpop.f32.mrb[84].mxu1 }
 0x1bf   :  { %1170 = vst.msk [vmem:[%s2736_s4 + $0x140] sm:$0xff] %vm1129_vm2, %v1120_v17  ;;  %v1072_v50 = vadd.f32 %v2318_v42, %v1016_v41  ;;  %v935_v21 = vadd.f32 %v2582_v2, %v624_v19  ;;  %v626_v22 = vpop.f32.mrb[85].mxu1 }
 0x1c1   :  { %v1121_v23 = vmax.f32 %v1072_v50, 0.0  ;;  %v1017_v25 = vmul.f32 %v2311_v38, %v935_v21 }
 0x1c2   :  { %v629_v26 = vpop.f32.mrb[86].mxu1 }
 0x1c3   :  { %1171 = vst.msk [vmem:[%s2736_s4 + $0x148] sm:$0xff] %vm1129_vm2, %v1121_v23  ;;  %v1073_v57 = vadd.f32 %v2318_v42, %v1017_v25  ;;  %v940_v49 = vadd.f32 %v2591_v10, %v629_v26  ;;  %v631_v30 = vpop.f32.mrb[87].mxu1 }
 0x1c5   :  { %v1122_v32 = vmax.f32 %v1073_v57, 0.0  ;;  %v1018_v34 = vmul.f32 %v2311_v38, %v940_v49 }
 0x1c6   :  { %v634_v36 = vpop.f32.mrb[88].mxu1 }
 0x1c7   :  { %1172 = vst.msk [vmem:[%s2736_s4 + $0x150] sm:$0xff] %vm1129_vm2, %v1122_v32  ;;  %v1074_v2 = vadd.f32 %v2318_v42, %v1018_v34  ;;  %v945_v37 = vadd.f32 %v2600_v16, %v634_v36  ;;  %v636_v39 = vpop.f32.mrb[89].mxu1 }
 0x1c9   :  { %v1123_v56 = vmax.f32 %v1074_v2, 0.0  ;;  %v1019_v43 = vmul.f32 %v2311_v38, %v945_v37 }
 0x1ca   :  { %v639_v44 = vpop.f32.mrb[90].mxu1 }
 0x1cb   :  { %1173 = vst.msk [vmem:[%s2736_s4 + $0x158] sm:$0xff] %vm1129_vm2, %v1123_v56  ;;  %v1075_v10 = vadd.f32 %v2318_v42, %v1019_v43  ;;  %v950_v45 = vadd.f32 %v2609_v20, %v639_v44  ;;  %v641_v46 = vpop.f32.mrb[91].mxu1 }
 0x1cd   :  { %v1124_v47 = vmax.f32 %v1075_v10, 0.0  ;;  %v1020_v48 = vmul.f32 %v2311_v38, %v950_v45 }
 0x1ce   :  { %v644_v1 = vpop.f32.mrb[92].mxu1 }
 0x1cf   :  { %1174 = vst.msk [vmem:[%s2736_s4 + $0x160] sm:$0xff] %vm1129_vm2, %v1124_v47  ;;  %v1076_v16 = vadd.f32 %v2318_v42, %v1020_v48  ;;  %v955_v51 = vadd.f32 %v2618_v24, %v644_v1  ;;  %v646_v52 = vpop.f32.mrb[93].mxu1 }
 0x1d1   :  { %v1125_v53 = vmax.f32 %v1076_v16, 0.0  ;;  %v1021_v54 = vmul.f32 %v2311_v38, %v955_v51 }
 0x1d2   :  { %v649_v55 = vpop.f32.mrb[94].mxu1 }
 0x1d3   :  { %1175 = vst.msk [vmem:[%s2736_s4 + $0x168] sm:$0xff] %vm1129_vm2, %v1125_v53  ;;  %v1077_v20 = vadd.f32 %v2318_v42, %v1021_v54  ;;  %v960_v6 = vadd.f32 %v2627_v27, %v649_v55  ;;  %v651_v31 = vpop.f32.mrb[95].mxu1 }
 0x1d5   :  { %v1126_v9 = vmax.f32 %v1077_v20, 0.0  ;;  %v1022_v58 = vmul.f32 %v2311_v38, %v960_v6 }
 0x1d6   :  { %v654_v59 = vpop.f32.mrb[96].mxu1 }
 0x1d7   :  { %1176 = vst.msk [vmem:[%s2736_s4 + $0x170] sm:$0xff] %vm1129_vm2, %v1126_v9  ;;  %v1078_v24 = vadd.f32 %v2318_v42, %v1022_v58  ;;  %v965_v60 = vadd.f32 %v2636_v29, %v654_v59  ;;  %v656_v61 = vpop.f32.mrb[97].mxu1 }
 0x1d9   :  { %v1127_v62 = vmax.f32 %v1078_v24, 0.0  ;;  %v1023_v63 = vmul.f32 %v2311_v38, %v965_v60 }
 0x1db   :  { %1177 = vst.msk [vmem:[%s2736_s4 + $0x178] sm:$0xff] %vm1129_vm2, %v1127_v62  ;;  %v1079_v27 = vadd.f32 %v2318_v42, %v1023_v63 }
 0x1dd   :  { %v1128_v33 = vmax.f32 %v1079_v27, 0.0 }
 0x1df   :  { %1178 = vst.msk [vmem:[%s2736_s4 + $0x180] sm:$0xff] %vm1129_vm2, %v1128_v33 }

// kernel: vae_forward.12
= control target key start
LH: loop header
LB: loop body
LE: loop exit
PB: predicated region body
PF: predicated region fallthrough
CT: control target
= control target key end

     0   :  { %vm977_vm0 = vmmov 0   ;;  %vm154_vm1 = vcmask 523264   ;;  %vm637_vm2 = vcmask 130048   ;;  %vm650_vm3 = vcmask 123904   ;;  %s1555_s1 = inlined_call_operand.vmem [shape: f32[576,16], index: 1, kind: input, shape index: {}]   ;;  %s1556_s0 = inlined_call_operand.vmem [shape: f32[98,576], index: 0, kind: input, shape index: {}]   ;;  %s1557_s2 = inlined_call_operand.vmem [shape: f32[1,16], index: 2, kind: input, shape index: {}]   ;;  %s1558_s3 = inlined_call_operand.vmem [shape: f32[1,16], index: 3, kind: input, shape index: {}]   ;;  %s1559_s4 = inlined_call_operand.vmem [shape: f32[98,16], index: 4, kind: output, shape index: {}]  }
   0x1   :  { %v98_v0 = vld [vmem:[%s1555_s1 + $0x80] sm:$0xff]  ;;  %v99_v1 = vld [vmem:[%s1555_s1 + $0x88] sm:$0xff]  ;;  %v100_v11 = vld [vmem:[%s1555_s1 + $0x90] sm:$0xff] }
   0x2   :  { %v130_v2 = vld [vmem:[%s1555_s1 + $0x180] sm:$0xff]  ;;  %v889_v3 = vpack.c.bf16 %v99_v1, %v98_v0  ;;  %v131_v4 = vld [vmem:[%s1555_s1 + $0x188] sm:$0xff]  ;;  %v101_v13 = vld [vmem:[%s1555_s1 + $0x98] sm:$0xff] }
   0x3   :  { %v82_v5 = vld [vmem:[%s1555_s1] sm:$0xff]  ;;  %v83_v6 = vld [vmem:[%s1555_s1 + $0x8] sm:$0xff]  ;;  %v921_v7 = vpack.c.bf16 %v131_v4, %v130_v2  ;;  %v132_v14 = vld [vmem:[%s1555_s1 + $0x190] sm:$0xff]  ;;  %v893_v16 = vpack.c.bf16 %v101_v13, %v100_v11 }
   0x4   :  { %v891_v8 = vpack.c.bf16 %v83_v6, %v82_v5  ;;  %v114_v9 = vld [vmem:[%s1555_s1 + $0x100] sm:$0xff]  ;;  %v115_v10 = vld [vmem:[%s1555_s1 + $0x108] sm:$0xff]  ;;  %890 = vmatprep.subr.bf16.mxu0 %v889_v3  ;;  %v133_v15 = vld [vmem:[%s1555_s1 + $0x198] sm:$0xff] }
   0x5   :  { %v923_v12 = vpack.c.bf16 %v115_v10, %v114_v9  ;;  %922 = vmatprep.subr.bf16.mxu1 %v921_v7  ;;  %v925_v17 = vpack.c.bf16 %v133_v15, %v132_v14  ;;  %v84_v18 = vld [vmem:[%s1555_s1 + $0x10] sm:$0xff]  ;;  %v85_v19 = vld [vmem:[%s1555_s1 + $0x18] sm:$0xff]  ;;  %v102_v23 = vld [vmem:[%s1555_s1 + $0xa0] sm:$0xff] }
   0x6   :  { %892 = vmatpush3.bf16.msra.mxu0 %v891_v8  ;;  %v116_v20 = vld [vmem:[%s1555_s1 + $0x110] sm:$0xff]  ;;  %v895_v21 = vpack.c.bf16 %v85_v19, %v84_v18  ;;  %v117_v22 = vld [vmem:[%s1555_s1 + $0x118] sm:$0xff]  ;;  %v103_v24 = vld [vmem:[%s1555_s1 + $0xa8] sm:$0xff] }
   0x7   :  { %924 = vmatpush3.bf16.msra.mxu1 %v923_v12  ;;  %894 = vmatprep.subr.bf16.mxu0 %v893_v16  ;;  %v927_v25 = vpack.c.bf16 %v117_v22, %v116_v20  ;;  %v897_v26 = vpack.c.bf16 %v103_v24, %v102_v23  ;;  %v134_v27 = vld [vmem:[%s1555_s1 + $0x1a0] sm:$0xff]  ;;  %v135_v28 = vld [vmem:[%s1555_s1 + $0x1a8] sm:$0xff]  ;;  %v104_v35 = vld [vmem:[%s1555_s1 + $0xb0] sm:$0xff] }
   0x8   :  { %926 = vmatprep.subr.bf16.mxu1 %v925_v17  ;;  %v86_v29 = vld [vmem:[%s1555_s1 + $0x20] sm:$0xff]  ;;  %v929_v30 = vpack.c.bf16 %v135_v28, %v134_v27  ;;  %v87_v31 = vld [vmem:[%s1555_s1 + $0x28] sm:$0xff]  ;;  %v105_v36 = vld [vmem:[%s1555_s1 + $0xb8] sm:$0xff] }
   0x9   :  { %v118_v32 = vld [vmem:[%s1555_s1 + $0x120] sm:$0xff]  ;;  %v119_v33 = vld [vmem:[%s1555_s1 + $0x128] sm:$0xff]  ;;  %v899_v34 = vpack.c.bf16 %v87_v31, %v86_v29  ;;  %v136_v37 = vld [vmem:[%s1555_s1 + $0x1b0] sm:$0xff]  ;;  %v901_v39 = vpack.c.bf16 %v105_v36, %v104_v35 }
   0xa   :  { %896 = vmatpush3.bf16.msra.mxu0 %v895_v21  ;;  %v931_v38 = vpack.c.bf16 %v119_v33, %v118_v32  ;;  %v137_v40 = vld [vmem:[%s1555_s1 + $0x1b8] sm:$0xff]  ;;  %v88_v41 = vld [vmem:[%s1555_s1 + $0x30] sm:$0xff]  ;;  %v106_v46 = vld [vmem:[%s1555_s1 + $0xc0] sm:$0xff] }
   0xb   :  { %928 = vmatpush3.bf16.msra.mxu1 %v927_v25  ;;  %898 = vmatprep.subr.bf16.mxu0 %v897_v26  ;;  %v89_v42 = vld [vmem:[%s1555_s1 + $0x38] sm:$0xff]  ;;  %v933_v43 = vpack.c.bf16 %v137_v40, %v136_v37  ;;  %v120_v44 = vld [vmem:[%s1555_s1 + $0x130] sm:$0xff]  ;;  %v107_v47 = vld [vmem:[%s1555_s1 + $0xc8] sm:$0xff] }
   0xc   :  { %930 = vmatprep.subr.bf16.mxu1 %v929_v30  ;;  %v121_v45 = vld [vmem:[%s1555_s1 + $0x138] sm:$0xff]  ;;  %v138_v48 = vld [vmem:[%s1555_s1 + $0x1c0] sm:$0xff]  ;;  %v139_v49 = vld [vmem:[%s1555_s1 + $0x1c8] sm:$0xff]  ;;  %v903_v50 = vpack.c.bf16 %v89_v42, %v88_v41  ;;  %v905_v52 = vpack.c.bf16 %v107_v47, %v106_v46 }
   0xd   :  { %v935_v51 = vpack.c.bf16 %v121_v45, %v120_v44  ;;  %v90_v53 = vld [vmem:[%s1555_s1 + $0x40] sm:$0xff]  ;;  %v91_v54 = vld [vmem:[%s1555_s1 + $0x48] sm:$0xff]  ;;  %v937_v56 = vpack.c.bf16 %v139_v49, %v138_v48  ;;  %v108_v58 = vld [vmem:[%s1555_s1 + $0xd0] sm:$0xff] }
   0xe   :  { %900 = vmatpush3.bf16.msra.mxu0 %v899_v34  ;;  %v122_v55 = vld [vmem:[%s1555_s1 + $0x140] sm:$0xff]  ;;  %v123_v57 = vld [vmem:[%s1555_s1 + $0x148] sm:$0xff]  ;;  %v109_v59 = vld [vmem:[%s1555_s1 + $0xd8] sm:$0xff]  ;;  %v907_v62 = vpack.c.bf16 %v91_v54, %v90_v53 }
   0xf   :  { %932 = vmatpush3.bf16.msra.mxu1 %v931_v38  ;;  %902 = vmatprep.subr.bf16.mxu0 %v901_v39  ;;  %v140_v60 = vld [vmem:[%s1555_s1 + $0x1d0] sm:$0xff]  ;;  %v141_v61 = vld [vmem:[%s1555_s1 + $0x1d8] sm:$0xff]  ;;  %v939_v63 = vpack.c.bf16 %v123_v57, %v122_v55  ;;  %v909_v0 = vpack.c.bf16 %v109_v59, %v108_v58  ;;  %v110_v6 = vld [vmem:[%s1555_s1 + $0xe0] sm:$0xff]  ;;  %v976_v39 = vmov 0.0|0.0  }
  0x10   :  { %934 = vmatprep.subr.bf16.mxu1 %v933_v43  ;;  %v92_v1 = vld [vmem:[%s1555_s1 + $0x50] sm:$0xff]  ;;  %v93_v2 = vld [vmem:[%s1555_s1 + $0x58] sm:$0xff]  ;;  %v941_v4 = vpack.c.bf16 %v141_v61, %v140_v60  ;;  %v111_v7 = vld [vmem:[%s1555_s1 + $0xe8] sm:$0xff] }
  0x11   :  { %v124_v3 = vld [vmem:[%s1555_s1 + $0x150] sm:$0xff]  ;;  %v125_v5 = vld [vmem:[%s1555_s1 + $0x158] sm:$0xff]  ;;  %v142_v8 = vld [vmem:[%s1555_s1 + $0x1e0] sm:$0xff]  ;;  %v911_v10 = vpack.c.bf16 %v93_v2, %v92_v1  ;;  %v913_v14 = vpack.c.bf16 %v111_v7, %v110_v6 }
  0x12   :  { %904 = vmatpush3.bf16.msra.mxu0 %v903_v50  ;;  %v143_v9 = vld [vmem:[%s1555_s1 + $0x1e8] sm:$0xff]  ;;  %v94_v11 = vld [vmem:[%s1555_s1 + $0x60] sm:$0xff]  ;;  %v943_v13 = vpack.c.bf16 %v125_v5, %v124_v3  ;;  %v20_v17 = vld [vmem:[%s1556_s0 + $0x18] sm:$0xff] }
  0x13   :  { %936 = vmatpush3.bf16.msra.mxu1 %v935_v51  ;;  %906 = vmatprep.subr.bf16.mxu0 %v905_v52  ;;  %v95_v12 = vld [vmem:[%s1555_s1 + $0x68] sm:$0xff]  ;;  %v126_v15 = vld [vmem:[%s1555_s1 + $0x160] sm:$0xff]  ;;  %v945_v18 = vpack.c.bf16 %v143_v9, %v142_v8  ;;  %v112_v20 = vld [vmem:[%s1555_s1 + $0xf0] sm:$0xff] }
  0x14   :  { %938 = vmatprep.subr.bf16.mxu1 %v937_v56  ;;  %v18_v16 = vld [vmem:[%s1556_s0 + $0x8] sm:$0xff]  ;;  %v113_v21 = vld [vmem:[%s1555_s1 + $0xf8] sm:$0xff]  ;;  %v144_v22 = vld [vmem:[%s1555_s1 + $0x1f0] sm:$0xff]  ;;  %388 = vmatprep.mubr.f32.mxu1 %v20_v17  ;;  %v915_v24 = vpack.c.bf16 %v95_v12, %v94_v11 }
  0x15   :  { %v127_v19 = vld [vmem:[%s1555_s1 + $0x168] sm:$0xff]  ;;  %258 = vmatprep.mubr.f32.mxu0 %v18_v16  ;;  %v145_v23 = vld [vmem:[%s1555_s1 + $0x1f8] sm:$0xff]  ;;  %v917_v26 = vpack.c.bf16 %v113_v21, %v112_v20  ;;  %v96_v27 = vld [vmem:[%s1555_s1 + $0x70] sm:$0xff] }
  0x16   :  { %908 = vmatpush3.bf16.msra.mxu0 %v907_v62  ;;  %v947_v25 = vpack.c.bf16 %v127_v19, %v126_v15  ;;  %v97_v28 = vld [vmem:[%s1555_s1 + $0x78] sm:$0xff]  ;;  %v949_v29 = vpack.c.bf16 %v145_v23, %v144_v22  ;;  %v128_v30 = vld [vmem:[%s1555_s1 + $0x170] sm:$0xff]  ;;  %v146_v34 = vld [vmem:[%s1555_s1 + $0x200] sm:$0xff] }
  0x17   :  { %940 = vmatpush3.bf16.msra.mxu1 %v939_v63  ;;  %910 = vmatprep.subr.bf16.mxu0 %v909_v0  ;;  %v129_v31 = vld [vmem:[%s1555_s1 + $0x178] sm:$0xff]  ;;  %v919_v32 = vpack.c.bf16 %v97_v28, %v96_v27  ;;  %v147_v35 = vld [vmem:[%s1555_s1 + $0x208] sm:$0xff]  ;;  %v17_v36 = vld [vmem:[%s1556_s0] sm:$0xff] }
  0x18   :  { %942 = vmatprep.subr.bf16.mxu1 %v941_v4  ;;  %v951_v33 = vpack.c.bf16 %v129_v31, %v128_v30  ;;  %v954_v37 = vpack.c.bf16 %v147_v35, %v146_v34  ;;  %v19_v38 = vld [vmem:[%s1556_s0 + $0x10] sm:$0xff]  ;;  %v25_v41 = vld [vmem:[%s1556_s0 + $0x40] sm:$0xff]  ;;  %v149_v43 = vld [vmem:[%s1555_s1 + $0x218] sm:$0xff] }
  0x19   :  { %v23_v40 = vld [vmem:[%s1556_s0 + $0x30] sm:$0xff]  ;;  %v22_v44 = vld [vmem:[%s1556_s0 + $0x28] sm:$0xff]  ;;  %v24_v45 = vld [vmem:[%s1556_s0 + $0x38] sm:$0xff] }
  0x1a   :  { %912 = vmatpush3.bf16.msra.mxu0 %v911_v10  ;;  %v148_v42 = vld [vmem:[%s1555_s1 + $0x210] sm:$0xff]  ;;  %v28_v46 = vld [vmem:[%s1556_s0 + $0x58] sm:$0xff]  ;;  %v30_v48 = vld [vmem:[%s1556_s0 + $0x68] sm:$0xff] }
  0x1b   :  { %944 = vmatpush3.bf16.msra.mxu1 %v943_v13  ;;  %914 = vmatprep.subr.bf16.mxu0 %v913_v14  ;;  %v957_v47 = vpack.c.bf16 %v149_v43, %v148_v42  ;;  %v150_v49 = vld [vmem:[%s1555_s1 + $0x220] sm:$0xff]  ;;  %v151_v50 = vld [vmem:[%s1555_s1 + $0x228] sm:$0xff]  ;;  %v27_v51 = vld [vmem:[%s1556_s0 + $0x50] sm:$0xff] }
  0x1c   :  { %946 = vmatprep.subr.bf16.mxu1 %v945_v18  ;;  %v29_v52 = vld [vmem:[%s1556_s0 + $0x60] sm:$0xff]  ;;  %v960_v54 = vpack.c.bf16 %v151_v50, %v150_v49  ;;  %v35_v55 = vld [vmem:[%s1556_s0 + $0x90] sm:$0xff]  ;;  %v153_v57 = vld [vmem:[%s1555_s1 + $0x238] sm:$0xff] }
  0x1d   :  { %v33_v53 = vld [vmem:[%s1556_s0 + $0x80] sm:$0xff]  ;;  %v152_v56 = vld [vmem:[%s1555_s1 + $0x230] sm:$0xff]  ;;  %v32_v58 = vld [vmem:[%s1556_s0 + $0x78] sm:$0xff] }
  0x1e   :  { %916 = vmatpush3.bf16.msra.mxu0 %v915_v24  ;;  %v34_v59 = vld [vmem:[%s1556_s0 + $0x88] sm:$0xff]  ;;  %v963_v61 = vpack.c.bf16 %v153_v57, %v152_v56  ;;  %v40_v62 = vld [vmem:[%s1556_s0 + $0xb8] sm:$0xff]  ;;  %v37_v63 = vld [vmem:[%s1556_s0 + $0xa0] sm:$0xff] }
  0x1f   :  { %948 = vmatpush3.bf16.msra.mxu1 %v947_v25  ;;  %918 = vmatprep.subr.bf16.mxu0 %v917_v26  ;;  %v38_v60 = vld [vmem:[%s1556_s0 + $0xa8] sm:$0xff]  ;;  %v39_v0 = vld [vmem:[%s1556_s0 + $0xb0] sm:$0xff]  ;;  %v45_v2 = vld [vmem:[%s1556_s0 + $0xe0] sm:$0xff] }
  0x20   :  { %950 = vmatprep.subr.bf16.mxu1 %v949_v29  ;;  %v43_v1 = vld [vmem:[%s1556_s0 + $0xd0] sm:$0xff]  ;;  %v42_v3 = vld [vmem:[%s1556_s0 + $0xc8] sm:$0xff]  ;;  %v44_v4 = vld [vmem:[%s1556_s0 + $0xd8] sm:$0xff] }
  0x21   :  { %v48_v5 = vld [vmem:[%s1556_s0 + $0xf8] sm:$0xff]  ;;  %v50_v6 = vld [vmem:[%s1556_s0 + $0x108] sm:$0xff]  ;;  %v47_v7 = vld [vmem:[%s1556_s0 + $0xf0] sm:$0xff] }
  0x22   :  { %920 = vmatpush3.bf16.msra.mxu0 %v919_v32  ;;  %v49_v8 = vld [vmem:[%s1556_s0 + $0x100] sm:$0xff]  ;;  %v55_v10 = vld [vmem:[%s1556_s0 + $0x130] sm:$0xff]  ;;  %v52_v11 = vld [vmem:[%s1556_s0 + $0x118] sm:$0xff] }
  0x23   :  { %952 = vmatpush3.bf16.msra.mxu1 %v951_v33  ;;  %953 = vmatprep.subr.bf16.mxu0 %v976_v39  ;;  %v53_v9 = vld [vmem:[%s1556_s0 + $0x120] sm:$0xff]  ;;  %v54_v12 = vld [vmem:[%s1556_s0 + $0x128] sm:$0xff]  ;;  %v60_v14 = vld [vmem:[%s1556_s0 + $0x158] sm:$0xff]  ;;  %v978_v33 = vmov 0.0  }
  0x24   :  { %965 = vmatprep.subr.bf16.mxu1 %v976_v39  ;;  %v58_v13 = vld [vmem:[%s1556_s0 + $0x148] sm:$0xff]  ;;  %v57_v15 = vld [vmem:[%s1556_s0 + $0x140] sm:$0xff]  ;;  %v59_v16 = vld [vmem:[%s1556_s0 + $0x150] sm:$0xff] }
  0x25   :  { %259 = vmatmul.mubr.f32.vlgmr.msra.gmra.mrb[0].mxu0 %v17_v36  ;;  %v63_v17 = vld [vmem:[%s1556_s0 + $0x170] sm:$0xff]  ;;  %v65_v18 = vld [vmem:[%s1556_s0 + $0x180] sm:$0xff]  ;;  %v62_v19 = vld [vmem:[%s1556_s0 + $0x168] sm:$0xff] }
  0x26   :  { %389 = vmatmul.mubr.f32.vlgmr.msra.gmra.mrb[0].mxu1 %v19_v38  ;;  %955 = vmatpush3.bf16.msra.mxu0 %v954_v37  ;;  %v64_v20 = vld [vmem:[%s1556_s0 + $0x178] sm:$0xff]  ;;  %v70_v22 = vld [vmem:[%s1556_s0 + $0x1a8] sm:$0xff]  ;;  %v67_v23 = vld [vmem:[%s1556_s0 + $0x190] sm:$0xff] }
  0x27   :  { %263 = vmatprep.mubr.f32.mxu0 %v23_v40  ;;  %393 = vmatprep.mubr.f32.mxu1 %v25_v41  ;;  %v68_v21 = vld [vmem:[%s1556_s0 + $0x198] sm:$0xff]  ;;  %v69_v24 = vld [vmem:[%s1556_s0 + $0x1a0] sm:$0xff]  ;;  %v75_v26 = vld [vmem:[%s1556_s0 + $0x1d0] sm:$0xff] }
  0x28   :  { %969 = vmatpush3.bf16.msra.mxu1 %v954_v37  ;;  %956 = vmatprep.subr.bf16.mxu0 %v976_v39  ;;  %v73_v25 = vld [vmem:[%s1556_s0 + $0x1c0] sm:$0xff]  ;;  %v72_v27 = vld [vmem:[%s1556_s0 + $0x1b8] sm:$0xff]  ;;  %v74_v28 = vld [vmem:[%s1556_s0 + $0x1c8] sm:$0xff] }
  0x29   :  { %264 = vmatmul.mubr.f32.gmra.mrb[2].mxu0 %v22_v44  ;;  %966 = vmatprep.subr.bf16.mxu1 %v976_v39  ;;  %v78_v29 = vld [vmem:[%s1556_s0 + $0x1e8] sm:$0x3]  ;;  %v80_v30 = vld [vmem:[%s1556_s0 + $0x1f8] sm:$0x3]  ;;  %v77_v31 = vld [vmem:[%s1556_s0 + $0x1e0] sm:$0x3] }
  0x2a   :  { %394 = vmatmul.mubr.f32.gmra.mrb[2].mxu1 %v24_v45  ;;  %268 = vmatprep.mubr.f32.mxu0 %v28_v46  ;;  %v79_v32 = vld [vmem:[%s1556_s0 + $0x1f0] sm:$0x3]  ;;  %v21_v34 = vld [vmem:[%s1556_s0 + $0x20] sm:$0xff]  ;;  %v56_v35 = vld [vmem:[%s1556_s0 + $0x138] sm:$0xff] }
  0x2b   :  { %398 = vmatprep.mubr.f32.mxu1 %v30_v48  ;;  %958 = vmatpush3.bf16.msra.mxu0 %v957_v47  ;;  %v26_v36 = vld [vmem:[%s1556_s0 + $0x48] sm:$0xff]  ;;  %v61_v37 = vld [vmem:[%s1556_s0 + $0x160] sm:$0xff]  ;;  %v31_v38 = vld [vmem:[%s1556_s0 + $0x70] sm:$0xff] }
  0x2c   :  { %970 = vmatpush3.bf16.msra.mxu1 %v957_v47  ;;  %959 = vmatprep.subr.bf16.mxu0 %v976_v39  ;;  %v36_v40 = vld [vmem:[%s1556_s0 + $0x98] sm:$0xff]  ;;  %v71_v41 = vld [vmem:[%s1556_s0 + $0x1b0] sm:$0xff]  ;;  %v41_v42 = vld [vmem:[%s1556_s0 + $0xc0] sm:$0xff] }
  0x2d   :  { %269 = vmatmul.mubr.f32.gmra.mrb[4].mxu0 %v27_v51  ;;  %967 = vmatprep.subr.bf16.mxu1 %v976_v39  ;;  %v76_v43 = vld [vmem:[%s1556_s0 + $0x1d8] sm:$0xff]  ;;  %v46_v44 = vld [vmem:[%s1556_s0 + $0xe8] sm:$0xff]  ;;  %v81_v45 = vld [vmem:[%s1556_s0 + $0x200] sm:$0x3] }
  0x2e   :  { %399 = vmatmul.mubr.f32.gmra.mrb[4].mxu1 %v29_v52  ;;  %273 = vmatprep.mubr.f32.mxu0 %v33_v53  ;;  %v51_v46 = vld [vmem:[%s1556_s0 + $0x110] sm:$0xff] }
  0x2f   :  { %403 = vmatprep.mubr.f32.mxu1 %v35_v55  ;;  %961 = vmatpush3.bf16.msra.mxu0 %v960_v54 }
  0x30   :  { %971 = vmatpush3.bf16.msra.mxu1 %v960_v54  ;;  %962 = vmatprep.subr.bf16.mxu0 %v976_v39 }
  0x31   :  { %274 = vmatmul.mubr.f32.gmra.mrb[6].mxu0 %v32_v58  ;;  %968 = vmatprep.subr.bf16.mxu1 %v976_v39  ;;  %v66_v39 = vld [vmem:[%s1556_s0 + $0x188] sm:$0xff] }
  0x32   :  { %404 = vmatmul.mubr.f32.gmra.mrb[6].mxu1 %v34_v59  ;;  %278 = vmatprep.mubr.f32.mxu0 %v38_v60 }
  0x33   :  { %408 = vmatprep.mubr.f32.mxu1 %v40_v62  ;;  %964 = vmatpush3.bf16.msra.mxu0 %v963_v61 }
  0x34   :  { %972 = vmatpush3.bf16.msra.mxu1 %v963_v61 }
  0x35   :  { %279 = vmatmul.mubr.f32.gmra.mrb[8].mxu0 %v37_v63 }
  0x36   :  { %409 = vmatmul.mubr.f32.gmra.mrb[8].mxu1 %v39_v0  ;;  %283 = vmatprep.mubr.f32.mxu0 %v43_v1 }
  0x37   :  { %413 = vmatprep.mubr.f32.mxu1 %v45_v2 }
  0x39   :  { %284 = vmatmul.mubr.f32.gmra.mrb[10].mxu0 %v42_v3 }
  0x3a   :  { %414 = vmatmul.mubr.f32.gmra.mrb[10].mxu1 %v44_v4  ;;  %288 = vmatprep.mubr.f32.mxu0 %v48_v5 }
  0x3b   :  { %418 = vmatprep.mubr.f32.mxu1 %v50_v6 }
  0x3d   :  { %289 = vmatmul.mubr.f32.gmra.mrb[12].mxu0 %v47_v7 }
  0x3e   :  { %419 = vmatmul.mubr.f32.gmra.mrb[12].mxu1 %v49_v8  ;;  %293 = vmatprep.mubr.f32.mxu0 %v53_v9 }
  0x3f   :  { %423 = vmatprep.mubr.f32.mxu1 %v55_v10 }
  0x41   :  { %294 = vmatmul.mubr.f32.gmra.mrb[14].mxu0 %v52_v11 }
  0x42   :  { %424 = vmatmul.mubr.f32.gmra.mrb[14].mxu1 %v54_v12  ;;  %298 = vmatprep.mubr.f32.mxu0 %v58_v13 }
  0x43   :  { %428 = vmatprep.mubr.f32.mxu1 %v60_v14 }
  0x45   :  { %299 = vmatmul.mubr.f32.gmra.mrb[16].mxu0 %v57_v15 }
  0x46   :  { %429 = vmatmul.mubr.f32.gmra.mrb[16].mxu1 %v59_v16  ;;  %303 = vmatprep.mubr.f32.mxu0 %v63_v17 }
  0x47   :  { %433 = vmatprep.mubr.f32.mxu1 %v65_v18 }
  0x49   :  { %304 = vmatmul.mubr.f32.gmra.mrb[18].mxu0 %v62_v19 }
  0x4a   :  { %434 = vmatmul.mubr.f32.gmra.mrb[18].mxu1 %v64_v20  ;;  %308 = vmatprep.mubr.f32.mxu0 %v68_v21 }
  0x4b   :  { %438 = vmatprep.mubr.f32.mxu1 %v70_v22 }
  0x4d   :  { %309 = vmatmul.mubr.f32.gmra.mrb[20].mxu0 %v67_v23 }
  0x4e   :  { %439 = vmatmul.mubr.f32.gmra.mrb[20].mxu1 %v69_v24  ;;  %313 = vmatprep.mubr.f32.mxu0 %v73_v25 }
  0x4f   :  { %443 = vmatprep.mubr.f32.mxu1 %v75_v26 }
  0x51   :  { %314 = vmatmul.mubr.f32.gmra.mrb[22].mxu0 %v72_v27 }
  0x52   :  { %444 = vmatmul.mubr.f32.gmra.mrb[22].mxu1 %v74_v28  ;;  %318 = vmatprep.mubr.f32.mxu0 %v78_v29 }
  0x53   :  { %448 = vmatprep.mubr.f32.mxu1 %v80_v30 }
  0x55   :  { %319 = vmatmul.mubr.f32.gmra.mrb[24].mxu0 %v77_v31 }
  0x56   :  { %449 = vmatmul.mubr.f32.gmra.mrb[24].mxu1 %v79_v32  ;;  %850 = vmatprep.mubr.msk.f32.mxu0 %vm977_vm0, %v978_v33 }
  0x57   :  { %871 = vmatprep.mubr.msk.f32.mxu1 %vm977_vm0, %v978_v33 }
  0x59   :  { %851 = vmatmul.mubr.msk.f32.vlgmr.msra.gmra.mrb[26].mxu0 %vm154_vm1, %v21_v34 }
  0x5a   :  { %872 = vmatmul.mubr.msk.f32.vlgmr.msra.gmra.mrb[26].mxu1 %vm154_vm1, %v56_v35  ;;  %853 = vmatprep.mubr.msk.f32.mxu0 %vm977_vm0, %v978_v33 }
  0x5b   :  { %874 = vmatprep.mubr.msk.f32.mxu1 %vm977_vm0, %v978_v33 }
  0x5d   :  { %854 = vmatmul.mubr.msk.f32.gmra.mrb[28].mxu0 %vm154_vm1, %v26_v36 }
  0x5e   :  { %875 = vmatmul.mubr.msk.f32.gmra.mrb[28].mxu1 %vm154_vm1, %v61_v37  ;;  %856 = vmatprep.mubr.msk.f32.mxu0 %vm977_vm0, %v978_v33 }
  0x5f   :  { %877 = vmatprep.mubr.msk.f32.mxu1 %vm977_vm0, %v978_v33 }
  0x61   :  { %857 = vmatmul.mubr.msk.f32.gmra.mrb[30].mxu0 %vm154_vm1, %v31_v38 }
  0x62   :  { %878 = vmatmul.mubr.msk.f32.gmra.mrb[30].mxu1 %vm154_vm1, %v66_v39  ;;  %859 = vmatprep.mubr.msk.f32.mxu0 %vm977_vm0, %v978_v33 }
  0x63   :  { %880 = vmatprep.mubr.msk.f32.mxu1 %vm977_vm0, %v978_v33 }
  0x65   :  { %860 = vmatmul.mubr.msk.f32.gmra.mrb[32].mxu0 %vm154_vm1, %v36_v40 }
  0x66   :  { %881 = vmatmul.mubr.msk.f32.gmra.mrb[32].mxu1 %vm154_vm1, %v71_v41  ;;  %862 = vmatprep.mubr.msk.f32.mxu0 %vm977_vm0, %v978_v33 }
  0x67   :  { %883 = vmatprep.mubr.msk.f32.mxu1 %vm977_vm0, %v978_v33 }
  0x69   :  { %863 = vmatmul.mubr.msk.f32.gmra.mrb[34].mxu0 %vm154_vm1, %v41_v42 }
  0x6a   :  { %884 = vmatmul.mubr.msk.f32.gmra.mrb[34].mxu1 %vm154_vm1, %v76_v43  ;;  %865 = vmatprep.mubr.msk.f32.mxu0 %vm977_vm0, %v978_v33 }
  0x6b   :  { %886 = vmatprep.mubr.msk.f32.mxu1 %vm977_vm0, %v978_v33 }
  0x6d   :  { %866 = vmatmul.mubr.msk.f32.gmra.mrb[36].mxu0 %vm154_vm1, %v46_v44 }
  0x6e   :  { %887 = vmatmul.mubr.msk.f32.gmra.mrb[36].mxu1 %vm154_vm1, %v81_v45  ;;  %868 = vmatprep.mubr.msk.f32.mxu0 %vm977_vm0, %v978_v33 }
  0x71   :  { %869 = vmatmul.mubr.msk.f32.gmra.mrb[38].mxu0 %vm154_vm1, %v51_v46 }
  0xf8   :  { %v703_v47 = vpop.f32.mrb[0].mxu0 }
  0xf9   :  { %v774_v48 = vpop.f32.mrb[0].mxu1  ;;  %v704_v49 = vpop.f32.mrb[1].mxu0 }
  0xfa   :  { %v705_v50 = vadd.f32 %v704_v49, %v703_v47  ;;  %v775_v51 = vpop.f32.mrb[1].mxu1 }
  0xfb   :  { %v776_v52 = vadd.f32 %v775_v51, %v774_v48 }
  0xfc   :  { %v706_v53 = vpop.f32.mrb[2].mxu0 }
  0xfd   :  { %v777_v54 = vpop.f32.mrb[2].mxu1  ;;  %v707_v55 = vpop.f32.mrb[3].mxu0  ;;  %v1441_v56 = vadd.f32 %v776_v52, %v705_v50 }
  0xfe   :  { %v708_v57 = vadd.f32 %v707_v55, %v706_v53  ;;  %v778_v58 = vpop.f32.mrb[3].mxu1 }
  0xff   :  { %v779_v59 = vadd.f32 %v778_v58, %v777_v54 }
 0x100   :  { %v709_v60 = vpop.f32.mrb[4].mxu0 }
 0x101   :  { %v780_v61 = vpop.f32.mrb[4].mxu1  ;;  %v710_v62 = vpop.f32.mrb[5].mxu0  ;;  %v1443_v63 = vadd.f32 %v779_v59, %v708_v57 }
 0x102   :  { %v711_v0 = vadd.f32 %v710_v62, %v709_v60  ;;  %v781_v1 = vpop.f32.mrb[5].mxu1 }
 0x103   :  { %v782_v2 = vadd.f32 %v781_v1, %v780_v61 }
 0x104   :  { %v712_v3 = vpop.f32.mrb[6].mxu0 }
 0x105   :  { %v783_v4 = vpop.f32.mrb[6].mxu1  ;;  %v713_v5 = vpop.f32.mrb[7].mxu0  ;;  %v1445_v6 = vadd.f32 %v782_v2, %v711_v0 }
 0x106   :  { %v714_v7 = vadd.f32 %v713_v5, %v712_v3  ;;  %v784_v8 = vpop.f32.mrb[7].mxu1 }
 0x107   :  { %v785_v9 = vadd.f32 %v784_v8, %v783_v4 }
 0x108   :  { %v715_v10 = vpop.f32.mrb[8].mxu0 }
 0x109   :  { %v786_v11 = vpop.f32.mrb[8].mxu1  ;;  %v716_v12 = vpop.f32.mrb[9].mxu0  ;;  %v1447_v13 = vadd.f32 %v785_v9, %v714_v7 }
 0x10a   :  { %v717_v14 = vadd.f32 %v716_v12, %v715_v10  ;;  %v787_v15 = vpop.f32.mrb[9].mxu1 }
 0x10b   :  { %v788_v16 = vadd.f32 %v787_v15, %v786_v11 }
 0x10c   :  { %v718_v17 = vpop.f32.mrb[10].mxu0 }
 0x10d   :  { %v789_v18 = vpop.f32.mrb[10].mxu1  ;;  %v719_v19 = vpop.f32.mrb[11].mxu0  ;;  %v1449_v20 = vadd.f32 %v788_v16, %v717_v14  ;;  %v1460_v14 = vld [vmem:[%s1557_s2] ss:$0 sm:$0xff] }
 0x10e   :  { %v720_v21 = vadd.f32 %v719_v19, %v718_v17  ;;  %v790_v22 = vpop.f32.mrb[11].mxu1  ;;  %v1468_v19 = vld [vmem:[%s1558_s3] ss:$0 sm:$0xff] }
 0x10f   :  { %v791_v23 = vadd.f32 %v790_v22, %v789_v18 }
 0x110   :  { %v721_v24 = vpop.f32.mrb[12].mxu0 }
 0x111   :  { %v792_v25 = vpop.f32.mrb[12].mxu1  ;;  %v722_v26 = vpop.f32.mrb[13].mxu0  ;;  %v1451_v27 = vadd.f32 %v791_v23, %v720_v21 }
 0x112   :  { %v723_v28 = vadd.f32 %v722_v26, %v721_v24  ;;  %v793_v29 = vpop.f32.mrb[13].mxu1 }
 0x113   :  { %v794_v30 = vadd.f32 %v793_v29, %v792_v25 }
 0x114   :  { %v724_v31 = vpop.f32.mrb[14].mxu0 }
 0x115   :  { %v795_v32 = vpop.f32.mrb[14].mxu1  ;;  %v725_v33 = vpop.f32.mrb[15].mxu0  ;;  %v1453_v34 = vadd.f32 %v794_v30, %v723_v28 }
 0x116   :  { %v726_v35 = vadd.f32 %v725_v33, %v724_v31  ;;  %v796_v36 = vpop.f32.mrb[15].mxu1 }
 0x117   :  { %v797_v37 = vadd.f32 %v796_v36, %v795_v32 }
 0x118   :  { %v727_v38 = vpop.f32.mrb[16].mxu0 }
 0x119   :  { %v798_v39 = vpop.f32.mrb[16].mxu1  ;;  %v728_v40 = vpop.f32.mrb[17].mxu0  ;;  %v426_v41 = vadd.f32 %v797_v37, %v726_v35 }
 0x11a   :  { %v729_v42 = vadd.f32 %v728_v40, %v727_v38  ;;  %v799_v43 = vpop.f32.mrb[17].mxu1 }
 0x11b   :  { %v800_v44 = vadd.f32 %v799_v43, %v798_v39 }
 0x11c   :  { %v730_v45 = vpop.f32.mrb[18].mxu0 }
 0x11d   :  { %v801_v46 = vpop.f32.mrb[18].mxu1  ;;  %v731_v47 = vpop.f32.mrb[19].mxu0  ;;  %v431_v48 = vadd.f32 %v800_v44, %v729_v42 }
 0x11e   :  { %v732_v49 = vadd.f32 %v731_v47, %v730_v45  ;;  %v802_v50 = vpop.f32.mrb[19].mxu1 }
 0x11f   :  { %v803_v51 = vadd.f32 %v802_v50, %v801_v46 }
 0x120   :  { %v733_v52 = vpop.f32.mrb[20].mxu0 }
 0x121   :  { %v804_v53 = vpop.f32.mrb[20].mxu1  ;;  %v734_v54 = vpop.f32.mrb[21].mxu0  ;;  %v436_v55 = vadd.f32 %v803_v51, %v732_v49 }
 0x122   :  { %v735_v57 = vadd.f32 %v734_v54, %v733_v52  ;;  %v805_v58 = vpop.f32.mrb[21].mxu1 }
 0x123   :  { %v806_v59 = vadd.f32 %v805_v58, %v804_v53 }
 0x124   :  { %v736_v60 = vpop.f32.mrb[22].mxu0 }
 0x125   :  { %v807_v61 = vpop.f32.mrb[22].mxu1  ;;  %v737_v62 = vpop.f32.mrb[23].mxu0  ;;  %v441_v0 = vadd.f32 %v806_v59, %v735_v57 }
 0x126   :  { %v738_v1 = vadd.f32 %v737_v62, %v736_v60  ;;  %v808_v2 = vpop.f32.mrb[23].mxu1 }
 0x127   :  { %v809_v3 = vadd.f32 %v808_v2, %v807_v61 }
 0x128   :  { %v739_v4 = vpop.f32.mrb[24].mxu0 }
 0x129   :  { %v810_v5 = vpop.f32.mrb[24].mxu1  ;;  %v740_v7 = vpop.f32.mrb[25].mxu0  ;;  %v1455_v8 = vadd.f32 %v809_v3, %v738_v1 }
 0x12a   :  { %v741_v9 = vadd.f32 %v740_v7, %v739_v4  ;;  %v811_v10 = vpop.f32.mrb[25].mxu1 }
 0x12b   :  { %v812_v11 = vadd.f32 %v811_v10, %v810_v5 }
 0x12c   :  { %v520_v12 = vpop.f32.mrb[26].mxu0 }
 0x12d   :  { %v521_v15 = vadd.f32 %v520_v12, %v1441_v56  ;;  %v555_v16 = vpop.f32.mrb[26].mxu1  ;;  %v852_v17 = vpop.f32.mrb[27].mxu0  ;;  %v1463_v18 = vadd.f32 %v812_v11, %v741_v9 }
 0x12e   :  { %v556_v21 = vadd.f32 %v555_v16, %v426_v41  ;;  %v873_v22 = vpop.f32.mrb[27].mxu1 }
 0x12f   :  { %v591_v23 = vmul.f32 %v1460_v14, %v521_v15 }
 0x130   :  { %v598_v24 = vmul.f32 %v1460_v14, %v556_v21  ;;  %v525_v25 = vpop.f32.mrb[28].mxu0 }
 0x131   :  { %v611_v26 = vadd.f32 %v1468_v19, %v591_v23  ;;  %v526_v56 = vadd.f32 %v525_v25, %v1443_v63  ;;  %v560_v28 = vpop.f32.mrb[28].mxu1  ;;  %v855_v29 = vpop.f32.mrb[29].mxu0 }
 0x132   :  { %v618_v30 = vadd.f32 %v1468_v19, %v598_v24  ;;  %v561_v31 = vadd.f32 %v560_v28, %v431_v48  ;;  %v876_v32 = vpop.f32.mrb[29].mxu1 }
 0x133   :  { %v624_v33 = vmax.f32 %v611_v26, 0.0  ;;  %v592_v35 = vmul.f32 %v1460_v14, %v526_v56 }
 0x134   :  { %v631_v36 = vmax.f32 %v618_v30, 0.0  ;;  %v599_v37 = vmul.f32 %v1460_v14, %v561_v31  ;;  %v530_v38 = vpop.f32.mrb[30].mxu0 }
 0x135   :  { %638 = vst.msk [vmem:[%s1559_s4] sm:$0xff] %vm637_vm2, %v624_v33  ;;  %v612_v63 = vadd.f32 %v1468_v19, %v592_v35  ;;  %v531_v39 = vadd.f32 %v530_v38, %v1445_v6  ;;  %v565_v40 = vpop.f32.mrb[30].mxu1  ;;  %v858_v41 = vpop.f32.mrb[31].mxu0 }
 0x136   :  { %645 = vst.msk [vmem:[%s1559_s4 + $0x38] sm:$0xff] %vm637_vm2, %v631_v36  ;;  %v619_v42 = vadd.f32 %v1468_v19, %v599_v37  ;;  %v566_v43 = vadd.f32 %v565_v40, %v436_v55  ;;  %v879_v44 = vpop.f32.mrb[31].mxu1 }
 0x137   :  { %v625_v45 = vmax.f32 %v612_v63, 0.0  ;;  %v593_v46 = vmul.f32 %v1460_v14, %v531_v39 }
 0x138   :  { %v632_v47 = vmax.f32 %v619_v42, 0.0  ;;  %v600_v48 = vmul.f32 %v1460_v14, %v566_v43  ;;  %v535_v49 = vpop.f32.mrb[32].mxu0 }
 0x139   :  { %639 = vst.msk [vmem:[%s1559_s4 + $0x8] sm:$0xff] %vm637_vm2, %v625_v45  ;;  %v613_v6 = vadd.f32 %v1468_v19, %v593_v46  ;;  %v536_v50 = vadd.f32 %v535_v49, %v1447_v13  ;;  %v570_v51 = vpop.f32.mrb[32].mxu1  ;;  %v861_v52 = vpop.f32.mrb[33].mxu0 }
 0x13a   :  { %646 = vst.msk [vmem:[%s1559_s4 + $0x40] sm:$0xff] %vm637_vm2, %v632_v47  ;;  %v620_v53 = vadd.f32 %v1468_v19, %v600_v48  ;;  %v571_v54 = vadd.f32 %v570_v51, %v441_v0  ;;  %v882_v55 = vpop.f32.mrb[33].mxu1 }
 0x13b   :  { %v626_v57 = vmax.f32 %v613_v6, 0.0  ;;  %v594_v58 = vmul.f32 %v1460_v14, %v536_v50 }
 0x13c   :  { %v633_v59 = vmax.f32 %v620_v53, 0.0  ;;  %v601_v60 = vmul.f32 %v1460_v14, %v571_v54  ;;  %v540_v61 = vpop.f32.mrb[34].mxu0 }
 0x13d   :  { %640 = vst.msk [vmem:[%s1559_s4 + $0x10] sm:$0xff] %vm637_vm2, %v626_v57  ;;  %v614_v13 = vadd.f32 %v1468_v19, %v594_v58  ;;  %v541_v62 = vadd.f32 %v540_v61, %v1449_v20  ;;  %v575_v1 = vpop.f32.mrb[34].mxu1  ;;  %v864_v2 = vpop.f32.mrb[35].mxu0 }
 0x13e   :  { %647 = vst.msk [vmem:[%s1559_s4 + $0x48] sm:$0xff] %vm637_vm2, %v633_v59  ;;  %v621_v0 = vadd.f32 %v1468_v19, %v601_v60  ;;  %v576_v3 = vadd.f32 %v575_v1, %v1455_v8  ;;  %v885_v4 = vpop.f32.mrb[35].mxu1 }
 0x13f   :  { %v627_v5 = vmax.f32 %v614_v13, 0.0  ;;  %v595_v7 = vmul.f32 %v1460_v14, %v541_v62 }
 0x140   :  { %v634_v9 = vmax.f32 %v621_v0, 0.0  ;;  %v602_v10 = vmul.f32 %v1460_v14, %v576_v3  ;;  %v545_v11 = vpop.f32.mrb[36].mxu0 }
 0x141   :  { %641 = vst.msk [vmem:[%s1559_s4 + $0x18] sm:$0xff] %vm637_vm2, %v627_v5  ;;  %v615_v20 = vadd.f32 %v1468_v19, %v595_v7  ;;  %v546_v12 = vadd.f32 %v545_v11, %v1451_v27  ;;  %v580_v15 = vpop.f32.mrb[36].mxu1  ;;  %v867_v16 = vpop.f32.mrb[37].mxu0 }
 0x142   :  { %648 = vst.msk [vmem:[%s1559_s4 + $0x50] sm:$0xff] %vm637_vm2, %v634_v9  ;;  %v622_v8 = vadd.f32 %v1468_v19, %v602_v10  ;;  %v581_v17 = vadd.f32 %v580_v15, %v1463_v18  ;;  %v888_v21 = vpop.f32.mrb[37].mxu1 }
 0x143   :  { %v628_v22 = vmax.f32 %v615_v20, 0.0  ;;  %v596_v23 = vmul.f32 %v1460_v14, %v546_v12 }
 0x144   :  { %v635_v24 = vmax.f32 %v622_v8, 0.0  ;;  %v603_v25 = vmul.f32 %v1460_v14, %v581_v17  ;;  %v550_v26 = vpop.f32.mrb[38].mxu0 }
 0x145   :  { %642 = vst.msk [vmem:[%s1559_s4 + $0x20] sm:$0xff] %vm637_vm2, %v628_v22  ;;  %v616_v27 = vadd.f32 %v1468_v19, %v596_v23  ;;  %v551_v56 = vadd.f32 %v550_v26, %v1453_v34  ;;  %v870_v28 = vpop.f32.mrb[39].mxu0 }
 0x146   :  { %649 = vst.msk [vmem:[%s1559_s4 + $0x58] sm:$0xff] %vm637_vm2, %v635_v24  ;;  %v623_v18 = vadd.f32 %v1468_v19, %v603_v25 }
 0x147   :  { %v629_v29 = vmax.f32 %v616_v27, 0.0  ;;  %v597_v30 = vmul.f32 %v1460_v14, %v551_v56 }
 0x148   :  { %v636_v31 = vmax.f32 %v623_v18, 0.0 }
 0x149   :  { %643 = vst.msk [vmem:[%s1559_s4 + $0x28] sm:$0xff] %vm637_vm2, %v629_v29  ;;  %v617_v34 = vadd.f32 %v1468_v19, %v597_v30 }
 0x14a   :  { %651 = vst.msk [vmem:[%s1559_s4 + $0x60] sm:$0x3] %vm650_vm3, %v636_v31 }
 0x14b   :  { %v630_v32 = vmax.f32 %v617_v34, 0.0 }
 0x14d   :  { %644 = vst.msk [vmem:[%s1559_s4 + $0x30] sm:$0xff] %vm637_vm2, %v630_v32 }

// kernel: vae_forward.13
= control target key start
LH: loop header
LB: loop body
LE: loop exit
PB: predicated region body
PF: predicated region fallthrough
CT: control target
= control target key end

     0   :  { %s2502_s0 = inlined_call_operand.vmem [shape: f32[2,784], index: 0, kind: input, shape index: {}]   ;;  %s2503_s1 = inlined_call_operand.vmem [shape: f32[784,50], index: 1, kind: input, shape index: {}]   ;;  %s2504_s2 = inlined_call_operand.vmem [shape: f32[1,50], index: 2, kind: input, shape index: {}]   ;;  %s2505_s3 = inlined_call_operand.vmem [shape: f32[1,50], index: 3, kind: input, shape index: {}]   ;;  %s2506_s4 = inlined_call_operand.vmem [shape: f32[50,50], index: 4, kind: input, shape index: {}]   ;;  %s2507_s5 = inlined_call_operand.vmem [shape: f32[1,50], index: 5, kind: input, shape index: {}]   ;;  %s2508_s6 = inlined_call_operand.vmem [shape: f32[50,50], index: 6, kind: input, shape index: {}]   ;;  %s2509_s7 = inlined_call_operand.vmem [shape: f32[1,50], index: 7, kind: input, shape index: {}]   ;;  %s2510_s8 = inlined_call_operand.vmem [shape: f32[50,50], index: 8, kind: input, shape index: {}]   ;;  %s2511_s9 = inlined_call_operand.vmem [shape: f32[1,50], index: 9, kind: input, shape index: {}]   ;;  %s2512_s10 = inlined_call_operand.vmem [shape: f32[1,50], index: 10, kind: input, shape index: {}]   ;;  %s2513_s11 = inlined_call_operand.vmem [shape: f32[50,784], index: 11, kind: input, shape index: {}]   ;;  %s2514_s12 = inlined_call_operand.vmem [shape: f32[1,784], index: 12, kind: input, shape index: {}]   ;;  %s2515_s13 = inlined_call_operand.vmem [shape: f32[1,784], index: 13, kind: input, shape index: {}]   ;;  %s2516_s14 = inlined_call_operand.hbm [shape: f32[2,50], index: 14, kind: output, shape index: {0}]   ;;  %s2517_s15 = inlined_call_operand.hbm [shape: f32[2,50], index: 15, kind: output, shape index: {1}]   ;;  %s2518_s16 = inlined_call_operand.vmem [shape: f32[2,784], index: 16, kind: output, shape index: {2}]  }
   0x1   :  { %2520 = sst [smem:[#allocation8_spill]] %s2502_s0 }
   0x2   :  { %22 = vsyncpa [#allocation3], 0  ;;  %v70_v0 = vld [vmem:[%s2503_s1 + $0x80] sm:$0xff]  ;;  %v71_v1 = vld [vmem:[%s2503_s1 + $0x88] sm:$0xff]  ;;  %v1772_v47 = vmov 1983009808   ;;  %v158_v49 = vlaneseq }
   0x3   :  { %v102_v2 = vld [vmem:[%s2503_s1 + $0x180] sm:$0xff]  ;;  %v1545_v3 = vpack.c.bf16 %v71_v1, %v70_v0  ;;  %v103_v4 = vld [vmem:[%s2503_s1 + $0x188] sm:$0xff]  ;;  %v72_v11 = vld [vmem:[%s2503_s1 + $0x90] sm:$0xff]  ;;  %v156_v48 = vunpack.c.l.s4 %v1772_v47  ;;  %s2521_s28 = sld [smem:[#allocation8_spill]] }
   0x4   :  { %v54_v5 = vld [vmem:[%s2503_s1] sm:$0xff]  ;;  %v55_v6 = vld [vmem:[%s2503_s1 + $0x8] sm:$0xff]  ;;  %v1577_v7 = vpack.c.bf16 %v103_v4, %v102_v2  ;;  %v73_v13 = vld [vmem:[%s2503_s1 + $0x98] sm:$0xff]  ;;  %v1989_v0 = vshrl.u32 %v158_v49, 7 }
   0x5   :  { %v1547_v8 = vpack.c.bf16 %v55_v6, %v54_v5  ;;  %v86_v9 = vld [vmem:[%s2503_s1 + $0x100] sm:$0xff]  ;;  %v87_v10 = vld [vmem:[%s2503_s1 + $0x108] sm:$0xff]  ;;  %1546 = vmatprep.subr.bf16.mxu0 %v1545_v3  ;;  %v104_v14 = vld [vmem:[%s2503_s1 + $0x190] sm:$0xff]  ;;  %v1549_v16 = vpack.c.bf16 %v73_v13, %v72_v11  ;;  %v157_v63 = vunpack.c.0.s8 %v156_v48 }
   0x6   :  { %v1579_v12 = vpack.c.bf16 %v87_v10, %v86_v9  ;;  %v105_v15 = vld [vmem:[%s2503_s1 + $0x198] sm:$0xff]  ;;  %1578 = vmatprep.subr.bf16.mxu1 %v1577_v7  ;;  %v56_v18 = vld [vmem:[%s2503_s1 + $0x10] sm:$0xff]  ;;  %v74_v23 = vld [vmem:[%s2503_s1 + $0xa0] sm:$0xff] }
   0x7   :  { %1548 = vmatpush3.bf16.msra.mxu0 %v1547_v8  ;;  %v1581_v17 = vpack.c.bf16 %v105_v15, %v104_v14  ;;  %v57_v19 = vld [vmem:[%s2503_s1 + $0x18] sm:$0xff]  ;;  %v88_v20 = vld [vmem:[%s2503_s1 + $0x110] sm:$0xff]  ;;  %v75_v24 = vld [vmem:[%s2503_s1 + $0xa8] sm:$0xff]  ;;  %v2016_v13 = vsub.s32 %v157_v63, %v1989_v0 }
   0x8   :  { %1580 = vmatpush3.bf16.msra.mxu1 %v1579_v12  ;;  %v1551_v21 = vpack.c.bf16 %v57_v19, %v56_v18  ;;  %v89_v22 = vld [vmem:[%s2503_s1 + $0x118] sm:$0xff]  ;;  %1550 = vmatprep.subr.bf16.mxu0 %v1549_v16  ;;  %v1553_v26 = vpack.c.bf16 %v75_v24, %v74_v23  ;;  %v106_v27 = vld [vmem:[%s2503_s1 + $0x1a0] sm:$0xff]  ;;  %v107_v28 = vld [vmem:[%s2503_s1 + $0x1a8] sm:$0xff] }
   0x9   :  { %1582 = vmatprep.subr.bf16.mxu1 %v1581_v17  ;;  %v1583_v25 = vpack.c.bf16 %v89_v22, %v88_v20  ;;  %v58_v29 = vld [vmem:[%s2503_s1 + $0x20] sm:$0xff]  ;;  %v1585_v30 = vpack.c.bf16 %v107_v28, %v106_v27  ;;  %v59_v31 = vld [vmem:[%s2503_s1 + $0x28] sm:$0xff]  ;;  %v76_v35 = vld [vmem:[%s2503_s1 + $0xb0] sm:$0xff] }
   0xa   :  { %v90_v32 = vld [vmem:[%s2503_s1 + $0x120] sm:$0xff]  ;;  %v91_v33 = vld [vmem:[%s2503_s1 + $0x128] sm:$0xff]  ;;  %v1555_v34 = vpack.c.bf16 %v59_v31, %v58_v29  ;;  %v77_v36 = vld [vmem:[%s2503_s1 + $0xb8] sm:$0xff] }
   0xb   :  { %1552 = vmatpush3.bf16.msra.mxu0 %v1551_v21  ;;  %v108_v37 = vld [vmem:[%s2503_s1 + $0x1b0] sm:$0xff]  ;;  %v1587_v38 = vpack.c.bf16 %v91_v33, %v90_v32  ;;  %v1557_v39 = vpack.c.bf16 %v77_v36, %v76_v35  ;;  %v109_v40 = vld [vmem:[%s2503_s1 + $0x1b8] sm:$0xff]  ;;  %v78_v46 = vld [vmem:[%s2503_s1 + $0xc0] sm:$0xff] }
   0xc   :  { %1584 = vmatpush3.bf16.msra.mxu1 %v1583_v25  ;;  %1554 = vmatprep.subr.bf16.mxu0 %v1553_v26  ;;  %v60_v41 = vld [vmem:[%s2503_s1 + $0x30] sm:$0xff]  ;;  %v61_v42 = vld [vmem:[%s2503_s1 + $0x38] sm:$0xff]  ;;  %v1589_v43 = vpack.c.bf16 %v109_v40, %v108_v37  ;;  %v79_v50 = vld [vmem:[%s2503_s1 + $0xc8] sm:$0xff] }
   0xd   :  { %1586 = vmatprep.subr.bf16.mxu1 %v1585_v30  ;;  %v92_v44 = vld [vmem:[%s2503_s1 + $0x130] sm:$0xff]  ;;  %v93_v45 = vld [vmem:[%s2503_s1 + $0x138] sm:$0xff]  ;;  %v110_v51 = vld [vmem:[%s2503_s1 + $0x1c0] sm:$0xff]  ;;  %v1559_v53 = vpack.c.bf16 %v61_v42, %v60_v41  ;;  %v1561_v55 = vpack.c.bf16 %v79_v50, %v78_v46 }
   0xe   :  { %v111_v52 = vld [vmem:[%s2503_s1 + $0x1c8] sm:$0xff]  ;;  %v1591_v54 = vpack.c.bf16 %v93_v45, %v92_v44  ;;  %v62_v56 = vld [vmem:[%s2503_s1 + $0x40] sm:$0xff]  ;;  %v80_v61 = vld [vmem:[%s2503_s1 + $0xd0] sm:$0xff] }
   0xf   :  { %1556 = vmatpush3.bf16.msra.mxu0 %v1555_v34  ;;  %v63_v57 = vld [vmem:[%s2503_s1 + $0x48] sm:$0xff]  ;;  %v94_v58 = vld [vmem:[%s2503_s1 + $0x140] sm:$0xff]  ;;  %v1593_v59 = vpack.c.bf16 %v111_v52, %v110_v51  ;;  %v81_v62 = vld [vmem:[%s2503_s1 + $0xd8] sm:$0xff] }
  0x10   :  { %1588 = vmatpush3.bf16.msra.mxu1 %v1587_v38  ;;  %1558 = vmatprep.subr.bf16.mxu0 %v1557_v39  ;;  %v95_v60 = vld [vmem:[%s2503_s1 + $0x148] sm:$0xff]  ;;  %v112_v1 = vld [vmem:[%s2503_s1 + $0x1d0] sm:$0xff]  ;;  %v113_v2 = vld [vmem:[%s2503_s1 + $0x1d8] sm:$0xff]  ;;  %v1563_v3 = vpack.c.bf16 %v63_v57, %v62_v56  ;;  %v1565_v5 = vpack.c.bf16 %v81_v62, %v80_v61 }
  0x11   :  { %1590 = vmatprep.subr.bf16.mxu1 %v1589_v43  ;;  %v1595_v4 = vpack.c.bf16 %v95_v60, %v94_v58  ;;  %v64_v6 = vld [vmem:[%s2503_s1 + $0x50] sm:$0xff]  ;;  %v65_v7 = vld [vmem:[%s2503_s1 + $0x58] sm:$0xff]  ;;  %v1597_v9 = vpack.c.bf16 %v113_v2, %v112_v1  ;;  %v82_v11 = vld [vmem:[%s2503_s1 + $0xe0] sm:$0xff] }
  0x12   :  { %v96_v8 = vld [vmem:[%s2503_s1 + $0x150] sm:$0xff]  ;;  %v97_v10 = vld [vmem:[%s2503_s1 + $0x158] sm:$0xff]  ;;  %v83_v12 = vld [vmem:[%s2503_s1 + $0xe8] sm:$0xff]  ;;  %v1567_v16 = vpack.c.bf16 %v65_v7, %v64_v6 }
  0x13   :  { %1560 = vmatpush3.bf16.msra.mxu0 %v1559_v53  ;;  %v114_v14 = vld [vmem:[%s2503_s1 + $0x1e0] sm:$0xff]  ;;  %v115_v15 = vld [vmem:[%s2503_s1 + $0x1e8] sm:$0xff]  ;;  %v1599_v18 = vpack.c.bf16 %v97_v10, %v96_v8  ;;  %v1569_v19 = vpack.c.bf16 %v83_v12, %v82_v11  ;;  %v84_v25 = vld [vmem:[%s2503_s1 + $0xf0] sm:$0xff] }
  0x14   :  { %1592 = vmatpush3.bf16.msra.mxu1 %v1591_v54  ;;  %1562 = vmatprep.subr.bf16.mxu0 %v1561_v55  ;;  %v66_v17 = vld [vmem:[%s2503_s1 + $0x60] sm:$0xff]  ;;  %v67_v20 = vld [vmem:[%s2503_s1 + $0x68] sm:$0xff]  ;;  %v1601_v23 = vpack.c.bf16 %v115_v15, %v114_v14  ;;  %v85_v26 = vld [vmem:[%s2503_s1 + $0xf8] sm:$0xff] }
  0x15   :  { %1594 = vmatprep.subr.bf16.mxu1 %v1593_v59  ;;  %v98_v21 = vld [vmem:[%s2503_s1 + $0x160] sm:$0xff]  ;;  %v99_v24 = vld [vmem:[%s2503_s1 + $0x168] sm:$0xff]  ;;  %v116_v29 = vld [vmem:[%s2503_s1 + $0x1f0] sm:$0xff]  ;;  %v1571_v31 = vpack.c.bf16 %v67_v20, %v66_v17  ;;  %v1573_v35 = vpack.c.bf16 %v85_v26, %v84_v25 }
  0x16   :  { %v52_v22 = vld [vmem:[%s2521_s28] sm:$0xff]  ;;  %v117_v30 = vld [vmem:[%s2503_s1 + $0x1f8] sm:$0xff]  ;;  %v1603_v34 = vpack.c.bf16 %v99_v24, %v98_v21  ;;  %v68_v36 = vld [vmem:[%s2503_s1 + $0x70] sm:$0xff] }
  0x17   :  { %1564 = vmatpush3.bf16.msra.mxu0 %v1563_v3  ;;  %v161_v27 = vrot.slane %v52_v22, %v2016_v13  ;;  %v154_v28 = vcombine.high %v52_v22, %v52_v22  ;;  %v69_v37 = vld [vmem:[%s2503_s1 + $0x78] sm:$0xff]  ;;  %v100_v38 = vld [vmem:[%s2503_s1 + $0x170] sm:$0xff]  ;;  %v1605_v39 = vpack.c.bf16 %v117_v30, %v116_v29  ;;  %v134_v42 = vld [vmem:[%s2503_s1 + $0x280] sm:$0xff] }
  0x18   :  { %1596 = vmatpush3.bf16.msra.mxu1 %v1595_v4  ;;  %1566 = vmatprep.subr.bf16.mxu0 %v1565_v5  ;;  %v101_v40 = vld [vmem:[%s2503_s1 + $0x178] sm:$0xff]  ;;  %v135_v43 = vld [vmem:[%s2503_s1 + $0x288] sm:$0xff]  ;;  %v1575_v44 = vpack.c.bf16 %v69_v37, %v68_v36  ;;  %v118_v47 = vld [vmem:[%s2503_s1 + $0x200] sm:$0xff] }
  0x19   :  { %1598 = vmatprep.subr.bf16.mxu1 %v1597_v9  ;;  %v169_v32 = vcombine.high %v161_v27, %v161_v27  ;;  %v168_v33 = vrot.slane %v154_v28, %v2016_v13  ;;  %v1607_v45 = vpack.c.bf16 %v101_v40, %v100_v38  ;;  %v1609_v46 = vpack.c.bf16 %v135_v43, %v134_v42  ;;  %v119_v48 = vld [vmem:[%s2503_s1 + $0x208] sm:$0xff]  ;;  %v136_v49 = vld [vmem:[%s2503_s1 + $0x290] sm:$0xff]  ;;  %v137_v50 = vld [vmem:[%s2503_s1 + $0x298] sm:$0xff] }
  0x1a   :  { %v1611_v51 = vpack.c.bf16 %v119_v48, %v118_v47  ;;  %v120_v52 = vld [vmem:[%s2503_s1 + $0x210] sm:$0xff]  ;;  %v53_v53 = vld [vmem:[%s2521_s28 + $0x8] sm:$0x3f]  ;;  %v150_v54 = vld [vmem:[%s2503_s1 + $0x300] sm:$0xff]  ;;  %v1613_v55 = vpack.c.bf16 %v137_v50, %v136_v49 }
  0x1b   :  { %1568 = vmatpush3.bf16.msra.mxu0 %v1567_v16  ;;  %260 = vmatprep.mubr.f32.mxu0 %v169_v32  ;;  %v170_v41 = vcombine.high %v168_v33, %v168_v33  ;;  %v121_v56 = vld [vmem:[%s2503_s1 + $0x218] sm:$0xff]  ;;  %v171_v57 = vcombine.high %v53_v53, %v53_v53  ;;  %v2096_v58 = vrot.slane %v53_v53, %v2016_v13  ;;  %v151_v59 = vld [vmem:[%s2503_s1 + $0x308] sm:$0xff] }
  0x1c   :  { %1600 = vmatpush3.bf16.msra.mxu1 %v1599_v18  ;;  %1570 = vmatprep.subr.bf16.mxu0 %v1569_v19 }
  0x1d   :  { %1602 = vmatprep.subr.bf16.mxu1 %v1601_v23  ;;  %330 = vmatprep.mubr.f32.mxu1 %v170_v41 }
  0x1f   :  { %1572 = vmatpush3.bf16.msra.mxu0 %v1571_v31 }
  0x20   :  { %1604 = vmatpush3.bf16.msra.mxu1 %v1603_v34  ;;  %1574 = vmatprep.subr.bf16.mxu0 %v1573_v35 }
  0x21   :  { %1606 = vmatprep.subr.bf16.mxu1 %v1605_v39 }
  0x23   :  { %1576 = vmatpush3.bf16.msra.mxu0 %v1575_v44 }
  0x24   :  { %1608 = vmatpush3.bf16.msra.mxu1 %v1607_v45  ;;  %1610 = vmatprep.subr.bf16.mxu0 %v1609_v46 }
  0x25   :  { %23 = vsyncpa [#allocation5], 0  ;;  %v138_v60 = vld [vmem:[%s2503_s1 + $0x2a0] sm:$0xff]  ;;  %v139_v61 = vld [vmem:[%s2503_s1 + $0x2a8] sm:$0xff]  ;;  %v1773_v62 = vmov 0.0|0.0   ;;  %v1642_v63 = vpack.c.bf16 %v151_v59, %v150_v54  ;;  %v186_v1 = vcombine.high %v2096_v58, %v2096_v58  ;;  %v1615_v2 = vpack.c.bf16 %v121_v56, %v120_v52 }
  0x26   :  { %1641 = vmatprep.subr.bf16.mxu1 %v1773_v62  ;;  %261 = vmatmul.mubr.f32.vlgmr.msra.gmra.mrb[0].mxu0 %v161_v27  ;;  %v1617_v3 = vpack.c.bf16 %v139_v61, %v138_v60  ;;  %v122_v4 = vld [vmem:[%s2503_s1 + $0x220] sm:$0xff]  ;;  %v123_v5 = vld [vmem:[%s2503_s1 + $0x228] sm:$0xff]  ;;  %v185_v6 = vrot.slane %v171_v57, %v2016_v13  ;;  %v140_v7 = vld [vmem:[%s2503_s1 + $0x2b0] sm:$0xff]  ;;  %vm1774_vm0 = vmmov 0   ;;  %v1775_v9 = vmov 0.0  }
  0x27   :  { %331 = vmatmul.mubr.f32.vlgmr.msra.gmra.mrb[0].mxu1 %v168_v33  ;;  %1612 = vmatpush3.bf16.msra.mxu0 %v1611_v51  ;;  %v141_v8 = vld [vmem:[%s2503_s1 + $0x2b8] sm:$0xff]  ;;  %vm193_vm1 = vcmask 130048   ;;  %v1619_v10 = vpack.c.bf16 %v123_v5, %v122_v4  ;;  %v124_v12 = vld [vmem:[%s2503_s1 + $0x230] sm:$0xff]  ;;  %v142_v15 = vld [vmem:[%s2503_s1 + $0x2c0] sm:$0xff]  ;;  %vm511_vm2 = vcmask 1041408   ;;  %vm507_vm3 = vcmask 408576  }
  0x28   :  { %1614 = vmatprep.subr.bf16.mxu0 %v1613_v55  ;;  %400 = vmatprep.mubr.f32.mxu0 %v186_v1  ;;  %v1621_v11 = vpack.c.bf16 %v141_v8, %v140_v7  ;;  %v125_v14 = vld [vmem:[%s2503_s1 + $0x238] sm:$0xff]  ;;  %v143_v16 = vld [vmem:[%s2503_s1 + $0x2c8] sm:$0xff]  ;;  %v126_v19 = vld [vmem:[%s2503_s1 + $0x240] sm:$0xff]  ;;  %vm672_vm4 = vcmask 402432  }
  0x29   :  { %1643 = vmatpush3.bf16.msra.mxu1 %v1642_v63  ;;  %1474 = vmatprep.mubr.msk.f32.mxu1 %vm1774_vm0, %v1775_v9  ;;  %v1623_v17 = vpack.c.bf16 %v125_v14, %v124_v12  ;;  %v1625_v18 = vpack.c.bf16 %v143_v16, %v142_v15  ;;  %v127_v20 = vld [vmem:[%s2503_s1 + $0x248] sm:$0xff]  ;;  %v144_v21 = vld [vmem:[%s2503_s1 + $0x2d0] sm:$0xff]  ;;  %v145_v22 = vld [vmem:[%s2503_s1 + $0x2d8] sm:$0xff] }
  0x2a   :  { %1644 = vmatprep.subr.bf16.mxu1 %v1773_v62  ;;  %v1627_v23 = vpack.c.bf16 %v127_v20, %v126_v19  ;;  %v1629_v24 = vpack.c.bf16 %v145_v22, %v144_v21  ;;  %v128_v25 = vld [vmem:[%s2503_s1 + $0x250] sm:$0xff]  ;;  %v129_v26 = vld [vmem:[%s2503_s1 + $0x258] sm:$0xff]  ;;  %v146_v27 = vld [vmem:[%s2503_s1 + $0x2e0] sm:$0xff] }
  0x2b   :  { %1616 = vmatpush3.bf16.msra.mxu0 %v1615_v2  ;;  %v147_v28 = vld [vmem:[%s2503_s1 + $0x2e8] sm:$0xff]  ;;  %v1631_v29 = vpack.c.bf16 %v129_v26, %v128_v25  ;;  %v130_v31 = vld [vmem:[%s2503_s1 + $0x260] sm:$0xff]  ;;  %v148_v33 = vld [vmem:[%s2503_s1 + $0x2f0] sm:$0xff] }
  0x2c   :  { %1618 = vmatprep.subr.bf16.mxu0 %v1617_v3  ;;  %1475 = vmatmul.mubr.msk.f32.vlgmr.msra.gmra.mrb[2].mxu1 %vm193_vm1, %v185_v6  ;;  %v1633_v30 = vpack.c.bf16 %v147_v28, %v146_v27  ;;  %v131_v32 = vld [vmem:[%s2503_s1 + $0x268] sm:$0xff]  ;;  %v149_v34 = vld [vmem:[%s2503_s1 + $0x2f8] sm:$0xff]  ;;  %v132_v37 = vld [vmem:[%s2503_s1 + $0x270] sm:$0xff] }
  0x2d   :  { %1491 = vmatprep.mubr.msk.f32.mxu1 %vm1774_vm0, %v1775_v9  ;;  %v1635_v35 = vpack.c.bf16 %v131_v32, %v130_v31  ;;  %v1637_v36 = vpack.c.bf16 %v149_v34, %v148_v33  ;;  %v133_v38 = vld [vmem:[%s2503_s1 + $0x278] sm:$0xff]  ;;  %v493_v40 = vld [vmem:[%s2506_s4] sm:$0xff]  ;;  %v494_v41 = vld [vmem:[%s2506_s4 + $0x8] sm:$0xff] }
  0x2e   :  { %v1639_v39 = vpack.c.bf16 %v133_v38, %v132_v37  ;;  %v1645_v42 = vpack.c.bf16 %v494_v41, %v493_v40  ;;  %v495_v43 = vld [vmem:[%s2506_s4 + $0x10] sm:$0xff]  ;;  %v496_v44 = vld [vmem:[%s2506_s4 + $0x18] sm:$0xff]  ;;  %v497_v46 = vld [vmem:[%s2506_s4 + $0x20] sm:$0xff] }
  0x2f   :  { %1620 = vmatpush3.bf16.msra.mxu0 %v1619_v10  ;;  %v1648_v45 = vpack.c.bf16 %v496_v44, %v495_v43  ;;  %v498_v47 = vld [vmem:[%s2506_s4 + $0x28] sm:$0xff]  ;;  %v499_v49 = vld [vmem:[%s2506_s4 + $0x30] sm:$0x3]  ;;  %v675_v50 = vld [vmem:[%s2510_s8] sm:$0xff] }
  0x30   :  { %1622 = vmatprep.subr.bf16.mxu0 %v1621_v11  ;;  %1646 = vmatpush3.bf16.msra.mxu1 %v1645_v42  ;;  %v1651_v48 = vpack.c.bf16 %v498_v47, %v497_v46  ;;  %v676_v51 = vld [vmem:[%s2510_s8 + $0x8] sm:$0xff]  ;;  %v677_v52 = vld [vmem:[%s2510_s8 + $0x10] sm:$0xff]  ;;  %v678_v54 = vld [vmem:[%s2510_s8 + $0x18] sm:$0xff] }
  0x31   :  { %1647 = vmatprep.subr.bf16.mxu1 %v1773_v62  ;;  %v1663_v53 = vpack.c.bf16 %v676_v51, %v675_v50  ;;  %v1666_v55 = vpack.c.bf16 %v678_v54, %v677_v52  ;;  %v679_v56 = vld [vmem:[%s2510_s8 + $0x20] sm:$0xff]  ;;  %v680_v57 = vld [vmem:[%s2510_s8 + $0x28] sm:$0xff]  ;;  %v587_v21 = vld [vmem:[%s2508_s6 + $0x10] sm:$0xff] }
  0x32   :  { %v1307_v11 = vld [vmem:[%s2504_s2] ss:$0 sm:$0xff]  ;;  %v588_v22 = vld [vmem:[%s2508_s6 + $0x18] sm:$0xff]  ;;  %v590_v25 = vld [vmem:[%s2508_s6 + $0x28] sm:$0xff] }
  0x33   :  { %1624 = vmatpush3.bf16.msra.mxu0 %v1623_v17  ;;  %v1308_v14 = vld [vmem:[%s2505_s3] ss:$0 sm:$0xff]  ;;  %v586_v17 = vld [vmem:[%s2508_s6 + $0x8] sm:$0xff]  ;;  %v591_v27 = vld [vmem:[%s2508_s6 + $0x30] sm:$0x3]  ;;  %s1777_s3 = smov [#allocation4]  }
  0x34   :  { %1626 = vmatprep.subr.bf16.mxu0 %v1625_v18  ;;  %1649 = vmatpush3.bf16.msra.mxu1 %v1648_v45  ;;  %v585_v16 = vld [vmem:[%s2508_s6] sm:$0xff]  ;;  %v681_v28 = vld [vmem:[%s2510_s8 + $0x30] sm:$0x3]  ;;  %v778_v31 = vld [vmem:[%s2513_s11 + $0x18] sm:$0xff]  ;;  %s1290_s1 = sshll.u32 %s1777_s3, 4  ;;  %s1291_s1 = int_to_ptr.vmem [resolvable:$true] %s1290_s1 }
  0x35   :  { %1650 = vmatprep.subr.bf16.mxu1 %v1773_v62  ;;  %v1654_v19 = vpack.c.bf16 %v586_v17, %v585_v16  ;;  %v785_v33 = vld [vmem:[%s2513_s11 + $0x50] sm:$0xff]  ;;  %v775_v34 = vld [vmem:[%s2513_s11] sm:$0xff]  ;;  %v790_v38 = vld [vmem:[%s2513_s11 + $0x78] sm:$0xff] }
  0x36   :  { %v789_v41 = vld [vmem:[%s2513_s11 + $0x70] sm:$0xff]  ;;  %v796_v42 = vld [vmem:[%s2513_s11 + $0xa8] sm:$0xff]  ;;  %v1309_v46 = vld [vmem:[%s2507_s5] ss:$0 sm:$0xff]  ;;  %s1776_s5 = smov [#allocation2]  }
  0x37   :  { %1628 = vmatpush3.bf16.msra.mxu0 %v1627_v23  ;;  %v1657_v23 = vpack.c.bf16 %v588_v22, %v587_v21  ;;  %v1677_v43 = vpack.c.bf16 %v796_v42, %v789_v41  ;;  %v777_v44 = vld [vmem:[%s2513_s11 + $0x10] sm:$0xff]  ;;  %v784_v45 = vld [vmem:[%s2513_s11 + $0x48] sm:$0xff]  ;;  %v791_v54 = vld [vmem:[%s2513_s11 + $0x80] sm:$0xff]  ;;  %s1280_s17 = sshll.u32 %s1776_s5, 4  ;;  %s1281_s17 = int_to_ptr.vmem [resolvable:$true] %s1280_s17 }
  0x38   :  { %1630 = vmatprep.subr.bf16.mxu0 %v1629_v24  ;;  %1652 = vmatpush3.bf16.msra.mxu1 %v1651_v48  ;;  %v589_v24 = vld [vmem:[%s2508_s6 + $0x20] sm:$0xff]  ;;  %v792_v47 = vld [vmem:[%s2513_s11 + $0x88] sm:$0xff]  ;;  %v1685_v50 = vpack.c.bf16 %v784_v45, %v777_v44  ;;  %v817_v16 = vld [vmem:[%s2513_s11 + $0x150] sm:$0x3]  ;;  %s1724_s4 = scalar_lea.vmem %s1281_s17, 32  ;;  %p1729_p1 = scmp.lt.s32.totalorder %s1281_s17, %s1281_s17 }
  0x39   :  { %1489 = vmatprep.subr.mxu1 %v1775_v9  ;;  %v1660_v26 = vpack.c.bf16 %v590_v25, %v589_v24  ;;  %v799_v48 = vld [vmem:[%s2513_s11 + $0xc0] sm:$0xff]  ;;  %p1725_p0 = scmp.ne.s32.totalorder %s1281_s17, %s1724_s4  ;;  %p1730_p2 = scmp.lt.s32.totalorder %s1724_s4, %s1724_s4 }
  0x3a   :  { %v819_v17 = vld [vmem:[%s2513_s11 + $0x160] sm:$0x3] }
  0x3b   :  { %1632 = vmatpush3.bf16.msra.mxu0 %v1631_v29  ;;  %v776_v29 = vld [vmem:[%s2513_s11 + $0x8] sm:$0xff]  ;;  %v1318_v22 = vld [vmem:[%s2512_s10] ss:$0 sm:$0xff]  ;;  %p1731_p3 = por %p1730_p2, %p1729_p1 }
  0x3c   :  { %1634 = vmatprep.subr.bf16.mxu0 %v1633_v30  ;;  %1490 = vmatpush3.msk.msra.mxu1 %vm511_vm2, %v499_v49  ;;  %v783_v30 = vld [vmem:[%s2513_s11 + $0x40] sm:$0xff] }
  0x3d   :  { %1653 = vmatprep.subr.bf16.mxu1 %v1773_v62  ;;  %v1671_v32 = vpack.c.bf16 %v783_v30, %v776_v29  ;;  %v794_v29 = vld [vmem:[%s2513_s11 + $0x98] sm:$0xff]  ;;  %v801_v30 = vld [vmem:[%s2513_s11 + $0xd0] sm:$0xff]  ;;  %v815_v41 = vld [vmem:[%s2513_s11 + $0x140] sm:$0xff]  ;;  %p1732_p4 = pnand %p1731_p3, %p1725_p0 }
  0x3e   :  { %v807_v44 = vld [vmem:[%s2513_s11 + $0x100] sm:$0xff] }
  0x3f   :  { %1636 = vmatpush3.bf16.msra.mxu0 %v1635_v35  ;;  %v782_v35 = vld [vmem:[%s2513_s11 + $0x38] sm:$0xff] }
  0x40   :  { %1638 = vmatprep.subr.bf16.mxu0 %v1637_v36  ;;  %v1683_v36 = vpack.c.bf16 %v785_v33, %v778_v31  ;;  %v1673_v37 = vpack.c.bf16 %v782_v35, %v775_v34  ;;  %v793_v34 = vld [vmem:[%s2513_s11 + $0x90] sm:$0xff] }
  0x43   :  { %1640 = vmatpush3.bf16.msra.mxu0 %v1639_v39  ;;  %v797_v39 = vld [vmem:[%s2513_s11 + $0xb0] sm:$0xff] }
  0x44   :  { %1662 = vmatprep.subr.bf16.mxu0 %v1773_v62  ;;  %v1675_v40 = vpack.c.bf16 %v797_v39, %v790_v38  ;;  %v795_v38 = vld [vmem:[%s2513_s11 + $0xa0] sm:$0xff]  ;;  %v802_v39 = vld [vmem:[%s2513_s11 + $0xd8] sm:$0xff] }
  0x46   :  { %401 = vmatmul.mubr.f32.vlgmr.msra.gmra.mrb[2].mxu0 %v2096_v58  ;;  %v1669_v58 = vpack.c.bf16 %v680_v57, %v679_v56  ;;  %v1312_v57 = vld [vmem:[%s2509_s7] ss:$0 sm:$0xff] }
  0x47   :  { %1525 = vmatprep.mubr.msk.f32.mxu0 %vm1774_vm0, %v1775_v9  ;;  %1664 = vmatpush3.bf16.msra.mxu0 %v1663_v53  ;;  %v1687_v53 = vpack.c.bf16 %v799_v48, %v792_v47  ;;  %v809_v47 = vld [vmem:[%s2513_s11 + $0x110] sm:$0xff]  ;;  %v816_v48 = vld [vmem:[%s2513_s11 + $0x148] sm:$0xff] }
  0x48   :  { %1665 = vmatprep.subr.bf16.mxu0 %v1773_v62 }
  0x4b   :  { %1667 = vmatpush3.bf16.msra.mxu0 %v1666_v55  ;;  %v798_v55 = vld [vmem:[%s2513_s11 + $0xb8] sm:$0xff] }
  0x4c   :  { %1668 = vmatprep.subr.bf16.mxu0 %v1773_v62  ;;  %v1689_v56 = vpack.c.bf16 %v798_v55, %v791_v54 }
  0x4f   :  { %1670 = vmatpush3.bf16.msra.mxu0 %v1669_v58 }
  0x50   :  { %1523 = vmatprep.subr.mxu0 %v1775_v9 }
  0x53   :  { %1524 = vmatpush3.msk.msra.mxu0 %vm511_vm2, %v681_v28  ;;  %v788_v28 = vld [vmem:[%s2513_s11 + $0x68] sm:$0xff] }
  0x54   :  { %1684 = vmatprep.subr.bf16.mxu0 %v1683_v36  ;;  %v1699_v36 = vpack.c.bf16 %v801_v30, %v794_v29 }
  0xf9   :  { %v1362_v59 = vpop.f32.mrb[0].mxu0 }
  0xfa   :  { %v1397_v60 = vpop.f32.mrb[0].mxu1  ;;  %v1363_v61 = vpop.f32.mrb[1].mxu0 }
  0xfb   :  { %v1364_v63 = vadd.f32 %v1363_v61, %v1362_v59  ;;  %v1398_v1 = vpop.f32.mrb[1].mxu1  ;;  %v804_v61 = vld [vmem:[%s2513_s11 + $0xe8] sm:$0xff] }
  0xfc   :  { %v1399_v2 = vadd.f32 %v1398_v1, %v1397_v60  ;;  %v806_v1 = vld [vmem:[%s2513_s11 + $0xf8] sm:$0xff] }
  0xfe   :  { %v333_v3 = vadd.f32 %v1399_v2, %v1364_v63  ;;  %v811_v63 = vld [vmem:[%s2513_s11 + $0x120] sm:$0xff] }
  0xff   :  { %v472_v4 = vpop.f32.mrb[2].mxu1  ;;  %v1679_v2 = vpack.c.bf16 %v811_v63, %v804_v61 }
 0x100   :  { %v1476_v5 = vpop.f32.mrb[3].mxu1 }
 0x101   :  { %v810_v5 = vld [vmem:[%s2513_s11 + $0x118] sm:$0xff] }
 0x119   :  { %v1432_v6 = vpop.f32.mrb[2].mxu0 }
 0x11a   :  { %v1433_v7 = vpop.f32.mrb[3].mxu0 }
 0x11b   :  { %v1434_v8 = vadd.f32 %v1433_v7, %v1432_v6 }
 0x11d   :  { %v403_v10 = vadd.f32 %v1434_v8, %v333_v3  ;;  %v813_v3 = vld [vmem:[%s2513_s11 + $0x130] sm:$0xff] }
 0x11e   :  { %v1691_v6 = vpack.c.bf16 %v813_v3, %v806_v1  ;;  %v805_v8 = vld [vmem:[%s2513_s11 + $0xf0] sm:$0xff] }
 0x11f   :  { %v473_v12 = vadd.f32 %v472_v4, %v403_v10  ;;  %v803_v4 = vld [vmem:[%s2513_s11 + $0xe0] sm:$0xff]  ;;  %v812_v10 = vld [vmem:[%s2513_s11 + $0x128] sm:$0xff] }
 0x120   :  { %v1681_v7 = vpack.c.bf16 %v810_v5, %v803_v4 }
 0x121   :  { %v483_v15 = vmul.f32 %v1307_v11, %v473_v12  ;;  %v1693_v11 = vpack.c.bf16 %v812_v10, %v805_v8  ;;  %v818_v12 = vld [vmem:[%s2513_s11 + $0x158] sm:$0x3] }
 0x123   :  { %v491_v18 = vadd.f32 %v1308_v14, %v483_v15  ;;  %v820_v14 = vld [vmem:[%s2513_s11 + $0x168] sm:$0x3] }
 0x124   :  { %v780_v15 = vld [vmem:[%s2513_s11 + $0x28] sm:$0xff] }
 0x125   :  { %v492_v20 = vmax.f32 %v491_v18, 0.0  ;;  %v787_v18 = vld [vmem:[%s2513_s11 + $0x60] sm:$0xff] }
 0x127   :  { %1492 = vmatmul.mubr.msk.f32.vlgmr.msra.gmra.mrb[4].mxu1 %vm507_vm3, %v492_v20 }
 0x128   :  { %1655 = vmatpush3.bf16.msra.mxu1 %v1654_v19  ;;  %1508 = vmatprep.mubr.msk.f32.mxu1 %vm1774_vm0, %v1775_v9  ;;  %v1695_v19 = vpack.c.bf16 %v787_v18, %v780_v15 }
 0x129   :  { %1656 = vmatprep.subr.bf16.mxu1 %v1773_v62 }
 0x12c   :  { %1658 = vmatpush3.bf16.msra.mxu1 %v1657_v23  ;;  %v779_v23 = vld [vmem:[%s2513_s11 + $0x20] sm:$0xff] }
 0x12d   :  { %1659 = vmatprep.subr.bf16.mxu1 %v1773_v62 }
 0x130   :  { %1661 = vmatpush3.bf16.msra.mxu1 %v1660_v26  ;;  %v786_v26 = vld [vmem:[%s2513_s11 + $0x58] sm:$0xff] }
 0x131   :  { %1506 = vmatprep.subr.mxu1 %v1775_v9 }
 0x134   :  { %1507 = vmatpush3.msk.msra.mxu1 %vm511_vm2, %v591_v27  ;;  %v781_v27 = vld [vmem:[%s2513_s11 + $0x30] sm:$0xff] }
 0x135   :  { %1509 = vmatmul.mubr.msk.f32.vlgmr.msra.gmra.mrb[6].mxu1 %vm507_vm3, %v492_v20  ;;  %1672 = vmatprep.subr.bf16.mxu1 %v1671_v32  ;;  %v1317_v20 = vld [vmem:[%s2511_s9] ss:$0 sm:$0xff]  ;;  %v1697_v32 = vpack.c.bf16 %v786_v26, %v779_v23  ;;  %v1708_v33 = vpack.c.bf16 %v788_v28, %v781_v27 }
 0x136   :  { %912 = vmatprep.mubr.f32.mxu1 %v1775_v9  ;;  %1674 = vmatpush1.bf16.msra.mxu1 %v1673_v37  ;;  %v800_v37 = vld [vmem:[%s2513_s11 + $0xc8] sm:$0xff] }
 0x137   :  { %1676 = vmatprep.subr.bf16.mxu1 %v1675_v40  ;;  %v808_v40 = vld [vmem:[%s2513_s11 + $0x108] sm:$0xff]  ;;  %v1701_v42 = vpack.c.bf16 %v800_v37, %v793_v34 }
 0x138   :  { %v1703_v45 = vpack.c.bf16 %v815_v41, %v808_v40 }
 0x13a   :  { %1678 = vmatpush1.bf16.msra.mxu1 %v1677_v43  ;;  %v1711_v43 = vpack.c.bf16 %v802_v39, %v795_v38 }
 0x13b   :  { %1680 = vmatprep.subr.bf16.mxu1 %v1679_v2 }
 0x13e   :  { %1682 = vmatpush1.bf16.msra.mxu1 %v1681_v7 }
 0x13f   :  { %1319 = vmatprep.subr.msk.mxu1 %vm511_vm2, %v818_v12 }
 0x142   :  { %1320 = vmatpush1.msk.msra.mxu1 %vm511_vm2, %v817_v16 }
 0x143   :  { %1696 = vmatprep.subr.bf16.mxu1 %v1695_v19 }
 0x1fa   :  { %v581_v49 = vpop.f32.mrb[4].mxu1 }
 0x1fb   :  { %v582_v51 = vadd.f32 %v1309_v46, %v581_v49  ;;  %v1493_v52 = vpop.f32.mrb[5].mxu1  ;;  %v814_v46 = vld [vmem:[%s2513_s11 + $0x138] sm:$0xff] }
 0x1fc   :  { %v1705_v49 = vpack.c.bf16 %v814_v46, %v807_v44  ;;  %v821_v52 = vld [vmem:[%s2513_s11 + $0x170] sm:$0x3] }
 0x1fd   :  { %1526 = vmatmul.mubr.msk.f32.vlgmr.msra.gmra.mrb[4].mxu0 %vm507_vm3, %v582_v51  ;;  %673 = vst.msk [vmem:[#allocation2] sm:$0x3] %vm672_vm4, %v582_v51  ;;  %v822_v51 = vld [vmem:[%s2513_s11 + $0x178] sm:$0x3] }
 0x1fe   :  { %1686 = vmatpush1.bf16.msra.mxu0 %v1685_v50  ;;  %983 = vmatprep.mubr.f32.mxu0 %v1775_v9  ;;  %v1714_v50 = vpack.c.bf16 %v816_v48, %v809_v47 }
 0x1ff   :  { %1688 = vmatprep.subr.bf16.mxu0 %v1687_v53  ;;  %v823_v53 = vld [vmem:[%s2513_s11 + $0x180] sm:$0x3] }
 0x202   :  { %1690 = vmatpush1.bf16.msra.mxu0 %v1689_v56 }
 0x203   :  { %1692 = vmatprep.subr.bf16.mxu0 %v1691_v6 }
 0x206   :  { %1694 = vmatpush1.bf16.msra.mxu0 %v1693_v11 }
 0x207   :  { %1322 = vmatprep.subr.msk.mxu0 %vm511_vm2, %v820_v14 }
 0x208   :  { %v668_v58 = vpop.f32.mrb[6].mxu1 }
 0x209   :  { %v669_v59 = vadd.f32 %v1312_v57, %v668_v58  ;;  %v1510_v60 = vpop.f32.mrb[7].mxu1 }
 0x20a   :  { %1323 = vmatpush1.msk.msra.mxu0 %vm511_vm2, %v819_v17 }
 0x20b   :  { %674 = vst.msk [vmem:[#allocation4] sm:$0x3] %vm672_vm4, %v669_v59  ;;  %1707 = vmatprep.subr.bf16.mxu0 %v1773_v62 }
 0x2d0   :  { %v754_v21 = vpop.f32.mrb[4].mxu0 }
 0x2d1   :  { %v765_v24 = vmul.f32 %v1317_v20, %v754_v21  ;;  %v1527_v25 = vpop.f32.mrb[5].mxu0 }
 0x2d3   :  { %v773_v31 = vadd.f32 %v1318_v22, %v765_v24 }
 0x2d5   :  { %v774_v35 = vmax.f32 %v773_v31, 0.0 }
 0x2d7   :  { %1321 = vmatmul.mubr.msk.f32.vlgmr.msra.gmra.mrb[8].mxu1 %vm507_vm3, %v774_v35  ;;  %1324 = vmatmul.mubr.msk.f32.vlgmr.msra.gmra.mrb[6].mxu0 %vm507_vm3, %v774_v35 }
 0x2d8   :  { %1698 = vmatpush1.bf16.msra.mxu1 %v1697_v32  ;;  %1709 = vmatpush3.bf16.msra.mxu0 %v1708_v33 }
 0x2d9   :  { %1700 = vmatprep.subr.bf16.mxu1 %v1699_v36  ;;  %1710 = vmatprep.subr.bf16.mxu0 %v1773_v62 }
 0x2da   :  { %1054 = vmatprep.mubr.f32.mxu1 %v1775_v9  ;;  %1542 = vmatprep.mubr.msk.f32.mxu0 %vm1774_vm0, %v1775_v9 }
 0x2dc   :  { %1702 = vmatpush1.bf16.msra.mxu1 %v1701_v42  ;;  %1712 = vmatpush3.bf16.msra.mxu0 %v1711_v43 }
 0x2dd   :  { %1704 = vmatprep.subr.bf16.mxu1 %v1703_v45  ;;  %1713 = vmatprep.subr.bf16.mxu0 %v1773_v62 }
 0x2e0   :  { %1706 = vmatpush1.bf16.msra.mxu1 %v1705_v49  ;;  %1715 = vmatpush3.bf16.msra.mxu0 %v1714_v50 }
 0x2e1   :  { %1325 = vmatprep.subr.msk.mxu1 %vm511_vm2, %v822_v51  ;;  %1540 = vmatprep.subr.mxu0 %v1775_v9 }
 0x2e4   :  { %1326 = vmatpush1.msk.msra.mxu1 %vm511_vm2, %v821_v52  ;;  %1541 = vmatpush3.msk.msra.mxu0 %vm511_vm2, %v823_v53 }
 0x2e5   :  { %1327 = vmatmul.mubr.msk.f32.vlgmr.msra.gmra.mrb[10].mxu1 %vm507_vm3, %v774_v35  ;;  %1543 = vmatmul.mubr.msk.f32.vlgmr.msra.gmra.mrb[8].mxu0 %vm507_vm3, %v774_v35 }
 0x2e6   :  { %1735 = shalt.err (!%p1732_p4)
}
 0x2e7   :  { %s1736_s19 = scalar_lea.hbm %s2516_s14, 32 }
 0x2e8   :  { %p1737_p5 = scmp.ne.s32.totalorder %s2516_s14, %s1736_s19  ;;  %p1740_p6 = scmp.lt.u32.totalorder %s1736_s19, %s2516_s14 }
 0x2ea   :  { %p1742_p7 = pnand %p1740_p6, %p1737_p5 }
 0x2ec   :  { %1745 = shalt.err (!%p1742_p7)
}
 0x2ed   :  { %1283 = dma.vmem_to_hbm [thread:$0]  %s1281_s17, 32, %s2516_s14, [#allocation3]  }
 0x2ee   :  { %s1746_s25 = scalar_lea.vmem %s1291_s1, 32  ;;  %p1751_p9 = scmp.lt.s32.totalorder %s1291_s1, %s1291_s1 }
 0x2ef   :  { %p1747_p8 = scmp.ne.s32.totalorder %s1291_s1, %s1746_s25  ;;  %p1752_p10 = scmp.lt.s32.totalorder %s1746_s25, %s1746_s25 }
 0x2f1   :  { %p1753_p11 = por %p1752_p10, %p1751_p9 }
 0x2f3   :  { %p1754_p12 = pnand %p1753_p11, %p1747_p8 }
 0x2f5   :  { %1757 = shalt.err (!%p1754_p12)
}
 0x2f6   :  { %s1758_s26 = scalar_lea.hbm %s2517_s15, 32 }
 0x2f7   :  { %p1759_p13 = scmp.ne.s32.totalorder %s2517_s15, %s1758_s26  ;;  %p1762_p0 = scmp.lt.u32.totalorder %s1758_s26, %s2517_s15 }
 0x2f9   :  { %p1764_p1 = pnand %p1762_p0, %p1759_p13 }
 0x2fb   :  { %1767 = shalt.err (!%p1764_p1)
}
 0x2fc   :  { %1293 = dma.vmem_to_hbm [thread:$0]  %s1291_s1, 32, %s2517_s15, [#allocation5]   ;;  %v1135_v62 = vsub.s32 0, %v1989_v0  ;;  %v1143_v9 = vsub.s32 2, %v1989_v0  ;;  %v1131_v54 = vld [vmem:[%s2514_s12] sm:$0x7f] }
 0x2fd   :  { %v1139_v55 = vsub.s32 1, %v1989_v0  ;;  %v1147_v56 = vsub.s32 3, %v1989_v0  ;;  %v1175_v57 = vld [vmem:[%s2515_s13] sm:$0x7f]  ;;  %v1151_v22 = vsub.s32 4, %v1989_v0  ;;  %v1159_v23 = vsub.s32 6, %v1989_v0 }
 0x2fe   :  { %v1136_v58 = vrot.slane %v1131_v54, %v1135_v62  ;;  %v1144_v59 = vrot.slane %v1131_v54, %v1143_v9  ;;  %v1180_v63 = vrot.slane %v1175_v57, %v1135_v62  ;;  %v1188_v1 = vrot.slane %v1175_v57, %v1143_v9 }
 0x2ff   :  { %v1140_v60 = vrot.slane %v1131_v54, %v1139_v55  ;;  %v1148_v61 = vrot.slane %v1131_v54, %v1147_v56  ;;  %v1184_v4 = vrot.slane %v1175_v57, %v1139_v55  ;;  %v1192_v5 = vrot.slane %v1175_v57, %v1147_v56 }
 0x300   :  { %v1155_v26 = vsub.s32 5, %v1989_v0  ;;  %v1152_v29 = vrot.slane %v1131_v54, %v1151_v22  ;;  %v1160_v30 = vrot.slane %v1131_v54, %v1159_v23  ;;  %v1196_v33 = vrot.slane %v1175_v57, %v1151_v22 }
 0x301   :  { %v1204_v34 = vrot.slane %v1175_v57, %v1159_v23  ;;  %vm1269_vm5 = vcmask 1043458   ;;  %vm1271_vm7 = vcmask 128004  }
 0x302   :  { %v1156_v32 = vrot.slane %v1131_v54, %v1155_v26  ;;  %v1200_v37 = vrot.slane %v1175_v57, %v1155_v26  ;;  %vm1270_vm6 = vmor %vm1269_vm5, %vm511_vm2 }
 0x303   :  { %vm1272_vm8 = vmor %vm1271_vm7, %vm1270_vm6 }
 0x3aa   :  { %v914_v2 = vpop.f32.mrb[8].mxu1  ;;  %v985_v3 = vpop.f32.mrb[6].mxu0 }
 0x3ab   :  { %v1168_v6 = vmul.f32 %v1136_v58, %v914_v2  ;;  %v1170_v7 = vmul.f32 %v1144_v59, %v985_v3  ;;  %v916_v8 = vpop.f32.mrb[9].mxu1  ;;  %v987_v10 = vpop.f32.mrb[7].mxu0 }
 0x3ac   :  { %v1169_v11 = vmul.f32 %v1140_v60, %v916_v8  ;;  %v1171_v12 = vmul.f32 %v1148_v61, %v987_v10 }
 0x3ad   :  { %v1212_v14 = vadd.f32 %v1180_v63, %v1168_v6  ;;  %v1214_v15 = vadd.f32 %v1188_v1, %v1170_v7 }
 0x3ae   :  { %v1213_v16 = vadd.f32 %v1184_v4, %v1169_v11  ;;  %v1215_v17 = vadd.f32 %v1192_v5, %v1171_v12 }
 0x3af   :  { %v1219_v18 = vmax.f32 %v1212_v14, 0.0  ;;  %v1221_v19 = vmax.f32 %v1214_v15, 0.0 }
 0x3b0   :  { %v1220_v20 = vmax.f32 %v1213_v16, 0.0  ;;  %v1222_v21 = vmax.f32 %v1215_v17, 0.0 }
 0x3b2   :  { %v1233_v24 = vcombine.low %v1219_v18, %v1220_v20  ;;  %v1234_v25 = vcombine.low %v1221_v19, %v1222_v21 }
 0x3b4   :  { %v1241_v27 = vrot.slane %v1233_v24, %v2016_v13  ;;  %v1248_v28 = vrot.slane %v1234_v25, %v2016_v13 }
 0x3b6   :  { %v1249_v31 = vcombine.low %v1241_v27, %v1248_v28 }
 0x3b8   :  { %1268 = vst [vmem:[%s2518_s16] sm:$0xff] %v1249_v31  ;;  %v1056_v35 = vpop.f32.mrb[10].mxu1  ;;  %v1127_v36 = vpop.f32.mrb[8].mxu0 }
 0x3b9   :  { %v1172_v38 = vmul.f32 %v1152_v29, %v1056_v35  ;;  %v1174_v39 = vmul.f32 %v1160_v30, %v1127_v36  ;;  %v1058_v0 = vpop.f32.mrb[11].mxu1  ;;  %v1544_v40 = vpop.f32.mrb[9].mxu0 }
 0x3ba   :  { %v1173_v41 = vmul.f32 %v1156_v32, %v1058_v0 }
 0x3bb   :  { %v1216_v42 = vadd.f32 %v1196_v33, %v1172_v38  ;;  %v1218_v43 = vadd.f32 %v1204_v34, %v1174_v39 }
 0x3bc   :  { %v1217_v44 = vadd.f32 %v1200_v37, %v1173_v41 }
 0x3bd   :  { %v1223_v45 = vmax.f32 %v1216_v42, 0.0  ;;  %v1225_v46 = vmax.f32 %v1218_v43, 0.0 }
 0x3be   :  { %v1224_v47 = vmax.f32 %v1217_v44, 0.0 }
 0x3bf   :  { %v1264_v49 = vrot.slane %v1225_v46, %v2016_v13 }
 0x3c0   :  { %v1250_v48 = vcombine.low %v1223_v45, %v1224_v47 }
 0x3c2   :  { %v1257_v50 = vrot.slane %v1250_v48, %v2016_v13 }
 0x3c4   :  { %v1265_v51 = vcombine.low %v1257_v50, %v1264_v49 }
 0x3c6   :  { %1273 = vst.msk [vmem:[%s2518_s16 + $0x8] sm:$0x3f] %vm1272_vm8, %v1265_v51 }
 0x3c7   :  { %1768 = dma.done.wait [#allocation3], 32  }
 0x3c8   :  { %1769 = vsyncadd [#allocation3], 4294967264 }
 0x3c9   :  { %1770 = dma.done.wait [#allocation5], 32  }
 0x3ca   :  { %1771 = vsyncadd [#allocation5], 4294967264 }
 0x3cb   :  { %1304 = vsyncpa [#allocation3], 1 }
 0x3cc   :  { %1305 = vsyncpa [#allocation5], 1 }

// kernel: vae_forward.14
= control target key start
LH: loop header
LB: loop body
LE: loop exit
PB: predicated region body
PF: predicated region fallthrough
CT: control target
= control target key end

     0   :  { %v399_v3 = vmov 0.0   ;;  %vm46_vm0 = vcmask 523264   ;;  %v231_v38 = vlaneseq  ;;  %s682_s1 = inlined_call_operand.vmem [shape: f32[64,256], index: 1, kind: input, shape index: {}]   ;;  %s683_s0 = inlined_call_operand.vmem [shape: f32[98,64], index: 0, kind: input, shape index: {}]   ;;  %s684_s2 = inlined_call_operand.vmem [shape: f32[1,256], index: 2, kind: input, shape index: {}]   ;;  %s685_s3 = inlined_call_operand.vmem [shape: f32[1,256], index: 3, kind: input, shape index: {}]   ;;  %s686_s4 = inlined_call_operand.vmem [shape: f32[98,256], index: 4, kind: output, shape index: {}]  }
   0x1   :  { %v31_v0 = vld [vmem:[%s682_s1 + $0x8] sm:$0xff]  ;;  %v33_v1 = vld [vmem:[%s682_s1 + $0x18] sm:$0xff]  ;;  %v30_v2 = vld [vmem:[%s682_s1] sm:$0xff]  ;;  %150 = vmatprep.mubr.f32.mxu0 %v399_v3  ;;  %192 = vmatprep.mubr.f32.mxu1 %v399_v3 }
   0x2   :  { %v374_v4 = vpack.c.bf16 %v33_v1, %v31_v0  ;;  %v32_v5 = vld [vmem:[%s682_s1 + $0x10] sm:$0xff]  ;;  %v35_v6 = vld [vmem:[%s682_s1 + $0x28] sm:$0xff]  ;;  %v37_v7 = vld [vmem:[%s682_s1 + $0x38] sm:$0xff]  ;;  %v232_v39 = vshrl.u32 %v231_v38, 7 }
   0x3   :  { %v376_v8 = vpack.c.bf16 %v32_v5, %v30_v2  ;;  %v378_v9 = vpack.c.bf16 %v37_v7, %v35_v6  ;;  %v34_v10 = vld [vmem:[%s682_s1 + $0x20] sm:$0xff]  ;;  %v36_v11 = vld [vmem:[%s682_s1 + $0x30] sm:$0xff]  ;;  %v39_v12 = vld [vmem:[%s682_s1 + $0x48] sm:$0xff] }
   0x4   :  { %375 = vmatprep.subr.bf16.mxu0 %v374_v4  ;;  %390 = vmatprep.subr.bf16.mxu1 %v374_v4  ;;  %v41_v13 = vld [vmem:[%s682_s1 + $0x58] sm:$0xff]  ;;  %v380_v14 = vpack.c.bf16 %v36_v11, %v34_v10  ;;  %v38_v16 = vld [vmem:[%s682_s1 + $0x40] sm:$0xff]  ;;  %v40_v17 = vld [vmem:[%s682_s1 + $0x50] sm:$0xff]  ;;  %v233_v40 = vsub.s32 0, %v232_v39  ;;  %v237_v42 = vsub.s32 1, %v232_v39 }
   0x5   :  { %377 = vmatpush1.bf16.msra.mxu0 %v376_v8  ;;  %394 = vmatpush1.bf16.msra.mxu1 %v376_v8  ;;  %v382_v15 = vpack.c.bf16 %v41_v13, %v39_v12  ;;  %v43_v18 = vld [vmem:[%s682_s1 + $0x68] sm:$0xff]  ;;  %v45_v19 = vld [vmem:[%s682_s1 + $0x78] sm:$0xff]  ;;  %v384_v20 = vpack.c.bf16 %v40_v17, %v38_v16  ;;  %v42_v22 = vld [vmem:[%s682_s1 + $0x60] sm:$0xff] }
   0x6   :  { %379 = vmatprep.subr.bf16.mxu0 %v378_v9  ;;  %391 = vmatprep.subr.bf16.mxu1 %v378_v9  ;;  %v386_v21 = vpack.c.bf16 %v45_v19, %v43_v18  ;;  %v44_v23 = vld [vmem:[%s682_s1 + $0x70] sm:$0xff]  ;;  %v17_v25 = vld [vmem:[%s683_s0] sm:$0xff]  ;;  %v24_v26 = vld [vmem:[%s683_s0 + $0x38] sm:$0xff] }
   0x7   :  { %v388_v24 = vpack.c.bf16 %v44_v23, %v42_v22  ;;  %v18_v27 = vld [vmem:[%s683_s0 + $0x8] sm:$0xff]  ;;  %v25_v28 = vld [vmem:[%s683_s0 + $0x40] sm:$0xff]  ;;  %v19_v29 = vld [vmem:[%s683_s0 + $0x10] sm:$0xff] }
   0x8   :  { %v26_v30 = vld [vmem:[%s683_s0 + $0x48] sm:$0xff]  ;;  %v20_v31 = vld [vmem:[%s683_s0 + $0x18] sm:$0xff]  ;;  %v27_v32 = vld [vmem:[%s683_s0 + $0x50] sm:$0xff] }
   0x9   :  { %381 = vmatpush1.bf16.msra.mxu0 %v380_v14  ;;  %395 = vmatpush1.bf16.msra.mxu1 %v380_v14  ;;  %v21_v33 = vld [vmem:[%s683_s0 + $0x20] sm:$0xff]  ;;  %v28_v34 = vld [vmem:[%s683_s0 + $0x58] sm:$0xff]  ;;  %v22_v35 = vld [vmem:[%s683_s0 + $0x28] sm:$0xff] }
   0xa   :  { %383 = vmatprep.subr.bf16.mxu0 %v382_v15  ;;  %392 = vmatprep.subr.bf16.mxu1 %v382_v15  ;;  %v29_v36 = vld [vmem:[%s683_s0 + $0x60] sm:$0x3]  ;;  %v23_v37 = vld [vmem:[%s683_s0 + $0x30] sm:$0xff] }
   0xb   :  { %v229_v41 = vld [vmem:[%s684_s2] sm:$0x3] }
   0xc   :  { %v267_v43 = vld [vmem:[%s685_s3] sm:$0x3]  ;;  %v544_v44 = vrot.slane %v229_v41, %v233_v40  ;;  %v546_v45 = vrot.slane %v229_v41, %v237_v42 }
   0xd   :  { %385 = vmatpush1.bf16.msra.mxu0 %v384_v20  ;;  %396 = vmatpush1.bf16.msra.mxu1 %v384_v20  ;;  %v548_v46 = vrot.slane %v267_v43, %v233_v40  ;;  %v550_v48 = vrot.slane %v267_v43, %v237_v42 }
   0xe   :  { %387 = vmatprep.subr.bf16.mxu0 %v386_v21  ;;  %393 = vmatprep.subr.bf16.mxu1 %v386_v21 }
  0x11   :  { %389 = vmatpush1.bf16.msra.mxu0 %v388_v24  ;;  %397 = vmatpush1.bf16.msra.mxu1 %v388_v24 }
  0x14   :  { %361 = vmatmul.mubr.msk.f32.vlgmr.msra.gmra.mrb[0].mxu0 %vm46_vm0, %v17_v25  ;;  %368 = vmatmul.mubr.msk.f32.vlgmr.msra.gmra.mrb[0].mxu1 %vm46_vm0, %v24_v26 }
  0x15   :  { %156 = vmatprep.mubr.f32.mxu0 %v399_v3  ;;  %198 = vmatprep.mubr.f32.mxu1 %v399_v3 }
  0x18   :  { %362 = vmatmul.mubr.msk.f32.gmra.mrb[2].mxu0 %vm46_vm0, %v18_v27  ;;  %369 = vmatmul.mubr.msk.f32.gmra.mrb[2].mxu1 %vm46_vm0, %v25_v28 }
  0x19   :  { %162 = vmatprep.mubr.f32.mxu0 %v399_v3  ;;  %204 = vmatprep.mubr.f32.mxu1 %v399_v3 }
  0x1c   :  { %363 = vmatmul.mubr.msk.f32.gmra.mrb[4].mxu0 %vm46_vm0, %v19_v29  ;;  %370 = vmatmul.mubr.msk.f32.gmra.mrb[4].mxu1 %vm46_vm0, %v26_v30 }
  0x1d   :  { %168 = vmatprep.mubr.f32.mxu0 %v399_v3  ;;  %210 = vmatprep.mubr.f32.mxu1 %v399_v3 }
  0x20   :  { %364 = vmatmul.mubr.msk.f32.gmra.mrb[6].mxu0 %vm46_vm0, %v20_v31  ;;  %371 = vmatmul.mubr.msk.f32.gmra.mrb[6].mxu1 %vm46_vm0, %v27_v32 }
  0x21   :  { %174 = vmatprep.mubr.f32.mxu0 %v399_v3  ;;  %216 = vmatprep.mubr.f32.mxu1 %v399_v3 }
  0x24   :  { %365 = vmatmul.mubr.msk.f32.gmra.mrb[8].mxu0 %vm46_vm0, %v21_v33  ;;  %372 = vmatmul.mubr.msk.f32.gmra.mrb[8].mxu1 %vm46_vm0, %v28_v34 }
  0x25   :  { %180 = vmatprep.mubr.f32.mxu0 %v399_v3  ;;  %222 = vmatprep.mubr.f32.mxu1 %v399_v3 }
  0x28   :  { %366 = vmatmul.mubr.msk.f32.gmra.mrb[10].mxu0 %vm46_vm0, %v22_v35  ;;  %373 = vmatmul.mubr.msk.f32.gmra.mrb[10].mxu1 %vm46_vm0, %v29_v36 }
  0x29   :  { %186 = vmatprep.mubr.f32.mxu0 %v399_v3 }
  0x2c   :  { %367 = vmatmul.mubr.msk.f32.gmra.mrb[12].mxu0 %vm46_vm0, %v23_v37 }
  0xe7   :  { %v152_v47 = vpop.f32.mrb[0].mxu0  ;;  %v194_v49 = vpop.f32.mrb[0].mxu1 }
  0xe8   :  { %v241_v50 = vmul.f32 %v544_v44, %v152_v47  ;;  %v154_v51 = vpop.f32.mrb[1].mxu0  ;;  %v255_v52 = vmul.f32 %v544_v44, %v194_v49  ;;  %v196_v53 = vpop.f32.mrb[1].mxu1 }
  0xe9   :  { %v242_v54 = vmul.f32 %v546_v45, %v154_v51  ;;  %v256_v55 = vmul.f32 %v546_v45, %v196_v53 }
  0xea   :  { %v279_v56 = vadd.f32 %v548_v46, %v241_v50  ;;  %v293_v57 = vadd.f32 %v548_v46, %v255_v52 }
  0xeb   :  { %v280_v58 = vadd.f32 %v550_v48, %v242_v54  ;;  %v158_v59 = vpop.f32.mrb[2].mxu0  ;;  %v294_v60 = vadd.f32 %v550_v48, %v256_v55  ;;  %v200_v61 = vpop.f32.mrb[2].mxu1 }
  0xec   :  { %v305_v62 = vmax.f32 %v279_v56, 0.0  ;;  %v319_v63 = vmax.f32 %v293_v57, 0.0  ;;  %v243_v0 = vmul.f32 %v544_v44, %v158_v59  ;;  %v160_v1 = vpop.f32.mrb[3].mxu0  ;;  %v257_v2 = vmul.f32 %v544_v44, %v200_v61  ;;  %v202_v3 = vpop.f32.mrb[3].mxu1 }
  0xed   :  { %v306_v4 = vmax.f32 %v280_v58, 0.0  ;;  %v320_v5 = vmax.f32 %v294_v60, 0.0  ;;  %v244_v6 = vmul.f32 %v546_v45, %v160_v1  ;;  %v258_v7 = vmul.f32 %v546_v45, %v202_v3 }
  0xee   :  { %331 = vst [vmem:[%s686_s4] sm:$0xff] %v305_v62  ;;  %345 = vst [vmem:[%s686_s4 + $0x70] sm:$0xff] %v319_v63  ;;  %v281_v8 = vadd.f32 %v548_v46, %v243_v0  ;;  %v295_v9 = vadd.f32 %v548_v46, %v257_v2 }
  0xef   :  { %332 = vst [vmem:[%s686_s4 + $0x8] sm:$0xff] %v306_v4  ;;  %346 = vst [vmem:[%s686_s4 + $0x78] sm:$0xff] %v320_v5  ;;  %v282_v10 = vadd.f32 %v550_v48, %v244_v6  ;;  %v164_v11 = vpop.f32.mrb[4].mxu0  ;;  %v296_v12 = vadd.f32 %v550_v48, %v258_v7  ;;  %v206_v13 = vpop.f32.mrb[4].mxu1 }
  0xf0   :  { %v307_v14 = vmax.f32 %v281_v8, 0.0  ;;  %v321_v15 = vmax.f32 %v295_v9, 0.0  ;;  %v245_v16 = vmul.f32 %v544_v44, %v164_v11  ;;  %v166_v17 = vpop.f32.mrb[5].mxu0  ;;  %v259_v18 = vmul.f32 %v544_v44, %v206_v13  ;;  %v208_v19 = vpop.f32.mrb[5].mxu1 }
  0xf1   :  { %v308_v20 = vmax.f32 %v282_v10, 0.0  ;;  %v322_v21 = vmax.f32 %v296_v12, 0.0  ;;  %v246_v22 = vmul.f32 %v546_v45, %v166_v17  ;;  %v260_v23 = vmul.f32 %v546_v45, %v208_v19 }
  0xf2   :  { %333 = vst [vmem:[%s686_s4 + $0x10] sm:$0xff] %v307_v14  ;;  %347 = vst [vmem:[%s686_s4 + $0x80] sm:$0xff] %v321_v15  ;;  %v283_v24 = vadd.f32 %v548_v46, %v245_v16  ;;  %v297_v25 = vadd.f32 %v548_v46, %v259_v18 }
  0xf3   :  { %334 = vst [vmem:[%s686_s4 + $0x18] sm:$0xff] %v308_v20  ;;  %348 = vst [vmem:[%s686_s4 + $0x88] sm:$0xff] %v322_v21  ;;  %v284_v26 = vadd.f32 %v550_v48, %v246_v22  ;;  %v170_v27 = vpop.f32.mrb[6].mxu0  ;;  %v298_v28 = vadd.f32 %v550_v48, %v260_v23  ;;  %v212_v29 = vpop.f32.mrb[6].mxu1 }
  0xf4   :  { %v309_v30 = vmax.f32 %v283_v24, 0.0  ;;  %v323_v31 = vmax.f32 %v297_v25, 0.0  ;;  %v247_v32 = vmul.f32 %v544_v44, %v170_v27  ;;  %v172_v33 = vpop.f32.mrb[7].mxu0  ;;  %v261_v34 = vmul.f32 %v544_v44, %v212_v29  ;;  %v214_v35 = vpop.f32.mrb[7].mxu1 }
  0xf5   :  { %v310_v36 = vmax.f32 %v284_v26, 0.0  ;;  %v324_v37 = vmax.f32 %v298_v28, 0.0  ;;  %v248_v38 = vmul.f32 %v546_v45, %v172_v33  ;;  %v262_v39 = vmul.f32 %v546_v45, %v214_v35 }
  0xf6   :  { %335 = vst [vmem:[%s686_s4 + $0x20] sm:$0xff] %v309_v30  ;;  %349 = vst [vmem:[%s686_s4 + $0x90] sm:$0xff] %v323_v31  ;;  %v285_v40 = vadd.f32 %v548_v46, %v247_v32  ;;  %v299_v41 = vadd.f32 %v548_v46, %v261_v34 }
  0xf7   :  { %336 = vst [vmem:[%s686_s4 + $0x28] sm:$0xff] %v310_v36  ;;  %350 = vst [vmem:[%s686_s4 + $0x98] sm:$0xff] %v324_v37  ;;  %v286_v42 = vadd.f32 %v550_v48, %v248_v38  ;;  %v176_v43 = vpop.f32.mrb[8].mxu0  ;;  %v300_v47 = vadd.f32 %v550_v48, %v262_v39  ;;  %v218_v49 = vpop.f32.mrb[8].mxu1 }
  0xf8   :  { %v311_v50 = vmax.f32 %v285_v40, 0.0  ;;  %v325_v51 = vmax.f32 %v299_v41, 0.0  ;;  %v249_v52 = vmul.f32 %v544_v44, %v176_v43  ;;  %v178_v53 = vpop.f32.mrb[9].mxu0  ;;  %v263_v54 = vmul.f32 %v544_v44, %v218_v49  ;;  %v220_v55 = vpop.f32.mrb[9].mxu1 }
  0xf9   :  { %v312_v56 = vmax.f32 %v286_v42, 0.0  ;;  %v326_v57 = vmax.f32 %v300_v47, 0.0  ;;  %v250_v58 = vmul.f32 %v546_v45, %v178_v53  ;;  %v264_v59 = vmul.f32 %v546_v45, %v220_v55 }
  0xfa   :  { %337 = vst [vmem:[%s686_s4 + $0x30] sm:$0xff] %v311_v50  ;;  %351 = vst [vmem:[%s686_s4 + $0xa0] sm:$0xff] %v325_v51  ;;  %v287_v60 = vadd.f32 %v548_v46, %v249_v52  ;;  %v301_v61 = vadd.f32 %v548_v46, %v263_v54 }
  0xfb   :  { %338 = vst [vmem:[%s686_s4 + $0x38] sm:$0xff] %v312_v56  ;;  %352 = vst [vmem:[%s686_s4 + $0xa8] sm:$0xff] %v326_v57  ;;  %v288_v62 = vadd.f32 %v550_v48, %v250_v58  ;;  %v182_v63 = vpop.f32.mrb[10].mxu0  ;;  %v302_v0 = vadd.f32 %v550_v48, %v264_v59  ;;  %v224_v1 = vpop.f32.mrb[10].mxu1 }
  0xfc   :  { %v313_v2 = vmax.f32 %v287_v60, 0.0  ;;  %v327_v3 = vmax.f32 %v301_v61, 0.0  ;;  %v251_v4 = vmul.f32 %v544_v44, %v182_v63  ;;  %v184_v5 = vpop.f32.mrb[11].mxu0  ;;  %v265_v6 = vmul.f32 %v544_v44, %v224_v1  ;;  %v226_v7 = vpop.f32.mrb[11].mxu1 }
  0xfd   :  { %v314_v8 = vmax.f32 %v288_v62, 0.0  ;;  %v328_v9 = vmax.f32 %v302_v0, 0.0  ;;  %v252_v10 = vmul.f32 %v546_v45, %v184_v5  ;;  %v266_v11 = vmul.f32 %v546_v45, %v226_v7 }
  0xfe   :  { %339 = vst [vmem:[%s686_s4 + $0x40] sm:$0xff] %v313_v2  ;;  %353 = vst [vmem:[%s686_s4 + $0xb0] sm:$0xff] %v327_v3  ;;  %v289_v12 = vadd.f32 %v548_v46, %v251_v4  ;;  %v303_v13 = vadd.f32 %v548_v46, %v265_v6 }
  0xff   :  { %340 = vst [vmem:[%s686_s4 + $0x48] sm:$0xff] %v314_v8  ;;  %354 = vst [vmem:[%s686_s4 + $0xb8] sm:$0xff] %v328_v9  ;;  %v290_v14 = vadd.f32 %v550_v48, %v252_v10  ;;  %v188_v15 = vpop.f32.mrb[12].mxu0  ;;  %v304_v16 = vadd.f32 %v550_v48, %v266_v11 }
 0x100   :  { %v315_v17 = vmax.f32 %v289_v12, 0.0  ;;  %v329_v18 = vmax.f32 %v303_v13, 0.0  ;;  %v253_v19 = vmul.f32 %v544_v44, %v188_v15  ;;  %v190_v20 = vpop.f32.mrb[13].mxu0 }
 0x101   :  { %v316_v21 = vmax.f32 %v290_v14, 0.0  ;;  %v330_v22 = vmax.f32 %v304_v16, 0.0  ;;  %v254_v23 = vmul.f32 %v546_v45, %v190_v20 }
 0x102   :  { %341 = vst [vmem:[%s686_s4 + $0x50] sm:$0xff] %v315_v17  ;;  %355 = vst [vmem:[%s686_s4 + $0xc0] sm:$0x3] %v329_v18  ;;  %v291_v24 = vadd.f32 %v548_v46, %v253_v19 }
 0x103   :  { %342 = vst [vmem:[%s686_s4 + $0x58] sm:$0xff] %v316_v21  ;;  %356 = vst [vmem:[%s686_s4 + $0xc8] sm:$0x3] %v330_v22  ;;  %v292_v44 = vadd.f32 %v550_v48, %v254_v23 }
 0x104   :  { %v317_v45 = vmax.f32 %v291_v24, 0.0 }
 0x105   :  { %v318_v25 = vmax.f32 %v292_v44, 0.0 }
 0x106   :  { %343 = vst [vmem:[%s686_s4 + $0x60] sm:$0xff] %v317_v45 }
 0x107   :  { %344 = vst [vmem:[%s686_s4 + $0x68] sm:$0xff] %v318_v25 }

// kernel: vae_forward.15
= control target key start
LH: loop header
LB: loop body
LE: loop exit
PB: predicated region body
PF: predicated region fallthrough
CT: control target
= control target key end

     0   :  { %v2188_v0 = vmov 0.0|0.0   ;;  %vm2189_vm0 = vmmov 0   ;;  %vm334_vm1 = vcmask 523264   ;;  %vm1573_vm2 = vcmask 261120   ;;  %s3809_s1 = inlined_call_operand.vmem [shape: f32[576,32], index: 1, kind: input, shape index: {}]   ;;  %s3810_s0 = inlined_call_operand.vmem [shape: f32[392,576], index: 0, kind: input, shape index: {}]   ;;  %s3811_s2 = inlined_call_operand.vmem [shape: f32[1,32], index: 2, kind: input, shape index: {}]   ;;  %s3812_s3 = inlined_call_operand.vmem [shape: f32[1,32], index: 3, kind: input, shape index: {}]   ;;  %s3813_s4 = inlined_call_operand.vmem [shape: f32[392,32], index: 4, kind: output, shape index: {}]  }
   0x1   :  { %1898 = vmatprep.subr.bf16.mxu1 %v2188_v0  ;;  %1946 = vmatprep.subr.bf16.mxu0 %v2188_v0  ;;  %v262_v1 = vld [vmem:[%s3809_s1] sm:$0xff]  ;;  %v263_v2 = vld [vmem:[%s3809_s1 + $0x8] sm:$0xff]  ;;  %v264_v6 = vld [vmem:[%s3809_s1 + $0x10] sm:$0xff] }
   0x2   :  { %v294_v3 = vld [vmem:[%s3809_s1 + $0x100] sm:$0xff]  ;;  %v1899_v4 = vpack.c.bf16 %v263_v2, %v262_v1  ;;  %v295_v5 = vld [vmem:[%s3809_s1 + $0x108] sm:$0xff]  ;;  %v265_v7 = vld [vmem:[%s3809_s1 + $0x18] sm:$0xff] }
   0x3   :  { %v2236_v8 = vpack.c.bf16 %v295_v5, %v294_v3  ;;  %v296_v9 = vld [vmem:[%s3809_s1 + $0x110] sm:$0xff]  ;;  %v297_v10 = vld [vmem:[%s3809_s1 + $0x118] sm:$0xff]  ;;  %v1902_v11 = vpack.c.bf16 %v265_v7, %v264_v6  ;;  %v266_v13 = vld [vmem:[%s3809_s1 + $0x20] sm:$0xff] }
   0x4   :  { %1900 = vmatpush1.bf16.msra.mxu1 %v1899_v4  ;;  %v2246_v12 = vpack.c.bf16 %v297_v10, %v296_v9  ;;  %v267_v14 = vld [vmem:[%s3809_s1 + $0x28] sm:$0xff]  ;;  %v298_v15 = vld [vmem:[%s3809_s1 + $0x120] sm:$0xff]  ;;  %v268_v19 = vld [vmem:[%s3809_s1 + $0x30] sm:$0xff] }
   0x5   :  { %1948 = vmatpush1.bf16.msra.mxu0 %v2236_v8  ;;  %1901 = vmatprep.subr.bf16.mxu1 %v2188_v0  ;;  %v299_v16 = vld [vmem:[%s3809_s1 + $0x128] sm:$0xff]  ;;  %v1905_v17 = vpack.c.bf16 %v267_v14, %v266_v13  ;;  %v269_v20 = vld [vmem:[%s3809_s1 + $0x38] sm:$0xff]  ;;  %v300_v21 = vld [vmem:[%s3809_s1 + $0x130] sm:$0xff] }
   0x6   :  { %1949 = vmatprep.subr.bf16.mxu0 %v2188_v0  ;;  %v2263_v18 = vpack.c.bf16 %v299_v16, %v298_v15  ;;  %v301_v22 = vld [vmem:[%s3809_s1 + $0x138] sm:$0xff]  ;;  %v1908_v23 = vpack.c.bf16 %v269_v20, %v268_v19  ;;  %v270_v25 = vld [vmem:[%s3809_s1 + $0x40] sm:$0xff]  ;;  %v271_v26 = vld [vmem:[%s3809_s1 + $0x48] sm:$0xff] }
   0x7   :  { %v2280_v24 = vpack.c.bf16 %v301_v22, %v300_v21  ;;  %v302_v27 = vld [vmem:[%s3809_s1 + $0x140] sm:$0xff]  ;;  %v303_v28 = vld [vmem:[%s3809_s1 + $0x148] sm:$0xff]  ;;  %v1911_v29 = vpack.c.bf16 %v271_v26, %v270_v25  ;;  %v272_v31 = vld [vmem:[%s3809_s1 + $0x50] sm:$0xff] }
   0x8   :  { %1903 = vmatpush1.bf16.msra.mxu1 %v1902_v11  ;;  %v2297_v30 = vpack.c.bf16 %v303_v28, %v302_v27  ;;  %v273_v32 = vld [vmem:[%s3809_s1 + $0x58] sm:$0xff]  ;;  %v304_v33 = vld [vmem:[%s3809_s1 + $0x150] sm:$0xff]  ;;  %v274_v37 = vld [vmem:[%s3809_s1 + $0x60] sm:$0xff] }
   0x9   :  { %1951 = vmatpush1.bf16.msra.mxu0 %v2246_v12  ;;  %1904 = vmatprep.subr.bf16.mxu1 %v2188_v0  ;;  %v305_v34 = vld [vmem:[%s3809_s1 + $0x158] sm:$0xff]  ;;  %v1914_v35 = vpack.c.bf16 %v273_v32, %v272_v31  ;;  %v275_v38 = vld [vmem:[%s3809_s1 + $0x68] sm:$0xff]  ;;  %v306_v39 = vld [vmem:[%s3809_s1 + $0x160] sm:$0xff] }
   0xa   :  { %1952 = vmatprep.subr.bf16.mxu0 %v2188_v0  ;;  %v2314_v36 = vpack.c.bf16 %v305_v34, %v304_v33  ;;  %v307_v40 = vld [vmem:[%s3809_s1 + $0x168] sm:$0xff]  ;;  %v20_v42 = vld [vmem:[%s3810_s0 + $0x18] sm:$0xff]  ;;  %v1917_v43 = vpack.c.bf16 %v275_v38, %v274_v37  ;;  %v276_v45 = vld [vmem:[%s3809_s1 + $0x70] sm:$0xff] }
   0xb   :  { %v18_v41 = vld [vmem:[%s3810_s0 + $0x8] sm:$0xff]  ;;  %856 = vmatprep.mubr.f32.mxu0 %v20_v42  ;;  %v2337_v44 = vpack.c.bf16 %v307_v40, %v306_v39  ;;  %v277_v46 = vld [vmem:[%s3809_s1 + $0x78] sm:$0xff]  ;;  %v308_v47 = vld [vmem:[%s3809_s1 + $0x170] sm:$0xff] }
   0xc   :  { %1906 = vmatpush1.bf16.msra.mxu1 %v1905_v17  ;;  %546 = vmatprep.mubr.f32.mxu1 %v18_v41  ;;  %v309_v48 = vld [vmem:[%s3809_s1 + $0x178] sm:$0xff]  ;;  %v1920_v49 = vpack.c.bf16 %v277_v46, %v276_v45  ;;  %v278_v51 = vld [vmem:[%s3809_s1 + $0x80] sm:$0xff]  ;;  %v279_v52 = vld [vmem:[%s3809_s1 + $0x88] sm:$0xff] }
   0xd   :  { %1954 = vmatpush1.bf16.msra.mxu0 %v2263_v18  ;;  %1907 = vmatprep.subr.bf16.mxu1 %v2188_v0  ;;  %v2354_v50 = vpack.c.bf16 %v309_v48, %v308_v47  ;;  %v310_v53 = vld [vmem:[%s3809_s1 + $0x180] sm:$0xff]  ;;  %v311_v54 = vld [vmem:[%s3809_s1 + $0x188] sm:$0xff]  ;;  %v1923_v55 = vpack.c.bf16 %v279_v52, %v278_v51  ;;  %v280_v57 = vld [vmem:[%s3809_s1 + $0x90] sm:$0xff] }
   0xe   :  { %1955 = vmatprep.subr.bf16.mxu0 %v2188_v0  ;;  %v2371_v56 = vpack.c.bf16 %v311_v54, %v310_v53  ;;  %v281_v58 = vld [vmem:[%s3809_s1 + $0x98] sm:$0xff]  ;;  %v312_v59 = vld [vmem:[%s3809_s1 + $0x190] sm:$0xff]  ;;  %v282_v63 = vld [vmem:[%s3809_s1 + $0xa0] sm:$0xff] }
   0xf   :  { %v313_v60 = vld [vmem:[%s3809_s1 + $0x198] sm:$0xff]  ;;  %v1926_v61 = vpack.c.bf16 %v281_v58, %v280_v57  ;;  %v283_v1 = vld [vmem:[%s3809_s1 + $0xa8] sm:$0xff]  ;;  %v314_v2 = vld [vmem:[%s3809_s1 + $0x1a0] sm:$0xff] }
  0x10   :  { %1909 = vmatpush1.bf16.msra.mxu1 %v1908_v23  ;;  %v2388_v62 = vpack.c.bf16 %v313_v60, %v312_v59  ;;  %v315_v3 = vld [vmem:[%s3809_s1 + $0x1a8] sm:$0xff]  ;;  %v1929_v4 = vpack.c.bf16 %v283_v1, %v282_v63  ;;  %v284_v6 = vld [vmem:[%s3809_s1 + $0xb0] sm:$0xff]  ;;  %v285_v7 = vld [vmem:[%s3809_s1 + $0xb8] sm:$0xff] }
  0x11   :  { %1957 = vmatpush1.bf16.msra.mxu0 %v2280_v24  ;;  %1910 = vmatprep.subr.bf16.mxu1 %v2188_v0  ;;  %v2405_v5 = vpack.c.bf16 %v315_v3, %v314_v2  ;;  %v316_v9 = vld [vmem:[%s3809_s1 + $0x1b0] sm:$0xff]  ;;  %v317_v10 = vld [vmem:[%s3809_s1 + $0x1b8] sm:$0xff]  ;;  %v1932_v11 = vpack.c.bf16 %v285_v7, %v284_v6  ;;  %v286_v14 = vld [vmem:[%s3809_s1 + $0xc0] sm:$0xff] }
  0x12   :  { %1958 = vmatprep.subr.bf16.mxu0 %v2188_v0  ;;  %v2422_v13 = vpack.c.bf16 %v317_v10, %v316_v9  ;;  %v287_v15 = vld [vmem:[%s3809_s1 + $0xc8] sm:$0xff]  ;;  %v318_v16 = vld [vmem:[%s3809_s1 + $0x1c0] sm:$0xff]  ;;  %v288_v21 = vld [vmem:[%s3809_s1 + $0xd0] sm:$0xff] }
  0x13   :  { %v319_v17 = vld [vmem:[%s3809_s1 + $0x1c8] sm:$0xff]  ;;  %v1935_v19 = vpack.c.bf16 %v287_v15, %v286_v14  ;;  %v289_v22 = vld [vmem:[%s3809_s1 + $0xd8] sm:$0xff]  ;;  %v320_v23 = vld [vmem:[%s3809_s1 + $0x1d0] sm:$0xff] }
  0x14   :  { %1912 = vmatpush1.bf16.msra.mxu1 %v1911_v29  ;;  %v2439_v20 = vpack.c.bf16 %v319_v17, %v318_v16  ;;  %v321_v25 = vld [vmem:[%s3809_s1 + $0x1d8] sm:$0xff]  ;;  %v1938_v26 = vpack.c.bf16 %v289_v22, %v288_v21  ;;  %v290_v28 = vld [vmem:[%s3809_s1 + $0xe0] sm:$0xff]  ;;  %v291_v29 = vld [vmem:[%s3809_s1 + $0xe8] sm:$0xff] }
  0x15   :  { %1960 = vmatpush1.bf16.msra.mxu0 %v2297_v30  ;;  %1913 = vmatprep.subr.bf16.mxu1 %v2188_v0  ;;  %v2456_v27 = vpack.c.bf16 %v321_v25, %v320_v23  ;;  %v322_v31 = vld [vmem:[%s3809_s1 + $0x1e0] sm:$0xff]  ;;  %v323_v32 = vld [vmem:[%s3809_s1 + $0x1e8] sm:$0xff]  ;;  %v1941_v33 = vpack.c.bf16 %v291_v29, %v290_v28  ;;  %v293_v37 = vld [vmem:[%s3809_s1 + $0xf8] sm:$0xff] }
  0x16   :  { %1961 = vmatprep.subr.bf16.mxu0 %v2188_v0  ;;  %v2473_v34 = vpack.c.bf16 %v323_v32, %v322_v31  ;;  %v324_v38 = vld [vmem:[%s3809_s1 + $0x1f0] sm:$0xff]  ;;  %v325_v39 = vld [vmem:[%s3809_s1 + $0x1f8] sm:$0xff]  ;;  %v326_v42 = vld [vmem:[%s3809_s1 + $0x200] sm:$0xff] }
  0x17   :  { %v2490_v41 = vpack.c.bf16 %v325_v39, %v324_v38  ;;  %v17_v45 = vld [vmem:[%s3810_s0] sm:$0xff]  ;;  %v19_v46 = vld [vmem:[%s3810_s0 + $0x10] sm:$0xff]  ;;  %v329_v52 = vld [vmem:[%s3809_s1 + $0x218] sm:$0xff] }
  0x18   :  { %1915 = vmatpush1.bf16.msra.mxu1 %v1914_v35  ;;  %v292_v35 = vld [vmem:[%s3809_s1 + $0xf0] sm:$0xff]  ;;  %v22_v53 = vld [vmem:[%s3810_s0 + $0x28] sm:$0xff]  ;;  %v24_v54 = vld [vmem:[%s3810_s0 + $0x38] sm:$0xff] }
  0x19   :  { %1963 = vmatpush1.bf16.msra.mxu0 %v2314_v36  ;;  %1916 = vmatprep.subr.bf16.mxu1 %v2188_v0  ;;  %v1944_v40 = vpack.c.bf16 %v293_v37, %v292_v35  ;;  %v23_v48 = vld [vmem:[%s3810_s0 + $0x30] sm:$0xff]  ;;  %v30_v58 = vld [vmem:[%s3810_s0 + $0x68] sm:$0xff]  ;;  %v330_v59 = vld [vmem:[%s3809_s1 + $0x220] sm:$0xff] }
  0x1a   :  { %1964 = vmatprep.subr.bf16.mxu0 %v2188_v0  ;;  %v328_v51 = vld [vmem:[%s3809_s1 + $0x210] sm:$0xff]  ;;  %v331_v60 = vld [vmem:[%s3809_s1 + $0x228] sm:$0xff]  ;;  %v33_v63 = vld [vmem:[%s3810_s0 + $0x80] sm:$0xff] }
  0x1b   :  { %v1998_v57 = vpack.c.bf16 %v329_v52, %v328_v51  ;;  %v2001_v1 = vpack.c.bf16 %v331_v60, %v330_v59  ;;  %v35_v2 = vld [vmem:[%s3810_s0 + $0x90] sm:$0xff]  ;;  %v32_v6 = vld [vmem:[%s3810_s0 + $0x78] sm:$0xff]  ;;  %v38_v7 = vld [vmem:[%s3810_s0 + $0xa8] sm:$0xff] }
  0x1c   :  { %1918 = vmatpush1.bf16.msra.mxu1 %v1917_v43  ;;  %v327_v43 = vld [vmem:[%s3809_s1 + $0x208] sm:$0xff]  ;;  %v332_v3 = vld [vmem:[%s3809_s1 + $0x230] sm:$0xff]  ;;  %v40_v10 = vld [vmem:[%s3810_s0 + $0xb8] sm:$0xff] }
  0x1d   :  { %1966 = vmatpush1.bf16.msra.mxu0 %v2337_v44  ;;  %1919 = vmatprep.subr.bf16.mxu1 %v2188_v0  ;;  %v1995_v47 = vpack.c.bf16 %v327_v43, %v326_v42  ;;  %v39_v14 = vld [vmem:[%s3810_s0 + $0xb0] sm:$0xff]  ;;  %v45_v15 = vld [vmem:[%s3810_s0 + $0xe0] sm:$0xff]  ;;  %v42_v16 = vld [vmem:[%s3810_s0 + $0xc8] sm:$0xff] }
  0x1e   :  { %1967 = vmatprep.subr.bf16.mxu0 %v2188_v0  ;;  %v44_v17 = vld [vmem:[%s3810_s0 + $0xd8] sm:$0xff]  ;;  %v47_v21 = vld [vmem:[%s3810_s0 + $0xf0] sm:$0xff]  ;;  %v49_v22 = vld [vmem:[%s3810_s0 + $0x100] sm:$0xff] }
  0x1f   :  { %v53_v23 = vld [vmem:[%s3810_s0 + $0x120] sm:$0xff]  ;;  %v52_v25 = vld [vmem:[%s3810_s0 + $0x118] sm:$0xff]  ;;  %v58_v28 = vld [vmem:[%s3810_s0 + $0x148] sm:$0xff] }
  0x20   :  { %1921 = vmatpush1.bf16.msra.mxu1 %v1920_v49  ;;  %v25_v49 = vld [vmem:[%s3810_s0 + $0x40] sm:$0xff]  ;;  %v59_v31 = vld [vmem:[%s3810_s0 + $0x150] sm:$0xff]  ;;  %v64_v35 = vld [vmem:[%s3810_s0 + $0x178] sm:$0xff] }
  0x21   :  { %1969 = vmatpush1.bf16.msra.mxu0 %v2354_v50  ;;  %1922 = vmatprep.subr.bf16.mxu1 %v2188_v0  ;;  %v57_v29 = vld [vmem:[%s3810_s0 + $0x140] sm:$0xff]  ;;  %v63_v32 = vld [vmem:[%s3810_s0 + $0x170] sm:$0xff]  ;;  %v68_v37 = vld [vmem:[%s3810_s0 + $0x198] sm:$0xff] }
  0x22   :  { %1970 = vmatprep.subr.bf16.mxu0 %v2188_v0  ;;  %v67_v38 = vld [vmem:[%s3810_s0 + $0x190] sm:$0xff]  ;;  %v69_v39 = vld [vmem:[%s3810_s0 + $0x1a0] sm:$0xff]  ;;  %v72_v42 = vld [vmem:[%s3810_s0 + $0x1b8] sm:$0xff] }
  0x23   :  { %v74_v43 = vld [vmem:[%s3810_s0 + $0x1c8] sm:$0xff]  ;;  %v84_v51 = vld [vmem:[%s3810_s0 + $0x218] sm:$0xff]  ;;  %v97_v60 = vld [vmem:[%s3810_s0 + $0x280] sm:$0xff] }
  0x24   :  { %1924 = vmatpush1.bf16.msra.mxu1 %v1923_v55  ;;  %v28_v55 = vld [vmem:[%s3810_s0 + $0x58] sm:$0xff]  ;;  %v98_v59 = vld [vmem:[%s3810_s0 + $0x288] sm:$0xff] }
  0x25   :  { %1972 = vmatpush1.bf16.msra.mxu0 %v2371_v56  ;;  %1925 = vmatprep.subr.bf16.mxu1 %v2188_v0  ;;  %v88_v52 = vld [vmem:[%s3810_s0 + $0x238] sm:$0xff] }
  0x26   :  { %1973 = vmatprep.subr.bf16.mxu0 %v2188_v0 }
  0x28   :  { %1927 = vmatpush1.bf16.msra.mxu1 %v1926_v61  ;;  %v29_v61 = vld [vmem:[%s3810_s0 + $0x60] sm:$0xff] }
  0x29   :  { %1975 = vmatpush1.bf16.msra.mxu0 %v2388_v62  ;;  %1928 = vmatprep.subr.bf16.mxu1 %v2188_v0 }
  0x2a   :  { %1976 = vmatprep.subr.bf16.mxu0 %v2188_v0 }
  0x2c   :  { %1930 = vmatpush1.bf16.msra.mxu1 %v1929_v4  ;;  %v333_v4 = vld [vmem:[%s3809_s1 + $0x238] sm:$0xff] }
  0x2d   :  { %1978 = vmatpush1.bf16.msra.mxu0 %v2405_v5  ;;  %1931 = vmatprep.subr.bf16.mxu1 %v2188_v0  ;;  %v2004_v9 = vpack.c.bf16 %v333_v4, %v332_v3  ;;  %v109_v3 = vld [vmem:[%s3810_s0 + $0x2e0] sm:$0xff] }
  0x2e   :  { %1979 = vmatprep.subr.bf16.mxu0 %v2188_v0  ;;  %v113_v4 = vld [vmem:[%s3810_s0 + $0x300] sm:$0xff] }
  0x30   :  { %1933 = vmatpush1.bf16.msra.mxu1 %v1932_v11  ;;  %v37_v11 = vld [vmem:[%s3810_s0 + $0xa0] sm:$0xff] }
  0x31   :  { %1981 = vmatpush1.bf16.msra.mxu0 %v2422_v13  ;;  %1934 = vmatprep.subr.bf16.mxu1 %v2188_v0 }
  0x32   :  { %1982 = vmatprep.subr.bf16.mxu0 %v2188_v0 }
  0x34   :  { %1936 = vmatpush1.bf16.msra.mxu1 %v1935_v19  ;;  %v48_v19 = vld [vmem:[%s3810_s0 + $0xf8] sm:$0xff] }
  0x35   :  { %1984 = vmatpush1.bf16.msra.mxu0 %v2439_v20  ;;  %1937 = vmatprep.subr.bf16.mxu1 %v2188_v0 }
  0x36   :  { %1985 = vmatprep.subr.bf16.mxu0 %v2188_v0 }
  0x38   :  { %1939 = vmatpush1.bf16.msra.mxu1 %v1938_v26  ;;  %v54_v26 = vld [vmem:[%s3810_s0 + $0x128] sm:$0xff] }
  0x39   :  { %1987 = vmatpush1.bf16.msra.mxu0 %v2456_v27  ;;  %1940 = vmatprep.subr.bf16.mxu1 %v2188_v0 }
  0x3a   :  { %1988 = vmatprep.subr.bf16.mxu0 %v2188_v0 }
  0x3c   :  { %1942 = vmatpush1.bf16.msra.mxu1 %v1941_v33  ;;  %v62_v33 = vld [vmem:[%s3810_s0 + $0x168] sm:$0xff] }
  0x3d   :  { %1990 = vmatpush1.bf16.msra.mxu0 %v2473_v34  ;;  %1943 = vmatprep.subr.bf16.mxu1 %v2188_v0 }
  0x3e   :  { %1991 = vmatprep.subr.bf16.mxu0 %v2188_v0 }
  0x40   :  { %1945 = vmatpush1.bf16.msra.mxu1 %v1944_v40  ;;  %v73_v40 = vld [vmem:[%s3810_s0 + $0x1c0] sm:$0xff] }
  0x41   :  { %1993 = vmatpush1.bf16.msra.mxu0 %v2490_v41  ;;  %2006 = vmatprep.subr.bf16.mxu1 %v2188_v0 }
  0x42   :  { %1994 = vmatprep.subr.bf16.mxu0 %v2188_v0 }
  0x43   :  { %547 = vmatmul.mubr.f32.vlgmr.msra.gmra.mrb[0].mxu1 %v17_v45  ;;  %v78_v45 = vld [vmem:[%s3810_s0 + $0x1e8] sm:$0xff] }
  0x44   :  { %857 = vmatmul.mubr.f32.vlgmr.msra.gmra.mrb[0].mxu0 %v19_v46  ;;  %551 = vmatprep.mubr.f32.mxu1 %v23_v48  ;;  %v77_v46 = vld [vmem:[%s3810_s0 + $0x1e0] sm:$0xff]  ;;  %v83_v48 = vld [vmem:[%s3810_s0 + $0x210] sm:$0xff] }
  0x45   :  { %1996 = vmatpush3.bf16.msra.mxu0 %v1995_v47  ;;  %861 = vmatprep.mubr.f32.mxu0 %v25_v49  ;;  %v79_v47 = vld [vmem:[%s3810_s0 + $0x1f0] sm:$0xff]  ;;  %v82_v49 = vld [vmem:[%s3810_s0 + $0x208] sm:$0xff] }
  0x46   :  { %2022 = vmatpush1.bf16.msra.mxu1 %v2236_v8  ;;  %1997 = vmatprep.subr.bf16.mxu0 %v2188_v0  ;;  %v27_v8 = vld [vmem:[%s3810_s0 + $0x50] sm:$0xff] }
  0x47   :  { %552 = vmatmul.mubr.f32.gmra.mrb[2].mxu1 %v22_v53  ;;  %2007 = vmatprep.subr.bf16.mxu1 %v2188_v0  ;;  %v87_v53 = vld [vmem:[%s3810_s0 + $0x230] sm:$0xff] }
  0x48   :  { %862 = vmatmul.mubr.f32.gmra.mrb[2].mxu0 %v24_v54  ;;  %556 = vmatprep.mubr.f32.mxu1 %v28_v55  ;;  %v89_v54 = vld [vmem:[%s3810_s0 + $0x240] sm:$0xff] }
  0x49   :  { %866 = vmatprep.mubr.f32.mxu0 %v30_v58  ;;  %1999 = vmatpush3.bf16.msra.mxu0 %v1998_v57  ;;  %v93_v55 = vld [vmem:[%s3810_s0 + $0x260] sm:$0xff]  ;;  %v92_v57 = vld [vmem:[%s3810_s0 + $0x258] sm:$0xff]  ;;  %v94_v58 = vld [vmem:[%s3810_s0 + $0x268] sm:$0xff] }
  0x4a   :  { %2023 = vmatpush1.bf16.msra.mxu1 %v2246_v12  ;;  %2000 = vmatprep.subr.bf16.mxu0 %v2188_v0  ;;  %v34_v12 = vld [vmem:[%s3810_s0 + $0x88] sm:$0xff] }
  0x4b   :  { %557 = vmatmul.mubr.f32.gmra.mrb[4].mxu1 %v27_v8  ;;  %2008 = vmatprep.subr.bf16.mxu1 %v2188_v0  ;;  %v99_v8 = vld [vmem:[%s3810_s0 + $0x290] sm:$0xff] }
  0x4c   :  { %867 = vmatmul.mubr.f32.gmra.mrb[4].mxu0 %v29_v61  ;;  %561 = vmatprep.mubr.f32.mxu1 %v33_v63  ;;  %v103_v61 = vld [vmem:[%s3810_s0 + $0x2b0] sm:$0xff]  ;;  %v104_v63 = vld [vmem:[%s3810_s0 + $0x2b8] sm:$0xff] }
  0x4d   :  { %871 = vmatprep.mubr.f32.mxu0 %v35_v2  ;;  %2002 = vmatpush3.bf16.msra.mxu0 %v2001_v1  ;;  %v108_v1 = vld [vmem:[%s3810_s0 + $0x2d8] sm:$0xff]  ;;  %v107_v2 = vld [vmem:[%s3810_s0 + $0x2d0] sm:$0xff] }
  0x4e   :  { %2024 = vmatpush1.bf16.msra.mxu1 %v2263_v18  ;;  %2003 = vmatprep.subr.bf16.mxu0 %v2188_v0  ;;  %v43_v18 = vld [vmem:[%s3810_s0 + $0xd0] sm:$0xff] }
  0x4f   :  { %562 = vmatmul.mubr.f32.gmra.mrb[6].mxu1 %v32_v6  ;;  %2009 = vmatprep.subr.bf16.mxu1 %v2188_v0  ;;  %v115_v6 = vld [vmem:[%s3810_s0 + $0x310] sm:$0xff] }
  0x50   :  { %872 = vmatmul.mubr.f32.gmra.mrb[6].mxu0 %v34_v12  ;;  %566 = vmatprep.mubr.f32.mxu1 %v38_v7  ;;  %v112_v12 = vld [vmem:[%s3810_s0 + $0x2f8] sm:$0xff]  ;;  %v114_v7 = vld [vmem:[%s3810_s0 + $0x308] sm:$0xff] }
  0x51   :  { %876 = vmatprep.mubr.f32.mxu0 %v40_v10  ;;  %2005 = vmatpush3.bf16.msra.mxu0 %v2004_v9  ;;  %v118_v9 = vld [vmem:[%s3810_s0 + $0x328] sm:$0xff]  ;;  %v120_v10 = vld [vmem:[%s3810_s0 + $0x338] sm:$0xff] }
  0x52   :  { %2025 = vmatpush1.bf16.msra.mxu1 %v2280_v24  ;;  %v50_v24 = vld [vmem:[%s3810_s0 + $0x108] sm:$0xff] }
  0x53   :  { %567 = vmatmul.mubr.f32.gmra.mrb[8].mxu1 %v37_v11  ;;  %2010 = vmatprep.subr.bf16.mxu1 %v2188_v0  ;;  %v117_v11 = vld [vmem:[%s3810_s0 + $0x320] sm:$0xff] }
  0x54   :  { %877 = vmatmul.mubr.f32.gmra.mrb[8].mxu0 %v39_v14  ;;  %571 = vmatprep.mubr.f32.mxu1 %v43_v18  ;;  %v119_v14 = vld [vmem:[%s3810_s0 + $0x330] sm:$0xff] }
  0x55   :  { %881 = vmatprep.mubr.f32.mxu0 %v45_v15  ;;  %v123_v18 = vld [vmem:[%s3810_s0 + $0x350] sm:$0xff]  ;;  %v125_v15 = vld [vmem:[%s3810_s0 + $0x360] sm:$0xff] }
  0x56   :  { %2026 = vmatpush1.bf16.msra.mxu1 %v2297_v30  ;;  %v55_v30 = vld [vmem:[%s3810_s0 + $0x130] sm:$0xff] }
  0x57   :  { %572 = vmatmul.mubr.f32.gmra.mrb[10].mxu1 %v42_v16  ;;  %2011 = vmatprep.subr.bf16.mxu1 %v2188_v0  ;;  %v122_v16 = vld [vmem:[%s3810_s0 + $0x348] sm:$0xff] }
  0x58   :  { %882 = vmatmul.mubr.f32.gmra.mrb[10].mxu0 %v44_v17  ;;  %576 = vmatprep.mubr.f32.mxu1 %v48_v19  ;;  %v124_v17 = vld [vmem:[%s3810_s0 + $0x358] sm:$0xff] }
  0x59   :  { %886 = vmatprep.mubr.f32.mxu0 %v50_v24  ;;  %v128_v19 = vld [vmem:[%s3810_s0 + $0x378] sm:$0xff]  ;;  %v130_v24 = vld [vmem:[%s3810_s0 + $0x388] sm:$0xff] }
  0x5a   :  { %2027 = vmatpush1.bf16.msra.mxu1 %v2314_v36  ;;  %v60_v36 = vld [vmem:[%s3810_s0 + $0x158] sm:$0xff] }
  0x5b   :  { %577 = vmatmul.mubr.f32.gmra.mrb[12].mxu1 %v47_v21  ;;  %2012 = vmatprep.subr.bf16.mxu1 %v2188_v0  ;;  %v127_v21 = vld [vmem:[%s3810_s0 + $0x370] sm:$0xff] }
  0x5c   :  { %887 = vmatmul.mubr.f32.gmra.mrb[12].mxu0 %v49_v22  ;;  %581 = vmatprep.mubr.f32.mxu1 %v53_v23  ;;  %v129_v22 = vld [vmem:[%s3810_s0 + $0x380] sm:$0xff] }
  0x5d   :  { %891 = vmatprep.mubr.f32.mxu0 %v55_v30  ;;  %v133_v23 = vld [vmem:[%s3810_s0 + $0x3a0] sm:$0xff]  ;;  %v135_v30 = vld [vmem:[%s3810_s0 + $0x3b0] sm:$0xff] }
  0x5e   :  { %2028 = vmatpush1.bf16.msra.mxu1 %v2337_v44  ;;  %v65_v44 = vld [vmem:[%s3810_s0 + $0x180] sm:$0xff] }
  0x5f   :  { %582 = vmatmul.mubr.f32.gmra.mrb[14].mxu1 %v52_v25  ;;  %2013 = vmatprep.subr.bf16.mxu1 %v2188_v0  ;;  %v132_v25 = vld [vmem:[%s3810_s0 + $0x398] sm:$0xff] }
  0x60   :  { %892 = vmatmul.mubr.f32.gmra.mrb[14].mxu0 %v54_v26  ;;  %586 = vmatprep.mubr.f32.mxu1 %v58_v28  ;;  %v134_v26 = vld [vmem:[%s3810_s0 + $0x3a8] sm:$0xff] }
  0x61   :  { %896 = vmatprep.mubr.f32.mxu0 %v60_v36  ;;  %v138_v28 = vld [vmem:[%s3810_s0 + $0x3c8] sm:$0xff]  ;;  %v140_v36 = vld [vmem:[%s3810_s0 + $0x3d8] sm:$0xff] }
  0x62   :  { %2029 = vmatpush1.bf16.msra.mxu1 %v2354_v50  ;;  %v70_v50 = vld [vmem:[%s3810_s0 + $0x1a8] sm:$0xff] }
  0x63   :  { %587 = vmatmul.mubr.f32.gmra.mrb[16].mxu1 %v57_v29  ;;  %2014 = vmatprep.subr.bf16.mxu1 %v2188_v0  ;;  %v137_v29 = vld [vmem:[%s3810_s0 + $0x3c0] sm:$0xff] }
  0x64   :  { %897 = vmatmul.mubr.f32.gmra.mrb[16].mxu0 %v59_v31  ;;  %591 = vmatprep.mubr.f32.mxu1 %v63_v32  ;;  %v139_v31 = vld [vmem:[%s3810_s0 + $0x3d0] sm:$0xff] }
  0x65   :  { %901 = vmatprep.mubr.f32.mxu0 %v65_v44  ;;  %v143_v32 = vld [vmem:[%s3810_s0 + $0x3f0] sm:$0xff]  ;;  %v142_v44 = vld [vmem:[%s3810_s0 + $0x3e8] sm:$0xff] }
  0x66   :  { %2030 = vmatpush1.bf16.msra.mxu1 %v2371_v56  ;;  %v75_v56 = vld [vmem:[%s3810_s0 + $0x1d0] sm:$0xff] }
  0x67   :  { %592 = vmatmul.mubr.f32.gmra.mrb[18].mxu1 %v62_v33  ;;  %2015 = vmatprep.subr.bf16.mxu1 %v2188_v0  ;;  %v2190_v33 = vmov 0.0  }
  0x68   :  { %902 = vmatmul.mubr.f32.gmra.mrb[18].mxu0 %v64_v35  ;;  %596 = vmatprep.mubr.f32.mxu1 %v68_v37  ;;  %v21_v35 = vld [vmem:[%s3810_s0 + $0x20] sm:$0xff]  ;;  %v148_v37 = vld [vmem:[%s3810_s0 + $0x418] sm:$0xff] }
  0x69   :  { %906 = vmatprep.mubr.f32.mxu0 %v70_v50  ;;  %v147_v50 = vld [vmem:[%s3810_s0 + $0x410] sm:$0xff] }
  0x6a   :  { %2031 = vmatpush1.bf16.msra.mxu1 %v2388_v62  ;;  %v80_v62 = vld [vmem:[%s3810_s0 + $0x1f8] sm:$0xff] }
  0x6b   :  { %597 = vmatmul.mubr.f32.gmra.mrb[20].mxu1 %v67_v38  ;;  %2016 = vmatprep.subr.bf16.mxu1 %v2188_v0  ;;  %v26_v38 = vld [vmem:[%s3810_s0 + $0x48] sm:$0xff] }
  0x6c   :  { %907 = vmatmul.mubr.f32.gmra.mrb[20].mxu0 %v69_v39  ;;  %601 = vmatprep.mubr.f32.mxu1 %v73_v40  ;;  %v153_v39 = vld [vmem:[%s3810_s0 + $0x440] sm:$0xff]  ;;  %v152_v40 = vld [vmem:[%s3810_s0 + $0x438] sm:$0xff] }
  0x6d   :  { %911 = vmatprep.mubr.f32.mxu0 %v75_v56  ;;  %v31_v56 = vld [vmem:[%s3810_s0 + $0x70] sm:$0xff] }
  0x6e   :  { %2032 = vmatpush1.bf16.msra.mxu1 %v2405_v5  ;;  %v85_v5 = vld [vmem:[%s3810_s0 + $0x220] sm:$0xff] }
  0x6f   :  { %602 = vmatmul.mubr.f32.gmra.mrb[22].mxu1 %v72_v42  ;;  %2017 = vmatprep.subr.bf16.mxu1 %v2188_v0  ;;  %v158_v42 = vld [vmem:[%s3810_s0 + $0x468] sm:$0xff] }
  0x70   :  { %912 = vmatmul.mubr.f32.gmra.mrb[22].mxu0 %v74_v43  ;;  %606 = vmatprep.mubr.f32.mxu1 %v78_v45  ;;  %v157_v43 = vld [vmem:[%s3810_s0 + $0x460] sm:$0xff]  ;;  %v36_v45 = vld [vmem:[%s3810_s0 + $0x98] sm:$0xff] }
  0x71   :  { %916 = vmatprep.mubr.f32.mxu0 %v80_v62  ;;  %v163_v62 = vld [vmem:[%s3810_s0 + $0x490] sm:$0xff] }
  0x72   :  { %2033 = vmatpush1.bf16.msra.mxu1 %v2422_v13  ;;  %v90_v13 = vld [vmem:[%s3810_s0 + $0x248] sm:$0xff] }
  0x73   :  { %607 = vmatmul.mubr.f32.gmra.mrb[24].mxu1 %v77_v46  ;;  %2018 = vmatprep.subr.bf16.mxu1 %v2188_v0  ;;  %v162_v46 = vld [vmem:[%s3810_s0 + $0x488] sm:$0xff] }
  0x74   :  { %917 = vmatmul.mubr.f32.gmra.mrb[24].mxu0 %v79_v47  ;;  %611 = vmatprep.mubr.f32.mxu1 %v83_v48  ;;  %v41_v47 = vld [vmem:[%s3810_s0 + $0xc0] sm:$0xff]  ;;  %v168_v48 = vld [vmem:[%s3810_s0 + $0x4b8] sm:$0xff] }
  0x75   :  { %921 = vmatprep.mubr.f32.mxu0 %v85_v5  ;;  %v167_v5 = vld [vmem:[%s3810_s0 + $0x4b0] sm:$0xff] }
  0x76   :  { %2034 = vmatpush1.bf16.msra.mxu1 %v2439_v20  ;;  %v95_v20 = vld [vmem:[%s3810_s0 + $0x270] sm:$0xff] }
  0x77   :  { %612 = vmatmul.mubr.f32.gmra.mrb[26].mxu1 %v82_v49  ;;  %2019 = vmatprep.subr.bf16.mxu1 %v2188_v0  ;;  %v46_v49 = vld [vmem:[%s3810_s0 + $0xe8] sm:$0xff] }
  0x78   :  { %922 = vmatmul.mubr.f32.gmra.mrb[26].mxu0 %v84_v51  ;;  %616 = vmatprep.mubr.f32.mxu1 %v88_v52  ;;  %v173_v51 = vld [vmem:[%s3810_s0 + $0x4e0] sm:$0xff]  ;;  %v172_v52 = vld [vmem:[%s3810_s0 + $0x4d8] sm:$0xff] }
  0x79   :  { %926 = vmatprep.mubr.f32.mxu0 %v90_v13  ;;  %v51_v13 = vld [vmem:[%s3810_s0 + $0x110] sm:$0xff] }
  0x7a   :  { %2035 = vmatpush1.bf16.msra.mxu1 %v2456_v27  ;;  %v100_v27 = vld [vmem:[%s3810_s0 + $0x298] sm:$0xff] }
  0x7b   :  { %617 = vmatmul.mubr.f32.gmra.mrb[28].mxu1 %v87_v53  ;;  %2020 = vmatprep.subr.bf16.mxu1 %v2188_v0  ;;  %v178_v53 = vld [vmem:[%s3810_s0 + $0x508] sm:$0xff] }
  0x7c   :  { %927 = vmatmul.mubr.f32.gmra.mrb[28].mxu0 %v89_v54  ;;  %621 = vmatprep.mubr.f32.mxu1 %v93_v55  ;;  %v177_v54 = vld [vmem:[%s3810_s0 + $0x500] sm:$0xff]  ;;  %v56_v55 = vld [vmem:[%s3810_s0 + $0x138] sm:$0xff] }
  0x7d   :  { %931 = vmatprep.mubr.f32.mxu0 %v95_v20  ;;  %v183_v20 = vld [vmem:[%s3810_s0 + $0x530] sm:$0xff] }
  0x7e   :  { %2036 = vmatpush1.bf16.msra.mxu1 %v2473_v34  ;;  %v105_v34 = vld [vmem:[%s3810_s0 + $0x2c0] sm:$0xff] }
  0x7f   :  { %622 = vmatmul.mubr.f32.gmra.mrb[30].mxu1 %v92_v57  ;;  %2021 = vmatprep.subr.bf16.mxu1 %v2188_v0  ;;  %v102_v0 = vld [vmem:[%s3810_s0 + $0x2a8] sm:$0xff] }
  0x80   :  { %932 = vmatmul.mubr.f32.gmra.mrb[30].mxu0 %v94_v58  ;;  %626 = vmatprep.mubr.f32.mxu1 %v98_v59  ;;  %v182_v57 = vld [vmem:[%s3810_s0 + $0x528] sm:$0xff]  ;;  %v61_v58 = vld [vmem:[%s3810_s0 + $0x160] sm:$0xff]  ;;  %v188_v59 = vld [vmem:[%s3810_s0 + $0x558] sm:$0xff] }
  0x81   :  { %936 = vmatprep.mubr.f32.mxu0 %v100_v27  ;;  %v187_v27 = vld [vmem:[%s3810_s0 + $0x550] sm:$0xff] }
  0x82   :  { %2037 = vmatpush1.bf16.msra.mxu1 %v2490_v41  ;;  %v110_v41 = vld [vmem:[%s3810_s0 + $0x2e8] sm:$0xff] }
  0x83   :  { %627 = vmatmul.mubr.f32.gmra.mrb[32].mxu1 %v97_v60  ;;  %v66_v60 = vld [vmem:[%s3810_s0 + $0x188] sm:$0xff] }
  0x84   :  { %937 = vmatmul.mubr.f32.gmra.mrb[32].mxu0 %v99_v8  ;;  %631 = vmatprep.mubr.f32.mxu1 %v103_v61  ;;  %v193_v8 = vld [vmem:[%s3810_s0 + $0x580] sm:$0xff]  ;;  %v192_v61 = vld [vmem:[%s3810_s0 + $0x578] sm:$0xff] }
  0x85   :  { %941 = vmatprep.mubr.f32.mxu0 %v105_v34  ;;  %v71_v34 = vld [vmem:[%s3810_s0 + $0x1b0] sm:$0xff] }
  0x87   :  { %632 = vmatmul.mubr.f32.gmra.mrb[34].mxu1 %v102_v0  ;;  %v198_v0 = vld [vmem:[%s3810_s0 + $0x5a8] sm:$0xff] }
  0x88   :  { %942 = vmatmul.mubr.f32.gmra.mrb[34].mxu0 %v104_v63  ;;  %636 = vmatprep.mubr.f32.mxu1 %v108_v1  ;;  %v197_v63 = vld [vmem:[%s3810_s0 + $0x5a0] sm:$0xff]  ;;  %v76_v1 = vld [vmem:[%s3810_s0 + $0x1d8] sm:$0xff] }
  0x89   :  { %946 = vmatprep.mubr.f32.mxu0 %v110_v41  ;;  %v203_v41 = vld [vmem:[%s3810_s0 + $0x5d0] sm:$0xff] }
  0x8b   :  { %637 = vmatmul.mubr.f32.gmra.mrb[36].mxu1 %v107_v2  ;;  %v202_v2 = vld [vmem:[%s3810_s0 + $0x5c8] sm:$0xff] }
  0x8c   :  { %947 = vmatmul.mubr.f32.gmra.mrb[36].mxu0 %v109_v3  ;;  %641 = vmatprep.mubr.f32.mxu1 %v113_v4  ;;  %v81_v3 = vld [vmem:[%s3810_s0 + $0x200] sm:$0xff]  ;;  %v208_v4 = vld [vmem:[%s3810_s0 + $0x5f8] sm:$0xff] }
  0x8d   :  { %951 = vmatprep.mubr.f32.mxu0 %v115_v6  ;;  %v207_v6 = vld [vmem:[%s3810_s0 + $0x5f0] sm:$0xff] }
  0x8f   :  { %642 = vmatmul.mubr.f32.gmra.mrb[38].mxu1 %v112_v12  ;;  %v86_v12 = vld [vmem:[%s3810_s0 + $0x228] sm:$0xff] }
  0x90   :  { %952 = vmatmul.mubr.f32.gmra.mrb[38].mxu0 %v114_v7  ;;  %646 = vmatprep.mubr.f32.mxu1 %v118_v9  ;;  %v213_v7 = vld [vmem:[%s3810_s0 + $0x620] sm:$0xff]  ;;  %v212_v9 = vld [vmem:[%s3810_s0 + $0x618] sm:$0xff] }
  0x91   :  { %956 = vmatprep.mubr.f32.mxu0 %v120_v10  ;;  %v91_v10 = vld [vmem:[%s3810_s0 + $0x250] sm:$0xff] }
  0x93   :  { %647 = vmatmul.mubr.f32.gmra.mrb[40].mxu1 %v117_v11  ;;  %v218_v11 = vld [vmem:[%s3810_s0 + $0x648] sm:$0xff] }
  0x94   :  { %957 = vmatmul.mubr.f32.gmra.mrb[40].mxu0 %v119_v14  ;;  %651 = vmatprep.mubr.f32.mxu1 %v123_v18  ;;  %v217_v14 = vld [vmem:[%s3810_s0 + $0x640] sm:$0xff]  ;;  %v96_v18 = vld [vmem:[%s3810_s0 + $0x278] sm:$0xff] }
  0x95   :  { %961 = vmatprep.mubr.f32.mxu0 %v125_v15  ;;  %v223_v15 = vld [vmem:[%s3810_s0 + $0x670] sm:$0xff] }
  0x97   :  { %652 = vmatmul.mubr.f32.gmra.mrb[42].mxu1 %v122_v16  ;;  %v222_v16 = vld [vmem:[%s3810_s0 + $0x668] sm:$0xff] }
  0x98   :  { %962 = vmatmul.mubr.f32.gmra.mrb[42].mxu0 %v124_v17  ;;  %656 = vmatprep.mubr.f32.mxu1 %v128_v19  ;;  %v101_v17 = vld [vmem:[%s3810_s0 + $0x2a0] sm:$0xff]  ;;  %v228_v19 = vld [vmem:[%s3810_s0 + $0x698] sm:$0xff] }
  0x99   :  { %966 = vmatprep.mubr.f32.mxu0 %v130_v24  ;;  %v227_v24 = vld [vmem:[%s3810_s0 + $0x690] sm:$0xff] }
  0x9b   :  { %657 = vmatmul.mubr.f32.gmra.mrb[44].mxu1 %v127_v21  ;;  %v106_v21 = vld [vmem:[%s3810_s0 + $0x2c8] sm:$0xff] }
  0x9c   :  { %967 = vmatmul.mubr.f32.gmra.mrb[44].mxu0 %v129_v22  ;;  %661 = vmatprep.mubr.f32.mxu1 %v133_v23  ;;  %v233_v22 = vld [vmem:[%s3810_s0 + $0x6c0] sm:$0xff]  ;;  %v232_v23 = vld [vmem:[%s3810_s0 + $0x6b8] sm:$0xff] }
  0x9d   :  { %971 = vmatprep.mubr.f32.mxu0 %v135_v30  ;;  %v111_v30 = vld [vmem:[%s3810_s0 + $0x2f0] sm:$0xff] }
  0x9f   :  { %662 = vmatmul.mubr.f32.gmra.mrb[46].mxu1 %v132_v25  ;;  %v238_v25 = vld [vmem:[%s3810_s0 + $0x6e8] sm:$0xff] }
  0xa0   :  { %972 = vmatmul.mubr.f32.gmra.mrb[46].mxu0 %v134_v26  ;;  %666 = vmatprep.mubr.f32.mxu1 %v138_v28  ;;  %v237_v26 = vld [vmem:[%s3810_s0 + $0x6e0] sm:$0xff]  ;;  %v116_v28 = vld [vmem:[%s3810_s0 + $0x318] sm:$0xff] }
  0xa1   :  { %976 = vmatprep.mubr.f32.mxu0 %v140_v36  ;;  %v243_v36 = vld [vmem:[%s3810_s0 + $0x710] sm:$0xff] }
  0xa3   :  { %667 = vmatmul.mubr.f32.gmra.mrb[48].mxu1 %v137_v29  ;;  %v242_v29 = vld [vmem:[%s3810_s0 + $0x708] sm:$0xff] }
  0xa4   :  { %977 = vmatmul.mubr.f32.gmra.mrb[48].mxu0 %v139_v31  ;;  %671 = vmatprep.mubr.f32.mxu1 %v143_v32  ;;  %v121_v31 = vld [vmem:[%s3810_s0 + $0x340] sm:$0xff]  ;;  %v248_v32 = vld [vmem:[%s3810_s0 + $0x738] sm:$0xff] }
  0xa5   :  { %1751 = vmatprep.mubr.msk.f32.mxu0 %vm2189_vm0, %v2190_v33 }
  0xa7   :  { %672 = vmatmul.mubr.f32.gmra.mrb[50].mxu1 %v142_v44  ;;  %v247_v44 = vld [vmem:[%s3810_s0 + $0x730] sm:$0xff] }
  0xa8   :  { %1752 = vmatmul.mubr.msk.f32.vlgmr.msra.gmra.mrb[0].mxu0 %vm334_vm1, %v21_v35  ;;  %676 = vmatprep.mubr.f32.mxu1 %v148_v37  ;;  %v126_v35 = vld [vmem:[%s3810_s0 + $0x368] sm:$0xff]  ;;  %v253_v37 = vld [vmem:[%s3810_s0 + $0x760] sm:$0xff] }
  0xa9   :  { %1754 = vmatprep.mubr.msk.f32.mxu0 %vm2189_vm0, %v2190_v33 }
  0xab   :  { %677 = vmatmul.mubr.f32.gmra.mrb[52].mxu1 %v147_v50  ;;  %v252_v50 = vld [vmem:[%s3810_s0 + $0x758] sm:$0xff] }
  0xac   :  { %1755 = vmatmul.mubr.msk.f32.gmra.mrb[2].mxu0 %vm334_vm1, %v26_v38  ;;  %681 = vmatprep.mubr.f32.mxu1 %v153_v39  ;;  %v131_v38 = vld [vmem:[%s3810_s0 + $0x390] sm:$0xff]  ;;  %v258_v39 = vld [vmem:[%s3810_s0 + $0x788] sm:$0xff] }
  0xad   :  { %1757 = vmatprep.mubr.msk.f32.mxu0 %vm2189_vm0, %v2190_v33 }
  0xaf   :  { %682 = vmatmul.mubr.f32.gmra.mrb[54].mxu1 %v152_v40  ;;  %v257_v40 = vld [vmem:[%s3810_s0 + $0x780] sm:$0xff] }
  0xb0   :  { %1758 = vmatmul.mubr.msk.f32.gmra.mrb[4].mxu0 %vm334_vm1, %v31_v56  ;;  %686 = vmatprep.mubr.f32.mxu1 %v158_v42  ;;  %v136_v56 = vld [vmem:[%s3810_s0 + $0x3b8] sm:$0xff]  ;;  %v145_v42 = vld [vmem:[%s3810_s0 + $0x400] sm:$0xff] }
  0xb1   :  { %1760 = vmatprep.mubr.msk.f32.mxu0 %vm2189_vm0, %v2190_v33 }
  0xb3   :  { %687 = vmatmul.mubr.f32.gmra.mrb[56].mxu1 %v157_v43  ;;  %v144_v43 = vld [vmem:[%s3810_s0 + $0x3f8] sm:$0xff] }
  0xb4   :  { %1761 = vmatmul.mubr.msk.f32.gmra.mrb[6].mxu0 %vm334_vm1, %v36_v45  ;;  %691 = vmatprep.mubr.f32.mxu1 %v163_v62  ;;  %v141_v45 = vld [vmem:[%s3810_s0 + $0x3e0] sm:$0xff]  ;;  %v150_v62 = vld [vmem:[%s3810_s0 + $0x428] sm:$0xff] }
  0xb5   :  { %1763 = vmatprep.mubr.msk.f32.mxu0 %vm2189_vm0, %v2190_v33 }
  0xb7   :  { %692 = vmatmul.mubr.f32.gmra.mrb[58].mxu1 %v162_v46  ;;  %v149_v46 = vld [vmem:[%s3810_s0 + $0x420] sm:$0xff] }
  0xb8   :  { %1764 = vmatmul.mubr.msk.f32.gmra.mrb[8].mxu0 %vm334_vm1, %v41_v47  ;;  %696 = vmatprep.mubr.f32.mxu1 %v168_v48  ;;  %v146_v47 = vld [vmem:[%s3810_s0 + $0x408] sm:$0xff]  ;;  %v155_v48 = vld [vmem:[%s3810_s0 + $0x450] sm:$0xff] }
  0xb9   :  { %1766 = vmatprep.mubr.msk.f32.mxu0 %vm2189_vm0, %v2190_v33 }
  0xbb   :  { %697 = vmatmul.mubr.f32.gmra.mrb[60].mxu1 %v167_v5  ;;  %v154_v5 = vld [vmem:[%s3810_s0 + $0x448] sm:$0xff] }
  0xbc   :  { %1767 = vmatmul.mubr.msk.f32.gmra.mrb[10].mxu0 %vm334_vm1, %v46_v49  ;;  %701 = vmatprep.mubr.f32.mxu1 %v173_v51  ;;  %v151_v49 = vld [vmem:[%s3810_s0 + $0x430] sm:$0xff]  ;;  %v160_v51 = vld [vmem:[%s3810_s0 + $0x478] sm:$0xff] }
  0xbd   :  { %1769 = vmatprep.mubr.msk.f32.mxu0 %vm2189_vm0, %v2190_v33 }
  0xbf   :  { %702 = vmatmul.mubr.f32.gmra.mrb[62].mxu1 %v172_v52  ;;  %v159_v52 = vld [vmem:[%s3810_s0 + $0x470] sm:$0xff] }
  0xc0   :  { %1770 = vmatmul.mubr.msk.f32.gmra.mrb[12].mxu0 %vm334_vm1, %v51_v13  ;;  %706 = vmatprep.mubr.f32.mxu1 %v178_v53  ;;  %v156_v13 = vld [vmem:[%s3810_s0 + $0x458] sm:$0xff]  ;;  %v165_v53 = vld [vmem:[%s3810_s0 + $0x4a0] sm:$0xff] }
  0xc1   :  { %1772 = vmatprep.mubr.msk.f32.mxu0 %vm2189_vm0, %v2190_v33 }
  0xc3   :  { %707 = vmatmul.mubr.f32.gmra.mrb[64].mxu1 %v177_v54  ;;  %v164_v54 = vld [vmem:[%s3810_s0 + $0x498] sm:$0xff] }
  0xc4   :  { %1773 = vmatmul.mubr.msk.f32.gmra.mrb[14].mxu0 %vm334_vm1, %v56_v55  ;;  %711 = vmatprep.mubr.f32.mxu1 %v183_v20  ;;  %v161_v55 = vld [vmem:[%s3810_s0 + $0x480] sm:$0xff]  ;;  %v170_v20 = vld [vmem:[%s3810_s0 + $0x4c8] sm:$0xff] }
  0xc5   :  { %1775 = vmatprep.mubr.msk.f32.mxu0 %vm2189_vm0, %v2190_v33 }
  0xc7   :  { %712 = vmatmul.mubr.f32.gmra.mrb[66].mxu1 %v182_v57 }
  0xc8   :  { %1776 = vmatmul.mubr.msk.f32.gmra.mrb[16].mxu0 %vm334_vm1, %v61_v58  ;;  %716 = vmatprep.mubr.f32.mxu1 %v188_v59  ;;  %v169_v59 = vld [vmem:[%s3810_s0 + $0x4c0] sm:$0xff] }
  0xc9   :  { %1778 = vmatprep.mubr.msk.f32.mxu0 %vm2189_vm0, %v2190_v33 }
  0xcb   :  { %717 = vmatmul.mubr.f32.gmra.mrb[68].mxu1 %v187_v27  ;;  %v166_v27 = vld [vmem:[%s3810_s0 + $0x4a8] sm:$0xff] }
  0xcc   :  { %1779 = vmatmul.mubr.msk.f32.gmra.mrb[18].mxu0 %vm334_vm1, %v66_v60  ;;  %721 = vmatprep.mubr.f32.mxu1 %v193_v8  ;;  %v175_v60 = vld [vmem:[%s3810_s0 + $0x4f0] sm:$0xff] }
  0xcd   :  { %1781 = vmatprep.mubr.msk.f32.mxu0 %vm2189_vm0, %v2190_v33 }
  0xcf   :  { %722 = vmatmul.mubr.f32.gmra.mrb[70].mxu1 %v192_v61 }
  0xd0   :  { %1782 = vmatmul.mubr.msk.f32.gmra.mrb[20].mxu0 %vm334_vm1, %v71_v34  ;;  %726 = vmatprep.mubr.f32.mxu1 %v198_v0  ;;  %v174_v34 = vld [vmem:[%s3810_s0 + $0x4e8] sm:$0xff]  ;;  %v171_v0 = vld [vmem:[%s3810_s0 + $0x4d0] sm:$0xff] }
  0xd1   :  { %1784 = vmatprep.mubr.msk.f32.mxu0 %vm2189_vm0, %v2190_v33 }
  0xd3   :  { %727 = vmatmul.mubr.f32.gmra.mrb[72].mxu1 %v197_v63  ;;  %v180_v63 = vld [vmem:[%s3810_s0 + $0x518] sm:$0xff] }
  0xd4   :  { %1785 = vmatmul.mubr.msk.f32.gmra.mrb[22].mxu0 %vm334_vm1, %v76_v1  ;;  %731 = vmatprep.mubr.f32.mxu1 %v203_v41 }
  0xd5   :  { %1787 = vmatprep.mubr.msk.f32.mxu0 %vm2189_vm0, %v2190_v33 }
  0xd7   :  { %732 = vmatmul.mubr.f32.gmra.mrb[74].mxu1 %v202_v2  ;;  %v179_v2 = vld [vmem:[%s3810_s0 + $0x510] sm:$0xff] }
  0xd8   :  { %1788 = vmatmul.mubr.msk.f32.gmra.mrb[24].mxu0 %vm334_vm1, %v81_v3  ;;  %736 = vmatprep.mubr.f32.mxu1 %v208_v4  ;;  %v176_v3 = vld [vmem:[%s3810_s0 + $0x4f8] sm:$0xff]  ;;  %v185_v4 = vld [vmem:[%s3810_s0 + $0x540] sm:$0xff] }
  0xd9   :  { %1790 = vmatprep.mubr.msk.f32.mxu0 %vm2189_vm0, %v2190_v33 }
  0xdb   :  { %737 = vmatmul.mubr.f32.gmra.mrb[76].mxu1 %v207_v6 }
  0xdc   :  { %1791 = vmatmul.mubr.msk.f32.gmra.mrb[26].mxu0 %vm334_vm1, %v86_v12  ;;  %741 = vmatprep.mubr.f32.mxu1 %v213_v7  ;;  %v184_v7 = vld [vmem:[%s3810_s0 + $0x538] sm:$0xff] }
  0xdd   :  { %1793 = vmatprep.mubr.msk.f32.mxu0 %vm2189_vm0, %v2190_v33 }
  0xdf   :  { %742 = vmatmul.mubr.f32.gmra.mrb[78].mxu1 %v212_v9  ;;  %v181_v9 = vld [vmem:[%s3810_s0 + $0x520] sm:$0xff] }
  0xe0   :  { %1794 = vmatmul.mubr.msk.f32.gmra.mrb[28].mxu0 %vm334_vm1, %v91_v10  ;;  %746 = vmatprep.mubr.f32.mxu1 %v218_v11  ;;  %v190_v10 = vld [vmem:[%s3810_s0 + $0x568] sm:$0xff] }
  0xe1   :  { %1796 = vmatprep.mubr.msk.f32.mxu0 %vm2189_vm0, %v2190_v33 }
  0xe3   :  { %747 = vmatmul.mubr.f32.gmra.mrb[80].mxu1 %v217_v14 }
  0xe4   :  { %1797 = vmatmul.mubr.msk.f32.gmra.mrb[30].mxu0 %vm334_vm1, %v96_v18  ;;  %751 = vmatprep.mubr.f32.mxu1 %v223_v15  ;;  %v189_v18 = vld [vmem:[%s3810_s0 + $0x560] sm:$0xff]  ;;  %v186_v15 = vld [vmem:[%s3810_s0 + $0x548] sm:$0xff] }
  0xe5   :  { %1799 = vmatprep.mubr.msk.f32.mxu0 %vm2189_vm0, %v2190_v33 }
  0xe7   :  { %752 = vmatmul.mubr.f32.gmra.mrb[82].mxu1 %v222_v16  ;;  %v195_v16 = vld [vmem:[%s3810_s0 + $0x590] sm:$0xff] }
  0xe8   :  { %1800 = vmatmul.mubr.msk.f32.gmra.mrb[32].mxu0 %vm334_vm1, %v101_v17  ;;  %756 = vmatprep.mubr.f32.mxu1 %v228_v19 }
  0xe9   :  { %1802 = vmatprep.mubr.msk.f32.mxu0 %vm2189_vm0, %v2190_v33 }
  0xeb   :  { %757 = vmatmul.mubr.f32.gmra.mrb[84].mxu1 %v227_v24  ;;  %v194_v24 = vld [vmem:[%s3810_s0 + $0x588] sm:$0xff] }
  0xec   :  { %1803 = vmatmul.mubr.msk.f32.gmra.mrb[34].mxu0 %vm334_vm1, %v106_v21  ;;  %761 = vmatprep.mubr.f32.mxu1 %v233_v22  ;;  %v191_v21 = vld [vmem:[%s3810_s0 + $0x570] sm:$0xff]  ;;  %v200_v22 = vld [vmem:[%s3810_s0 + $0x5b8] sm:$0xff] }
  0xed   :  { %1805 = vmatprep.mubr.msk.f32.mxu0 %vm2189_vm0, %v2190_v33 }
  0xef   :  { %762 = vmatmul.mubr.f32.gmra.mrb[86].mxu1 %v232_v23 }
  0xf0   :  { %1806 = vmatmul.mubr.msk.f32.gmra.mrb[36].mxu0 %vm334_vm1, %v111_v30  ;;  %766 = vmatprep.mubr.f32.mxu1 %v238_v25  ;;  %v199_v25 = vld [vmem:[%s3810_s0 + $0x5b0] sm:$0xff] }
  0xf1   :  { %1808 = vmatprep.mubr.msk.f32.mxu0 %vm2189_vm0, %v2190_v33 }
  0xf3   :  { %767 = vmatmul.mubr.f32.gmra.mrb[88].mxu1 %v237_v26  ;;  %v196_v26 = vld [vmem:[%s3810_s0 + $0x598] sm:$0xff] }
  0xf4   :  { %1809 = vmatmul.mubr.msk.f32.gmra.mrb[38].mxu0 %vm334_vm1, %v116_v28  ;;  %771 = vmatprep.mubr.f32.mxu1 %v243_v36  ;;  %v205_v28 = vld [vmem:[%s3810_s0 + $0x5e0] sm:$0xff] }
  0xf5   :  { %1811 = vmatprep.mubr.msk.f32.mxu0 %vm2189_vm0, %v2190_v33 }
  0xf7   :  { %772 = vmatmul.mubr.f32.gmra.mrb[90].mxu1 %v242_v29 }
  0xf8   :  { %1812 = vmatmul.mubr.msk.f32.gmra.mrb[40].mxu0 %vm334_vm1, %v121_v31  ;;  %776 = vmatprep.mubr.f32.mxu1 %v248_v32  ;;  %v204_v31 = vld [vmem:[%s3810_s0 + $0x5d8] sm:$0xff]  ;;  %v201_v32 = vld [vmem:[%s3810_s0 + $0x5c0] sm:$0xff] }
  0xf9   :  { %1814 = vmatprep.mubr.msk.f32.mxu0 %vm2189_vm0, %v2190_v33 }
  0xfb   :  { %777 = vmatmul.mubr.f32.gmra.mrb[92].mxu1 %v247_v44  ;;  %v210_v44 = vld [vmem:[%s3810_s0 + $0x608] sm:$0xff] }
  0xfc   :  { %1815 = vmatmul.mubr.msk.f32.gmra.mrb[42].mxu0 %vm334_vm1, %v126_v35  ;;  %781 = vmatprep.mubr.f32.mxu1 %v253_v37 }
  0xfd   :  { %1817 = vmatprep.mubr.msk.f32.mxu0 %vm2189_vm0, %v2190_v33 }
  0xff   :  { %782 = vmatmul.mubr.f32.gmra.mrb[94].mxu1 %v252_v50  ;;  %v209_v50 = vld [vmem:[%s3810_s0 + $0x600] sm:$0xff] }
 0x100   :  { %1818 = vmatmul.mubr.msk.f32.gmra.mrb[44].mxu0 %vm334_vm1, %v131_v38  ;;  %786 = vmatprep.mubr.f32.mxu1 %v258_v39  ;;  %v206_v38 = vld [vmem:[%s3810_s0 + $0x5e8] sm:$0xff]  ;;  %v215_v39 = vld [vmem:[%s3810_s0 + $0x630] sm:$0xff] }
 0x101   :  { %1820 = vmatprep.mubr.msk.f32.mxu0 %vm2189_vm0, %v2190_v33 }
 0x103   :  { %787 = vmatmul.mubr.f32.gmra.mrb[96].mxu1 %v257_v40 }
 0x104   :  { %1821 = vmatmul.mubr.msk.f32.gmra.mrb[46].mxu0 %vm334_vm1, %v136_v56  ;;  %981 = vmatprep.mubr.f32.mxu1 %v145_v42  ;;  %v214_v42 = vld [vmem:[%s3810_s0 + $0x628] sm:$0xff] }
 0x105   :  { %1823 = vmatprep.mubr.msk.f32.mxu0 %vm2189_vm0, %v2190_v33 }
 0x107   :  { %982 = vmatmul.mubr.f32.vlgmr.msra.gmra.mrb[50].mxu1 %v144_v43  ;;  %v211_v43 = vld [vmem:[%s3810_s0 + $0x610] sm:$0xff] }
 0x108   :  { %1824 = vmatmul.mubr.msk.f32.gmra.mrb[48].mxu0 %vm334_vm1, %v141_v45  ;;  %986 = vmatprep.mubr.f32.mxu1 %v150_v62  ;;  %v220_v45 = vld [vmem:[%s3810_s0 + $0x658] sm:$0xff] }
 0x109   :  { %1826 = vmatprep.mubr.msk.f32.mxu0 %vm2189_vm0, %v2190_v33 }
 0x10b   :  { %987 = vmatmul.mubr.f32.gmra.mrb[52].mxu1 %v149_v46 }
 0x10c   :  { %1827 = vmatmul.mubr.msk.f32.gmra.mrb[50].mxu0 %vm334_vm1, %v146_v47  ;;  %991 = vmatprep.mubr.f32.mxu1 %v155_v48  ;;  %v219_v47 = vld [vmem:[%s3810_s0 + $0x650] sm:$0xff]  ;;  %v216_v48 = vld [vmem:[%s3810_s0 + $0x638] sm:$0xff] }
 0x10d   :  { %1829 = vmatprep.mubr.msk.f32.mxu0 %vm2189_vm0, %v2190_v33 }
 0x10f   :  { %992 = vmatmul.mubr.f32.gmra.mrb[54].mxu1 %v154_v5  ;;  %v225_v5 = vld [vmem:[%s3810_s0 + $0x680] sm:$0xff] }
 0x110   :  { %1830 = vmatmul.mubr.msk.f32.gmra.mrb[52].mxu0 %vm334_vm1, %v151_v49  ;;  %996 = vmatprep.mubr.f32.mxu1 %v160_v51 }
 0x111   :  { %1832 = vmatprep.mubr.msk.f32.mxu0 %vm2189_vm0, %v2190_v33 }
 0x113   :  { %997 = vmatmul.mubr.f32.gmra.mrb[56].mxu1 %v159_v52  ;;  %v224_v52 = vld [vmem:[%s3810_s0 + $0x678] sm:$0xff] }
 0x114   :  { %1833 = vmatmul.mubr.msk.f32.gmra.mrb[54].mxu0 %vm334_vm1, %v156_v13  ;;  %1001 = vmatprep.mubr.f32.mxu1 %v165_v53  ;;  %v221_v13 = vld [vmem:[%s3810_s0 + $0x660] sm:$0xff]  ;;  %v230_v53 = vld [vmem:[%s3810_s0 + $0x6a8] sm:$0xff] }
 0x115   :  { %1835 = vmatprep.mubr.msk.f32.mxu0 %vm2189_vm0, %v2190_v33 }
 0x116   :  { %v3198_v57 = vpop.f32.mrb[0].mxu1 }
 0x117   :  { %1002 = vmatmul.mubr.f32.gmra.mrb[58].mxu1 %v164_v54  ;;  %v550_v58 = vpop.f32.mrb[1].mxu1 }
 0x118   :  { %1836 = vmatmul.mubr.msk.f32.gmra.mrb[56].mxu0 %vm334_vm1, %v161_v55  ;;  %1006 = vmatprep.mubr.f32.mxu1 %v170_v20  ;;  %v229_v20 = vld [vmem:[%s3810_s0 + $0x6a0] sm:$0xff]  ;;  %v226_v58 = vld [vmem:[%s3810_s0 + $0x688] sm:$0xff] }
 0x119   :  { %1838 = vmatprep.mubr.msk.f32.mxu0 %vm2189_vm0, %v2190_v33 }
 0x11a   :  { %v3212_v8 = vpop.f32.mrb[2].mxu1 }
 0x11b   :  { %1007 = vmatmul.mubr.f32.gmra.mrb[60].mxu1 %v169_v59  ;;  %v555_v61 = vpop.f32.mrb[3].mxu1  ;;  %v235_v59 = vld [vmem:[%s3810_s0 + $0x6d0] sm:$0xff] }
 0x11c   :  { %1839 = vmatmul.mubr.msk.f32.gmra.mrb[58].mxu0 %vm334_vm1, %v166_v27  ;;  %1011 = vmatprep.mubr.f32.mxu1 %v175_v60  ;;  %v234_v61 = vld [vmem:[%s3810_s0 + $0x6c8] sm:$0xff] }
 0x11d   :  { %1841 = vmatprep.mubr.msk.f32.mxu0 %vm2189_vm0, %v2190_v33 }
 0x11e   :  { %v3226_v1 = vpop.f32.mrb[4].mxu1 }
 0x11f   :  { %1012 = vmatmul.mubr.f32.gmra.mrb[62].mxu1 %v174_v34  ;;  %v560_v41 = vpop.f32.mrb[5].mxu1  ;;  %v231_v34 = vld [vmem:[%s3810_s0 + $0x6b0] sm:$0xff] }
 0x120   :  { %1842 = vmatmul.mubr.msk.f32.gmra.mrb[60].mxu0 %vm334_vm1, %v171_v0  ;;  %1016 = vmatprep.mubr.f32.mxu1 %v180_v63  ;;  %v240_v0 = vld [vmem:[%s3810_s0 + $0x6f8] sm:$0xff] }
 0x121   :  { %1844 = vmatprep.mubr.msk.f32.mxu0 %vm2189_vm0, %v2190_v33 }
 0x122   :  { %v3240_v6 = vpop.f32.mrb[6].mxu1 }
 0x123   :  { %1017 = vmatmul.mubr.f32.gmra.mrb[64].mxu1 %v179_v2  ;;  %v565_v12 = vpop.f32.mrb[7].mxu1  ;;  %v239_v2 = vld [vmem:[%s3810_s0 + $0x6f0] sm:$0xff] }
 0x124   :  { %1845 = vmatmul.mubr.msk.f32.gmra.mrb[62].mxu0 %vm334_vm1, %v176_v3  ;;  %1021 = vmatprep.mubr.f32.mxu1 %v185_v4  ;;  %v236_v3 = vld [vmem:[%s3810_s0 + $0x6d8] sm:$0xff]  ;;  %v245_v4 = vld [vmem:[%s3810_s0 + $0x720] sm:$0xff] }
 0x125   :  { %1847 = vmatprep.mubr.msk.f32.mxu0 %vm2189_vm0, %v2190_v33 }
 0x126   :  { %v3254_v11 = vpop.f32.mrb[8].mxu1 }
 0x127   :  { %1022 = vmatmul.mubr.f32.gmra.mrb[66].mxu1 %v184_v7  ;;  %v570_v14 = vpop.f32.mrb[9].mxu1 }
 0x128   :  { %1848 = vmatmul.mubr.msk.f32.gmra.mrb[64].mxu0 %vm334_vm1, %v181_v9  ;;  %1026 = vmatprep.mubr.f32.mxu1 %v190_v10  ;;  %v244_v9 = vld [vmem:[%s3810_s0 + $0x718] sm:$0xff]  ;;  %v241_v10 = vld [vmem:[%s3810_s0 + $0x700] sm:$0xff]  ;;  %v250_v14 = vld [vmem:[%s3810_s0 + $0x748] sm:$0xff] }
 0x129   :  { %1850 = vmatprep.mubr.msk.f32.mxu0 %vm2189_vm0, %v2190_v33 }
 0x12a   :  { %v3268_v17 = vpop.f32.mrb[10].mxu1 }
 0x12b   :  { %1027 = vmatmul.mubr.f32.gmra.mrb[68].mxu1 %v189_v18  ;;  %v575_v19 = vpop.f32.mrb[11].mxu1 }
 0x12c   :  { %1851 = vmatmul.mubr.msk.f32.gmra.mrb[66].mxu0 %vm334_vm1, %v186_v15  ;;  %1031 = vmatprep.mubr.f32.mxu1 %v195_v16  ;;  %v249_v16 = vld [vmem:[%s3810_s0 + $0x740] sm:$0xff]  ;;  %v246_v19 = vld [vmem:[%s3810_s0 + $0x728] sm:$0xff] }
 0x12d   :  { %1853 = vmatprep.mubr.msk.f32.mxu0 %vm2189_vm0, %v2190_v33 }
 0x12e   :  { %v3282_v23 = vpop.f32.mrb[12].mxu1 }
 0x12f   :  { %1032 = vmatmul.mubr.f32.gmra.mrb[70].mxu1 %v194_v24  ;;  %v580_v30 = vpop.f32.mrb[13].mxu1  ;;  %v255_v24 = vld [vmem:[%s3810_s0 + $0x770] sm:$0xff] }
 0x130   :  { %1854 = vmatmul.mubr.msk.f32.gmra.mrb[68].mxu0 %vm334_vm1, %v191_v21  ;;  %1036 = vmatprep.mubr.f32.mxu1 %v200_v22  ;;  %v254_v30 = vld [vmem:[%s3810_s0 + $0x768] sm:$0xff] }
 0x131   :  { %1856 = vmatprep.mubr.msk.f32.mxu0 %vm2189_vm0, %v2190_v33 }
 0x132   :  { %v3296_v36 = vpop.f32.mrb[14].mxu1 }
 0x133   :  { %1037 = vmatmul.mubr.f32.gmra.mrb[72].mxu1 %v199_v25  ;;  %v585_v29 = vpop.f32.mrb[15].mxu1  ;;  %v251_v25 = vld [vmem:[%s3810_s0 + $0x750] sm:$0xff] }
 0x134   :  { %1857 = vmatmul.mubr.msk.f32.gmra.mrb[70].mxu0 %vm334_vm1, %v196_v26  ;;  %1041 = vmatprep.mubr.f32.mxu1 %v205_v28  ;;  %v260_v26 = vld [vmem:[%s3810_s0 + $0x798] sm:$0xff] }
 0x135   :  { %1859 = vmatprep.mubr.msk.f32.mxu0 %vm2189_vm0, %v2190_v33 }
 0x136   :  { %v3310_v35 = vpop.f32.mrb[16].mxu1 }
 0x137   :  { %1042 = vmatmul.mubr.f32.gmra.mrb[74].mxu1 %v204_v31  ;;  %v590_v37 = vpop.f32.mrb[17].mxu1  ;;  %v259_v31 = vld [vmem:[%s3810_s0 + $0x790] sm:$0xff] }
 0x138   :  { %1860 = vmatmul.mubr.msk.f32.gmra.mrb[72].mxu0 %vm334_vm1, %v201_v32  ;;  %1046 = vmatprep.mubr.f32.mxu1 %v210_v44  ;;  %v256_v32 = vld [vmem:[%s3810_s0 + $0x778] sm:$0xff] }
 0x139   :  { %1862 = vmatprep.mubr.msk.f32.mxu0 %vm2189_vm0, %v2190_v33 }
 0x13a   :  { %v3324_v40 = vpop.f32.mrb[18].mxu1 }
 0x13b   :  { %1047 = vmatmul.mubr.f32.gmra.mrb[76].mxu1 %v209_v50  ;;  %v595_v56 = vpop.f32.mrb[19].mxu1  ;;  %v261_v50 = vld [vmem:[%s3810_s0 + $0x7a0] sm:$0xff] }
 0x13c   :  { %1863 = vmatmul.mubr.msk.f32.gmra.mrb[74].mxu0 %vm334_vm1, %v206_v38  ;;  %1051 = vmatprep.mubr.f32.mxu1 %v215_v39 }
 0x13d   :  { %1865 = vmatprep.mubr.msk.f32.mxu0 %vm2189_vm0, %v2190_v33 }
 0x13e   :  { %v3338_v62 = vpop.f32.mrb[20].mxu1 }
 0x13f   :  { %1052 = vmatmul.mubr.f32.gmra.mrb[78].mxu1 %v214_v42  ;;  %v600_v46 = vpop.f32.mrb[21].mxu1 }
 0x140   :  { %1866 = vmatmul.mubr.msk.f32.gmra.mrb[76].mxu0 %vm334_vm1, %v211_v43  ;;  %1056 = vmatprep.mubr.f32.mxu1 %v220_v45 }
 0x141   :  { %1868 = vmatprep.mubr.msk.f32.mxu0 %vm2189_vm0, %v2190_v33 }
 0x142   :  { %v3352_v49 = vpop.f32.mrb[22].mxu1 }
 0x143   :  { %1057 = vmatmul.mubr.f32.gmra.mrb[80].mxu1 %v219_v47  ;;  %v605_v51 = vpop.f32.mrb[23].mxu1 }
 0x144   :  { %1869 = vmatmul.mubr.msk.f32.gmra.mrb[78].mxu0 %vm334_vm1, %v216_v48  ;;  %1061 = vmatprep.mubr.f32.mxu1 %v225_v5  ;;  %v3483_v51 = vld [vmem:[%s3811_s2] ss:$0 sm:$0xff] }
 0x145   :  { %1871 = vmatprep.mubr.msk.f32.mxu0 %vm2189_vm0, %v2190_v33 }
 0x146   :  { %v3366_v54 = vpop.f32.mrb[24].mxu1 }
 0x147   :  { %1062 = vmatmul.mubr.f32.gmra.mrb[82].mxu1 %v224_v52  ;;  %v610_v55 = vpop.f32.mrb[25].mxu1 }
 0x148   :  { %1872 = vmatmul.mubr.msk.f32.gmra.mrb[80].mxu0 %vm334_vm1, %v221_v13  ;;  %1066 = vmatprep.mubr.f32.mxu1 %v230_v53  ;;  %v3489_v53 = vld [vmem:[%s3812_s3] ss:$0 sm:$0xff] }
 0x149   :  { %1874 = vmatprep.mubr.msk.f32.mxu0 %vm2189_vm0, %v2190_v33 }
 0x14a   :  { %v3380_v27 = vpop.f32.mrb[26].mxu1 }
 0x14b   :  { %1067 = vmatmul.mubr.f32.gmra.mrb[84].mxu1 %v229_v20  ;;  %v615_v60 = vpop.f32.mrb[27].mxu1 }
 0x14c   :  { %1875 = vmatmul.mubr.msk.f32.gmra.mrb[82].mxu0 %vm334_vm1, %v226_v58  ;;  %1071 = vmatprep.mubr.f32.mxu1 %v235_v59 }
 0x14d   :  { %1877 = vmatprep.mubr.msk.f32.mxu0 %vm2189_vm0, %v2190_v33 }
 0x14e   :  { %v3394_v63 = vpop.f32.mrb[28].mxu1 }
 0x14f   :  { %1072 = vmatmul.mubr.f32.gmra.mrb[86].mxu1 %v234_v61  ;;  %v620_v41 = vpop.f32.mrb[29].mxu1 }
 0x150   :  { %1878 = vmatmul.mubr.msk.f32.gmra.mrb[84].mxu0 %vm334_vm1, %v231_v34  ;;  %1076 = vmatprep.mubr.f32.mxu1 %v240_v0 }
 0x151   :  { %1880 = vmatprep.mubr.msk.f32.mxu0 %vm2189_vm0, %v2190_v33 }
 0x152   :  { %v3408_v12 = vpop.f32.mrb[30].mxu1 }
 0x153   :  { %1077 = vmatmul.mubr.f32.gmra.mrb[88].mxu1 %v239_v2  ;;  %v625_v7 = vpop.f32.mrb[31].mxu1 }
 0x154   :  { %1881 = vmatmul.mubr.msk.f32.gmra.mrb[86].mxu0 %vm334_vm1, %v236_v3  ;;  %1081 = vmatprep.mubr.f32.mxu1 %v245_v4 }
 0x155   :  { %1883 = vmatprep.mubr.msk.f32.mxu0 %vm2189_vm0, %v2190_v33 }
 0x156   :  { %v3422_v18 = vpop.f32.mrb[32].mxu1 }
 0x157   :  { %1082 = vmatmul.mubr.f32.gmra.mrb[90].mxu1 %v244_v9  ;;  %v630_v15 = vpop.f32.mrb[33].mxu1 }
 0x158   :  { %1884 = vmatmul.mubr.msk.f32.gmra.mrb[88].mxu0 %vm334_vm1, %v241_v10  ;;  %1086 = vmatprep.mubr.f32.mxu1 %v250_v14 }
 0x159   :  { %1886 = vmatprep.mubr.msk.f32.mxu0 %vm2189_vm0, %v2190_v33 }
 0x15a   :  { %v3436_v21 = vpop.f32.mrb[34].mxu1 }
 0x15b   :  { %1087 = vmatmul.mubr.f32.gmra.mrb[92].mxu1 %v249_v16  ;;  %v635_v22 = vpop.f32.mrb[35].mxu1 }
 0x15c   :  { %1887 = vmatmul.mubr.msk.f32.gmra.mrb[90].mxu0 %vm334_vm1, %v246_v19  ;;  %1091 = vmatprep.mubr.f32.mxu1 %v255_v24 }
 0x15d   :  { %1889 = vmatprep.mubr.msk.f32.mxu0 %vm2189_vm0, %v2190_v33 }
 0x15e   :  { %v3450_v28 = vpop.f32.mrb[36].mxu1 }
 0x15f   :  { %1092 = vmatmul.mubr.f32.gmra.mrb[94].mxu1 %v254_v30  ;;  %v640_v29 = vpop.f32.mrb[37].mxu1 }
 0x160   :  { %1890 = vmatmul.mubr.msk.f32.gmra.mrb[92].mxu0 %vm334_vm1, %v251_v25  ;;  %1096 = vmatprep.mubr.f32.mxu1 %v260_v26 }
 0x161   :  { %1892 = vmatprep.mubr.msk.f32.mxu0 %vm2189_vm0, %v2190_v33 }
 0x162   :  { %v3461_v44 = vpop.f32.mrb[38].mxu1 }
 0x163   :  { %1097 = vmatmul.mubr.f32.gmra.mrb[96].mxu1 %v259_v31  ;;  %v645_v37 = vpop.f32.mrb[39].mxu1 }
 0x164   :  { %1893 = vmatmul.mubr.msk.f32.gmra.mrb[94].mxu0 %vm334_vm1, %v256_v32 }
 0x165   :  { %1895 = vmatprep.mubr.msk.f32.mxu0 %vm2189_vm0, %v2190_v33 }
 0x166   :  { %v3469_v38 = vpop.f32.mrb[40].mxu1 }
 0x167   :  { %v650_v39 = vpop.f32.mrb[41].mxu1 }
 0x168   :  { %1896 = vmatmul.mubr.msk.f32.gmra.mrb[96].mxu0 %vm334_vm1, %v261_v50 }
 0x16a   :  { %v3472_v56 = vpop.f32.mrb[42].mxu1 }
 0x16b   :  { %v655_v42 = vpop.f32.mrb[43].mxu1 }
 0x16e   :  { %v3474_v43 = vpop.f32.mrb[44].mxu1 }
 0x16f   :  { %v660_v45 = vpop.f32.mrb[45].mxu1 }
 0x172   :  { %v3476_v46 = vpop.f32.mrb[46].mxu1 }
 0x173   :  { %v665_v47 = vpop.f32.mrb[47].mxu1 }
 0x176   :  { %v3478_v48 = vpop.f32.mrb[48].mxu1 }
 0x177   :  { %v670_v33 = vpop.f32.mrb[49].mxu1 }
 0x17b   :  { %v1168_v5 = vpop.f32.mrb[0].mxu0 }
 0x17c   :  { %v2038_v52 = vadd.f32 %v1168_v5, %v3198_v57  ;;  %v1753_v13 = vpop.f32.mrb[1].mxu0 }
 0x17e   :  { %v1419_v55 = vmul.f32 %v2038_v52, %v3483_v51 }
 0x17f   :  { %v1173_v20 = vpop.f32.mrb[2].mxu0 }
 0x180   :  { %v1475_v58 = vadd.f32 %v3489_v53, %v1419_v55  ;;  %v2039_v59 = vadd.f32 %v1173_v20, %v3212_v8  ;;  %v1756_v60 = vpop.f32.mrb[3].mxu0 }
 0x182   :  { %v1524_v61 = vmax.f32 %v1475_v58, 0.0  ;;  %v1420_v34 = vmul.f32 %v2039_v59, %v3483_v51 }
 0x183   :  { %v1178_v0 = vpop.f32.mrb[4].mxu0 }
 0x184   :  { %1574 = vst.msk [vmem:[%s3813_s4] sm:$0xff] %vm1573_vm2, %v1524_v61  ;;  %v1476_v57 = vadd.f32 %v3489_v53, %v1420_v34  ;;  %v2040_v41 = vadd.f32 %v1178_v0, %v3226_v1  ;;  %v1759_v2 = vpop.f32.mrb[5].mxu0 }
 0x186   :  { %v1525_v3 = vmax.f32 %v1476_v57, 0.0  ;;  %v1421_v4 = vmul.f32 %v2040_v41, %v3483_v51 }
 0x187   :  { %v1183_v8 = vpop.f32.mrb[6].mxu0 }
 0x188   :  { %1575 = vst.msk [vmem:[%s3813_s4 + $0x8] sm:$0xff] %vm1573_vm2, %v1525_v3  ;;  %v1477_v7 = vadd.f32 %v3489_v53, %v1421_v4  ;;  %v2041_v9 = vadd.f32 %v1183_v8, %v3240_v6  ;;  %v1762_v10 = vpop.f32.mrb[7].mxu0 }
 0x18a   :  { %v1526_v14 = vmax.f32 %v1477_v7, 0.0  ;;  %v1422_v15 = vmul.f32 %v2041_v9, %v3483_v51 }
 0x18b   :  { %v1188_v16 = vpop.f32.mrb[8].mxu0 }
 0x18c   :  { %1576 = vst.msk [vmem:[%s3813_s4 + $0x10] sm:$0xff] %vm1573_vm2, %v1526_v14  ;;  %v1478_v1 = vadd.f32 %v3489_v53, %v1422_v15  ;;  %v2042_v19 = vadd.f32 %v1188_v16, %v3254_v11  ;;  %v1765_v24 = vpop.f32.mrb[9].mxu0 }
 0x18e   :  { %v1527_v22 = vmax.f32 %v1478_v1, 0.0  ;;  %v1423_v30 = vmul.f32 %v2042_v19, %v3483_v51 }
 0x18f   :  { %v1193_v25 = vpop.f32.mrb[10].mxu0 }
 0x190   :  { %1577 = vst.msk [vmem:[%s3813_s4 + $0x18] sm:$0xff] %vm1573_vm2, %v1527_v22  ;;  %v1479_v6 = vadd.f32 %v3489_v53, %v1423_v30  ;;  %v2043_v26 = vadd.f32 %v1193_v25, %v3268_v17  ;;  %v1768_v29 = vpop.f32.mrb[11].mxu0 }
 0x192   :  { %v1528_v31 = vmax.f32 %v1479_v6, 0.0  ;;  %v1424_v32 = vmul.f32 %v2043_v26, %v3483_v51 }
 0x193   :  { %v1198_v37 = vpop.f32.mrb[12].mxu0 }
 0x194   :  { %1578 = vst.msk [vmem:[%s3813_s4 + $0x20] sm:$0xff] %vm1573_vm2, %v1528_v31  ;;  %v1480_v11 = vadd.f32 %v3489_v53, %v1424_v32  ;;  %v2044_v50 = vadd.f32 %v1198_v37, %v3282_v23  ;;  %v1771_v39 = vpop.f32.mrb[13].mxu0 }
 0x196   :  { %v1529_v42 = vmax.f32 %v1480_v11, 0.0  ;;  %v1425_v45 = vmul.f32 %v2044_v50, %v3483_v51 }
 0x197   :  { %v1203_v47 = vpop.f32.mrb[14].mxu0 }
 0x198   :  { %1579 = vst.msk [vmem:[%s3813_s4 + $0x28] sm:$0xff] %vm1573_vm2, %v1529_v42  ;;  %v1481_v17 = vadd.f32 %v3489_v53, %v1425_v45  ;;  %v2045_v33 = vadd.f32 %v1203_v47, %v3296_v36  ;;  %v1774_v5 = vpop.f32.mrb[15].mxu0 }
 0x19a   :  { %v1530_v52 = vmax.f32 %v1481_v17, 0.0  ;;  %v1426_v13 = vmul.f32 %v2045_v33, %v3483_v51 }
 0x19b   :  { %v1208_v55 = vpop.f32.mrb[16].mxu0 }
 0x19c   :  { %1580 = vst.msk [vmem:[%s3813_s4 + $0x30] sm:$0xff] %vm1573_vm2, %v1530_v52  ;;  %v1482_v23 = vadd.f32 %v3489_v53, %v1426_v13  ;;  %v2046_v20 = vadd.f32 %v1208_v55, %v3310_v35  ;;  %v1777_v58 = vpop.f32.mrb[17].mxu0 }
 0x19e   :  { %v1531_v59 = vmax.f32 %v1482_v23, 0.0  ;;  %v1427_v60 = vmul.f32 %v2046_v20, %v3483_v51 }
 0x19f   :  { %v1213_v61 = vpop.f32.mrb[18].mxu0 }
 0x1a0   :  { %1581 = vst.msk [vmem:[%s3813_s4 + $0x38] sm:$0xff] %vm1573_vm2, %v1531_v59  ;;  %v1483_v36 = vadd.f32 %v3489_v53, %v1427_v60  ;;  %v2047_v34 = vadd.f32 %v1213_v61, %v3324_v40  ;;  %v1780_v0 = vpop.f32.mrb[19].mxu0 }
 0x1a2   :  { %v1532_v57 = vmax.f32 %v1483_v36, 0.0  ;;  %v1428_v41 = vmul.f32 %v2047_v34, %v3483_v51 }
 0x1a3   :  { %v1218_v2 = vpop.f32.mrb[20].mxu0 }
 0x1a4   :  { %1582 = vst.msk [vmem:[%s3813_s4 + $0x40] sm:$0xff] %vm1573_vm2, %v1532_v57  ;;  %v1484_v35 = vadd.f32 %v3489_v53, %v1428_v41  ;;  %v2048_v3 = vadd.f32 %v1218_v2, %v3338_v62  ;;  %v1783_v4 = vpop.f32.mrb[21].mxu0 }
 0x1a6   :  { %v1533_v8 = vmax.f32 %v1484_v35, 0.0  ;;  %v1429_v7 = vmul.f32 %v2048_v3, %v3483_v51 }
 0x1a7   :  { %v1223_v9 = vpop.f32.mrb[22].mxu0 }
 0x1a8   :  { %1583 = vst.msk [vmem:[%s3813_s4 + $0x48] sm:$0xff] %vm1573_vm2, %v1533_v8  ;;  %v1485_v40 = vadd.f32 %v3489_v53, %v1429_v7  ;;  %v2049_v10 = vadd.f32 %v1223_v9, %v3352_v49  ;;  %v1786_v14 = vpop.f32.mrb[23].mxu0 }
 0x1aa   :  { %v1534_v15 = vmax.f32 %v1485_v40, 0.0  ;;  %v1430_v16 = vmul.f32 %v2049_v10, %v3483_v51 }
 0x1ab   :  { %v1228_v1 = vpop.f32.mrb[24].mxu0 }
 0x1ac   :  { %1584 = vst.msk [vmem:[%s3813_s4 + $0x50] sm:$0xff] %vm1573_vm2, %v1534_v15  ;;  %v1486_v62 = vadd.f32 %v3489_v53, %v1430_v16  ;;  %v2050_v19 = vadd.f32 %v1228_v1, %v3366_v54  ;;  %v1789_v24 = vpop.f32.mrb[25].mxu0 }
 0x1ae   :  { %v1535_v22 = vmax.f32 %v1486_v62, 0.0  ;;  %v1431_v30 = vmul.f32 %v2050_v19, %v3483_v51 }
 0x1af   :  { %v1233_v25 = vpop.f32.mrb[26].mxu0 }
 0x1b0   :  { %1585 = vst.msk [vmem:[%s3813_s4 + $0x58] sm:$0xff] %vm1573_vm2, %v1535_v22  ;;  %v1487_v49 = vadd.f32 %v3489_v53, %v1431_v30  ;;  %v2051_v6 = vadd.f32 %v1233_v25, %v3380_v27  ;;  %v1792_v26 = vpop.f32.mrb[27].mxu0 }
 0x1b2   :  { %v1536_v29 = vmax.f32 %v1487_v49, 0.0  ;;  %v1432_v31 = vmul.f32 %v2051_v6, %v3483_v51 }
 0x1b3   :  { %v1238_v32 = vpop.f32.mrb[28].mxu0 }
 0x1b4   :  { %1586 = vst.msk [vmem:[%s3813_s4 + $0x60] sm:$0xff] %vm1573_vm2, %v1536_v29  ;;  %v1488_v54 = vadd.f32 %v3489_v53, %v1432_v31  ;;  %v2052_v37 = vadd.f32 %v1238_v32, %v3394_v63  ;;  %v1795_v11 = vpop.f32.mrb[29].mxu0 }
 0x1b6   :  { %v1537_v50 = vmax.f32 %v1488_v54, 0.0  ;;  %v1433_v39 = vmul.f32 %v2052_v37, %v3483_v51 }
 0x1b7   :  { %v1243_v42 = vpop.f32.mrb[30].mxu0 }
 0x1b8   :  { %1587 = vst.msk [vmem:[%s3813_s4 + $0x68] sm:$0xff] %vm1573_vm2, %v1537_v50  ;;  %v1489_v27 = vadd.f32 %v3489_v53, %v1433_v39  ;;  %v2053_v45 = vadd.f32 %v1243_v42, %v3408_v12  ;;  %v1798_v47 = vpop.f32.mrb[31].mxu0 }
 0x1ba   :  { %v1538_v17 = vmax.f32 %v1489_v27, 0.0  ;;  %v1434_v33 = vmul.f32 %v2053_v45, %v3483_v51 }
 0x1bb   :  { %v1248_v5 = vpop.f32.mrb[32].mxu0 }
 0x1bc   :  { %1588 = vst.msk [vmem:[%s3813_s4 + $0x70] sm:$0xff] %vm1573_vm2, %v1538_v17  ;;  %v1490_v63 = vadd.f32 %v3489_v53, %v1434_v33  ;;  %v2054_v52 = vadd.f32 %v1248_v5, %v3422_v18  ;;  %v1801_v13 = vpop.f32.mrb[33].mxu0 }
 0x1be   :  { %v1539_v55 = vmax.f32 %v1490_v63, 0.0  ;;  %v1435_v23 = vmul.f32 %v2054_v52, %v3483_v51 }
 0x1bf   :  { %v1253_v20 = vpop.f32.mrb[34].mxu0 }
 0x1c0   :  { %1589 = vst.msk [vmem:[%s3813_s4 + $0x78] sm:$0xff] %vm1573_vm2, %v1539_v55  ;;  %v1491_v12 = vadd.f32 %v3489_v53, %v1435_v23  ;;  %v2055_v58 = vadd.f32 %v1253_v20, %v3436_v21  ;;  %v1804_v59 = vpop.f32.mrb[35].mxu0 }
 0x1c2   :  { %v1540_v60 = vmax.f32 %v1491_v12, 0.0  ;;  %v1436_v61 = vmul.f32 %v2055_v58, %v3483_v51 }
 0x1c3   :  { %v1258_v36 = vpop.f32.mrb[36].mxu0 }
 0x1c4   :  { %1590 = vst.msk [vmem:[%s3813_s4 + $0x80] sm:$0xff] %vm1573_vm2, %v1540_v60  ;;  %v1492_v18 = vadd.f32 %v3489_v53, %v1436_v61  ;;  %v2056_v34 = vadd.f32 %v1258_v36, %v3450_v28  ;;  %v1807_v0 = vpop.f32.mrb[37].mxu0 }
 0x1c6   :  { %v1541_v57 = vmax.f32 %v1492_v18, 0.0  ;;  %v1437_v41 = vmul.f32 %v2056_v34, %v3483_v51 }
 0x1c7   :  { %v1263_v2 = vpop.f32.mrb[38].mxu0 }
 0x1c8   :  { %1591 = vst.msk [vmem:[%s3813_s4 + $0x88] sm:$0xff] %vm1573_vm2, %v1541_v57  ;;  %v1493_v21 = vadd.f32 %v3489_v53, %v1437_v41  ;;  %v2057_v35 = vadd.f32 %v1263_v2, %v3461_v44  ;;  %v1810_v3 = vpop.f32.mrb[39].mxu0 }
 0x1ca   :  { %v1542_v4 = vmax.f32 %v1493_v21, 0.0  ;;  %v1438_v8 = vmul.f32 %v2057_v35, %v3483_v51 }
 0x1cb   :  { %v1268_v7 = vpop.f32.mrb[40].mxu0 }
 0x1cc   :  { %1592 = vst.msk [vmem:[%s3813_s4 + $0x90] sm:$0xff] %vm1573_vm2, %v1542_v4  ;;  %v1494_v28 = vadd.f32 %v3489_v53, %v1438_v8  ;;  %v2058_v9 = vadd.f32 %v1268_v7, %v3469_v38  ;;  %v1813_v40 = vpop.f32.mrb[41].mxu0 }
 0x1ce   :  { %v1543_v10 = vmax.f32 %v1494_v28, 0.0  ;;  %v1439_v14 = vmul.f32 %v2058_v9, %v3483_v51 }
 0x1cf   :  { %v1273_v15 = vpop.f32.mrb[42].mxu0 }
 0x1d0   :  { %1593 = vst.msk [vmem:[%s3813_s4 + $0x98] sm:$0xff] %vm1573_vm2, %v1543_v10  ;;  %v1495_v44 = vadd.f32 %v3489_v53, %v1439_v14  ;;  %v2059_v16 = vadd.f32 %v1273_v15, %v3472_v56  ;;  %v1816_v1 = vpop.f32.mrb[43].mxu0 }
 0x1d2   :  { %v1544_v62 = vmax.f32 %v1495_v44, 0.0  ;;  %v1440_v19 = vmul.f32 %v2059_v16, %v3483_v51 }
 0x1d3   :  { %v1278_v24 = vpop.f32.mrb[44].mxu0 }
 0x1d4   :  { %1594 = vst.msk [vmem:[%s3813_s4 + $0xa0] sm:$0xff] %vm1573_vm2, %v1544_v62  ;;  %v1496_v38 = vadd.f32 %v3489_v53, %v1440_v19  ;;  %v2060_v22 = vadd.f32 %v1278_v24, %v3474_v43  ;;  %v1819_v30 = vpop.f32.mrb[45].mxu0 }
 0x1d6   :  { %v1545_v25 = vmax.f32 %v1496_v38, 0.0  ;;  %v1441_v49 = vmul.f32 %v2060_v22, %v3483_v51 }
 0x1d7   :  { %v1283_v6 = vpop.f32.mrb[46].mxu0 }
 0x1d8   :  { %1595 = vst.msk [vmem:[%s3813_s4 + $0xa8] sm:$0xff] %vm1573_vm2, %v1545_v25  ;;  %v1497_v56 = vadd.f32 %v3489_v53, %v1441_v49  ;;  %v2061_v26 = vadd.f32 %v1283_v6, %v3476_v46  ;;  %v1822_v29 = vpop.f32.mrb[47].mxu0 }
 0x1da   :  { %v1546_v31 = vmax.f32 %v1497_v56, 0.0  ;;  %v1442_v32 = vmul.f32 %v2061_v26, %v3483_v51  ;;  %v983_v54 = vpop.f32.mrb[50].mxu1 }
 0x1db   :  { %v1288_v43 = vpop.f32.mrb[48].mxu0  ;;  %v985_v37 = vpop.f32.mrb[51].mxu1 }
 0x1dc   :  { %1596 = vst.msk [vmem:[%s3813_s4 + $0xb0] sm:$0xff] %vm1573_vm2, %v1546_v31  ;;  %v1498_v11 = vadd.f32 %v3489_v53, %v1442_v32  ;;  %v2062_v50 = vadd.f32 %v1288_v43, %v3478_v48  ;;  %v1825_v39 = vpop.f32.mrb[49].mxu0 }
 0x1de   :  { %v1547_v42 = vmax.f32 %v1498_v11, 0.0  ;;  %v1443_v46 = vmul.f32 %v2062_v50, %v3483_v51  ;;  %v988_v27 = vpop.f32.mrb[52].mxu1 }
 0x1df   :  { %v1293_v45 = vpop.f32.mrb[50].mxu0  ;;  %v990_v47 = vpop.f32.mrb[53].mxu1 }
 0x1e0   :  { %1597 = vst.msk [vmem:[%s3813_s4 + $0xb8] sm:$0xff] %vm1573_vm2, %v1547_v42  ;;  %v1499_v17 = vadd.f32 %v3489_v53, %v1443_v46  ;;  %v2063_v33 = vadd.f32 %v1293_v45, %v983_v54  ;;  %v1828_v5 = vpop.f32.mrb[51].mxu0 }
 0x1e2   :  { %v1548_v63 = vmax.f32 %v1499_v17, 0.0  ;;  %v1444_v52 = vmul.f32 %v2063_v33, %v3483_v51  ;;  %v993_v48 = vpop.f32.mrb[54].mxu1 }
 0x1e3   :  { %v1298_v13 = vpop.f32.mrb[52].mxu0  ;;  %v995_v55 = vpop.f32.mrb[55].mxu1 }
 0x1e4   :  { %1598 = vst.msk [vmem:[%s3813_s4 + $0xc0] sm:$0xff] %vm1573_vm2, %v1548_v63  ;;  %v1500_v23 = vadd.f32 %v3489_v53, %v1444_v52  ;;  %v2064_v20 = vadd.f32 %v1298_v13, %v988_v27  ;;  %v1831_v12 = vpop.f32.mrb[53].mxu0 }
 0x1e6   :  { %v1549_v58 = vmax.f32 %v1500_v23, 0.0  ;;  %v1445_v59 = vmul.f32 %v2064_v20, %v3483_v51  ;;  %v998_v60 = vpop.f32.mrb[56].mxu1 }
 0x1e7   :  { %v1303_v61 = vpop.f32.mrb[54].mxu0  ;;  %v1000_v36 = vpop.f32.mrb[57].mxu1 }
 0x1e8   :  { %1599 = vst.msk [vmem:[%s3813_s4 + $0xc8] sm:$0xff] %vm1573_vm2, %v1549_v58  ;;  %v1501_v18 = vadd.f32 %v3489_v53, %v1445_v59  ;;  %v2065_v34 = vadd.f32 %v1303_v61, %v993_v48  ;;  %v1834_v0 = vpop.f32.mrb[55].mxu0 }
 0x1ea   :  { %v1550_v57 = vmax.f32 %v1501_v18, 0.0  ;;  %v1446_v41 = vmul.f32 %v2065_v34, %v3483_v51  ;;  %v1003_v2 = vpop.f32.mrb[58].mxu1 }
 0x1eb   :  { %v1308_v21 = vpop.f32.mrb[56].mxu0  ;;  %v1005_v35 = vpop.f32.mrb[59].mxu1 }
 0x1ec   :  { %1600 = vst.msk [vmem:[%s3813_s4 + $0xd0] sm:$0xff] %vm1573_vm2, %v1550_v57  ;;  %v1502_v3 = vadd.f32 %v3489_v53, %v1446_v41  ;;  %v2066_v4 = vadd.f32 %v1308_v21, %v998_v60  ;;  %v1837_v8 = vpop.f32.mrb[57].mxu0 }
 0x1ee   :  { %v1551_v7 = vmax.f32 %v1502_v3, 0.0  ;;  %v1447_v28 = vmul.f32 %v2066_v4, %v3483_v51  ;;  %v1008_v9 = vpop.f32.mrb[60].mxu1 }
 0x1ef   :  { %v1313_v40 = vpop.f32.mrb[58].mxu0  ;;  %v1010_v10 = vpop.f32.mrb[61].mxu1 }
 0x1f0   :  { %1601 = vst.msk [vmem:[%s3813_s4 + $0xd8] sm:$0xff] %vm1573_vm2, %v1551_v7  ;;  %v1503_v14 = vadd.f32 %v3489_v53, %v1447_v28  ;;  %v2067_v15 = vadd.f32 %v1313_v40, %v1003_v2  ;;  %v1840_v44 = vpop.f32.mrb[59].mxu0 }
 0x1f2   :  { %v1552_v16 = vmax.f32 %v1503_v14, 0.0  ;;  %v1448_v1 = vmul.f32 %v2067_v15, %v3483_v51  ;;  %v1013_v62 = vpop.f32.mrb[62].mxu1 }
 0x1f3   :  { %v1318_v19 = vpop.f32.mrb[60].mxu0  ;;  %v1015_v24 = vpop.f32.mrb[63].mxu1 }
 0x1f4   :  { %1602 = vst.msk [vmem:[%s3813_s4 + $0xe0] sm:$0xff] %vm1573_vm2, %v1552_v16  ;;  %v1504_v38 = vadd.f32 %v3489_v53, %v1448_v1  ;;  %v2068_v22 = vadd.f32 %v1318_v19, %v1008_v9  ;;  %v1843_v30 = vpop.f32.mrb[61].mxu0 }
 0x1f6   :  { %v1553_v25 = vmax.f32 %v1504_v38, 0.0  ;;  %v1449_v49 = vmul.f32 %v2068_v22, %v3483_v51  ;;  %v1018_v6 = vpop.f32.mrb[64].mxu1 }
 0x1f7   :  { %v1323_v56 = vpop.f32.mrb[62].mxu0  ;;  %v1020_v26 = vpop.f32.mrb[65].mxu1 }
 0x1f8   :  { %1603 = vst.msk [vmem:[%s3813_s4 + $0xe8] sm:$0xff] %vm1573_vm2, %v1553_v25  ;;  %v1505_v29 = vadd.f32 %v3489_v53, %v1449_v49  ;;  %v2069_v31 = vadd.f32 %v1323_v56, %v1013_v62  ;;  %v1846_v32 = vpop.f32.mrb[63].mxu0 }
 0x1fa   :  { %v1554_v54 = vmax.f32 %v1505_v29, 0.0  ;;  %v1450_v43 = vmul.f32 %v2069_v31, %v3483_v51  ;;  %v1023_v37 = vpop.f32.mrb[66].mxu1 }
 0x1fb   :  { %v1328_v11 = vpop.f32.mrb[64].mxu0  ;;  %v1025_v50 = vpop.f32.mrb[67].mxu1 }
 0x1fc   :  { %1604 = vst.msk [vmem:[%s3813_s4 + $0xf0] sm:$0xff] %vm1573_vm2, %v1554_v54  ;;  %v1506_v39 = vadd.f32 %v3489_v53, %v1450_v43  ;;  %v2070_v42 = vadd.f32 %v1328_v11, %v1018_v6  ;;  %v1849_v46 = vpop.f32.mrb[65].mxu0 }
 0x1fe   :  { %v1555_v27 = vmax.f32 %v1506_v39, 0.0  ;;  %v1451_v45 = vmul.f32 %v2070_v42, %v3483_v51  ;;  %v1028_v47 = vpop.f32.mrb[68].mxu1 }
 0x1ff   :  { %v1333_v17 = vpop.f32.mrb[66].mxu0  ;;  %v1030_v33 = vpop.f32.mrb[69].mxu1 }
 0x200   :  { %1605 = vst.msk [vmem:[%s3813_s4 + $0xf8] sm:$0xff] %vm1573_vm2, %v1555_v27  ;;  %v1507_v5 = vadd.f32 %v3489_v53, %v1451_v45  ;;  %v2071_v63 = vadd.f32 %v1333_v17, %v1023_v37  ;;  %v1852_v52 = vpop.f32.mrb[67].mxu0 }
 0x202   :  { %v1556_v48 = vmax.f32 %v1507_v5, 0.0  ;;  %v1452_v13 = vmul.f32 %v2071_v63, %v3483_v51  ;;  %v1033_v55 = vpop.f32.mrb[70].mxu1 }
 0x203   :  { %v1338_v23 = vpop.f32.mrb[68].mxu0  ;;  %v1035_v20 = vpop.f32.mrb[71].mxu1 }
 0x204   :  { %1606 = vst.msk [vmem:[%s3813_s4 + $0x100] sm:$0xff] %vm1573_vm2, %v1556_v48  ;;  %v1508_v12 = vadd.f32 %v3489_v53, %v1452_v13  ;;  %v2072_v58 = vadd.f32 %v1338_v23, %v1028_v47  ;;  %v1855_v59 = vpop.f32.mrb[69].mxu0 }
 0x206   :  { %v1557_v60 = vmax.f32 %v1508_v12, 0.0  ;;  %v1453_v61 = vmul.f32 %v2072_v58, %v3483_v51  ;;  %v1038_v36 = vpop.f32.mrb[72].mxu1 }
 0x207   :  { %v1343_v18 = vpop.f32.mrb[70].mxu0  ;;  %v1040_v34 = vpop.f32.mrb[73].mxu1 }
 0x208   :  { %1607 = vst.msk [vmem:[%s3813_s4 + $0x108] sm:$0xff] %vm1573_vm2, %v1557_v60  ;;  %v1509_v0 = vadd.f32 %v3489_v53, %v1453_v61  ;;  %v2073_v57 = vadd.f32 %v1343_v18, %v1033_v55  ;;  %v1858_v41 = vpop.f32.mrb[71].mxu0 }
 0x20a   :  { %v1558_v2 = vmax.f32 %v1509_v0, 0.0  ;;  %v1454_v21 = vmul.f32 %v2073_v57, %v3483_v51  ;;  %v1043_v35 = vpop.f32.mrb[74].mxu1 }
 0x20b   :  { %v1348_v3 = vpop.f32.mrb[72].mxu0  ;;  %v1045_v4 = vpop.f32.mrb[75].mxu1 }
 0x20c   :  { %1608 = vst.msk [vmem:[%s3813_s4 + $0x110] sm:$0xff] %vm1573_vm2, %v1558_v2  ;;  %v1510_v8 = vadd.f32 %v3489_v53, %v1454_v21  ;;  %v2074_v7 = vadd.f32 %v1348_v3, %v1038_v36  ;;  %v1861_v28 = vpop.f32.mrb[73].mxu0 }
 0x20e   :  { %v1559_v9 = vmax.f32 %v1510_v8, 0.0  ;;  %v1455_v40 = vmul.f32 %v2074_v7, %v3483_v51  ;;  %v1048_v10 = vpop.f32.mrb[76].mxu1 }
 0x20f   :  { %v1353_v14 = vpop.f32.mrb[74].mxu0  ;;  %v1050_v15 = vpop.f32.mrb[77].mxu1 }
 0x210   :  { %1609 = vst.msk [vmem:[%s3813_s4 + $0x118] sm:$0xff] %vm1573_vm2, %v1559_v9  ;;  %v1511_v44 = vadd.f32 %v3489_v53, %v1455_v40  ;;  %v2075_v16 = vadd.f32 %v1353_v14, %v1043_v35  ;;  %v1864_v1 = vpop.f32.mrb[75].mxu0 }
 0x212   :  { %v1560_v62 = vmax.f32 %v1511_v44, 0.0  ;;  %v1456_v19 = vmul.f32 %v2075_v16, %v3483_v51  ;;  %v1053_v24 = vpop.f32.mrb[78].mxu1 }
 0x213   :  { %v1358_v38 = vpop.f32.mrb[76].mxu0  ;;  %v1055_v22 = vpop.f32.mrb[79].mxu1 }
 0x214   :  { %1610 = vst.msk [vmem:[%s3813_s4 + $0x120] sm:$0xff] %vm1573_vm2, %v1560_v62  ;;  %v1512_v30 = vadd.f32 %v3489_v53, %v1456_v19  ;;  %v2076_v25 = vadd.f32 %v1358_v38, %v1048_v10  ;;  %v1867_v49 = vpop.f32.mrb[77].mxu0 }
 0x216   :  { %v1561_v6 = vmax.f32 %v1512_v30, 0.0  ;;  %v1457_v56 = vmul.f32 %v2076_v25, %v3483_v51  ;;  %v1058_v26 = vpop.f32.mrb[80].mxu1 }
 0x217   :  { %v1363_v29 = vpop.f32.mrb[78].mxu0  ;;  %v1060_v31 = vpop.f32.mrb[81].mxu1 }
 0x218   :  { %1611 = vst.msk [vmem:[%s3813_s4 + $0x128] sm:$0xff] %vm1573_vm2, %v1561_v6  ;;  %v1513_v32 = vadd.f32 %v3489_v53, %v1457_v56  ;;  %v2077_v54 = vadd.f32 %v1363_v29, %v1053_v24  ;;  %v1870_v43 = vpop.f32.mrb[79].mxu0 }
 0x21a   :  { %v1562_v37 = vmax.f32 %v1513_v32, 0.0  ;;  %v1458_v11 = vmul.f32 %v2077_v54, %v3483_v51  ;;  %v1063_v50 = vpop.f32.mrb[82].mxu1 }
 0x21b   :  { %v1368_v39 = vpop.f32.mrb[80].mxu0  ;;  %v1065_v42 = vpop.f32.mrb[83].mxu1 }
 0x21c   :  { %1612 = vst.msk [vmem:[%s3813_s4 + $0x130] sm:$0xff] %vm1573_vm2, %v1562_v37  ;;  %v1514_v46 = vadd.f32 %v3489_v53, %v1458_v11  ;;  %v2078_v27 = vadd.f32 %v1368_v39, %v1058_v26  ;;  %v1873_v45 = vpop.f32.mrb[81].mxu0 }
 0x21e   :  { %v1563_v47 = vmax.f32 %v1514_v46, 0.0  ;;  %v1459_v17 = vmul.f32 %v2078_v27, %v3483_v51  ;;  %v1068_v33 = vpop.f32.mrb[84].mxu1 }
 0x21f   :  { %v1373_v5 = vpop.f32.mrb[82].mxu0  ;;  %v1070_v63 = vpop.f32.mrb[85].mxu1 }
 0x220   :  { %1613 = vst.msk [vmem:[%s3813_s4 + $0x138] sm:$0xff] %vm1573_vm2, %v1563_v47  ;;  %v1515_v52 = vadd.f32 %v3489_v53, %v1459_v17  ;;  %v2079_v48 = vadd.f32 %v1373_v5, %v1063_v50  ;;  %v1876_v13 = vpop.f32.mrb[83].mxu0 }
 0x222   :  { %v1564_v55 = vmax.f32 %v1515_v52, 0.0  ;;  %v1460_v23 = vmul.f32 %v2079_v48, %v3483_v51  ;;  %v1073_v20 = vpop.f32.mrb[86].mxu1 }
 0x223   :  { %v1378_v12 = vpop.f32.mrb[84].mxu0  ;;  %v1075_v58 = vpop.f32.mrb[87].mxu1 }
 0x224   :  { %1614 = vst.msk [vmem:[%s3813_s4 + $0x140] sm:$0xff] %vm1573_vm2, %v1564_v55  ;;  %v1516_v59 = vadd.f32 %v3489_v53, %v1460_v23  ;;  %v2080_v60 = vadd.f32 %v1378_v12, %v1068_v33  ;;  %v1879_v61 = vpop.f32.mrb[85].mxu0 }
 0x226   :  { %v1565_v36 = vmax.f32 %v1516_v59, 0.0  ;;  %v1461_v18 = vmul.f32 %v2080_v60, %v3483_v51  ;;  %v1078_v34 = vpop.f32.mrb[88].mxu1 }
 0x227   :  { %v1383_v0 = vpop.f32.mrb[86].mxu0  ;;  %v1080_v57 = vpop.f32.mrb[89].mxu1 }
 0x228   :  { %1615 = vst.msk [vmem:[%s3813_s4 + $0x148] sm:$0xff] %vm1573_vm2, %v1565_v36  ;;  %v1517_v41 = vadd.f32 %v3489_v53, %v1461_v18  ;;  %v2081_v2 = vadd.f32 %v1383_v0, %v1073_v20  ;;  %v1882_v21 = vpop.f32.mrb[87].mxu0 }
 0x22a   :  { %v1566_v35 = vmax.f32 %v1517_v41, 0.0  ;;  %v1462_v3 = vmul.f32 %v2081_v2, %v3483_v51  ;;  %v1083_v4 = vpop.f32.mrb[90].mxu1 }
 0x22b   :  { %v1388_v8 = vpop.f32.mrb[88].mxu0  ;;  %v1085_v7 = vpop.f32.mrb[91].mxu1 }
 0x22c   :  { %1616 = vst.msk [vmem:[%s3813_s4 + $0x150] sm:$0xff] %vm1573_vm2, %v1566_v35  ;;  %v1518_v28 = vadd.f32 %v3489_v53, %v1462_v3  ;;  %v2082_v9 = vadd.f32 %v1388_v8, %v1078_v34  ;;  %v1885_v40 = vpop.f32.mrb[89].mxu0 }
 0x22e   :  { %v1567_v10 = vmax.f32 %v1518_v28, 0.0  ;;  %v1463_v14 = vmul.f32 %v2082_v9, %v3483_v51  ;;  %v1088_v15 = vpop.f32.mrb[92].mxu1 }
 0x22f   :  { %v1393_v44 = vpop.f32.mrb[90].mxu0  ;;  %v1090_v16 = vpop.f32.mrb[93].mxu1 }
 0x230   :  { %1617 = vst.msk [vmem:[%s3813_s4 + $0x158] sm:$0xff] %vm1573_vm2, %v1567_v10  ;;  %v1519_v1 = vadd.f32 %v3489_v53, %v1463_v14  ;;  %v2083_v62 = vadd.f32 %v1393_v44, %v1083_v4  ;;  %v1888_v19 = vpop.f32.mrb[91].mxu0 }
 0x232   :  { %v1568_v24 = vmax.f32 %v1519_v1, 0.0  ;;  %v1464_v38 = vmul.f32 %v2083_v62, %v3483_v51  ;;  %v1093_v22 = vpop.f32.mrb[94].mxu1 }
 0x233   :  { %v1398_v30 = vpop.f32.mrb[92].mxu0  ;;  %v1095_v25 = vpop.f32.mrb[95].mxu1 }
 0x234   :  { %1618 = vst.msk [vmem:[%s3813_s4 + $0x160] sm:$0xff] %vm1573_vm2, %v1568_v24  ;;  %v1520_v49 = vadd.f32 %v3489_v53, %v1464_v38  ;;  %v2084_v6 = vadd.f32 %v1398_v30, %v1088_v15  ;;  %v1891_v56 = vpop.f32.mrb[93].mxu0 }
 0x236   :  { %v1569_v26 = vmax.f32 %v1520_v49, 0.0  ;;  %v1465_v29 = vmul.f32 %v2084_v6, %v3483_v51  ;;  %v1098_v31 = vpop.f32.mrb[96].mxu1 }
 0x237   :  { %v1403_v32 = vpop.f32.mrb[94].mxu0  ;;  %v1100_v54 = vpop.f32.mrb[97].mxu1 }
 0x238   :  { %1619 = vst.msk [vmem:[%s3813_s4 + $0x168] sm:$0xff] %vm1573_vm2, %v1569_v26  ;;  %v1521_v43 = vadd.f32 %v3489_v53, %v1465_v29  ;;  %v2085_v37 = vadd.f32 %v1403_v32, %v1093_v22  ;;  %v1894_v11 = vpop.f32.mrb[95].mxu0 }
 0x23a   :  { %v1570_v50 = vmax.f32 %v1521_v43, 0.0  ;;  %v1466_v39 = vmul.f32 %v2085_v37, %v3483_v51 }
 0x23b   :  { %v1408_v42 = vpop.f32.mrb[96].mxu0 }
 0x23c   :  { %1620 = vst.msk [vmem:[%s3813_s4 + $0x170] sm:$0xff] %vm1573_vm2, %v1570_v50  ;;  %v1522_v46 = vadd.f32 %v3489_v53, %v1466_v39  ;;  %v2086_v27 = vadd.f32 %v1408_v42, %v1098_v31  ;;  %v1897_v45 = vpop.f32.mrb[97].mxu0 }
 0x23e   :  { %v1571_v47 = vmax.f32 %v1522_v46, 0.0  ;;  %v1467_v17 = vmul.f32 %v2086_v27, %v3483_v51 }
 0x240   :  { %1621 = vst.msk [vmem:[%s3813_s4 + $0x178] sm:$0xff] %vm1573_vm2, %v1571_v47  ;;  %v1523_v33 = vadd.f32 %v3489_v53, %v1467_v17 }
 0x242   :  { %v1572_v5 = vmax.f32 %v1523_v33, 0.0 }
 0x244   :  { %1622 = vst.msk [vmem:[%s3813_s4 + $0x180] sm:$0xff] %vm1573_vm2, %v1572_v5 }

// kernel: vae_forward.16
= control target key start
LH: loop header
LB: loop body
LE: loop exit
PB: predicated region body
PF: predicated region fallthrough
CT: control target
= control target key end

     0   :  { %v896_v0 = vmov 0.0|0.0   ;;  %vm897_vm0 = vmmov 0   ;;  %v898_v6 = vmov 0.0   ;;  %vm553_vm1 = vcmask 523264   ;;  %s1521_s1 = inlined_call_operand.vmem [shape: f32[128,64], index: 1, kind: input, shape index: {}]   ;;  %s1522_s0 = inlined_call_operand.vmem [shape: f32[392,128], index: 0, kind: input, shape index: {}]   ;;  %s1523_s2 = inlined_call_operand.vmem [shape: f32[1,64], index: 2, kind: input, shape index: {}]   ;;  %s1524_s3 = inlined_call_operand.vmem [shape: f32[1,64], index: 3, kind: input, shape index: {}]   ;;  %s1525_s4 = inlined_call_operand.vmem [shape: f32[392,64], index: 4, kind: output, shape index: {}]  }
   0x1   :  { %853 = vmatprep.subr.bf16.mxu0 %v896_v0  ;;  %v66_v1 = vld [vmem:[%s1521_s1] sm:$0xff]  ;;  %v67_v2 = vld [vmem:[%s1521_s1 + $0x8] sm:$0xff]  ;;  %877 = vmatprep.subr.bf16.mxu1 %v896_v0  ;;  %v68_v3 = vld [vmem:[%s1521_s1 + $0x10] sm:$0xff] }
   0x2   :  { %v854_v4 = vpack.c.bf16 %v67_v2, %v66_v1  ;;  %v69_v5 = vld [vmem:[%s1521_s1 + $0x18] sm:$0xff]  ;;  %706 = vmatprep.mubr.msk.f32.mxu0 %vm897_vm0, %v898_v6  ;;  %781 = vmatprep.mubr.msk.f32.mxu1 %vm897_vm0, %v898_v6  ;;  %v70_v8 = vld [vmem:[%s1521_s1 + $0x20] sm:$0xff]  ;;  %v71_v9 = vld [vmem:[%s1521_s1 + $0x28] sm:$0xff] }
   0x3   :  { %v857_v7 = vpack.c.bf16 %v69_v5, %v68_v3  ;;  %v860_v10 = vpack.c.bf16 %v71_v9, %v70_v8  ;;  %v72_v11 = vld [vmem:[%s1521_s1 + $0x30] sm:$0xff]  ;;  %v73_v12 = vld [vmem:[%s1521_s1 + $0x38] sm:$0xff]  ;;  %v74_v14 = vld [vmem:[%s1521_s1 + $0x40] sm:$0xff] }
   0x4   :  { %855 = vmatpush3.bf16.msra.mxu0 %v854_v4  ;;  %885 = vmatpush3.bf16.msra.mxu1 %v854_v4  ;;  %v863_v13 = vpack.c.bf16 %v73_v12, %v72_v11  ;;  %v75_v15 = vld [vmem:[%s1521_s1 + $0x48] sm:$0xff]  ;;  %v76_v17 = vld [vmem:[%s1521_s1 + $0x50] sm:$0xff]  ;;  %v77_v18 = vld [vmem:[%s1521_s1 + $0x58] sm:$0xff] }
   0x5   :  { %856 = vmatprep.subr.bf16.mxu0 %v896_v0  ;;  %878 = vmatprep.subr.bf16.mxu1 %v896_v0  ;;  %v866_v16 = vpack.c.bf16 %v75_v15, %v74_v14  ;;  %v869_v19 = vpack.c.bf16 %v77_v18, %v76_v17  ;;  %v78_v20 = vld [vmem:[%s1521_s1 + $0x60] sm:$0xff]  ;;  %v79_v21 = vld [vmem:[%s1521_s1 + $0x68] sm:$0xff]  ;;  %v80_v23 = vld [vmem:[%s1521_s1 + $0x70] sm:$0xff] }
   0x6   :  { %v872_v22 = vpack.c.bf16 %v79_v21, %v78_v20  ;;  %v81_v24 = vld [vmem:[%s1521_s1 + $0x78] sm:$0xff]  ;;  %v17_v26 = vld [vmem:[%s1522_s0] sm:$0xff]  ;;  %v42_v27 = vld [vmem:[%s1522_s0 + $0xc8] sm:$0xff] }
   0x7   :  { %v875_v25 = vpack.c.bf16 %v81_v24, %v80_v23  ;;  %v18_v28 = vld [vmem:[%s1522_s0 + $0x8] sm:$0xff]  ;;  %v43_v29 = vld [vmem:[%s1522_s0 + $0xd0] sm:$0xff]  ;;  %v44_v31 = vld [vmem:[%s1522_s0 + $0xd8] sm:$0xff] }
   0x8   :  { %858 = vmatpush3.bf16.msra.mxu0 %v857_v7  ;;  %886 = vmatpush3.bf16.msra.mxu1 %v857_v7  ;;  %v19_v30 = vld [vmem:[%s1522_s0 + $0x10] sm:$0xff]  ;;  %v20_v32 = vld [vmem:[%s1522_s0 + $0x18] sm:$0xff]  ;;  %v45_v33 = vld [vmem:[%s1522_s0 + $0xe0] sm:$0xff] }
   0x9   :  { %859 = vmatprep.subr.bf16.mxu0 %v896_v0  ;;  %879 = vmatprep.subr.bf16.mxu1 %v896_v0  ;;  %v21_v34 = vld [vmem:[%s1522_s0 + $0x20] sm:$0xff]  ;;  %v46_v35 = vld [vmem:[%s1522_s0 + $0xe8] sm:$0xff]  ;;  %v47_v37 = vld [vmem:[%s1522_s0 + $0xf0] sm:$0xff] }
   0xa   :  { %v22_v36 = vld [vmem:[%s1522_s0 + $0x28] sm:$0xff]  ;;  %v23_v38 = vld [vmem:[%s1522_s0 + $0x30] sm:$0xff]  ;;  %v48_v39 = vld [vmem:[%s1522_s0 + $0xf8] sm:$0xff] }
   0xb   :  { %v24_v40 = vld [vmem:[%s1522_s0 + $0x38] sm:$0xff]  ;;  %v49_v41 = vld [vmem:[%s1522_s0 + $0x100] sm:$0xff]  ;;  %v50_v43 = vld [vmem:[%s1522_s0 + $0x108] sm:$0xff] }
   0xc   :  { %861 = vmatpush3.bf16.msra.mxu0 %v860_v10  ;;  %887 = vmatpush3.bf16.msra.mxu1 %v860_v10  ;;  %v25_v42 = vld [vmem:[%s1522_s0 + $0x40] sm:$0xff]  ;;  %v26_v44 = vld [vmem:[%s1522_s0 + $0x48] sm:$0xff]  ;;  %v51_v45 = vld [vmem:[%s1522_s0 + $0x110] sm:$0xff] }
   0xd   :  { %862 = vmatprep.subr.bf16.mxu0 %v896_v0  ;;  %880 = vmatprep.subr.bf16.mxu1 %v896_v0  ;;  %v27_v46 = vld [vmem:[%s1522_s0 + $0x50] sm:$0xff]  ;;  %v52_v47 = vld [vmem:[%s1522_s0 + $0x118] sm:$0xff]  ;;  %v53_v49 = vld [vmem:[%s1522_s0 + $0x120] sm:$0xff] }
   0xe   :  { %v28_v48 = vld [vmem:[%s1522_s0 + $0x58] sm:$0xff]  ;;  %v29_v50 = vld [vmem:[%s1522_s0 + $0x60] sm:$0xff]  ;;  %v54_v51 = vld [vmem:[%s1522_s0 + $0x128] sm:$0xff] }
   0xf   :  { %v30_v52 = vld [vmem:[%s1522_s0 + $0x68] sm:$0xff]  ;;  %v55_v53 = vld [vmem:[%s1522_s0 + $0x130] sm:$0xff]  ;;  %v56_v55 = vld [vmem:[%s1522_s0 + $0x138] sm:$0xff] }
  0x10   :  { %864 = vmatpush3.bf16.msra.mxu0 %v863_v13  ;;  %888 = vmatpush3.bf16.msra.mxu1 %v863_v13  ;;  %v31_v54 = vld [vmem:[%s1522_s0 + $0x70] sm:$0xff]  ;;  %v32_v56 = vld [vmem:[%s1522_s0 + $0x78] sm:$0xff]  ;;  %v57_v57 = vld [vmem:[%s1522_s0 + $0x140] sm:$0xff] }
  0x11   :  { %865 = vmatprep.subr.bf16.mxu0 %v896_v0  ;;  %881 = vmatprep.subr.bf16.mxu1 %v896_v0  ;;  %v33_v58 = vld [vmem:[%s1522_s0 + $0x80] sm:$0xff]  ;;  %v58_v59 = vld [vmem:[%s1522_s0 + $0x148] sm:$0xff]  ;;  %v59_v61 = vld [vmem:[%s1522_s0 + $0x150] sm:$0xff] }
  0x12   :  { %v34_v60 = vld [vmem:[%s1522_s0 + $0x88] sm:$0xff]  ;;  %v35_v62 = vld [vmem:[%s1522_s0 + $0x90] sm:$0xff]  ;;  %v60_v63 = vld [vmem:[%s1522_s0 + $0x158] sm:$0xff] }
  0x13   :  { %v61_v1 = vld [vmem:[%s1522_s0 + $0x160] sm:$0xff]  ;;  %v62_v3 = vld [vmem:[%s1522_s0 + $0x168] sm:$0xff]  ;;  %v63_v5 = vld [vmem:[%s1522_s0 + $0x170] sm:$0xff] }
  0x14   :  { %867 = vmatpush3.bf16.msra.mxu0 %v866_v16  ;;  %889 = vmatpush3.bf16.msra.mxu1 %v866_v16  ;;  %v37_v2 = vld [vmem:[%s1522_s0 + $0xa0] sm:$0xff]  ;;  %v38_v4 = vld [vmem:[%s1522_s0 + $0xa8] sm:$0xff]  ;;  %v39_v7 = vld [vmem:[%s1522_s0 + $0xb0] sm:$0xff] }
  0x15   :  { %868 = vmatprep.subr.bf16.mxu0 %v896_v0  ;;  %882 = vmatprep.subr.bf16.mxu1 %v896_v0  ;;  %v64_v8 = vld [vmem:[%s1522_s0 + $0x178] sm:$0xff]  ;;  %v65_v10 = vld [vmem:[%s1522_s0 + $0x180] sm:$0xff] }
  0x16   :  { %v40_v9 = vld [vmem:[%s1522_s0 + $0xb8] sm:$0xff]  ;;  %v41_v11 = vld [vmem:[%s1522_s0 + $0xc0] sm:$0xff] }
  0x17   :  { %v1220_v12 = vld [vmem:[%s1523_s2] ss:$0 sm:$0xff] }
  0x18   :  { %870 = vmatpush3.bf16.msra.mxu0 %v869_v19  ;;  %890 = vmatpush3.bf16.msra.mxu1 %v869_v19  ;;  %v1225_v14 = vld [vmem:[%s1524_s3] ss:$0 sm:$0xff] }
  0x19   :  { %871 = vmatprep.subr.bf16.mxu0 %v896_v0  ;;  %883 = vmatprep.subr.bf16.mxu1 %v896_v0 }
  0x1c   :  { %873 = vmatpush3.bf16.msra.mxu0 %v872_v22  ;;  %891 = vmatpush3.bf16.msra.mxu1 %v872_v22 }
  0x1d   :  { %874 = vmatprep.subr.bf16.mxu0 %v896_v0  ;;  %884 = vmatprep.subr.bf16.mxu1 %v896_v0  ;;  %v36_v0 = vld [vmem:[%s1522_s0 + $0x98] sm:$0xff] }
  0x20   :  { %876 = vmatpush3.bf16.msra.mxu0 %v875_v25  ;;  %892 = vmatpush3.bf16.msra.mxu1 %v875_v25 }
  0x23   :  { %707 = vmatmul.mubr.f32.vlgmr.msra.gmra.mrb[0].mxu0 %v17_v26  ;;  %782 = vmatmul.mubr.f32.vlgmr.msra.gmra.mrb[0].mxu1 %v42_v27 }
  0x24   :  { %709 = vmatprep.mubr.msk.f32.mxu0 %vm897_vm0, %v898_v6  ;;  %784 = vmatprep.mubr.msk.f32.mxu1 %vm897_vm0, %v898_v6 }
  0x27   :  { %710 = vmatmul.mubr.f32.gmra.mrb[2].mxu0 %v18_v28  ;;  %785 = vmatmul.mubr.f32.gmra.mrb[2].mxu1 %v43_v29 }
  0x28   :  { %712 = vmatprep.mubr.msk.f32.mxu0 %vm897_vm0, %v898_v6  ;;  %787 = vmatprep.mubr.msk.f32.mxu1 %vm897_vm0, %v898_v6 }
  0x2b   :  { %713 = vmatmul.mubr.f32.gmra.mrb[4].mxu0 %v19_v30  ;;  %788 = vmatmul.mubr.f32.gmra.mrb[4].mxu1 %v44_v31 }
  0x2c   :  { %715 = vmatprep.mubr.msk.f32.mxu0 %vm897_vm0, %v898_v6  ;;  %790 = vmatprep.mubr.msk.f32.mxu1 %vm897_vm0, %v898_v6 }
  0x2f   :  { %716 = vmatmul.mubr.f32.gmra.mrb[6].mxu0 %v20_v32  ;;  %791 = vmatmul.mubr.f32.gmra.mrb[6].mxu1 %v45_v33 }
  0x30   :  { %718 = vmatprep.mubr.msk.f32.mxu0 %vm897_vm0, %v898_v6  ;;  %793 = vmatprep.mubr.msk.f32.mxu1 %vm897_vm0, %v898_v6 }
  0x33   :  { %719 = vmatmul.mubr.f32.gmra.mrb[8].mxu0 %v21_v34  ;;  %794 = vmatmul.mubr.f32.gmra.mrb[8].mxu1 %v46_v35 }
  0x34   :  { %721 = vmatprep.mubr.msk.f32.mxu0 %vm897_vm0, %v898_v6  ;;  %796 = vmatprep.mubr.msk.f32.mxu1 %vm897_vm0, %v898_v6 }
  0x37   :  { %722 = vmatmul.mubr.f32.gmra.mrb[10].mxu0 %v22_v36  ;;  %797 = vmatmul.mubr.f32.gmra.mrb[10].mxu1 %v47_v37 }
  0x38   :  { %724 = vmatprep.mubr.msk.f32.mxu0 %vm897_vm0, %v898_v6  ;;  %799 = vmatprep.mubr.msk.f32.mxu1 %vm897_vm0, %v898_v6 }
  0x3b   :  { %725 = vmatmul.mubr.f32.gmra.mrb[12].mxu0 %v23_v38  ;;  %800 = vmatmul.mubr.f32.gmra.mrb[12].mxu1 %v48_v39 }
  0x3c   :  { %727 = vmatprep.mubr.msk.f32.mxu0 %vm897_vm0, %v898_v6  ;;  %802 = vmatprep.mubr.msk.f32.mxu1 %vm897_vm0, %v898_v6 }
  0x3f   :  { %728 = vmatmul.mubr.f32.gmra.mrb[14].mxu0 %v24_v40  ;;  %803 = vmatmul.mubr.f32.gmra.mrb[14].mxu1 %v49_v41 }
  0x40   :  { %730 = vmatprep.mubr.msk.f32.mxu0 %vm897_vm0, %v898_v6  ;;  %805 = vmatprep.mubr.msk.f32.mxu1 %vm897_vm0, %v898_v6 }
  0x43   :  { %731 = vmatmul.mubr.f32.gmra.mrb[16].mxu0 %v25_v42  ;;  %806 = vmatmul.mubr.f32.gmra.mrb[16].mxu1 %v50_v43 }
  0x44   :  { %733 = vmatprep.mubr.msk.f32.mxu0 %vm897_vm0, %v898_v6  ;;  %808 = vmatprep.mubr.msk.f32.mxu1 %vm897_vm0, %v898_v6 }
  0x47   :  { %734 = vmatmul.mubr.f32.gmra.mrb[18].mxu0 %v26_v44  ;;  %809 = vmatmul.mubr.f32.gmra.mrb[18].mxu1 %v51_v45 }
  0x48   :  { %736 = vmatprep.mubr.msk.f32.mxu0 %vm897_vm0, %v898_v6  ;;  %811 = vmatprep.mubr.msk.f32.mxu1 %vm897_vm0, %v898_v6 }
  0x4b   :  { %737 = vmatmul.mubr.f32.gmra.mrb[20].mxu0 %v27_v46  ;;  %812 = vmatmul.mubr.f32.gmra.mrb[20].mxu1 %v52_v47 }
  0x4c   :  { %739 = vmatprep.mubr.msk.f32.mxu0 %vm897_vm0, %v898_v6  ;;  %814 = vmatprep.mubr.msk.f32.mxu1 %vm897_vm0, %v898_v6 }
  0x4f   :  { %740 = vmatmul.mubr.f32.gmra.mrb[22].mxu0 %v28_v48  ;;  %815 = vmatmul.mubr.f32.gmra.mrb[22].mxu1 %v53_v49 }
  0x50   :  { %742 = vmatprep.mubr.msk.f32.mxu0 %vm897_vm0, %v898_v6  ;;  %817 = vmatprep.mubr.msk.f32.mxu1 %vm897_vm0, %v898_v6 }
  0x53   :  { %743 = vmatmul.mubr.f32.gmra.mrb[24].mxu0 %v29_v50  ;;  %818 = vmatmul.mubr.f32.gmra.mrb[24].mxu1 %v54_v51 }
  0x54   :  { %745 = vmatprep.mubr.msk.f32.mxu0 %vm897_vm0, %v898_v6  ;;  %820 = vmatprep.mubr.msk.f32.mxu1 %vm897_vm0, %v898_v6 }
  0x57   :  { %746 = vmatmul.mubr.f32.gmra.mrb[26].mxu0 %v30_v52  ;;  %821 = vmatmul.mubr.f32.gmra.mrb[26].mxu1 %v55_v53 }
  0x58   :  { %748 = vmatprep.mubr.msk.f32.mxu0 %vm897_vm0, %v898_v6  ;;  %823 = vmatprep.mubr.msk.f32.mxu1 %vm897_vm0, %v898_v6 }
  0x5b   :  { %749 = vmatmul.mubr.f32.gmra.mrb[28].mxu0 %v31_v54  ;;  %824 = vmatmul.mubr.f32.gmra.mrb[28].mxu1 %v56_v55 }
  0x5c   :  { %751 = vmatprep.mubr.msk.f32.mxu0 %vm897_vm0, %v898_v6  ;;  %826 = vmatprep.mubr.msk.f32.mxu1 %vm897_vm0, %v898_v6 }
  0x5f   :  { %752 = vmatmul.mubr.f32.gmra.mrb[30].mxu0 %v32_v56  ;;  %827 = vmatmul.mubr.f32.gmra.mrb[30].mxu1 %v57_v57 }
  0x60   :  { %754 = vmatprep.mubr.msk.f32.mxu0 %vm897_vm0, %v898_v6  ;;  %829 = vmatprep.mubr.msk.f32.mxu1 %vm897_vm0, %v898_v6 }
  0x63   :  { %755 = vmatmul.mubr.f32.gmra.mrb[32].mxu0 %v33_v58  ;;  %830 = vmatmul.mubr.f32.gmra.mrb[32].mxu1 %v58_v59 }
  0x64   :  { %757 = vmatprep.mubr.msk.f32.mxu0 %vm897_vm0, %v898_v6  ;;  %832 = vmatprep.mubr.msk.f32.mxu1 %vm897_vm0, %v898_v6 }
  0x67   :  { %758 = vmatmul.mubr.f32.gmra.mrb[34].mxu0 %v34_v60  ;;  %833 = vmatmul.mubr.f32.gmra.mrb[34].mxu1 %v59_v61 }
  0x68   :  { %760 = vmatprep.mubr.msk.f32.mxu0 %vm897_vm0, %v898_v6  ;;  %835 = vmatprep.mubr.msk.f32.mxu1 %vm897_vm0, %v898_v6 }
  0x6b   :  { %761 = vmatmul.mubr.f32.gmra.mrb[36].mxu0 %v35_v62  ;;  %836 = vmatmul.mubr.f32.gmra.mrb[36].mxu1 %v60_v63 }
  0x6c   :  { %763 = vmatprep.mubr.msk.f32.mxu0 %vm897_vm0, %v898_v6  ;;  %838 = vmatprep.mubr.msk.f32.mxu1 %vm897_vm0, %v898_v6 }
  0x6f   :  { %764 = vmatmul.mubr.f32.gmra.mrb[38].mxu0 %v36_v0  ;;  %839 = vmatmul.mubr.f32.gmra.mrb[38].mxu1 %v61_v1 }
  0x70   :  { %766 = vmatprep.mubr.msk.f32.mxu0 %vm897_vm0, %v898_v6  ;;  %841 = vmatprep.mubr.msk.f32.mxu1 %vm897_vm0, %v898_v6 }
  0x73   :  { %767 = vmatmul.mubr.f32.gmra.mrb[40].mxu0 %v37_v2  ;;  %842 = vmatmul.mubr.f32.gmra.mrb[40].mxu1 %v62_v3 }
  0x74   :  { %769 = vmatprep.mubr.msk.f32.mxu0 %vm897_vm0, %v898_v6  ;;  %844 = vmatprep.mubr.msk.f32.mxu1 %vm897_vm0, %v898_v6 }
  0x77   :  { %770 = vmatmul.mubr.f32.gmra.mrb[42].mxu0 %v38_v4  ;;  %845 = vmatmul.mubr.f32.gmra.mrb[42].mxu1 %v63_v5 }
  0x78   :  { %772 = vmatprep.mubr.msk.f32.mxu0 %vm897_vm0, %v898_v6  ;;  %847 = vmatprep.mubr.msk.f32.mxu1 %vm897_vm0, %v898_v6 }
  0x7b   :  { %773 = vmatmul.mubr.f32.gmra.mrb[44].mxu0 %v39_v7  ;;  %848 = vmatmul.mubr.f32.gmra.mrb[44].mxu1 %v64_v8 }
  0x7c   :  { %775 = vmatprep.mubr.msk.f32.mxu0 %vm897_vm0, %v898_v6  ;;  %850 = vmatprep.mubr.msk.f32.mxu1 %vm897_vm0, %v898_v6 }
  0x7f   :  { %776 = vmatmul.mubr.f32.gmra.mrb[46].mxu0 %v40_v9  ;;  %851 = vmatmul.mubr.f32.gmra.mrb[46].mxu1 %v65_v10 }
  0x80   :  { %778 = vmatprep.mubr.msk.f32.mxu0 %vm897_vm0, %v898_v6 }
  0x83   :  { %779 = vmatmul.mubr.f32.gmra.mrb[48].mxu0 %v41_v11 }
  0xf6   :  { %v148_v13 = vpop.f32.mrb[0].mxu0  ;;  %v273_v15 = vpop.f32.mrb[0].mxu1 }
  0xf7   :  { %v399_v16 = vmul.f32 %v1220_v12, %v148_v13  ;;  %v708_v6 = vpop.f32.mrb[1].mxu0  ;;  %v424_v17 = vmul.f32 %v1220_v12, %v273_v15  ;;  %v783_v18 = vpop.f32.mrb[1].mxu1 }
  0xf9   :  { %v455_v19 = vadd.f32 %v1225_v14, %v399_v16  ;;  %v480_v20 = vadd.f32 %v1225_v14, %v424_v17 }
  0xfa   :  { %v153_v21 = vpop.f32.mrb[2].mxu0  ;;  %v278_v22 = vpop.f32.mrb[2].mxu1 }
  0xfb   :  { %v504_v23 = vmax.f32 %v455_v19, 0.0  ;;  %v529_v24 = vmax.f32 %v480_v20, 0.0  ;;  %v400_v25 = vmul.f32 %v1220_v12, %v153_v21  ;;  %v711_v26 = vpop.f32.mrb[3].mxu0  ;;  %v425_v27 = vmul.f32 %v1220_v12, %v278_v22  ;;  %v786_v28 = vpop.f32.mrb[3].mxu1 }
  0xfd   :  { %554 = vst.msk [vmem:[%s1525_s4] sm:$0xff] %vm553_vm1, %v504_v23  ;;  %579 = vst.msk [vmem:[%s1525_s4 + $0xc8] sm:$0xff] %vm553_vm1, %v529_v24  ;;  %v456_v29 = vadd.f32 %v1225_v14, %v400_v25  ;;  %v481_v30 = vadd.f32 %v1225_v14, %v425_v27 }
  0xfe   :  { %v158_v31 = vpop.f32.mrb[4].mxu0  ;;  %v283_v32 = vpop.f32.mrb[4].mxu1 }
  0xff   :  { %v505_v33 = vmax.f32 %v456_v29, 0.0  ;;  %v530_v34 = vmax.f32 %v481_v30, 0.0  ;;  %v401_v35 = vmul.f32 %v1220_v12, %v158_v31  ;;  %v714_v36 = vpop.f32.mrb[5].mxu0  ;;  %v426_v37 = vmul.f32 %v1220_v12, %v283_v32  ;;  %v789_v38 = vpop.f32.mrb[5].mxu1 }
 0x101   :  { %555 = vst.msk [vmem:[%s1525_s4 + $0x8] sm:$0xff] %vm553_vm1, %v505_v33  ;;  %580 = vst.msk [vmem:[%s1525_s4 + $0xd0] sm:$0xff] %vm553_vm1, %v530_v34  ;;  %v457_v39 = vadd.f32 %v1225_v14, %v401_v35  ;;  %v482_v40 = vadd.f32 %v1225_v14, %v426_v37 }
 0x102   :  { %v163_v41 = vpop.f32.mrb[6].mxu0  ;;  %v288_v42 = vpop.f32.mrb[6].mxu1 }
 0x103   :  { %v506_v43 = vmax.f32 %v457_v39, 0.0  ;;  %v531_v44 = vmax.f32 %v482_v40, 0.0  ;;  %v402_v45 = vmul.f32 %v1220_v12, %v163_v41  ;;  %v717_v46 = vpop.f32.mrb[7].mxu0  ;;  %v427_v47 = vmul.f32 %v1220_v12, %v288_v42  ;;  %v792_v48 = vpop.f32.mrb[7].mxu1 }
 0x105   :  { %556 = vst.msk [vmem:[%s1525_s4 + $0x10] sm:$0xff] %vm553_vm1, %v506_v43  ;;  %581 = vst.msk [vmem:[%s1525_s4 + $0xd8] sm:$0xff] %vm553_vm1, %v531_v44  ;;  %v458_v49 = vadd.f32 %v1225_v14, %v402_v45  ;;  %v483_v50 = vadd.f32 %v1225_v14, %v427_v47 }
 0x106   :  { %v168_v51 = vpop.f32.mrb[8].mxu0  ;;  %v293_v52 = vpop.f32.mrb[8].mxu1 }
 0x107   :  { %v507_v53 = vmax.f32 %v458_v49, 0.0  ;;  %v532_v54 = vmax.f32 %v483_v50, 0.0  ;;  %v403_v55 = vmul.f32 %v1220_v12, %v168_v51  ;;  %v720_v56 = vpop.f32.mrb[9].mxu0  ;;  %v428_v57 = vmul.f32 %v1220_v12, %v293_v52  ;;  %v795_v58 = vpop.f32.mrb[9].mxu1 }
 0x109   :  { %557 = vst.msk [vmem:[%s1525_s4 + $0x18] sm:$0xff] %vm553_vm1, %v507_v53  ;;  %582 = vst.msk [vmem:[%s1525_s4 + $0xe0] sm:$0xff] %vm553_vm1, %v532_v54  ;;  %v459_v59 = vadd.f32 %v1225_v14, %v403_v55  ;;  %v484_v60 = vadd.f32 %v1225_v14, %v428_v57 }
 0x10a   :  { %v173_v61 = vpop.f32.mrb[10].mxu0  ;;  %v298_v62 = vpop.f32.mrb[10].mxu1 }
 0x10b   :  { %v508_v63 = vmax.f32 %v459_v59, 0.0  ;;  %v533_v0 = vmax.f32 %v484_v60, 0.0  ;;  %v404_v1 = vmul.f32 %v1220_v12, %v173_v61  ;;  %v723_v2 = vpop.f32.mrb[11].mxu0  ;;  %v429_v3 = vmul.f32 %v1220_v12, %v298_v62  ;;  %v798_v4 = vpop.f32.mrb[11].mxu1 }
 0x10d   :  { %558 = vst.msk [vmem:[%s1525_s4 + $0x20] sm:$0xff] %vm553_vm1, %v508_v63  ;;  %583 = vst.msk [vmem:[%s1525_s4 + $0xe8] sm:$0xff] %vm553_vm1, %v533_v0  ;;  %v460_v5 = vadd.f32 %v1225_v14, %v404_v1  ;;  %v485_v7 = vadd.f32 %v1225_v14, %v429_v3 }
 0x10e   :  { %v178_v8 = vpop.f32.mrb[12].mxu0  ;;  %v303_v9 = vpop.f32.mrb[12].mxu1 }
 0x10f   :  { %v509_v10 = vmax.f32 %v460_v5, 0.0  ;;  %v534_v11 = vmax.f32 %v485_v7, 0.0  ;;  %v405_v13 = vmul.f32 %v1220_v12, %v178_v8  ;;  %v726_v15 = vpop.f32.mrb[13].mxu0  ;;  %v430_v16 = vmul.f32 %v1220_v12, %v303_v9  ;;  %v801_v6 = vpop.f32.mrb[13].mxu1 }
 0x111   :  { %559 = vst.msk [vmem:[%s1525_s4 + $0x28] sm:$0xff] %vm553_vm1, %v509_v10  ;;  %584 = vst.msk [vmem:[%s1525_s4 + $0xf0] sm:$0xff] %vm553_vm1, %v534_v11  ;;  %v461_v17 = vadd.f32 %v1225_v14, %v405_v13  ;;  %v486_v18 = vadd.f32 %v1225_v14, %v430_v16 }
 0x112   :  { %v183_v19 = vpop.f32.mrb[14].mxu0  ;;  %v308_v20 = vpop.f32.mrb[14].mxu1 }
 0x113   :  { %v510_v21 = vmax.f32 %v461_v17, 0.0  ;;  %v535_v22 = vmax.f32 %v486_v18, 0.0  ;;  %v406_v23 = vmul.f32 %v1220_v12, %v183_v19  ;;  %v729_v24 = vpop.f32.mrb[15].mxu0  ;;  %v431_v25 = vmul.f32 %v1220_v12, %v308_v20  ;;  %v804_v26 = vpop.f32.mrb[15].mxu1 }
 0x115   :  { %560 = vst.msk [vmem:[%s1525_s4 + $0x30] sm:$0xff] %vm553_vm1, %v510_v21  ;;  %585 = vst.msk [vmem:[%s1525_s4 + $0xf8] sm:$0xff] %vm553_vm1, %v535_v22  ;;  %v462_v27 = vadd.f32 %v1225_v14, %v406_v23  ;;  %v487_v28 = vadd.f32 %v1225_v14, %v431_v25 }
 0x116   :  { %v188_v29 = vpop.f32.mrb[16].mxu0  ;;  %v313_v30 = vpop.f32.mrb[16].mxu1 }
 0x117   :  { %v511_v31 = vmax.f32 %v462_v27, 0.0  ;;  %v536_v32 = vmax.f32 %v487_v28, 0.0  ;;  %v407_v33 = vmul.f32 %v1220_v12, %v188_v29  ;;  %v732_v34 = vpop.f32.mrb[17].mxu0  ;;  %v432_v35 = vmul.f32 %v1220_v12, %v313_v30  ;;  %v807_v36 = vpop.f32.mrb[17].mxu1 }
 0x119   :  { %561 = vst.msk [vmem:[%s1525_s4 + $0x38] sm:$0xff] %vm553_vm1, %v511_v31  ;;  %586 = vst.msk [vmem:[%s1525_s4 + $0x100] sm:$0xff] %vm553_vm1, %v536_v32  ;;  %v463_v37 = vadd.f32 %v1225_v14, %v407_v33  ;;  %v488_v38 = vadd.f32 %v1225_v14, %v432_v35 }
 0x11a   :  { %v193_v39 = vpop.f32.mrb[18].mxu0  ;;  %v318_v40 = vpop.f32.mrb[18].mxu1 }
 0x11b   :  { %v512_v41 = vmax.f32 %v463_v37, 0.0  ;;  %v537_v42 = vmax.f32 %v488_v38, 0.0  ;;  %v408_v43 = vmul.f32 %v1220_v12, %v193_v39  ;;  %v735_v44 = vpop.f32.mrb[19].mxu0  ;;  %v433_v45 = vmul.f32 %v1220_v12, %v318_v40  ;;  %v810_v46 = vpop.f32.mrb[19].mxu1 }
 0x11d   :  { %562 = vst.msk [vmem:[%s1525_s4 + $0x40] sm:$0xff] %vm553_vm1, %v512_v41  ;;  %587 = vst.msk [vmem:[%s1525_s4 + $0x108] sm:$0xff] %vm553_vm1, %v537_v42  ;;  %v464_v47 = vadd.f32 %v1225_v14, %v408_v43  ;;  %v489_v48 = vadd.f32 %v1225_v14, %v433_v45 }
 0x11e   :  { %v198_v49 = vpop.f32.mrb[20].mxu0  ;;  %v323_v50 = vpop.f32.mrb[20].mxu1 }
 0x11f   :  { %v513_v51 = vmax.f32 %v464_v47, 0.0  ;;  %v538_v52 = vmax.f32 %v489_v48, 0.0  ;;  %v409_v53 = vmul.f32 %v1220_v12, %v198_v49  ;;  %v738_v54 = vpop.f32.mrb[21].mxu0  ;;  %v434_v55 = vmul.f32 %v1220_v12, %v323_v50  ;;  %v813_v56 = vpop.f32.mrb[21].mxu1 }
 0x121   :  { %563 = vst.msk [vmem:[%s1525_s4 + $0x48] sm:$0xff] %vm553_vm1, %v513_v51  ;;  %588 = vst.msk [vmem:[%s1525_s4 + $0x110] sm:$0xff] %vm553_vm1, %v538_v52  ;;  %v465_v57 = vadd.f32 %v1225_v14, %v409_v53  ;;  %v490_v58 = vadd.f32 %v1225_v14, %v434_v55 }
 0x122   :  { %v203_v59 = vpop.f32.mrb[22].mxu0  ;;  %v328_v60 = vpop.f32.mrb[22].mxu1 }
 0x123   :  { %v514_v61 = vmax.f32 %v465_v57, 0.0  ;;  %v539_v62 = vmax.f32 %v490_v58, 0.0  ;;  %v410_v63 = vmul.f32 %v1220_v12, %v203_v59  ;;  %v741_v0 = vpop.f32.mrb[23].mxu0  ;;  %v435_v1 = vmul.f32 %v1220_v12, %v328_v60  ;;  %v816_v2 = vpop.f32.mrb[23].mxu1 }
 0x125   :  { %564 = vst.msk [vmem:[%s1525_s4 + $0x50] sm:$0xff] %vm553_vm1, %v514_v61  ;;  %589 = vst.msk [vmem:[%s1525_s4 + $0x118] sm:$0xff] %vm553_vm1, %v539_v62  ;;  %v466_v3 = vadd.f32 %v1225_v14, %v410_v63  ;;  %v491_v4 = vadd.f32 %v1225_v14, %v435_v1 }
 0x126   :  { %v208_v5 = vpop.f32.mrb[24].mxu0  ;;  %v333_v7 = vpop.f32.mrb[24].mxu1 }
 0x127   :  { %v515_v8 = vmax.f32 %v466_v3, 0.0  ;;  %v540_v9 = vmax.f32 %v491_v4, 0.0  ;;  %v411_v10 = vmul.f32 %v1220_v12, %v208_v5  ;;  %v744_v11 = vpop.f32.mrb[25].mxu0  ;;  %v436_v13 = vmul.f32 %v1220_v12, %v333_v7  ;;  %v819_v15 = vpop.f32.mrb[25].mxu1 }
 0x129   :  { %565 = vst.msk [vmem:[%s1525_s4 + $0x58] sm:$0xff] %vm553_vm1, %v515_v8  ;;  %590 = vst.msk [vmem:[%s1525_s4 + $0x120] sm:$0xff] %vm553_vm1, %v540_v9  ;;  %v467_v16 = vadd.f32 %v1225_v14, %v411_v10  ;;  %v492_v6 = vadd.f32 %v1225_v14, %v436_v13 }
 0x12a   :  { %v213_v17 = vpop.f32.mrb[26].mxu0  ;;  %v338_v18 = vpop.f32.mrb[26].mxu1 }
 0x12b   :  { %v516_v19 = vmax.f32 %v467_v16, 0.0  ;;  %v541_v20 = vmax.f32 %v492_v6, 0.0  ;;  %v412_v21 = vmul.f32 %v1220_v12, %v213_v17  ;;  %v747_v22 = vpop.f32.mrb[27].mxu0  ;;  %v437_v23 = vmul.f32 %v1220_v12, %v338_v18  ;;  %v822_v24 = vpop.f32.mrb[27].mxu1 }
 0x12d   :  { %566 = vst.msk [vmem:[%s1525_s4 + $0x60] sm:$0xff] %vm553_vm1, %v516_v19  ;;  %591 = vst.msk [vmem:[%s1525_s4 + $0x128] sm:$0xff] %vm553_vm1, %v541_v20  ;;  %v468_v25 = vadd.f32 %v1225_v14, %v412_v21  ;;  %v493_v26 = vadd.f32 %v1225_v14, %v437_v23 }
 0x12e   :  { %v218_v27 = vpop.f32.mrb[28].mxu0  ;;  %v343_v28 = vpop.f32.mrb[28].mxu1 }
 0x12f   :  { %v517_v29 = vmax.f32 %v468_v25, 0.0  ;;  %v542_v30 = vmax.f32 %v493_v26, 0.0  ;;  %v413_v31 = vmul.f32 %v1220_v12, %v218_v27  ;;  %v750_v32 = vpop.f32.mrb[29].mxu0  ;;  %v438_v33 = vmul.f32 %v1220_v12, %v343_v28  ;;  %v825_v34 = vpop.f32.mrb[29].mxu1 }
 0x131   :  { %567 = vst.msk [vmem:[%s1525_s4 + $0x68] sm:$0xff] %vm553_vm1, %v517_v29  ;;  %592 = vst.msk [vmem:[%s1525_s4 + $0x130] sm:$0xff] %vm553_vm1, %v542_v30  ;;  %v469_v35 = vadd.f32 %v1225_v14, %v413_v31  ;;  %v494_v36 = vadd.f32 %v1225_v14, %v438_v33 }
 0x132   :  { %v223_v37 = vpop.f32.mrb[30].mxu0  ;;  %v348_v38 = vpop.f32.mrb[30].mxu1 }
 0x133   :  { %v518_v39 = vmax.f32 %v469_v35, 0.0  ;;  %v543_v40 = vmax.f32 %v494_v36, 0.0  ;;  %v414_v41 = vmul.f32 %v1220_v12, %v223_v37  ;;  %v753_v42 = vpop.f32.mrb[31].mxu0  ;;  %v439_v43 = vmul.f32 %v1220_v12, %v348_v38  ;;  %v828_v44 = vpop.f32.mrb[31].mxu1 }
 0x135   :  { %568 = vst.msk [vmem:[%s1525_s4 + $0x70] sm:$0xff] %vm553_vm1, %v518_v39  ;;  %593 = vst.msk [vmem:[%s1525_s4 + $0x138] sm:$0xff] %vm553_vm1, %v543_v40  ;;  %v470_v45 = vadd.f32 %v1225_v14, %v414_v41  ;;  %v495_v46 = vadd.f32 %v1225_v14, %v439_v43 }
 0x136   :  { %v228_v47 = vpop.f32.mrb[32].mxu0  ;;  %v353_v48 = vpop.f32.mrb[32].mxu1 }
 0x137   :  { %v519_v49 = vmax.f32 %v470_v45, 0.0  ;;  %v544_v50 = vmax.f32 %v495_v46, 0.0  ;;  %v415_v51 = vmul.f32 %v1220_v12, %v228_v47  ;;  %v756_v52 = vpop.f32.mrb[33].mxu0  ;;  %v440_v53 = vmul.f32 %v1220_v12, %v353_v48  ;;  %v831_v54 = vpop.f32.mrb[33].mxu1 }
 0x139   :  { %569 = vst.msk [vmem:[%s1525_s4 + $0x78] sm:$0xff] %vm553_vm1, %v519_v49  ;;  %594 = vst.msk [vmem:[%s1525_s4 + $0x140] sm:$0xff] %vm553_vm1, %v544_v50  ;;  %v471_v55 = vadd.f32 %v1225_v14, %v415_v51  ;;  %v496_v56 = vadd.f32 %v1225_v14, %v440_v53 }
 0x13a   :  { %v233_v57 = vpop.f32.mrb[34].mxu0  ;;  %v358_v58 = vpop.f32.mrb[34].mxu1 }
 0x13b   :  { %v520_v59 = vmax.f32 %v471_v55, 0.0  ;;  %v545_v60 = vmax.f32 %v496_v56, 0.0  ;;  %v416_v61 = vmul.f32 %v1220_v12, %v233_v57  ;;  %v759_v62 = vpop.f32.mrb[35].mxu0  ;;  %v441_v63 = vmul.f32 %v1220_v12, %v358_v58  ;;  %v834_v0 = vpop.f32.mrb[35].mxu1 }
 0x13d   :  { %570 = vst.msk [vmem:[%s1525_s4 + $0x80] sm:$0xff] %vm553_vm1, %v520_v59  ;;  %595 = vst.msk [vmem:[%s1525_s4 + $0x148] sm:$0xff] %vm553_vm1, %v545_v60  ;;  %v472_v1 = vadd.f32 %v1225_v14, %v416_v61  ;;  %v497_v2 = vadd.f32 %v1225_v14, %v441_v63 }
 0x13e   :  { %v238_v3 = vpop.f32.mrb[36].mxu0  ;;  %v363_v4 = vpop.f32.mrb[36].mxu1 }
 0x13f   :  { %v521_v5 = vmax.f32 %v472_v1, 0.0  ;;  %v546_v7 = vmax.f32 %v497_v2, 0.0  ;;  %v417_v8 = vmul.f32 %v1220_v12, %v238_v3  ;;  %v762_v9 = vpop.f32.mrb[37].mxu0  ;;  %v442_v10 = vmul.f32 %v1220_v12, %v363_v4  ;;  %v837_v11 = vpop.f32.mrb[37].mxu1 }
 0x141   :  { %571 = vst.msk [vmem:[%s1525_s4 + $0x88] sm:$0xff] %vm553_vm1, %v521_v5  ;;  %596 = vst.msk [vmem:[%s1525_s4 + $0x150] sm:$0xff] %vm553_vm1, %v546_v7  ;;  %v473_v13 = vadd.f32 %v1225_v14, %v417_v8  ;;  %v498_v15 = vadd.f32 %v1225_v14, %v442_v10 }
 0x142   :  { %v243_v16 = vpop.f32.mrb[38].mxu0  ;;  %v368_v6 = vpop.f32.mrb[38].mxu1 }
 0x143   :  { %v522_v17 = vmax.f32 %v473_v13, 0.0  ;;  %v547_v18 = vmax.f32 %v498_v15, 0.0  ;;  %v418_v19 = vmul.f32 %v1220_v12, %v243_v16  ;;  %v765_v20 = vpop.f32.mrb[39].mxu0  ;;  %v443_v21 = vmul.f32 %v1220_v12, %v368_v6  ;;  %v840_v22 = vpop.f32.mrb[39].mxu1 }
 0x145   :  { %572 = vst.msk [vmem:[%s1525_s4 + $0x90] sm:$0xff] %vm553_vm1, %v522_v17  ;;  %597 = vst.msk [vmem:[%s1525_s4 + $0x158] sm:$0xff] %vm553_vm1, %v547_v18  ;;  %v474_v23 = vadd.f32 %v1225_v14, %v418_v19  ;;  %v499_v24 = vadd.f32 %v1225_v14, %v443_v21 }
 0x146   :  { %v248_v25 = vpop.f32.mrb[40].mxu0  ;;  %v373_v26 = vpop.f32.mrb[40].mxu1 }
 0x147   :  { %v523_v27 = vmax.f32 %v474_v23, 0.0  ;;  %v548_v28 = vmax.f32 %v499_v24, 0.0  ;;  %v419_v29 = vmul.f32 %v1220_v12, %v248_v25  ;;  %v768_v30 = vpop.f32.mrb[41].mxu0  ;;  %v444_v31 = vmul.f32 %v1220_v12, %v373_v26  ;;  %v843_v32 = vpop.f32.mrb[41].mxu1 }
 0x149   :  { %573 = vst.msk [vmem:[%s1525_s4 + $0x98] sm:$0xff] %vm553_vm1, %v523_v27  ;;  %598 = vst.msk [vmem:[%s1525_s4 + $0x160] sm:$0xff] %vm553_vm1, %v548_v28  ;;  %v475_v33 = vadd.f32 %v1225_v14, %v419_v29  ;;  %v500_v34 = vadd.f32 %v1225_v14, %v444_v31 }
 0x14a   :  { %v253_v35 = vpop.f32.mrb[42].mxu0  ;;  %v378_v36 = vpop.f32.mrb[42].mxu1 }
 0x14b   :  { %v524_v37 = vmax.f32 %v475_v33, 0.0  ;;  %v549_v38 = vmax.f32 %v500_v34, 0.0  ;;  %v420_v39 = vmul.f32 %v1220_v12, %v253_v35  ;;  %v771_v40 = vpop.f32.mrb[43].mxu0  ;;  %v445_v41 = vmul.f32 %v1220_v12, %v378_v36  ;;  %v846_v42 = vpop.f32.mrb[43].mxu1 }
 0x14d   :  { %574 = vst.msk [vmem:[%s1525_s4 + $0xa0] sm:$0xff] %vm553_vm1, %v524_v37  ;;  %599 = vst.msk [vmem:[%s1525_s4 + $0x168] sm:$0xff] %vm553_vm1, %v549_v38  ;;  %v476_v43 = vadd.f32 %v1225_v14, %v420_v39  ;;  %v501_v44 = vadd.f32 %v1225_v14, %v445_v41 }
 0x14e   :  { %v258_v45 = vpop.f32.mrb[44].mxu0  ;;  %v383_v46 = vpop.f32.mrb[44].mxu1 }
 0x14f   :  { %v525_v47 = vmax.f32 %v476_v43, 0.0  ;;  %v550_v48 = vmax.f32 %v501_v44, 0.0  ;;  %v421_v49 = vmul.f32 %v1220_v12, %v258_v45  ;;  %v774_v50 = vpop.f32.mrb[45].mxu0  ;;  %v446_v51 = vmul.f32 %v1220_v12, %v383_v46  ;;  %v849_v52 = vpop.f32.mrb[45].mxu1 }
 0x151   :  { %575 = vst.msk [vmem:[%s1525_s4 + $0xa8] sm:$0xff] %vm553_vm1, %v525_v47  ;;  %600 = vst.msk [vmem:[%s1525_s4 + $0x170] sm:$0xff] %vm553_vm1, %v550_v48  ;;  %v477_v53 = vadd.f32 %v1225_v14, %v421_v49  ;;  %v502_v54 = vadd.f32 %v1225_v14, %v446_v51 }
 0x152   :  { %v263_v55 = vpop.f32.mrb[46].mxu0  ;;  %v388_v56 = vpop.f32.mrb[46].mxu1 }
 0x153   :  { %v526_v57 = vmax.f32 %v477_v53, 0.0  ;;  %v551_v58 = vmax.f32 %v502_v54, 0.0  ;;  %v422_v59 = vmul.f32 %v1220_v12, %v263_v55  ;;  %v777_v60 = vpop.f32.mrb[47].mxu0  ;;  %v447_v61 = vmul.f32 %v1220_v12, %v388_v56  ;;  %v852_v62 = vpop.f32.mrb[47].mxu1 }
 0x155   :  { %576 = vst.msk [vmem:[%s1525_s4 + $0xb0] sm:$0xff] %vm553_vm1, %v526_v57  ;;  %601 = vst.msk [vmem:[%s1525_s4 + $0x178] sm:$0xff] %vm553_vm1, %v551_v58  ;;  %v478_v63 = vadd.f32 %v1225_v14, %v422_v59  ;;  %v503_v0 = vadd.f32 %v1225_v14, %v447_v61 }
 0x156   :  { %v268_v1 = vpop.f32.mrb[48].mxu0 }
 0x157   :  { %v527_v2 = vmax.f32 %v478_v63, 0.0  ;;  %v552_v3 = vmax.f32 %v503_v0, 0.0  ;;  %v423_v4 = vmul.f32 %v1220_v12, %v268_v1  ;;  %v780_v5 = vpop.f32.mrb[49].mxu0 }
 0x159   :  { %577 = vst.msk [vmem:[%s1525_s4 + $0xb8] sm:$0xff] %vm553_vm1, %v527_v2  ;;  %602 = vst.msk [vmem:[%s1525_s4 + $0x180] sm:$0xff] %vm553_vm1, %v552_v3  ;;  %v479_v7 = vadd.f32 %v1225_v14, %v423_v4 }
 0x15b   :  { %v528_v8 = vmax.f32 %v479_v7, 0.0 }
 0x15d   :  { %578 = vst.msk [vmem:[%s1525_s4 + $0xc0] sm:$0xff] %vm553_vm1, %v528_v8 }

// kernel: vae_forward.17
= control target key start
LH: loop header
LB: loop body
LE: loop exit
PB: predicated region body
PF: predicated region fallthrough
CT: control target
= control target key end

     0   :  { %v1280_v8 = vmov 0   ;;  %v257_v58 = vlaneseq  ;;  %vm271_vm0 = vcmask 130048   ;;  %s2081_s0 = inlined_call_operand.vmem [shape: f32[144,1568], index: 0, kind: input, shape index: {}]   ;;  %s2082_s2 = inlined_call_operand.<no memory space> [shape: f32[1,1], index: 2, kind: input, shape index: {}]   ;;  %s2083_s1 = inlined_call_operand.vmem [shape: f32[1,144], index: 1, kind: input, shape index: {}]   ;;  %s2084_s3 = inlined_call_operand.vmem [shape: f32[1,1568], index: 3, kind: output, shape index: {}]  }
   0x1   :  { %v18_v0 = vld [vmem:[%s2081_s0 + $0x8] sm:$0xff]  ;;  %v31_v1 = vld [vmem:[%s2081_s0 + $0x70] sm:$0xff]  ;;  %v20_v2 = vld [vmem:[%s2081_s0 + $0x18] sm:$0xff]  ;;  %v8_v3 = vstv %s2082_s2  ;;  %1227 = vset.pattern.permute.xlu0 %v1280_v8 }
   0x2   :  { %v981_v4 = vpack.c.bf16 %v31_v1, %v18_v0  ;;  %v33_v5 = vld [vmem:[%s2081_s0 + $0x80] sm:$0xff]  ;;  %v30_v7 = vld [vmem:[%s2081_s0 + $0x68] sm:$0xff]  ;;  %9 = vst [vmem:[#allocation2] sm:$0x1] %v8_v3  ;;  %v19_v11 = vld [vmem:[%s2081_s0 + $0x10] sm:$0xff]  ;;  %vm954_vm1 = vcmp.lt.s32.totalorder %v257_v58, 544 }
   0x3   :  { %v17_v6 = vld [vmem:[%s2081_s0] sm:$0xff]  ;;  %v1017_v9 = vpack.c.bf16 %v33_v5, %v20_v2  ;;  %v32_v12 = vld [vmem:[%s2081_s0 + $0x78] sm:$0xff]  ;;  %v46_v16 = vld [vmem:[%s2081_s0 + $0xe8] sm:$0xff] }
   0x4   :  { %v983_v10 = vpack.c.bf16 %v30_v7, %v17_v6  ;;  %v44_v13 = vld [vmem:[%s2081_s0 + $0xd8] sm:$0xff]  ;;  %982 = vmatprep.subr.bf16.mxu0 %v981_v4  ;;  %v1019_v14 = vpack.c.bf16 %v32_v12, %v19_v11  ;;  %v57_v15 = vld [vmem:[%s2081_s0 + $0x140] sm:$0xff]  ;;  %v59_v17 = vld [vmem:[%s2081_s0 + $0x150] sm:$0xff]  ;;  %v1448_v7 = vshrl.u32 %v257_v58, 7 }
   0x5   :  { %1018 = vmatprep.subr.bf16.mxu1 %v1017_v9  ;;  %v985_v18 = vpack.c.bf16 %v57_v15, %v44_v13  ;;  %v1021_v19 = vpack.c.bf16 %v59_v17, %v46_v16  ;;  %v43_v20 = vld [vmem:[%s2081_s0 + $0xd0] sm:$0xff]  ;;  %v56_v21 = vld [vmem:[%s2081_s0 + $0x138] sm:$0xff]  ;;  %v45_v22 = vld [vmem:[%s2081_s0 + $0xe0] sm:$0xff] }
   0x6   :  { %984 = vmatpush1.bf16.msra.mxu0 %v983_v10  ;;  %1020 = vmatpush1.bf16.msra.mxu1 %v1019_v14  ;;  %v987_v23 = vpack.c.bf16 %v56_v21, %v43_v20  ;;  %v58_v24 = vld [vmem:[%s2081_s0 + $0x148] sm:$0xff]  ;;  %v83_v26 = vld [vmem:[%s2081_s0 + $0x210] sm:$0xff]  ;;  %v72_v29 = vld [vmem:[%s2081_s0 + $0x1b8] sm:$0xff]  ;;  %v268_v20 = vsub.s32 1, %v1448_v7 }
   0x7   :  { %v70_v25 = vld [vmem:[%s2081_s0 + $0x1a8] sm:$0xff]  ;;  %986 = vmatprep.subr.bf16.mxu0 %v985_v18  ;;  %1022 = vmatprep.subr.bf16.mxu1 %v1021_v19  ;;  %v1023_v27 = vpack.c.bf16 %v58_v24, %v45_v22  ;;  %v85_v30 = vld [vmem:[%s2081_s0 + $0x220] sm:$0xff]  ;;  %v71_v34 = vld [vmem:[%s2081_s0 + $0x1b0] sm:$0xff] }
   0x8   :  { %v989_v28 = vpack.c.bf16 %v83_v26, %v70_v25  ;;  %v69_v31 = vld [vmem:[%s2081_s0 + $0x1a0] sm:$0xff]  ;;  %v1025_v32 = vpack.c.bf16 %v85_v30, %v72_v29  ;;  %v82_v33 = vld [vmem:[%s2081_s0 + $0x208] sm:$0xff]  ;;  %v84_v35 = vld [vmem:[%s2081_s0 + $0x218] sm:$0xff] }
   0x9   :  { %v991_v36 = vpack.c.bf16 %v82_v33, %v69_v31  ;;  %v96_v37 = vld [vmem:[%s2081_s0 + $0x278] sm:$0xff]  ;;  %v109_v38 = vld [vmem:[%s2081_s0 + $0x2e0] sm:$0xff]  ;;  %v98_v39 = vld [vmem:[%s2081_s0 + $0x288] sm:$0xff]  ;;  %v1027_v40 = vpack.c.bf16 %v84_v35, %v71_v34 }
   0xa   :  { %988 = vmatpush1.bf16.msra.mxu0 %v987_v23  ;;  %1024 = vmatpush1.bf16.msra.mxu1 %v1023_v27  ;;  %v993_v41 = vpack.c.bf16 %v109_v38, %v96_v37  ;;  %v111_v42 = vld [vmem:[%s2081_s0 + $0x2f0] sm:$0xff]  ;;  %v108_v44 = vld [vmem:[%s2081_s0 + $0x2d8] sm:$0xff]  ;;  %v97_v46 = vld [vmem:[%s2081_s0 + $0x280] sm:$0xff] }
   0xb   :  { %990 = vmatprep.subr.bf16.mxu0 %v989_v28  ;;  %v95_v43 = vld [vmem:[%s2081_s0 + $0x270] sm:$0xff]  ;;  %1026 = vmatprep.subr.bf16.mxu1 %v1025_v32  ;;  %v1029_v45 = vpack.c.bf16 %v111_v42, %v98_v39  ;;  %v110_v47 = vld [vmem:[%s2081_s0 + $0x2e8] sm:$0xff]  ;;  %v124_v50 = vld [vmem:[%s2081_s0 + $0x358] sm:$0xff] }
   0xc   :  { %v122_v48 = vld [vmem:[%s2081_s0 + $0x348] sm:$0xff]  ;;  %v135_v49 = vld [vmem:[%s2081_s0 + $0x3b0] sm:$0xff]  ;;  %v137_v51 = vld [vmem:[%s2081_s0 + $0x3c0] sm:$0xff]  ;;  %v995_v52 = vpack.c.bf16 %v108_v44, %v95_v43  ;;  %v1031_v53 = vpack.c.bf16 %v110_v47, %v97_v46 }
   0xd   :  { %v997_v54 = vpack.c.bf16 %v135_v49, %v122_v48  ;;  %v121_v55 = vld [vmem:[%s2081_s0 + $0x340] sm:$0xff]  ;;  %v134_v56 = vld [vmem:[%s2081_s0 + $0x3a8] sm:$0xff]  ;;  %v123_v57 = vld [vmem:[%s2081_s0 + $0x350] sm:$0xff]  ;;  %v1033_v59 = vpack.c.bf16 %v137_v51, %v124_v50  ;;  %v259_v51 = vsub.s32 0, %v1448_v7 }
   0xe   :  { %992 = vmatpush1.bf16.msra.mxu0 %v991_v36  ;;  %1028 = vmatpush1.bf16.msra.mxu1 %v1027_v40  ;;  %v136_v60 = vld [vmem:[%s2081_s0 + $0x3b8] sm:$0xff]  ;;  %v161_v62 = vld [vmem:[%s2081_s0 + $0x480] sm:$0xff]  ;;  %v150_v63 = vld [vmem:[%s2081_s0 + $0x428] sm:$0xff]  ;;  %v999_v1 = vpack.c.bf16 %v134_v56, %v121_v55 }
   0xf   :  { %994 = vmatprep.subr.bf16.mxu0 %v993_v41  ;;  %1030 = vmatprep.subr.bf16.mxu1 %v1029_v45  ;;  %v148_v61 = vld [vmem:[%s2081_s0 + $0x418] sm:$0xff]  ;;  %v163_v0 = vld [vmem:[%s2081_s0 + $0x490] sm:$0xff]  ;;  %v1035_v2 = vpack.c.bf16 %v136_v60, %v123_v57  ;;  %v149_v6 = vld [vmem:[%s2081_s0 + $0x420] sm:$0xff] }
  0x10   :  { %v1001_v3 = vpack.c.bf16 %v161_v62, %v148_v61  ;;  %v147_v4 = vld [vmem:[%s2081_s0 + $0x410] sm:$0xff]  ;;  %v160_v5 = vld [vmem:[%s2081_s0 + $0x478] sm:$0xff]  ;;  %v1037_v8 = vpack.c.bf16 %v163_v0, %v150_v63  ;;  %v162_v9 = vld [vmem:[%s2081_s0 + $0x488] sm:$0xff] }
  0x11   :  { %v174_v10 = vld [vmem:[%s2081_s0 + $0x4e8] sm:$0xff]  ;;  %v187_v11 = vld [vmem:[%s2081_s0 + $0x550] sm:$0xff]  ;;  %v176_v12 = vld [vmem:[%s2081_s0 + $0x4f8] sm:$0xff]  ;;  %v1003_v14 = vpack.c.bf16 %v160_v5, %v147_v4  ;;  %v1039_v15 = vpack.c.bf16 %v162_v9, %v149_v6 }
  0x12   :  { %996 = vmatpush1.bf16.msra.mxu0 %v995_v52  ;;  %1032 = vmatpush1.bf16.msra.mxu1 %v1031_v53  ;;  %v189_v13 = vld [vmem:[%s2081_s0 + $0x560] sm:$0xff]  ;;  %v1005_v16 = vpack.c.bf16 %v187_v11, %v174_v10  ;;  %v186_v18 = vld [vmem:[%s2081_s0 + $0x548] sm:$0xff]  ;;  %v175_v19 = vld [vmem:[%s2081_s0 + $0x4f0] sm:$0xff] }
  0x13   :  { %998 = vmatprep.subr.bf16.mxu0 %v997_v54  ;;  %1034 = vmatprep.subr.bf16.mxu1 %v1033_v59  ;;  %v173_v17 = vld [vmem:[%s2081_s0 + $0x4e0] sm:$0xff]  ;;  %v1041_v21 = vpack.c.bf16 %v189_v13, %v176_v12  ;;  %v188_v22 = vld [vmem:[%s2081_s0 + $0x558] sm:$0xff]  ;;  %v202_v25 = vld [vmem:[%s2081_s0 + $0x5c8] sm:$0xff] }
  0x14   :  { %v200_v23 = vld [vmem:[%s2081_s0 + $0x5b8] sm:$0xff]  ;;  %v213_v24 = vld [vmem:[%s2081_s0 + $0x620] sm:$0xff]  ;;  %v215_v26 = vld [vmem:[%s2081_s0 + $0x630] sm:$0xff]  ;;  %v1007_v27 = vpack.c.bf16 %v186_v18, %v173_v17  ;;  %v1043_v29 = vpack.c.bf16 %v188_v22, %v175_v19 }
  0x15   :  { %v16_v28 = vld [vmem:[%s2083_s1] sm:$0x3]  ;;  %v1009_v30 = vpack.c.bf16 %v213_v24, %v200_v23  ;;  %v199_v31 = vld [vmem:[%s2081_s0 + $0x5b0] sm:$0xff]  ;;  %v212_v32 = vld [vmem:[%s2081_s0 + $0x618] sm:$0xff]  ;;  %v1045_v35 = vpack.c.bf16 %v215_v26, %v202_v25 }
  0x16   :  { %1000 = vmatpush1.bf16.msra.mxu0 %v999_v1  ;;  %1036 = vmatpush1.bf16.msra.mxu1 %v1035_v2  ;;  %v201_v33 = vld [vmem:[%s2081_s0 + $0x5c0] sm:$0xff]  ;;  %v1502_v34 = vrot.slane %v16_v28, %v268_v20  ;;  %v214_v36 = vld [vmem:[%s2081_s0 + $0x628] sm:$0xff]  ;;  %v239_v38 = vld [vmem:[%s2081_s0 + $0x6f0] sm:$0xff]  ;;  %v1011_v41 = vpack.c.bf16 %v212_v32, %v199_v31  ;;  %v1568_v1 = vrot.slane %v16_v28, %v259_v51 }
  0x17   :  { %1002 = vmatprep.subr.bf16.mxu0 %v1001_v3  ;;  %1038 = vmatprep.subr.bf16.mxu1 %v1037_v8  ;;  %v226_v37 = vld [vmem:[%s2081_s0 + $0x688] sm:$0xff]  ;;  %v228_v39 = vld [vmem:[%s2081_s0 + $0x698] sm:$0xff]  ;;  %v241_v40 = vld [vmem:[%s2081_s0 + $0x700] sm:$0xff]  ;;  %v1047_v42 = vpack.c.bf16 %v214_v36, %v201_v33 }
  0x18   :  { %961 = vmatprep.mubr.msk.f32.mxu0 %vm271_vm0, %v1502_v34  ;;  %962 = vmatprep.mubr.msk.f32.mxu1 %vm271_vm0, %v1502_v34  ;;  %v1013_v43 = vpack.c.bf16 %v239_v38, %v226_v37  ;;  %v225_v44 = vld [vmem:[%s2081_s0 + $0x680] sm:$0xff]  ;;  %v238_v45 = vld [vmem:[%s2081_s0 + $0x6e8] sm:$0xff]  ;;  %v227_v46 = vld [vmem:[%s2081_s0 + $0x690] sm:$0xff]  ;;  %v1049_v47 = vpack.c.bf16 %v241_v40, %v228_v39 }
  0x19   :  { %v240_v48 = vld [vmem:[%s2081_s0 + $0x6f8] sm:$0xff]  ;;  %v22_v49 = vld [vmem:[%s2081_s0 + $0x28] sm:$0xff]  ;;  %v35_v50 = vld [vmem:[%s2081_s0 + $0x90] sm:$0xff]  ;;  %v1015_v54 = vpack.c.bf16 %v238_v45, %v225_v44 }
  0x1a   :  { %1004 = vmatpush1.bf16.msra.mxu0 %v1003_v14  ;;  %1040 = vmatpush1.bf16.msra.mxu1 %v1039_v15  ;;  %v24_v52 = vld [vmem:[%s2081_s0 + $0x38] sm:$0xff]  ;;  %v37_v53 = vld [vmem:[%s2081_s0 + $0xa0] sm:$0xff]  ;;  %v1051_v55 = vpack.c.bf16 %v240_v48, %v227_v46  ;;  %v1053_v56 = vpack.c.bf16 %v35_v50, %v22_v49  ;;  %v34_v59 = vld [vmem:[%s2081_s0 + $0x88] sm:$0xff] }
  0x1b   :  { %1006 = vmatprep.subr.bf16.mxu0 %v1005_v16  ;;  %1042 = vmatprep.subr.bf16.mxu1 %v1041_v21  ;;  %v21_v57 = vld [vmem:[%s2081_s0 + $0x20] sm:$0xff]  ;;  %v23_v60 = vld [vmem:[%s2081_s0 + $0x30] sm:$0xff]  ;;  %v1089_v61 = vpack.c.bf16 %v37_v53, %v24_v52  ;;  %v36_v62 = vld [vmem:[%s2081_s0 + $0x98] sm:$0xff] }
  0x1c   :  { %v48_v63 = vld [vmem:[%s2081_s0 + $0xf8] sm:$0xff]  ;;  %v61_v0 = vld [vmem:[%s2081_s0 + $0x160] sm:$0xff]  ;;  %v50_v2 = vld [vmem:[%s2081_s0 + $0x108] sm:$0xff]  ;;  %v1055_v4 = vpack.c.bf16 %v34_v59, %v21_v57  ;;  %v1091_v5 = vpack.c.bf16 %v36_v62, %v23_v60 }
  0x1d   :  { %v63_v3 = vld [vmem:[%s2081_s0 + $0x170] sm:$0xff]  ;;  %v1057_v6 = vpack.c.bf16 %v61_v0, %v48_v63  ;;  %v60_v9 = vld [vmem:[%s2081_s0 + $0x158] sm:$0xff]  ;;  %v49_v10 = vld [vmem:[%s2081_s0 + $0x100] sm:$0xff] }
  0x1e   :  { %1008 = vmatpush1.bf16.msra.mxu0 %v1007_v27  ;;  %1044 = vmatpush1.bf16.msra.mxu1 %v1043_v29  ;;  %v47_v8 = vld [vmem:[%s2081_s0 + $0xf0] sm:$0xff]  ;;  %v1093_v11 = vpack.c.bf16 %v63_v3, %v50_v2  ;;  %v62_v12 = vld [vmem:[%s2081_s0 + $0x168] sm:$0xff]  ;;  %v76_v15 = vld [vmem:[%s2081_s0 + $0x1d8] sm:$0xff] }
  0x1f   :  { %1010 = vmatprep.subr.bf16.mxu0 %v1009_v30  ;;  %1046 = vmatprep.subr.bf16.mxu1 %v1045_v35  ;;  %v74_v13 = vld [vmem:[%s2081_s0 + $0x1c8] sm:$0xff]  ;;  %v87_v14 = vld [vmem:[%s2081_s0 + $0x230] sm:$0xff]  ;;  %v89_v16 = vld [vmem:[%s2081_s0 + $0x240] sm:$0xff]  ;;  %v1059_v17 = vpack.c.bf16 %v60_v9, %v47_v8  ;;  %v1095_v18 = vpack.c.bf16 %v62_v12, %v49_v10 }
  0x20   :  { %v1061_v19 = vpack.c.bf16 %v87_v14, %v74_v13  ;;  %v73_v20 = vld [vmem:[%s2081_s0 + $0x1c0] sm:$0xff]  ;;  %v86_v21 = vld [vmem:[%s2081_s0 + $0x228] sm:$0xff]  ;;  %v75_v22 = vld [vmem:[%s2081_s0 + $0x1d0] sm:$0xff]  ;;  %v1097_v23 = vpack.c.bf16 %v89_v16, %v76_v15 }
  0x21   :  { %v88_v24 = vld [vmem:[%s2081_s0 + $0x238] sm:$0xff]  ;;  %v113_v26 = vld [vmem:[%s2081_s0 + $0x300] sm:$0xff]  ;;  %v102_v27 = vld [vmem:[%s2081_s0 + $0x2a8] sm:$0xff]  ;;  %v1063_v29 = vpack.c.bf16 %v86_v21, %v73_v20 }
  0x22   :  { %1012 = vmatpush1.bf16.msra.mxu0 %v1011_v41  ;;  %1048 = vmatpush1.bf16.msra.mxu1 %v1047_v42  ;;  %v100_v25 = vld [vmem:[%s2081_s0 + $0x298] sm:$0xff]  ;;  %v115_v28 = vld [vmem:[%s2081_s0 + $0x310] sm:$0xff]  ;;  %v1099_v30 = vpack.c.bf16 %v88_v24, %v75_v22  ;;  %v101_v35 = vld [vmem:[%s2081_s0 + $0x2a0] sm:$0xff] }
  0x23   :  { %1014 = vmatprep.subr.bf16.mxu0 %v1013_v43  ;;  %1050 = vmatprep.subr.bf16.mxu1 %v1049_v47  ;;  %v1065_v31 = vpack.c.bf16 %v113_v26, %v100_v25  ;;  %v99_v32 = vld [vmem:[%s2081_s0 + $0x290] sm:$0xff]  ;;  %v112_v33 = vld [vmem:[%s2081_s0 + $0x2f8] sm:$0xff]  ;;  %v1101_v36 = vpack.c.bf16 %v115_v28, %v102_v27  ;;  %v114_v37 = vld [vmem:[%s2081_s0 + $0x308] sm:$0xff] }
  0x24   :  { %v126_v38 = vld [vmem:[%s2081_s0 + $0x368] sm:$0xff]  ;;  %v139_v39 = vld [vmem:[%s2081_s0 + $0x3d0] sm:$0xff]  ;;  %v128_v40 = vld [vmem:[%s2081_s0 + $0x378] sm:$0xff]  ;;  %v1067_v42 = vpack.c.bf16 %v112_v33, %v99_v32  ;;  %v1103_v43 = vpack.c.bf16 %v114_v37, %v101_v35 }
  0x25   :  { %v141_v41 = vld [vmem:[%s2081_s0 + $0x3e0] sm:$0xff]  ;;  %v1069_v44 = vpack.c.bf16 %v139_v39, %v126_v38  ;;  %v138_v46 = vld [vmem:[%s2081_s0 + $0x3c8] sm:$0xff]  ;;  %v127_v47 = vld [vmem:[%s2081_s0 + $0x370] sm:$0xff] }
  0x26   :  { %1016 = vmatpush1.bf16.msra.mxu0 %v1015_v54  ;;  %1052 = vmatpush1.bf16.msra.mxu1 %v1051_v55  ;;  %v125_v45 = vld [vmem:[%s2081_s0 + $0x360] sm:$0xff]  ;;  %v1105_v48 = vpack.c.bf16 %v141_v41, %v128_v40  ;;  %v140_v49 = vld [vmem:[%s2081_s0 + $0x3d8] sm:$0xff]  ;;  %v154_v53 = vld [vmem:[%s2081_s0 + $0x448] sm:$0xff] }
  0x27   :  { %1054 = vmatprep.subr.bf16.mxu0 %v1053_v56  ;;  %1090 = vmatprep.subr.bf16.mxu1 %v1089_v61  ;;  %v152_v50 = vld [vmem:[%s2081_s0 + $0x438] sm:$0xff]  ;;  %v165_v52 = vld [vmem:[%s2081_s0 + $0x4a0] sm:$0xff]  ;;  %v167_v54 = vld [vmem:[%s2081_s0 + $0x4b0] sm:$0xff]  ;;  %v1071_v55 = vpack.c.bf16 %v138_v46, %v125_v45  ;;  %v1107_v56 = vpack.c.bf16 %v140_v49, %v127_v47 }
  0x28   :  { %v1073_v57 = vpack.c.bf16 %v165_v52, %v152_v50  ;;  %v151_v59 = vld [vmem:[%s2081_s0 + $0x430] sm:$0xff]  ;;  %v164_v60 = vld [vmem:[%s2081_s0 + $0x498] sm:$0xff]  ;;  %v153_v61 = vld [vmem:[%s2081_s0 + $0x440] sm:$0xff]  ;;  %v1109_v62 = vpack.c.bf16 %v167_v54, %v154_v53 }
  0x29   :  { %339 = vmatmul.mubr.f32.vlgmr.msra.gmra.mrb[0].mxu0 %v1568_v1  ;;  %410 = vmatmul.mubr.f32.vlgmr.msra.gmra.mrb[0].mxu1 %v1568_v1  ;;  %v166_v63 = vld [vmem:[%s2081_s0 + $0x4a8] sm:$0xff]  ;;  %v191_v2 = vld [vmem:[%s2081_s0 + $0x570] sm:$0xff]  ;;  %v180_v3 = vld [vmem:[%s2081_s0 + $0x518] sm:$0xff] }
  0x2a   :  { %1056 = vmatpush1.bf16.msra.mxu0 %v1055_v4  ;;  %1092 = vmatpush1.bf16.msra.mxu1 %v1091_v5  ;;  %v178_v0 = vld [vmem:[%s2081_s0 + $0x508] sm:$0xff]  ;;  %v193_v4 = vld [vmem:[%s2081_s0 + $0x580] sm:$0xff]  ;;  %v1075_v5 = vpack.c.bf16 %v164_v60, %v151_v59  ;;  %v192_v13 = vld [vmem:[%s2081_s0 + $0x578] sm:$0xff] }
  0x2b   :  { %1058 = vmatprep.subr.bf16.mxu0 %v1057_v6  ;;  %1094 = vmatprep.subr.bf16.mxu1 %v1093_v11  ;;  %v1111_v6 = vpack.c.bf16 %v166_v63, %v153_v61  ;;  %v1077_v8 = vpack.c.bf16 %v191_v2, %v178_v0  ;;  %v177_v9 = vld [vmem:[%s2081_s0 + $0x500] sm:$0xff]  ;;  %v190_v10 = vld [vmem:[%s2081_s0 + $0x568] sm:$0xff]  ;;  %v179_v11 = vld [vmem:[%s2081_s0 + $0x510] sm:$0xff]  ;;  %v1113_v12 = vpack.c.bf16 %v193_v4, %v180_v3 }
  0x2c   :  { %963 = vmatprep.mubr.msk.f32.mxu0 %vm271_vm0, %v1502_v34  ;;  %964 = vmatprep.mubr.msk.f32.mxu1 %vm271_vm0, %v1502_v34  ;;  %v204_v14 = vld [vmem:[%s2081_s0 + $0x5d8] sm:$0xff]  ;;  %v217_v15 = vld [vmem:[%s2081_s0 + $0x640] sm:$0xff]  ;;  %v206_v16 = vld [vmem:[%s2081_s0 + $0x5e8] sm:$0xff] }
  0x2d   :  { %v1081_v20 = vpack.c.bf16 %v217_v15, %v204_v14  ;;  %v203_v21 = vld [vmem:[%s2081_s0 + $0x5d0] sm:$0xff]  ;;  %v216_v22 = vld [vmem:[%s2081_s0 + $0x638] sm:$0xff]  ;;  %v218_v25 = vld [vmem:[%s2081_s0 + $0x648] sm:$0xff] }
  0x2e   :  { %1060 = vmatpush1.bf16.msra.mxu0 %v1059_v17  ;;  %1096 = vmatpush1.bf16.msra.mxu1 %v1095_v18  ;;  %v219_v17 = vld [vmem:[%s2081_s0 + $0x650] sm:$0xff]  ;;  %v1079_v18 = vpack.c.bf16 %v190_v10, %v177_v9  ;;  %v230_v26 = vld [vmem:[%s2081_s0 + $0x6a8] sm:$0xff]  ;;  %v232_v28 = vld [vmem:[%s2081_s0 + $0x6b8] sm:$0xff] }
  0x2f   :  { %1062 = vmatprep.subr.bf16.mxu0 %v1061_v19  ;;  %1098 = vmatprep.subr.bf16.mxu1 %v1097_v23  ;;  %v1115_v19 = vpack.c.bf16 %v192_v13, %v179_v11  ;;  %v205_v23 = vld [vmem:[%s2081_s0 + $0x5e0] sm:$0xff]  ;;  %v1117_v24 = vpack.c.bf16 %v219_v17, %v206_v16  ;;  %v243_v27 = vld [vmem:[%s2081_s0 + $0x710] sm:$0xff]  ;;  %v242_v35 = vld [vmem:[%s2081_s0 + $0x708] sm:$0xff] }
  0x30   :  { %v1085_v32 = vpack.c.bf16 %v243_v27, %v230_v26  ;;  %v229_v33 = vld [vmem:[%s2081_s0 + $0x6a0] sm:$0xff]  ;;  %v244_v38 = vld [vmem:[%s2081_s0 + $0x718] sm:$0xff]  ;;  %v26_v39 = vld [vmem:[%s2081_s0 + $0x48] sm:$0xff] }
  0x31   :  { %v39_v40 = vld [vmem:[%s2081_s0 + $0xb0] sm:$0xff]  ;;  %v28_v41 = vld [vmem:[%s2081_s0 + $0x58] sm:$0xff]  ;;  %v25_v46 = vld [vmem:[%s2081_s0 + $0x40] sm:$0xff] }
  0x32   :  { %1064 = vmatpush1.bf16.msra.mxu0 %v1063_v29  ;;  %1100 = vmatpush1.bf16.msra.mxu1 %v1099_v30  ;;  %v245_v29 = vld [vmem:[%s2081_s0 + $0x720] sm:$0xff]  ;;  %v1083_v30 = vpack.c.bf16 %v216_v22, %v203_v21  ;;  %v1125_v45 = vpack.c.bf16 %v39_v40, %v26_v39  ;;  %v38_v47 = vld [vmem:[%s2081_s0 + $0xa8] sm:$0xff]  ;;  %v40_v50 = vld [vmem:[%s2081_s0 + $0xb8] sm:$0xff] }
  0x33   :  { %1066 = vmatprep.subr.bf16.mxu0 %v1065_v31  ;;  %1102 = vmatprep.subr.bf16.mxu1 %v1101_v36  ;;  %v1119_v31 = vpack.c.bf16 %v218_v25, %v205_v23  ;;  %v231_v36 = vld [vmem:[%s2081_s0 + $0x6b0] sm:$0xff]  ;;  %v1121_v37 = vpack.c.bf16 %v245_v29, %v232_v28  ;;  %v52_v52 = vld [vmem:[%s2081_s0 + $0x118] sm:$0xff]  ;;  %v65_v53 = vld [vmem:[%s2081_s0 + $0x180] sm:$0xff] }
  0x34   :  { %v54_v54 = vld [vmem:[%s2081_s0 + $0x128] sm:$0xff]  ;;  %v1129_v60 = vpack.c.bf16 %v65_v53, %v52_v52  ;;  %v64_v61 = vld [vmem:[%s2081_s0 + $0x178] sm:$0xff]  ;;  %v91_v3 = vld [vmem:[%s2081_s0 + $0x250] sm:$0xff] }
  0x35   :  { %v66_v63 = vld [vmem:[%s2081_s0 + $0x188] sm:$0xff]  ;;  %v251_v4 = vld [vmem:[#allocation2] sm:$0x1]  ;;  %v79_v13 = vld [vmem:[%s2081_s0 + $0x1f0] sm:$0xff] }
  0x36   :  { %1068 = vmatpush1.bf16.msra.mxu0 %v1067_v42  ;;  %1104 = vmatpush1.bf16.msra.mxu1 %v1103_v43  ;;  %v41_v42 = vld [vmem:[%s2081_s0 + $0xc0] sm:$0xff]  ;;  %v1087_v43 = vpack.c.bf16 %v242_v35, %v229_v33  ;;  %v78_v2 = vld [vmem:[%s2081_s0 + $0x1e8] sm:$0xff]  ;;  %v92_v15 = vld [vmem:[%s2081_s0 + $0x258] sm:$0xff] }
  0x37   :  { %1070 = vmatprep.subr.bf16.mxu0 %v1069_v44  ;;  %1106 = vmatprep.subr.bf16.mxu1 %v1105_v48  ;;  %v1123_v44 = vpack.c.bf16 %v244_v38, %v231_v36  ;;  %v27_v48 = vld [vmem:[%s2081_s0 + $0x50] sm:$0xff]  ;;  %v1161_v49 = vpack.c.bf16 %v41_v42, %v28_v41  ;;  %v1133_v10 = vpack.c.bf16 %v91_v3, %v78_v2  ;;  %v77_v11 = vld [vmem:[%s2081_s0 + $0x1e0] sm:$0xff]  ;;  %v104_v16 = vld [vmem:[%s2081_s0 + $0x2b8] sm:$0xff] }
  0x38   :  { %v1163_v59 = vpack.c.bf16 %v40_v50, %v27_v48  ;;  %254 = vperm.xlu0 %1227, %v251_v4   ;;  %v117_v17 = vld [vmem:[%s2081_s0 + $0x320] sm:$0xff]  ;;  %v1171_v21 = vpack.c.bf16 %v92_v15, %v79_v13  ;;  %v103_v23 = vld [vmem:[%s2081_s0 + $0x2b0] sm:$0xff]  ;;  %v118_v27 = vld [vmem:[%s2081_s0 + $0x328] sm:$0xff] }
  0x39   :  { %v1137_v22 = vpack.c.bf16 %v117_v17, %v104_v16  ;;  %v105_v25 = vld [vmem:[%s2081_s0 + $0x2c0] sm:$0xff]  ;;  %v130_v28 = vld [vmem:[%s2081_s0 + $0x388] sm:$0xff]  ;;  %v143_v29 = vld [vmem:[%s2081_s0 + $0x3f0] sm:$0xff] }
  0x3a   :  { %1072 = vmatpush1.bf16.msra.mxu0 %v1071_v55  ;;  %1108 = vmatpush1.bf16.msra.mxu1 %v1107_v56  ;;  %v67_v55 = vld [vmem:[%s2081_s0 + $0x190] sm:$0xff]  ;;  %v1127_v56 = vpack.c.bf16 %v38_v47, %v25_v46  ;;  %v1175_v33 = vpack.c.bf16 %v118_v27, %v105_v25  ;;  %v1141_v35 = vpack.c.bf16 %v143_v29, %v130_v28  ;;  %v129_v36 = vld [vmem:[%s2081_s0 + $0x380] sm:$0xff]  ;;  %v144_v40 = vld [vmem:[%s2081_s0 + $0x3f8] sm:$0xff] }
  0x3b   :  { %1074 = vmatprep.subr.bf16.mxu0 %v1073_v57  ;;  %1110 = vmatprep.subr.bf16.mxu1 %v1109_v62  ;;  %v51_v57 = vld [vmem:[%s2081_s0 + $0x110] sm:$0xff]  ;;  %v53_v62 = vld [vmem:[%s2081_s0 + $0x120] sm:$0xff]  ;;  %v1165_v0 = vpack.c.bf16 %v67_v55, %v54_v54  ;;  %v156_v41 = vld [vmem:[%s2081_s0 + $0x458] sm:$0xff] }
  0x3c   :  { %v1167_v9 = vpack.c.bf16 %v66_v63, %v53_v62  ;;  %v131_v38 = vld [vmem:[%s2081_s0 + $0x390] sm:$0xff]  ;;  %v169_v42 = vld [vmem:[%s2081_s0 + $0x4c0] sm:$0xff]  ;;  %v170_v53 = vld [vmem:[%s2081_s0 + $0x4c8] sm:$0xff] }
  0x3d   :  { %v1179_v46 = vpack.c.bf16 %v144_v40, %v131_v38  ;;  %v1145_v47 = vpack.c.bf16 %v169_v42, %v156_v41  ;;  %v155_v48 = vld [vmem:[%s2081_s0 + $0x450] sm:$0xff]  ;;  %v157_v50 = vld [vmem:[%s2081_s0 + $0x460] sm:$0xff]  ;;  %v182_v54 = vld [vmem:[%s2081_s0 + $0x528] sm:$0xff] }
  0x3e   :  { %1076 = vmatpush1.bf16.msra.mxu0 %v1075_v5  ;;  %1112 = vmatpush1.bf16.msra.mxu1 %v1111_v6  ;;  %v80_v5 = vld [vmem:[%s2081_s0 + $0x1f8] sm:$0xff]  ;;  %v93_v6 = vld [vmem:[%s2081_s0 + $0x260] sm:$0xff]  ;;  %v195_v55 = vld [vmem:[%s2081_s0 + $0x590] sm:$0xff] }
  0x3f   :  { %1078 = vmatprep.subr.bf16.mxu0 %v1077_v8  ;;  %1114 = vmatprep.subr.bf16.mxu1 %v1113_v12  ;;  %v1131_v8 = vpack.c.bf16 %v64_v61, %v51_v57  ;;  %v90_v12 = vld [vmem:[%s2081_s0 + $0x248] sm:$0xff]  ;;  %v1169_v14 = vpack.c.bf16 %v93_v6, %v80_v5  ;;  %v197_v57 = vld [vmem:[%s2081_s0 + $0x5a0] sm:$0xff]  ;;  %v1149_v61 = vpack.c.bf16 %v195_v55, %v182_v54  ;;  %v196_v3 = vld [vmem:[%s2081_s0 + $0x598] sm:$0xff] }
  0x40   :  { %v181_v62 = vld [vmem:[%s2081_s0 + $0x520] sm:$0xff]  ;;  %v194_v63 = vld [vmem:[%s2081_s0 + $0x588] sm:$0xff]  ;;  %v208_v4 = vld [vmem:[%s2081_s0 + $0x5f8] sm:$0xff] }
  0x41   :  { %v221_v5 = vld [vmem:[%s2081_s0 + $0x660] sm:$0xff]  ;;  %v210_v6 = vld [vmem:[%s2081_s0 + $0x608] sm:$0xff]  ;;  %v220_v13 = vld [vmem:[%s2081_s0 + $0x658] sm:$0xff] }
  0x42   :  { %1080 = vmatpush1.bf16.msra.mxu0 %v1079_v18  ;;  %1116 = vmatpush1.bf16.msra.mxu1 %v1115_v19  ;;  %v106_v18 = vld [vmem:[%s2081_s0 + $0x2c8] sm:$0xff]  ;;  %v119_v19 = vld [vmem:[%s2081_s0 + $0x330] sm:$0xff]  ;;  %v248_v28 = vld [vmem:[%s2081_s0 + $0x738] sm:$0xff] }
  0x43   :  { %1082 = vmatprep.subr.bf16.mxu0 %v1081_v20  ;;  %1118 = vmatprep.subr.bf16.mxu1 %v1117_v24  ;;  %v1135_v20 = vpack.c.bf16 %v90_v12, %v77_v11  ;;  %v116_v24 = vld [vmem:[%s2081_s0 + $0x318] sm:$0xff]  ;;  %v1173_v26 = vpack.c.bf16 %v119_v19, %v106_v18  ;;  %v1153_v11 = vpack.c.bf16 %v221_v5, %v208_v4  ;;  %v207_v12 = vld [vmem:[%s2081_s0 + $0x5f0] sm:$0xff]  ;;  %v222_v16 = vld [vmem:[%s2081_s0 + $0x668] sm:$0xff] }
  0x44   :  { %v234_v17 = vld [vmem:[%s2081_s0 + $0x6c8] sm:$0xff]  ;;  %v247_v18 = vld [vmem:[%s2081_s0 + $0x730] sm:$0xff]  ;;  %v236_v19 = vld [vmem:[%s2081_s0 + $0x6d8] sm:$0xff] }
  0x45   :  { %v246_v25 = vld [vmem:[%s2081_s0 + $0x728] sm:$0xff]  ;;  %v235_v27 = vld [vmem:[%s2081_s0 + $0x6d0] sm:$0xff]  ;;  %v224_v55 = vld [vmem:[%s2081_s0 + $0x678] sm:$0xff] }
  0x46   :  { %1084 = vmatpush1.bf16.msra.mxu0 %v1083_v30  ;;  %1120 = vmatpush1.bf16.msra.mxu1 %v1119_v31  ;;  %v132_v30 = vld [vmem:[%s2081_s0 + $0x398] sm:$0xff]  ;;  %v145_v31 = vld [vmem:[%s2081_s0 + $0x400] sm:$0xff]  ;;  %v94_v40 = vld [vmem:[%s2081_s0 + $0x268] sm:$0xff] }
  0x47   :  { %1086 = vmatprep.subr.bf16.mxu0 %v1085_v32  ;;  %1122 = vmatprep.subr.bf16.mxu1 %v1121_v37  ;;  %v1139_v32 = vpack.c.bf16 %v116_v24, %v103_v23  ;;  %v142_v37 = vld [vmem:[%s2081_s0 + $0x3e8] sm:$0xff]  ;;  %v1177_v39 = vpack.c.bf16 %v145_v31, %v132_v30  ;;  %v1157_v23 = vpack.c.bf16 %v247_v18, %v234_v17  ;;  %v233_v24 = vld [vmem:[%s2081_s0 + $0x6c0] sm:$0xff]  ;;  %v107_v42 = vld [vmem:[%s2081_s0 + $0x2d0] sm:$0xff] }
  0x48   :  { %v1159_v29 = vpack.c.bf16 %v246_v25, %v233_v24  ;;  %v1195_v30 = vpack.c.bf16 %v248_v28, %v235_v27  ;;  %v29_v31 = vld [vmem:[%s2081_s0 + $0x60] sm:$0xff]  ;;  %v211_v54 = vld [vmem:[%s2081_s0 + $0x610] sm:$0xff] }
  0x4a   :  { %1088 = vmatpush1.bf16.msra.mxu0 %v1087_v43  ;;  %1124 = vmatpush1.bf16.msra.mxu1 %v1123_v44  ;;  %v158_v43 = vld [vmem:[%s2081_s0 + $0x468] sm:$0xff]  ;;  %v171_v44 = vld [vmem:[%s2081_s0 + $0x4d0] sm:$0xff] }
  0x4b   :  { %1126 = vmatprep.subr.bf16.mxu0 %v1125_v45  ;;  %1162 = vmatprep.subr.bf16.mxu1 %v1161_v49  ;;  %v1143_v45 = vpack.c.bf16 %v142_v37, %v129_v36  ;;  %v168_v49 = vld [vmem:[%s2081_s0 + $0x4b8] sm:$0xff]  ;;  %v1181_v52 = vpack.c.bf16 %v171_v44, %v158_v43  ;;  %v55_v36 = vld [vmem:[%s2081_s0 + $0x130] sm:$0xff] }
  0x4c   :  { %v68_v37 = vld [vmem:[%s2081_s0 + $0x198] sm:$0xff] }
  0x4d   :  { %481 = vmatmul.mubr.f32.vlgmr.msra.gmra.mrb[2].mxu0 %v1568_v1  ;;  %552 = vmatmul.mubr.f32.vlgmr.msra.gmra.mrb[2].mxu1 %v1568_v1  ;;  %v1201_v38 = vpack.c.bf16 %v68_v37, %v55_v36  ;;  %v120_v43 = vld [vmem:[%s2081_s0 + $0x338] sm:$0xff] }
  0x4e   :  { %1128 = vmatpush1.bf16.msra.mxu0 %v1127_v56  ;;  %1164 = vmatpush1.bf16.msra.mxu1 %v1163_v59  ;;  %v184_v56 = vld [vmem:[%s2081_s0 + $0x538] sm:$0xff]  ;;  %v1147_v59 = vpack.c.bf16 %v168_v49, %v155_v48  ;;  %v1207_v44 = vpack.c.bf16 %v120_v43, %v107_v42 }
  0x4f   :  { %1130 = vmatprep.subr.bf16.mxu0 %v1129_v60  ;;  %1166 = vmatprep.subr.bf16.mxu1 %v1165_v0  ;;  %v1183_v60 = vpack.c.bf16 %v170_v53, %v157_v50  ;;  %v183_v0 = vld [vmem:[%s2081_s0 + $0x530] sm:$0xff]  ;;  %v1185_v2 = vpack.c.bf16 %v197_v57, %v184_v56  ;;  %v172_v48 = vld [vmem:[%s2081_s0 + $0x4d8] sm:$0xff]  ;;  %v185_v50 = vld [vmem:[%s2081_s0 + $0x540] sm:$0xff]  ;;  %v1219_v56 = vpack.c.bf16 %v224_v55, %v211_v54 }
  0x50   :  { %965 = vmatprep.mubr.msk.f32.mxu0 %vm271_vm0, %v1502_v34  ;;  %966 = vmatprep.mubr.msk.f32.mxu1 %vm271_vm0, %v1502_v34  ;;  %v237_v57 = vld [vmem:[%s2081_s0 + $0x6e0] sm:$0xff] }
  0x52   :  { %1132 = vmatpush1.bf16.msra.mxu0 %v1131_v8  ;;  %1168 = vmatpush1.bf16.msra.mxu1 %v1167_v9  ;;  %v223_v8 = vld [vmem:[%s2081_s0 + $0x670] sm:$0xff]  ;;  %v1151_v9 = vpack.c.bf16 %v194_v63, %v181_v62 }
  0x53   :  { %1134 = vmatprep.subr.bf16.mxu0 %v1133_v10  ;;  %1170 = vmatprep.subr.bf16.mxu1 %v1169_v14  ;;  %v1187_v10 = vpack.c.bf16 %v196_v3, %v183_v0  ;;  %v209_v14 = vld [vmem:[%s2081_s0 + $0x600] sm:$0xff]  ;;  %v1189_v15 = vpack.c.bf16 %v223_v8, %v210_v6 }
  0x56   :  { %1136 = vmatpush1.bf16.msra.mxu0 %v1135_v20  ;;  %1172 = vmatpush1.bf16.msra.mxu1 %v1171_v21  ;;  %v249_v20 = vld [vmem:[%s2081_s0 + $0x740] sm:$0xff]  ;;  %v1155_v21 = vpack.c.bf16 %v220_v13, %v207_v12 }
  0x57   :  { %1138 = vmatprep.subr.bf16.mxu0 %v1137_v22  ;;  %1174 = vmatprep.subr.bf16.mxu1 %v1173_v26  ;;  %v1191_v22 = vpack.c.bf16 %v222_v16, %v209_v14  ;;  %v1193_v26 = vpack.c.bf16 %v249_v20, %v236_v19  ;;  %v1282_v19 = vmov 1966171168  }
  0x58   :  { %v866_v20 = vunpack.c.l.s4 %v1282_v19 }
  0x5a   :  { %1140 = vmatpush1.bf16.msra.mxu0 %v1139_v32  ;;  %1176 = vmatpush1.bf16.msra.mxu1 %v1175_v33  ;;  %v42_v32 = vld [vmem:[%s2081_s0 + $0xc8] sm:$0xff] }
  0x5b   :  { %1142 = vmatprep.subr.bf16.mxu0 %v1141_v35  ;;  %1178 = vmatprep.subr.bf16.mxu1 %v1177_v39  ;;  %v1198_v33 = vpack.c.bf16 %v42_v32, %v29_v31  ;;  %v1281_v35 = vmov 0.0|0.0   ;;  %v81_v39 = vld [vmem:[%s2081_s0 + $0x200] sm:$0xff] }
  0x5c   :  { %v1204_v41 = vpack.c.bf16 %v94_v40, %v81_v39 }
  0x5e   :  { %1144 = vmatpush1.bf16.msra.mxu0 %v1143_v45  ;;  %1180 = vmatpush1.bf16.msra.mxu1 %v1179_v46  ;;  %v133_v45 = vld [vmem:[%s2081_s0 + $0x3a0] sm:$0xff] }
  0x5f   :  { %1146 = vmatprep.subr.bf16.mxu0 %v1145_v47  ;;  %1182 = vmatprep.subr.bf16.mxu1 %v1181_v52  ;;  %v159_v47 = vld [vmem:[%s2081_s0 + $0x470] sm:$0xff]  ;;  %v198_v52 = vld [vmem:[%s2081_s0 + $0x5a8] sm:$0xff] }
  0x60   :  { %v1213_v49 = vpack.c.bf16 %v172_v48, %v159_v47  ;;  %v1216_v53 = vpack.c.bf16 %v198_v52, %v185_v50 }
  0x62   :  { %1148 = vmatpush1.bf16.msra.mxu0 %v1147_v59  ;;  %1184 = vmatpush1.bf16.msra.mxu1 %v1183_v60  ;;  %v250_v59 = vld [vmem:[%s2081_s0 + $0x748] sm:$0xff] }
  0x63   :  { %1150 = vmatprep.subr.bf16.mxu0 %v1149_v61  ;;  %1186 = vmatprep.subr.bf16.mxu1 %v1185_v2  ;;  %v1222_v60 = vpack.c.bf16 %v250_v59, %v237_v57 }
  0x66   :  { %1152 = vmatpush1.bf16.msra.mxu0 %v1151_v9  ;;  %1188 = vmatpush1.bf16.msra.mxu1 %v1187_v10 }
  0x67   :  { %1154 = vmatprep.subr.bf16.mxu0 %v1153_v11  ;;  %1190 = vmatprep.subr.bf16.mxu1 %v1189_v15 }
  0x6a   :  { %1156 = vmatpush1.bf16.msra.mxu0 %v1155_v21  ;;  %1192 = vmatpush1.bf16.msra.mxu1 %v1191_v22  ;;  %v867_v21 = vunpack.c.0.s8 %v866_v20 }
  0x6b   :  { %1158 = vmatprep.subr.bf16.mxu0 %v1157_v23  ;;  %1194 = vmatprep.subr.bf16.mxu1 %v1193_v26 }
  0x6c   :  { %v2052_v24 = vsub.s32 %v867_v21, %v1448_v7 }
  0x6e   :  { %1160 = vmatpush1.bf16.msra.mxu0 %v1159_v29  ;;  %1196 = vmatpush1.bf16.msra.mxu1 %v1195_v30 }
  0x6f   :  { %1197 = vmatprep.subr.bf16.mxu0 %v1281_v35 }
  0x71   :  { %623 = vmatmul.mubr.f32.vlgmr.msra.gmra.mrb[4].mxu0 %v1568_v1  ;;  %694 = vmatmul.mubr.f32.vlgmr.msra.gmra.mrb[4].mxu1 %v1568_v1 }
  0x72   :  { %1199 = vmatpush1.bf16.msra.mxu0 %v1198_v33  ;;  %967 = vmatprep.mubr.msk.f32.mxu0 %vm271_vm0, %v1502_v34  ;;  %v146_v34 = vld [vmem:[%s2081_s0 + $0x408] sm:$0xff] }
  0x73   :  { %1200 = vmatprep.subr.bf16.mxu0 %v1281_v35  ;;  %v1210_v46 = vpack.c.bf16 %v146_v34, %v133_v45 }
  0x76   :  { %1202 = vmatpush1.bf16.msra.mxu0 %v1201_v38 }
  0x77   :  { %1203 = vmatprep.subr.bf16.mxu0 %v1281_v35 }
  0x7a   :  { %1205 = vmatpush1.bf16.msra.mxu0 %v1204_v41 }
  0x7b   :  { %1206 = vmatprep.subr.bf16.mxu0 %v1281_v35 }
  0x7e   :  { %1208 = vmatpush1.bf16.msra.mxu0 %v1207_v44 }
  0x7f   :  { %1209 = vmatprep.subr.bf16.mxu0 %v1281_v35 }
  0x82   :  { %1211 = vmatpush1.bf16.msra.mxu0 %v1210_v46 }
  0x83   :  { %1212 = vmatprep.subr.bf16.mxu0 %v1281_v35 }
  0x86   :  { %1214 = vmatpush1.bf16.msra.mxu0 %v1213_v49 }
  0x87   :  { %1215 = vmatprep.subr.bf16.mxu0 %v1281_v35 }
  0x8a   :  { %1217 = vmatpush1.bf16.msra.mxu0 %v1216_v53 }
  0x8b   :  { %1218 = vmatprep.subr.bf16.mxu0 %v1281_v35 }
  0x8e   :  { %1220 = vmatpush1.bf16.msra.mxu0 %v1219_v56 }
  0x8f   :  { %1221 = vmatprep.subr.bf16.mxu0 %v1281_v35 }
  0x92   :  { %1223 = vmatpush1.bf16.msra.mxu0 %v1222_v60 }
  0x95   :  { %765 = vmatmul.mubr.f32.vlgmr.msra.gmra.mrb[6].mxu0 %v1568_v1 }
  0xb7   :  { %v255_v61 = vpop.permute.xlu0 %254 }
  0xb8   :  { %v2045_v62 = vrot.slane %v255_v61, %v259_v51 }
  0xfc   :  { %v340_v63 = vpop.f32.mrb[0].mxu0  ;;  %v411_v2 = vpop.f32.mrb[0].mxu1 }
  0xfd   :  { %v341_v0 = vadd.f32 %v340_v63, %v2045_v62  ;;  %v342_v3 = vpop.f32.mrb[1].mxu0  ;;  %v412_v4 = vadd.f32 %v411_v2, %v2045_v62  ;;  %v413_v6 = vpop.f32.mrb[1].mxu1 }
  0xfe   :  { %v343_v5 = vadd.f32 %v342_v3, %v2045_v62  ;;  %v414_v9 = vadd.f32 %v413_v6, %v2045_v62 }
  0xff   :  { %v968_v8 = vmul.f32 -1.442695, %v341_v0  ;;  %v970_v10 = vmul.f32 -1.442695, %v412_v4 }
 0x100   :  { %v969_v1 = vmul.f32 -1.442695, %v343_v5  ;;  %v971_v11 = vmul.f32 -1.442695, %v414_v9 }
 0x101   :  { %1228 = vpow2.f32 %v968_v8 }
 0x102   :  { %1230 = vpow2.f32 %v970_v10 }
 0x103   :  { %1232 = vpow2.f32 %v969_v1 }
 0x104   :  { %1234 = vpow2.f32 %v971_v11 }
 0x10b   :  { %v1229_v51 = vpop.eup %1228 }
 0x10c   :  { %v1231_v12 = vpop.eup %1230  ;;  %v809_v13 = vadd.f32 1.0, %v1229_v51 }
 0x10d   :  { %v1233_v14 = vpop.eup %1232  ;;  %v811_v15 = vadd.f32 1.0, %v1231_v12 }
 0x10e   :  { %v1235_v16 = vpop.eup %1234  ;;  %1236 = vrcp.f32 %v809_v13  ;;  %v810_v17 = vadd.f32 1.0, %v1233_v14 }
 0x10f   :  { %1238 = vrcp.f32 %v811_v15  ;;  %v812_v18 = vadd.f32 1.0, %v1235_v16 }
 0x110   :  { %1240 = vrcp.f32 %v810_v17 }
 0x111   :  { %1242 = vrcp.f32 %v812_v18 }
 0x118   :  { %v1237_v22 = vpop.eup %1236 }
 0x119   :  { %v1239_v23 = vpop.eup %1238 }
 0x11a   :  { %v1241_v25 = vpop.eup %1240 }
 0x11b   :  { %v1243_v26 = vpop.eup %1242  ;;  %v861_v27 = vcombine.low %v1237_v22, %v1241_v25 }
 0x11c   :  { %v862_v28 = vcombine.low %v1239_v23, %v1243_v26 }
 0x11d   :  { %v871_v29 = vrot.slane %v861_v27, %v2052_v24 }
 0x11e   :  { %v878_v30 = vrot.slane %v862_v28, %v2052_v24 }
 0x120   :  { %v893_v31 = vcombine.low %v871_v29, %v878_v30  ;;  %v482_v32 = vpop.f32.mrb[2].mxu0  ;;  %v553_v35 = vpop.f32.mrb[2].mxu1 }
 0x121   :  { %v483_v33 = vadd.f32 %v482_v32, %v2045_v62  ;;  %v484_v36 = vpop.f32.mrb[3].mxu0  ;;  %v554_v37 = vadd.f32 %v553_v35, %v2045_v62  ;;  %v555_v7 = vpop.f32.mrb[3].mxu1 }
 0x122   :  { %v485_v38 = vadd.f32 %v484_v36, %v2045_v62  ;;  %v556_v40 = vadd.f32 %v555_v7, %v2045_v62  ;;  %v901_v4 = vrot.slane %v893_v31, %v2052_v24 }
 0x123   :  { %v972_v39 = vmul.f32 -1.442695, %v483_v33  ;;  %v974_v41 = vmul.f32 -1.442695, %v554_v37 }
 0x124   :  { %v973_v42 = vmul.f32 -1.442695, %v485_v38  ;;  %v975_v43 = vmul.f32 -1.442695, %v556_v40 }
 0x125   :  { %1244 = vpow2.f32 %v972_v39 }
 0x126   :  { %1246 = vpow2.f32 %v974_v41 }
 0x127   :  { %1248 = vpow2.f32 %v973_v42 }
 0x128   :  { %1250 = vpow2.f32 %v975_v43 }
 0x12f   :  { %v1245_v44 = vpop.eup %1244 }
 0x130   :  { %v1247_v45 = vpop.eup %1246  ;;  %v813_v34 = vadd.f32 1.0, %v1245_v44 }
 0x131   :  { %v1249_v46 = vpop.eup %1248  ;;  %v815_v47 = vadd.f32 1.0, %v1247_v45 }
 0x132   :  { %v1251_v48 = vpop.eup %1250  ;;  %1252 = vrcp.f32 %v813_v34  ;;  %v814_v49 = vadd.f32 1.0, %v1249_v46 }
 0x133   :  { %1254 = vrcp.f32 %v815_v47  ;;  %v816_v50 = vadd.f32 1.0, %v1251_v48 }
 0x134   :  { %1256 = vrcp.f32 %v814_v49 }
 0x135   :  { %1258 = vrcp.f32 %v816_v50 }
 0x13c   :  { %v1253_v52 = vpop.eup %1252 }
 0x13d   :  { %v1255_v53 = vpop.eup %1254 }
 0x13e   :  { %v1257_v54 = vpop.eup %1256 }
 0x13f   :  { %v1259_v55 = vpop.eup %1258  ;;  %v863_v56 = vcombine.low %v1253_v52, %v1257_v54 }
 0x140   :  { %v864_v57 = vcombine.low %v1255_v53, %v1259_v55 }
 0x141   :  { %v885_v59 = vrot.slane %v863_v56, %v2052_v24 }
 0x142   :  { %v892_v60 = vrot.slane %v864_v57, %v2052_v24 }
 0x144   :  { %v894_v61 = vcombine.low %v885_v59, %v892_v60  ;;  %v624_v63 = vpop.f32.mrb[4].mxu0  ;;  %v695_v2 = vpop.f32.mrb[4].mxu1 }
 0x145   :  { %v625_v0 = vadd.f32 %v624_v63, %v2045_v62  ;;  %v626_v3 = vpop.f32.mrb[5].mxu0  ;;  %v696_v6 = vadd.f32 %v695_v2, %v2045_v62  ;;  %v697_v9 = vpop.f32.mrb[5].mxu1 }
 0x146   :  { %v908_v5 = vrot.slane %v894_v61, %v2052_v24  ;;  %v627_v8 = vadd.f32 %v626_v3, %v2045_v62  ;;  %v698_v1 = vadd.f32 %v697_v9, %v2045_v62 }
 0x147   :  { %v976_v10 = vmul.f32 -1.442695, %v625_v0  ;;  %v978_v51 = vmul.f32 -1.442695, %v696_v6 }
 0x148   :  { %v909_v11 = vcombine.low %v901_v4, %v908_v5  ;;  %v977_v12 = vmul.f32 -1.442695, %v627_v8  ;;  %v979_v13 = vmul.f32 -1.442695, %v698_v1 }
 0x149   :  { %1260 = vpow2.f32 %v976_v10 }
 0x14a   :  { %951 = vst [vmem:[%s2084_s3] sm:$0xff] %v909_v11  ;;  %1262 = vpow2.f32 %v978_v51 }
 0x14b   :  { %1264 = vpow2.f32 %v977_v12 }
 0x14c   :  { %1266 = vpow2.f32 %v979_v13 }
 0x153   :  { %v1261_v14 = vpop.eup %1260 }
 0x154   :  { %v1263_v15 = vpop.eup %1262  ;;  %v817_v16 = vadd.f32 1.0, %v1261_v14 }
 0x155   :  { %v1265_v17 = vpop.eup %1264  ;;  %v819_v18 = vadd.f32 1.0, %v1263_v15 }
 0x156   :  { %v1267_v19 = vpop.eup %1266  ;;  %1268 = vrcp.f32 %v817_v16  ;;  %v818_v20 = vadd.f32 1.0, %v1265_v17 }
 0x157   :  { %1270 = vrcp.f32 %v819_v18  ;;  %v820_v21 = vadd.f32 1.0, %v1267_v19 }
 0x158   :  { %1272 = vrcp.f32 %v818_v20 }
 0x159   :  { %1274 = vrcp.f32 %v820_v21 }
 0x160   :  { %v1269_v22 = vpop.eup %1268 }
 0x161   :  { %v1271_v23 = vpop.eup %1270 }
 0x162   :  { %v1273_v25 = vpop.eup %1272 }
 0x163   :  { %v1275_v26 = vpop.eup %1274  ;;  %v910_v27 = vcombine.low %v1269_v22, %v1273_v25 }
 0x164   :  { %v911_v28 = vcombine.low %v1271_v23, %v1275_v26 }
 0x165   :  { %v918_v29 = vrot.slane %v910_v27, %v2052_v24 }
 0x166   :  { %v925_v30 = vrot.slane %v911_v28, %v2052_v24 }
 0x168   :  { %v933_v31 = vcombine.low %v918_v29, %v925_v30  ;;  %v766_v32 = vpop.f32.mrb[6].mxu0 }
 0x169   :  { %v767_v33 = vadd.f32 %v766_v32, %v2045_v62  ;;  %v768_v35 = vpop.f32.mrb[7].mxu0 }
 0x16a   :  { %v940_v40 = vrot.slane %v933_v31, %v2052_v24 }
 0x16b   :  { %v980_v36 = vmul.f32 -1.442695, %v767_v33 }
 0x16d   :  { %1276 = vpow2.f32 %v980_v36 }
 0x177   :  { %v1277_v37 = vpop.eup %1276 }
 0x178   :  { %v821_v38 = vadd.f32 1.0, %v1277_v37 }
 0x17a   :  { %1278 = vrcp.f32 %v821_v38 }
 0x184   :  { %v1279_v7 = vpop.eup %1278 }
 0x185   :  { %v932_v39 = vrot.slane %v1279_v7, %v2052_v24 }
 0x187   :  { %v947_v41 = vrot.slane %v932_v39, %v2052_v24 }
 0x189   :  { %v948_v42 = vcombine.low %v940_v40, %v947_v41 }
 0x18b   :  { %956 = vst.msk [vmem:[%s2084_s3 + $0x8] sm:$0x1f] %vm954_vm1, %v948_v42 }

</bundles_post_ra>
